<compile_context>
chip_gen: v5e
topology: v5e:2x2
jax: 0.10.0
libtpu: 0.0.40
codegen_flags: <defaults>
</compile_context>

<pallas_src>
import jax
import jax.numpy as jnp
from jax.experimental import pallas as pl
from jax.experimental.pallas import tpu as pltpu

# ----------------------------- configuration --------------------------------
RELATION_DIM  = 128
DIM_L1        = 256
DIM_L2        = 128
LSTM_HIDDEN   = 64            # 2 * LSTM_HIDDEN == DIM_L2 (asserted below)
MAX_CHAIN_LEN = 8
NUM_RELATIONS = 16
BERT_DIM      = 768
MARGIN        = 1.0
PAD           = 128           # lane-padded per-gate / per-direction width
BLOCK_B       = 8             # examples per grid step (one sublane tile)

assert 2 * LSTM_HIDDEN == DIM_L2


# ----------------------------- kernel ----------------------------------------
def _lstm_cell(gx, h, c, whh_ref):
    """One LSTM step on lane-padded gates.  gx: [BB,4*PAD], h/c: [BB,PAD]."""
    gates = gx + jnp.dot(h.astype(jnp.bfloat16), whh_ref[...],
                         preferred_element_type=jnp.float32)
    i = jax.nn.sigmoid(gates[:, 0 * PAD:1 * PAD])
    f = jax.nn.sigmoid(gates[:, 1 * PAD:2 * PAD])
    g = jnp.tanh(gates[:, 2 * PAD:3 * PAD])
    o = jax.nn.sigmoid(gates[:, 3 * PAD:4 * PAD])
    c_new = f * c + i * g
    h_new = o * jnp.tanh(c_new)
    return h_new, c_new


def fused_forward_kernel(idx_ref, len_ref, lab_ref, cls_ref,
                         gtab_ref, w1t_ref, b1_ref, w2t_ref,
                         whh_f_ref, whh_b_ref,
                         watt_ref, batt_ref, v_ref,
                         out_ref,
                         gates_ref):                         # VMEM scratch
    T, BB = MAX_CHAIN_LEN, BLOCK_B
    f32, bf16 = jnp.float32, jnp.bfloat16
    lengths = len_ref[...]                                   # [BB, 1] int32

    # ---- relation gather as a one-hot matmul, fused with the (pre-folded)
    #      input-to-hidden weights: gates_x = onehot @ (table @ Wih + b) ------
    lane_iota = jax.lax.broadcasted_iota(jnp.int32, (BB, NUM_RELATIONS), 1)
    onehot = jnp.concatenate(
        [(lane_iota == idx_ref[:, t:t + 1]).astype(f32) for t in range(T)],
        axis=0)                                              # [T*BB, NUM_REL]
    gates_ref[...] = jnp.dot(onehot, gtab_ref[...],
                             preferred_element_type=f32)     # [T*BB, 8*PAD]

    # ---- question head: relu(cls @ W1 + b1) @ W2 (padded output layout) -----
    h1 = jnp.maximum(
        jnp.dot(cls_ref[...].astype(bf16), w1t_ref[...],
                preferred_element_type=f32) + b1_ref[...], 0.0)
    q = jnp.dot(h1.astype(bf16), w2t_ref[...],
                preferred_element_type=f32)                  # [BB, 2*PAD]

    # ---- merged fwd/bwd BiLSTM recurrence (fully unrolled, batched) ----------
    # Padded gate/weight columns are zero, so lanes [H:PAD] of h/c stay zero.
    zeros = jnp.zeros((BB, PAD), f32)
    h_f = c_f = zeros
    h_b = c_b = zeros
    hf_seq = [None] * T
    hb_seq = [None] * T
    for s in range(T):
        tb = T - 1 - s
        gxf = gates_ref[s * BB:(s + 1) * BB, 0:4 * PAD]
        gxb = gates_ref[tb * BB:(tb + 1) * BB, 4 * PAD:8 * PAD]
        hf_new, cf_new = _lstm_cell(gxf, h_f, c_f, whh_f_ref)
        hb_new, cb_new = _lstm_cell(gxb, h_b, c_b, whh_b_ref)
        vf = lengths > s               # forward step valid
        vb = lengths > tb              # backward step valid (starts at t=L-1)
        # Masked-to-zero value is both the recurrence carry and the
        # pad_packed_sequence(padding_value=0.0) output -> no re-mask later.
        h_f = jnp.where(vf, hf_new, 0.0)
        c_f = jnp.where(vf, cf_new, 0.0)
        h_b = jnp.where(vb, hb_new, 0.0)
        c_b = jnp.where(vb, cb_new, 0.0)
        hf_seq[s] = h_f
        hb_seq[tb] = h_b

    hseq = [jnp.concatenate([hf_seq[t], hb_seq[t]], axis=1) for t in range(T)]
    hseq_flat = jnp.concatenate(hseq, axis=0)                # [T*BB, 2*PAD]

    # ---- additive attention pooling (length-masked softmax over time) -------
    u = jnp.tanh(jnp.dot(hseq_flat.astype(bf16), watt_ref[...],
                         preferred_element_type=f32) + batt_ref[...])
    scores = jnp.dot(u, v_ref[...], preferred_element_type=f32)   # [T*BB, 1]
    neg = jnp.float32(-1e30)
    m = jnp.full((BB, 1), neg, f32)
    for t in range(T):
        m = jnp.maximum(m, jnp.where(lengths > t,
                                     scores[t * BB:(t + 1) * BB, :], neg))
    e_seq = []
    denom = jnp.zeros((BB, 1), f32)
    for t in range(T):
        e_t = jnp.where(lengths > t,
                        jnp.exp(scores[t * BB:(t + 1) * BB, :] - m), 0.0)
        e_seq.append(e_t)
        denom = denom + e_t
    inv = 1.0 / (denom + 1e-30)        # exact divide: alpha sums to 1
    c_vec = jnp.zeros((BB, 2 * PAD), f32)
    for t in range(T):
        c_vec = c_vec + (e_seq[t] * inv) * hseq[t]           # [BB, 2*PAD]

    # ---- contrastive loss + cosine similarity (padded lanes are zero) -------
    label = lab_ref[...]                                     # [BB, 1]
    diff = q - c_vec
    d2 = jnp.sum(diff * diff, axis=-1, keepdims=True)
    d = jnp.sqrt(d2 + 1e-12)
    hinge = jnp.maximum(MARGIN - d, 0.0)
    loss = 0.5 * (label * d2 + (1.0 - label) * hinge * hinge)
    num = jnp.sum(q * c_vec, axis=-1, keepdims=True)
    qn = jnp.sqrt(jnp.sum(q * q, axis=-1, keepdims=True))
    cn = jnp.sqrt(jnp.sum(c_vec * c_vec, axis=-1, keepdims=True))
    sim = num / (qn * cn + 1e-12)
    out_ref[...] = jnp.concatenate([loss, sim], axis=1)      # [BB, 2]


# ----------------------------- wrapper ---------------------------------------
def _fused_call(idx, lengths, labels, cls_vec, p):
    Bp = cls_vec.shape[0]
    T = MAX_CHAIN_LEN
    assert Bp % BLOCK_B == 0
    nb = Bp // BLOCK_B

    # advisory cost estimate so XLA can overlap surrounding work
    per_ex_flops = (
        2 * BERT_DIM * DIM_L1 + 2 * DIM_L1 * 2 * PAD           # question head
        + 2 * T * NUM_RELATIONS * 8 * PAD                      # one-hot gather
        + 2 * T * 2 * (PAD * 4 * PAD)                          # BiLSTM recurrence
        + 2 * T * (2 * PAD) * DIM_L2 + 2 * T * DIM_L2          # attention
        + 8 * 2 * PAD)                                         # loss / cosine
    per_ex_trans = T * 2 * 5 * PAD + T * DIM_L2 + T
    w_bytes = sum(v.size * v.dtype.itemsize for v in p.values())
    io_bytes = Bp * (BERT_DIM * 4 + T * 4 + 4 + 4 + 8)
    cost = pl.CostEstimate(flops=int(Bp * per_ex_flops),
                           transcendentals=int(Bp * per_ex_trans),
                           bytes_accessed=int(w_bytes + io_bytes))

    return pl.pallas_call(
        fused_forward_kernel,
        out_shape=jax.ShapeDtypeStruct((Bp, 2), jnp.float32),
        grid=(nb,),
        in_specs=[
            pl.BlockSpec((BLOCK_B, T), lambda i: (i, 0)),                 # idx
            pl.BlockSpec((BLOCK_B, 1), lambda i: (i, 0)),                 # lengths
            pl.BlockSpec((BLOCK_B, 1), lambda i: (i, 0)),                 # labels
            pl.BlockSpec((BLOCK_B, BERT_DIM), lambda i: (i, 0)),          # cls
            pl.BlockSpec((NUM_RELATIONS, 8 * PAD), lambda i: (0, 0)),     # gate_table
            pl.BlockSpec((BERT_DIM, DIM_L1), lambda i: (0, 0)),           # w1t
            pl.BlockSpec((1, DIM_L1), lambda i: (0, 0)),                  # b1
            pl.BlockSpec((DIM_L1, 2 * PAD), lambda i: (0, 0)),            # w2t_pad
            pl.BlockSpec((PAD, 4 * PAD), lambda i: (0, 0)),               # whh_f
            pl.BlockSpec((PAD, 4 * PAD), lambda i: (0, 0)),               # whh_b
            pl.BlockSpec((2 * PAD, DIM_L2), lambda i: (0, 0)),            # watt_pad
            pl.BlockSpec((1, DIM_L2), lambda i: (0, 0)),                  # batt
            pl.BlockSpec((DIM_L2, 1), lambda i: (0, 0)),                  # v_att
        ],
        out_specs=pl.BlockSpec((BLOCK_B, 2), lambda i: (i, 0)),
        scratch_shapes=[pltpu.VMEM((T * BLOCK_B, 8 * PAD), jnp.float32)],
        compiler_params=pltpu.CompilerParams(
            dimension_semantics=("parallel",)),
        cost_estimate=cost,
    )(idx, lengths, labels, cls_vec,
      p['gate_table'], p['w1t'], p['b1'], p['w2t_pad'],
      p['whh_f_pad'], p['whh_b_pad'],
      p['watt_pad'], p['batt'], p['v_att'])


@jax.jit
def forward(packed_params, roberta_cls, relational_chain_idxs,
            relation_chain_lengths, labels):
    """Batched forward: returns (euclidean_loss[B], similarity[B])."""
    cls = roberta_cls.astype(jnp.float32)
    idx = relational_chain_idxs.astype(jnp.int32)
    lengths = jnp.reshape(relation_chain_lengths, (-1, 1)).astype(jnp.int32)
    lab = jnp.reshape(labels, (-1, 1)).astype(jnp.float32)
    B = cls.shape[0]
    Bp = ((B + BLOCK_B - 1) // BLOCK_B) * BLOCK_B
    pad = Bp - B
    if pad:
        cls = jnp.pad(cls, ((0, pad), (0, 0)))
        idx = jnp.pad(idx, ((0, pad), (0, 0)))
        lengths = jnp.pad(lengths, ((0, pad), (0, 0)), constant_values=1)
        lab = jnp.pad(lab, ((0, pad), (0, 0)))
    out = _fused_call(idx, lengths, lab, cls, packed_params)
    return out[:B, 0], out[:B, 1]


# ----------------------------- parameter packing ------------------------------
def pack_params(p):
    """Pre-pad / pre-fold weights into the lane-aligned layouts the kernel uses."""
    H = LSTM_HIDDEN

    def pad_gate_cols(w):                       # [rows, 4H] -> [rows, 4*PAD]
        out = jnp.zeros((w.shape[0], 4 * PAD), jnp.float32)
        for g in range(4):
            out = out.at[:, g * PAD:g * PAD + H].set(w[:, g * H:(g + 1) * H])
        return out

    def pad_hh(whh):                            # [H, 4H] -> [PAD, 4*PAD]
        full = jnp.zeros((PAD, 4 * H), jnp.float32).at[:H, :].set(whh)
        return pad_gate_cols(full)

    # fold embedding table + input-to-hidden weights + biases into one table:
    # gates_x(row) = gate_table[relation_idx]  (exact, selected via one-hot)
    wih_cat = jnp.concatenate([pad_gate_cols(p['wih_f_t']),
                               pad_gate_cols(p['wih_b_t'])], axis=1)   # [128,1024]
    b_cat = jnp.concatenate([pad_gate_cols(p['b_f']),
                             pad_gate_cols(p['b_b'])], axis=1)         # [1,1024]
    table = p['relation_embeddings'].astype(jnp.float32)               # [16,128]
    gate_table = jnp.dot(table, wih_cat) + b_cat                       # [16,1024]

    # fc output mapped into the padded [fwd(0:64) | 0 | bwd(0:64) | 0] layout
    w2t_pad = jnp.zeros((DIM_L1, 2 * PAD), jnp.float32)
    w2t_pad = w2t_pad.at[:, 0:H].set(p['w2t'][:, 0:H])
    w2t_pad = w2t_pad.at[:, PAD:PAD + H].set(p['w2t'][:, H:2 * H])

    watt_pad = jnp.zeros((2 * PAD, 2 * H), jnp.float32)
    watt_pad = watt_pad.at[0:H, :].set(p['watt'][0:H, :])
    watt_pad = watt_pad.at[PAD:PAD + H, :].set(p['watt'][H:2 * H, :])

    return {
        'gate_table': gate_table,                                      # f32 [16,1024]
        'w1t': p['w1t'].astype(jnp.bfloat16),                          # [768,256]
        'b1': p['b1'],                                                 # f32 [1,256]
        'w2t_pad': w2t_pad.astype(jnp.bfloat16),                       # [256,256]
        'whh_f_pad': pad_hh(p['whh_f_t']).astype(jnp.bfloat16),        # [128,512]
        'whh_b_pad': pad_hh(p['whh_b_t']).astype(jnp.bfloat16),        # [128,512]
        'watt_pad': watt_pad.astype(jnp.bfloat16),                     # [256,128]
        'batt': p['batt'],                                             # f32 [1,128]
        'v_att': p['v_att'],                                           # f32 [128,1]
    }


# ----------------------------- parameter init ---------------------------------
def init_params(key):
    ks = jax.random.split(key, 12)
    H, D = LSTM_HIDDEN, RELATION_DIM

    def xavier(k, shape):
        fan_in, fan_out = shape[0], shape[1]
        std = (2.0 / (fan_in + fan_out)) ** 0.5
        return std * jax.random.normal(k, shape, jnp.float32)

    lstm_scale = 1.0 / (H ** 0.5)
    return {
        'relation_embeddings': jax.random.normal(
            ks[0], (NUM_RELATIONS, RELATION_DIM), jnp.float32),
        # fc_bert2dim1 (768 -> dim_l1, bias) and fc_dim12dim2 (dim_l1 -> dim_l2)
        'w1t': xavier(ks[1], (BERT_DIM, DIM_L1)),
        'b1': jnp.zeros((1, DIM_L1), jnp.float32),
        'w2t': xavier(ks[2], (DIM_L1, DIM_L2)),
        # BiLSTM (gate order i, f, g, o; biases = b_ih + b_hh combined)
        'wih_f_t': lstm_scale * jax.random.normal(ks[3], (D, 4 * H), jnp.float32),
        'whh_f_t': lstm_scale * jax.random.normal(ks[4], (H, 4 * H), jnp.float32),
        'b_f': lstm_scale * jax.random.normal(ks[5], (1, 4 * H), jnp.float32),
        'wih_b_t': lstm_scale * jax.random.normal(ks[6], (D, 4 * H), jnp.float32),
        'whh_b_t': lstm_scale * jax.random.normal(ks[7], (H, 4 * H), jnp.float32),
        'b_b': lstm_scale * jax.random.normal(ks[8], (1, 4 * H), jnp.float32),
        # additive attention (hidden_dim = attention_dim = 2H)
        'watt': xavier(ks[9], (2 * H, 2 * H)),
        'batt': jnp.zeros((1, 2 * H), jnp.float32),
        'v_att': xavier(ks[10], (2 * H, 1)),
    }


# ----------------------------- main --------------------------------------------
if __name__ == "__main__":
    key = jax.random.PRNGKey(0)
    k_params, k_cls, k_idx, k_len, k_lab = jax.random.split(key, 5)
    params = init_params(k_params)
    packed = pack_params(params)

    B = 16                                    # 2 batch blocks -> grid=(2,)
    # TODO(synk): roberta-base encoder + RobertaTokenizer have no Pallas
    # equivalent; the <s>-token hidden states [B, 768] are supplied directly.
    roberta_cls = jax.random.normal(k_cls, (B, BERT_DIM), jnp.float32)
    relational_chain_idxs = jax.random.randint(
        k_idx, (B, MAX_CHAIN_LEN), 0, NUM_RELATIONS, jnp.int32)
    relation_chain_lengths = jax.random.randint(
        k_len, (B,), 1, MAX_CHAIN_LEN + 1, jnp.int32)
    labels = jax.random.bernoulli(k_lab, 0.5, (B,)).astype(jnp.float32)

    euclidean_loss, similarity = forward(packed, roberta_cls,
                                         relational_chain_idxs,
                                         relation_chain_lengths, labels)
    jax.block_until_ready((euclidean_loss, similarity))

    assert euclidean_loss.shape == (B,) and similarity.shape == (B,)
    assert bool(jnp.all(jnp.isfinite(euclidean_loss)))
    assert bool(jnp.all(jnp.isfinite(similarity)))
    print("KERNEL_OK")
</pallas_src>

<mosaic_0001>
module attributes {stable_mosaic.version = 11 : i64} {
  func.func @fused_forward_kernel(%arg0: i32, %arg1: memref<8x8xi32, #tpu.memory_space<vmem>>, %arg2: memref<8x1xi32, #tpu.memory_space<vmem>>, %arg3: memref<8x1xf32, #tpu.memory_space<vmem>>, %arg4: memref<8x768xf32, #tpu.memory_space<vmem>>, %arg5: memref<16x1024xf32, #tpu.memory_space<vmem>>, %arg6: memref<768x256xbf16, #tpu.memory_space<vmem>>, %arg7: memref<1x256xf32, #tpu.memory_space<vmem>>, %arg8: memref<256x256xbf16, #tpu.memory_space<vmem>>, %arg9: memref<128x512xbf16, #tpu.memory_space<vmem>>, %arg10: memref<128x512xbf16, #tpu.memory_space<vmem>>, %arg11: memref<256x128xbf16, #tpu.memory_space<vmem>>, %arg12: memref<1x128xf32, #tpu.memory_space<vmem>>, %arg13: memref<128x1xf32, #tpu.memory_space<vmem>>, %arg14: memref<8x2xf32, #tpu.memory_space<vmem>>, %arg15: memref<64x1024xf32, #tpu.memory_space<vmem>>) attributes {dimension_semantics = [#tpu.dimension_semantics<parallel>], iteration_bounds = array<i64: 2>, scalar_prefetch = 0 : i64, scratch_operands = 1 : i64, tpu.core_type = #tpu.core_type<tc>, window_params = [{transform_indices = @transform_0, window_bounds = array<i64: 8, 8>}, {transform_indices = @transform_1, window_bounds = array<i64: 8, 1>}, {transform_indices = @transform_2, window_bounds = array<i64: 8, 1>}, {transform_indices = @transform_3, window_bounds = array<i64: 8, 768>}, {pipeline_mode = #tpu.pipeline_mode<synchronous>, transform_indices = @transform_4, window_bounds = array<i64: 16, 1024>}, {pipeline_mode = #tpu.pipeline_mode<synchronous>, transform_indices = @transform_5, window_bounds = array<i64: 768, 256>}, {pipeline_mode = #tpu.pipeline_mode<synchronous>, transform_indices = @transform_6, window_bounds = array<i64: 1, 256>}, {pipeline_mode = #tpu.pipeline_mode<synchronous>, transform_indices = @transform_7, window_bounds = array<i64: 256, 256>}, {pipeline_mode = #tpu.pipeline_mode<synchronous>, transform_indices = @transform_8, window_bounds = array<i64: 128, 512>}, {pipeline_mode = #tpu.pipeline_mode<synchronous>, transform_indices = @transform_9, window_bounds = array<i64: 128, 512>}, {pipeline_mode = #tpu.pipeline_mode<synchronous>, transform_indices = @transform_10, window_bounds = array<i64: 256, 128>}, {pipeline_mode = #tpu.pipeline_mode<synchronous>, transform_indices = @transform_11, window_bounds = array<i64: 1, 128>}, {pipeline_mode = #tpu.pipeline_mode<synchronous>, transform_indices = @transform_12, window_bounds = array<i64: 128, 1>}, {transform_indices = @transform_13, window_bounds = array<i64: 8, 2>}]} {
    %c0 = arith.constant 0 : index
    %c0_0 = arith.constant 0 : index
    %0 = vector.load %arg2[%c0, %c0_0] : memref<8x1xi32, #tpu.memory_space<vmem>>, vector<8x1xi32>
    %1 = tpu.iota {dimensions = array<i32: 1>} : vector<8x16xi32>
    %c0_1 = arith.constant 0 : index
    %c0_2 = arith.constant 0 : index
    %2 = vector.load %arg1[%c0_1, %c0_2] : memref<8x8xi32, #tpu.memory_space<vmem>>, vector<8x1xi32>
    %3 = vector.broadcast %2 : vector<8x1xi32> to vector<8x16xi32>
    %4 = arith.cmpi eq, %1, %3 : vector<8x16xi32>
    %5 = arith.extui %4 : vector<8x16xi1> to vector<8x16xi32>
    %6 = arith.sitofp %5 : vector<8x16xi32> to vector<8x16xf32>
    %c0_3 = arith.constant 0 : index
    %c1 = arith.constant 1 : index
    %7 = vector.load %arg1[%c0_3, %c1] : memref<8x8xi32, #tpu.memory_space<vmem>>, vector<8x1xi32>
    %8 = vector.broadcast %7 : vector<8x1xi32> to vector<8x16xi32>
    %9 = arith.cmpi eq, %1, %8 : vector<8x16xi32>
    %10 = arith.extui %9 : vector<8x16xi1> to vector<8x16xi32>
    %11 = arith.sitofp %10 : vector<8x16xi32> to vector<8x16xf32>
    %c0_4 = arith.constant 0 : index
    %c2 = arith.constant 2 : index
    %12 = vector.load %arg1[%c0_4, %c2] : memref<8x8xi32, #tpu.memory_space<vmem>>, vector<8x1xi32>
    %13 = vector.broadcast %12 : vector<8x1xi32> to vector<8x16xi32>
    %14 = arith.cmpi eq, %1, %13 : vector<8x16xi32>
    %15 = arith.extui %14 : vector<8x16xi1> to vector<8x16xi32>
    %16 = arith.sitofp %15 : vector<8x16xi32> to vector<8x16xf32>
    %c0_5 = arith.constant 0 : index
    %c3 = arith.constant 3 : index
    %17 = vector.load %arg1[%c0_5, %c3] : memref<8x8xi32, #tpu.memory_space<vmem>>, vector<8x1xi32>
    %18 = vector.broadcast %17 : vector<8x1xi32> to vector<8x16xi32>
    %19 = arith.cmpi eq, %1, %18 : vector<8x16xi32>
    %20 = arith.extui %19 : vector<8x16xi1> to vector<8x16xi32>
    %21 = arith.sitofp %20 : vector<8x16xi32> to vector<8x16xf32>
    %c0_6 = arith.constant 0 : index
    %c4 = arith.constant 4 : index
    %22 = vector.load %arg1[%c0_6, %c4] : memref<8x8xi32, #tpu.memory_space<vmem>>, vector<8x1xi32>
    %23 = vector.broadcast %22 : vector<8x1xi32> to vector<8x16xi32>
    %24 = arith.cmpi eq, %1, %23 : vector<8x16xi32>
    %25 = arith.extui %24 : vector<8x16xi1> to vector<8x16xi32>
    %26 = arith.sitofp %25 : vector<8x16xi32> to vector<8x16xf32>
    %c0_7 = arith.constant 0 : index
    %c5 = arith.constant 5 : index
    %27 = vector.load %arg1[%c0_7, %c5] : memref<8x8xi32, #tpu.memory_space<vmem>>, vector<8x1xi32>
    %28 = vector.broadcast %27 : vector<8x1xi32> to vector<8x16xi32>
    %29 = arith.cmpi eq, %1, %28 : vector<8x16xi32>
    %30 = arith.extui %29 : vector<8x16xi1> to vector<8x16xi32>
    %31 = arith.sitofp %30 : vector<8x16xi32> to vector<8x16xf32>
    %c0_8 = arith.constant 0 : index
    %c6 = arith.constant 6 : index
    %32 = vector.load %arg1[%c0_8, %c6] : memref<8x8xi32, #tpu.memory_space<vmem>>, vector<8x1xi32>
    %33 = vector.broadcast %32 : vector<8x1xi32> to vector<8x16xi32>
    %34 = arith.cmpi eq, %1, %33 : vector<8x16xi32>
    %35 = arith.extui %34 : vector<8x16xi1> to vector<8x16xi32>
    %36 = arith.sitofp %35 : vector<8x16xi32> to vector<8x16xf32>
    %c0_9 = arith.constant 0 : index
    %c7 = arith.constant 7 : index
    %37 = vector.load %arg1[%c0_9, %c7] : memref<8x8xi32, #tpu.memory_space<vmem>>, vector<8x1xi32>
    %38 = vector.broadcast %37 : vector<8x1xi32> to vector<8x16xi32>
    %39 = arith.cmpi eq, %1, %38 : vector<8x16xi32>
    %40 = arith.extui %39 : vector<8x16xi1> to vector<8x16xi32>
    %41 = arith.sitofp %40 : vector<8x16xi32> to vector<8x16xf32>
    %42 = tpu.concatenate %6, %11, %16, %21, %26, %31, %36, %41 in 0 : vector<8x16xf32>, vector<8x16xf32>, vector<8x16xf32>, vector<8x16xf32>, vector<8x16xf32>, vector<8x16xf32>, vector<8x16xf32>, vector<8x16xf32> -> vector<64x16xf32>
    %c0_10 = arith.constant 0 : index
    %c0_11 = arith.constant 0 : index
    %43 = vector.load %arg5[%c0_10, %c0_11] : memref<16x1024xf32, #tpu.memory_space<vmem>>, vector<16x1024xf32>
    %cst = arith.constant dense<0.000000e+00> : vector<64x1024xf32>
    %44 = tpu.matmul %42, %43, %cst {dimension_numbers = #tpu.dot_dimension_numbers<[1], [0], [0], [1], [0, 0, 1, 1], [], []>} : vector<64x16xf32>, vector<16x1024xf32>, vector<64x1024xf32> -> vector<64x1024xf32>
    %c0_12 = arith.constant 0 : index
    %c0_13 = arith.constant 0 : index
    %45 = vector.load %arg15[%c0_12, %c0_13] : memref<64x1024xf32, #tpu.memory_space<vmem>>, vector<64x1024xf32>
    tpu.vector_store %arg15[%c0_12, %c0_13], %44 {strides = array<i32>} : memref<64x1024xf32, #tpu.memory_space<vmem>>, vector<64x1024xf32>,
    %c0_14 = arith.constant 0 : index
    %c0_15 = arith.constant 0 : index
    %46 = vector.load %arg4[%c0_14, %c0_15] : memref<8x768xf32, #tpu.memory_space<vmem>>, vector<8x768xf32>
    %47 = arith.truncf %46 : vector<8x768xf32> to vector<8x768xbf16>
    %c0_16 = arith.constant 0 : index
    %c0_17 = arith.constant 0 : index
    %48 = vector.load %arg6[%c0_16, %c0_17] : memref<768x256xbf16, #tpu.memory_space<vmem>>, vector<768x256xbf16>
    %cst_18 = arith.constant dense<0.000000e+00> : vector<8x256xf32>
    %49 = tpu.matmul %47, %48, %cst_18 {dimension_numbers = #tpu.dot_dimension_numbers<[1], [0], [0], [1], [0, 0, 1, 1], [], []>} : vector<8x768xbf16>, vector<768x256xbf16>, vector<8x256xf32> -> vector<8x256xf32>
    %c0_19 = arith.constant 0 : index
    %c0_20 = arith.constant 0 : index
    %50 = vector.load %arg7[%c0_19, %c0_20] : memref<1x256xf32, #tpu.memory_space<vmem>>, vector<1x256xf32>
    %51 = vector.broadcast %50 : vector<1x256xf32> to vector<8x256xf32>
    %52 = arith.addf %49, %51 : vector<8x256xf32>
    %cst_21 = arith.constant 0.000000e+00 : f32
    %53 = vector.broadcast %cst_21 : f32 to vector<8x256xf32>
    %54 = arith.maximumf %52, %53 : vector<8x256xf32>
    %55 = arith.truncf %54 : vector<8x256xf32> to vector<8x256xbf16>
    %c0_22 = arith.constant 0 : index
    %c0_23 = arith.constant 0 : index
    %56 = vector.load %arg8[%c0_22, %c0_23] : memref<256x256xbf16, #tpu.memory_space<vmem>>, vector<256x256xbf16>
    %cst_24 = arith.constant dense<0.000000e+00> : vector<8x256xf32>
    %57 = tpu.matmul %55, %56, %cst_24 {dimension_numbers = #tpu.dot_dimension_numbers<[1], [0], [0], [1], [0, 0, 1, 1], [], []>} : vector<8x256xbf16>, vector<256x256xbf16>, vector<8x256xf32> -> vector<8x256xf32>
    %cst_25 = arith.constant 0.000000e+00 : f32
    %58 = vector.broadcast %cst_25 : f32 to vector<8x128xf32>
    %c0_26 = arith.constant 0 : index
    %c0_27 = arith.constant 0 : index
    %59 = vector.load %arg15[%c0_26, %c0_27] : memref<64x1024xf32, #tpu.memory_space<vmem>>, vector<8x512xf32>
    %c56 = arith.constant 56 : index
    %c512 = arith.constant 512 : index
    %60 = vector.load %arg15[%c56, %c512] : memref<64x1024xf32, #tpu.memory_space<vmem>>, vector<8x512xf32>
    %61 = arith.truncf %58 : vector<8x128xf32> to vector<8x128xbf16>
    %c0_28 = arith.constant 0 : index
    %c0_29 = arith.constant 0 : index
    %62 = vector.load %arg9[%c0_28, %c0_29] : memref<128x512xbf16, #tpu.memory_space<vmem>>, vector<128x512xbf16>
    %cst_30 = arith.constant dense<0.000000e+00> : vector<8x512xf32>
    %63 = tpu.matmul %61, %62, %cst_30 {dimension_numbers = #tpu.dot_dimension_numbers<[1], [0], [0], [1], [0, 0, 1, 1], [], []>} : vector<8x128xbf16>, vector<128x512xbf16>, vector<8x512xf32> -> vector<8x512xf32>
    %64 = arith.addf %59, %63 : vector<8x512xf32>
    %65 = vector.extract_strided_slice %64 {offsets = [0, 0], sizes = [8, 128], strides = [1, 1]} : vector<8x512xf32> to vector<8x128xf32>
    %66 = arith.negf %65 : vector<8x128xf32>
    %67 = math.exp %66 : vector<8x128xf32>
    %cst_31 = arith.constant 1.000000e+00 : f32
    %68 = vector.broadcast %cst_31 : f32 to vector<8x128xf32>
    %69 = arith.addf %68, %67 : vector<8x128xf32>
    %70 = arith.divf %68, %69 : vector<8x128xf32>
    %71 = vector.extract_strided_slice %64 {offsets = [0, 128], sizes = [8, 128], strides = [1, 1]} : vector<8x512xf32> to vector<8x128xf32>
    %72 = arith.negf %71 : vector<8x128xf32>
    %73 = math.exp %72 : vector<8x128xf32>
    %cst_32 = arith.constant 1.000000e+00 : f32
    %74 = vector.broadcast %cst_32 : f32 to vector<8x128xf32>
    %75 = arith.addf %74, %73 : vector<8x128xf32>
    %76 = arith.divf %74, %75 : vector<8x128xf32>
    %77 = vector.extract_strided_slice %64 {offsets = [0, 256], sizes = [8, 128], strides = [1, 1]} : vector<8x512xf32> to vector<8x128xf32>
    %78 = math.tanh %77 : vector<8x128xf32>
    %79 = vector.extract_strided_slice %64 {offsets = [0, 384], sizes = [8, 128], strides = [1, 1]} : vector<8x512xf32> to vector<8x128xf32>
    %80 = arith.negf %79 : vector<8x128xf32>
    %81 = math.exp %80 : vector<8x128xf32>
    %cst_33 = arith.constant 1.000000e+00 : f32
    %82 = vector.broadcast %cst_33 : f32 to vector<8x128xf32>
    %83 = arith.addf %82, %81 : vector<8x128xf32>
    %84 = arith.divf %82, %83 : vector<8x128xf32>
    %85 = arith.mulf %76, %58 : vector<8x128xf32>
    %86 = arith.mulf %70, %78 : vector<8x128xf32>
    %87 = arith.addf %85, %86 : vector<8x128xf32>
    %88 = math.tanh %87 : vector<8x128xf32>
    %89 = arith.mulf %84, %88 : vector<8x128xf32>
    %90 = arith.truncf %58 : vector<8x128xf32> to vector<8x128xbf16>
    %c0_34 = arith.constant 0 : index
    %c0_35 = arith.constant 0 : index
    %91 = vector.load %arg10[%c0_34, %c0_35] : memref<128x512xbf16, #tpu.memory_space<vmem>>, vector<128x512xbf16>
    %cst_36 = arith.constant dense<0.000000e+00> : vector<8x512xf32>
    %92 = tpu.matmul %90, %91, %cst_36 {dimension_numbers = #tpu.dot_dimension_numbers<[1], [0], [0], [1], [0, 0, 1, 1], [], []>} : vector<8x128xbf16>, vector<128x512xbf16>, vector<8x512xf32> -> vector<8x512xf32>
    %93 = arith.addf %60, %92 : vector<8x512xf32>
    %94 = vector.extract_strided_slice %93 {offsets = [0, 0], sizes = [8, 128], strides = [1, 1]} : vector<8x512xf32> to vector<8x128xf32>
    %95 = arith.negf %94 : vector<8x128xf32>
    %96 = math.exp %95 : vector<8x128xf32>
    %cst_37 = arith.constant 1.000000e+00 : f32
    %97 = vector.broadcast %cst_37 : f32 to vector<8x128xf32>
    %98 = arith.addf %97, %96 : vector<8x128xf32>
    %99 = arith.divf %97, %98 : vector<8x128xf32>
    %100 = vector.extract_strided_slice %93 {offsets = [0, 128], sizes = [8, 128], strides = [1, 1]} : vector<8x512xf32> to vector<8x128xf32>
    %101 = arith.negf %100 : vector<8x128xf32>
    %102 = math.exp %101 : vector<8x128xf32>
    %cst_38 = arith.constant 1.000000e+00 : f32
    %103 = vector.broadcast %cst_38 : f32 to vector<8x128xf32>
    %104 = arith.addf %103, %102 : vector<8x128xf32>
    %105 = arith.divf %103, %104 : vector<8x128xf32>
    %106 = vector.extract_strided_slice %93 {offsets = [0, 256], sizes = [8, 128], strides = [1, 1]} : vector<8x512xf32> to vector<8x128xf32>
    %107 = math.tanh %106 : vector<8x128xf32>
    %108 = vector.extract_strided_slice %93 {offsets = [0, 384], sizes = [8, 128], strides = [1, 1]} : vector<8x512xf32> to vector<8x128xf32>
    %109 = arith.negf %108 : vector<8x128xf32>
    %110 = math.exp %109 : vector<8x128xf32>
    %cst_39 = arith.constant 1.000000e+00 : f32
    %111 = vector.broadcast %cst_39 : f32 to vector<8x128xf32>
    %112 = arith.addf %111, %110 : vector<8x128xf32>
    %113 = arith.divf %111, %112 : vector<8x128xf32>
    %114 = arith.mulf %105, %58 : vector<8x128xf32>
    %115 = arith.mulf %99, %107 : vector<8x128xf32>
    %116 = arith.addf %114, %115 : vector<8x128xf32>
    %117 = math.tanh %116 : vector<8x128xf32>
    %118 = arith.mulf %113, %117 : vector<8x128xf32>
    %c0_i32 = arith.constant 0 : i32
    %119 = vector.broadcast %c0_i32 : i32 to vector<8x1xi32>
    %120 = arith.cmpi sgt, %0, %119 : vector<8x1xi32>
    %c7_i32 = arith.constant 7 : i32
    %121 = vector.broadcast %c7_i32 : i32 to vector<8x1xi32>
    %122 = arith.cmpi sgt, %0, %121 : vector<8x1xi32>
    %cst_40 = arith.constant 0.000000e+00 : f32
    %123 = vector.shape_cast %120 : vector<8x1xi1> to vector<8x1xi1>
    %124 = vector.broadcast %123 : vector<8x1xi1> to vector<8x128xi1>
    %125 = vector.broadcast %cst_40 : f32 to vector<8x128xf32>
    %126 = arith.select %124, %89, %125 : vector<8x128xi1>, vector<8x128xf32>
    %cst_41 = arith.constant 0.000000e+00 : f32
    %127 = vector.shape_cast %120 : vector<8x1xi1> to vector<8x1xi1>
    %128 = vector.broadcast %127 : vector<8x1xi1> to vector<8x128xi1>
    %129 = vector.broadcast %cst_41 : f32 to vector<8x128xf32>
    %130 = arith.select %128, %87, %129 : vector<8x128xi1>, vector<8x128xf32>
    %cst_42 = arith.constant 0.000000e+00 : f32
    %131 = vector.shape_cast %122 : vector<8x1xi1> to vector<8x1xi1>
    %132 = vector.broadcast %131 : vector<8x1xi1> to vector<8x128xi1>
    %133 = vector.broadcast %cst_42 : f32 to vector<8x128xf32>
    %134 = arith.select %132, %118, %133 : vector<8x128xi1>, vector<8x128xf32>
    %cst_43 = arith.constant 0.000000e+00 : f32
    %135 = vector.shape_cast %122 : vector<8x1xi1> to vector<8x1xi1>
    %136 = vector.broadcast %135 : vector<8x1xi1> to vector<8x128xi1>
    %137 = vector.broadcast %cst_43 : f32 to vector<8x128xf32>
    %138 = arith.select %136, %116, %137 : vector<8x128xi1>, vector<8x128xf32>
    %c8 = arith.constant 8 : index
    %c0_44 = arith.constant 0 : index
    %139 = vector.load %arg15[%c8, %c0_44] : memref<64x1024xf32, #tpu.memory_space<vmem>>, vector<8x512xf32>
    %c48 = arith.constant 48 : index
    %c512_45 = arith.constant 512 : index
    %140 = vector.load %arg15[%c48, %c512_45] : memref<64x1024xf32, #tpu.memory_space<vmem>>, vector<8x512xf32>
    %141 = arith.truncf %126 : vector<8x128xf32> to vector<8x128xbf16>
    %c0_46 = arith.constant 0 : index
    %c0_47 = arith.constant 0 : index
    %142 = vector.load %arg9[%c0_46, %c0_47] : memref<128x512xbf16, #tpu.memory_space<vmem>>, vector<128x512xbf16>
    %cst_48 = arith.constant dense<0.000000e+00> : vector<8x512xf32>
    %143 = tpu.matmul %141, %142, %cst_48 {dimension_numbers = #tpu.dot_dimension_numbers<[1], [0], [0], [1], [0, 0, 1, 1], [], []>} : vector<8x128xbf16>, vector<128x512xbf16>, vector<8x512xf32> -> vector<8x512xf32>
    %144 = arith.addf %139, %143 : vector<8x512xf32>
    %145 = vector.extract_strided_slice %144 {offsets = [0, 0], sizes = [8, 128], strides = [1, 1]} : vector<8x512xf32> to vector<8x128xf32>
    %146 = arith.negf %145 : vector<8x128xf32>
    %147 = math.exp %146 : vector<8x128xf32>
    %cst_49 = arith.constant 1.000000e+00 : f32
    %148 = vector.broadcast %cst_49 : f32 to vector<8x128xf32>
    %149 = arith.addf %148, %147 : vector<8x128xf32>
    %150 = arith.divf %148, %149 : vector<8x128xf32>
    %151 = vector.extract_strided_slice %144 {offsets = [0, 128], sizes = [8, 128], strides = [1, 1]} : vector<8x512xf32> to vector<8x128xf32>
    %152 = arith.negf %151 : vector<8x128xf32>
    %153 = math.exp %152 : vector<8x128xf32>
    %cst_50 = arith.constant 1.000000e+00 : f32
    %154 = vector.broadcast %cst_50 : f32 to vector<8x128xf32>
    %155 = arith.addf %154, %153 : vector<8x128xf32>
    %156 = arith.divf %154, %155 : vector<8x128xf32>
    %157 = vector.extract_strided_slice %144 {offsets = [0, 256], sizes = [8, 128], strides = [1, 1]} : vector<8x512xf32> to vector<8x128xf32>
    %158 = math.tanh %157 : vector<8x128xf32>
    %159 = vector.extract_strided_slice %144 {offsets = [0, 384], sizes = [8, 128], strides = [1, 1]} : vector<8x512xf32> to vector<8x128xf32>
    %160 = arith.negf %159 : vector<8x128xf32>
    %161 = math.exp %160 : vector<8x128xf32>
    %cst_51 = arith.constant 1.000000e+00 : f32
    %162 = vector.broadcast %cst_51 : f32 to vector<8x128xf32>
    %163 = arith.addf %162, %161 : vector<8x128xf32>
    %164 = arith.divf %162, %163 : vector<8x128xf32>
    %165 = arith.mulf %156, %130 : vector<8x128xf32>
    %166 = arith.mulf %150, %158 : vector<8x128xf32>
    %167 = arith.addf %165, %166 : vector<8x128xf32>
    %168 = math.tanh %167 : vector<8x128xf32>
    %169 = arith.mulf %164, %168 : vector<8x128xf32>
    %170 = arith.truncf %134 : vector<8x128xf32> to vector<8x128xbf16>
    %c0_52 = arith.constant 0 : index
    %c0_53 = arith.constant 0 : index
    %171 = vector.load %arg10[%c0_52, %c0_53] : memref<128x512xbf16, #tpu.memory_space<vmem>>, vector<128x512xbf16>
    %cst_54 = arith.constant dense<0.000000e+00> : vector<8x512xf32>
    %172 = tpu.matmul %170, %171, %cst_54 {dimension_numbers = #tpu.dot_dimension_numbers<[1], [0], [0], [1], [0, 0, 1, 1], [], []>} : vector<8x128xbf16>, vector<128x512xbf16>, vector<8x512xf32> -> vector<8x512xf32>
    %173 = arith.addf %140, %172 : vector<8x512xf32>
    %174 = vector.extract_strided_slice %173 {offsets = [0, 0], sizes = [8, 128], strides = [1, 1]} : vector<8x512xf32> to vector<8x128xf32>
    %175 = arith.negf %174 : vector<8x128xf32>
    %176 = math.exp %175 : vector<8x128xf32>
    %cst_55 = arith.constant 1.000000e+00 : f32
    %177 = vector.broadcast %cst_55 : f32 to vector<8x128xf32>
    %178 = arith.addf %177, %176 : vector<8x128xf32>
    %179 = arith.divf %177, %178 : vector<8x128xf32>
    %180 = vector.extract_strided_slice %173 {offsets = [0, 128], sizes = [8, 128], strides = [1, 1]} : vector<8x512xf32> to vector<8x128xf32>
    %181 = arith.negf %180 : vector<8x128xf32>
    %182 = math.exp %181 : vector<8x128xf32>
    %cst_56 = arith.constant 1.000000e+00 : f32
    %183 = vector.broadcast %cst_56 : f32 to vector<8x128xf32>
    %184 = arith.addf %183, %182 : vector<8x128xf32>
    %185 = arith.divf %183, %184 : vector<8x128xf32>
    %186 = vector.extract_strided_slice %173 {offsets = [0, 256], sizes = [8, 128], strides = [1, 1]} : vector<8x512xf32> to vector<8x128xf32>
    %187 = math.tanh %186 : vector<8x128xf32>
    %188 = vector.extract_strided_slice %173 {offsets = [0, 384], sizes = [8, 128], strides = [1, 1]} : vector<8x512xf32> to vector<8x128xf32>
    %189 = arith.negf %188 : vector<8x128xf32>
    %190 = math.exp %189 : vector<8x128xf32>
    %cst_57 = arith.constant 1.000000e+00 : f32
    %191 = vector.broadcast %cst_57 : f32 to vector<8x128xf32>
    %192 = arith.addf %191, %190 : vector<8x128xf32>
    %193 = arith.divf %191, %192 : vector<8x128xf32>
    %194 = arith.mulf %185, %138 : vector<8x128xf32>
    %195 = arith.mulf %179, %187 : vector<8x128xf32>
    %196 = arith.addf %194, %195 : vector<8x128xf32>
    %197 = math.tanh %196 : vector<8x128xf32>
    %198 = arith.mulf %193, %197 : vector<8x128xf32>
    %c1_i32 = arith.constant 1 : i32
    %199 = vector.broadcast %c1_i32 : i32 to vector<8x1xi32>
    %200 = arith.cmpi sgt, %0, %199 : vector<8x1xi32>
    %c6_i32 = arith.constant 6 : i32
    %201 = vector.broadcast %c6_i32 : i32 to vector<8x1xi32>
    %202 = arith.cmpi sgt, %0, %201 : vector<8x1xi32>
    %cst_58 = arith.constant 0.000000e+00 : f32
    %203 = vector.shape_cast %200 : vector<8x1xi1> to vector<8x1xi1>
    %204 = vector.broadcast %203 : vector<8x1xi1> to vector<8x128xi1>
    %205 = vector.broadcast %cst_58 : f32 to vector<8x128xf32>
    %206 = arith.select %204, %169, %205 : vector<8x128xi1>, vector<8x128xf32>
    %cst_59 = arith.constant 0.000000e+00 : f32
    %207 = vector.shape_cast %200 : vector<8x1xi1> to vector<8x1xi1>
    %208 = vector.broadcast %207 : vector<8x1xi1> to vector<8x128xi1>
    %209 = vector.broadcast %cst_59 : f32 to vector<8x128xf32>
    %210 = arith.select %208, %167, %209 : vector<8x128xi1>, vector<8x128xf32>
    %cst_60 = arith.constant 0.000000e+00 : f32
    %211 = vector.shape_cast %202 : vector<8x1xi1> to vector<8x1xi1>
    %212 = vector.broadcast %211 : vector<8x1xi1> to vector<8x128xi1>
    %213 = vector.broadcast %cst_60 : f32 to vector<8x128xf32>
    %214 = arith.select %212, %198, %213 : vector<8x128xi1>, vector<8x128xf32>
    %cst_61 = arith.constant 0.000000e+00 : f32
    %215 = vector.shape_cast %202 : vector<8x1xi1> to vector<8x1xi1>
    %216 = vector.broadcast %215 : vector<8x1xi1> to vector<8x128xi1>
    %217 = vector.broadcast %cst_61 : f32 to vector<8x128xf32>
    %218 = arith.select %216, %196, %217 : vector<8x128xi1>, vector<8x128xf32>
    %c16 = arith.constant 16 : index
    %c0_62 = arith.constant 0 : index
    %219 = vector.load %arg15[%c16, %c0_62] : memref<64x1024xf32, #tpu.memory_space<vmem>>, vector<8x512xf32>
    %c40 = arith.constant 40 : index
    %c512_63 = arith.constant 512 : index
    %220 = vector.load %arg15[%c40, %c512_63] : memref<64x1024xf32, #tpu.memory_space<vmem>>, vector<8x512xf32>
    %221 = arith.truncf %206 : vector<8x128xf32> to vector<8x128xbf16>
    %c0_64 = arith.constant 0 : index
    %c0_65 = arith.constant 0 : index
    %222 = vector.load %arg9[%c0_64, %c0_65] : memref<128x512xbf16, #tpu.memory_space<vmem>>, vector<128x512xbf16>
    %cst_66 = arith.constant dense<0.000000e+00> : vector<8x512xf32>
    %223 = tpu.matmul %221, %222, %cst_66 {dimension_numbers = #tpu.dot_dimension_numbers<[1], [0], [0], [1], [0, 0, 1, 1], [], []>} : vector<8x128xbf16>, vector<128x512xbf16>, vector<8x512xf32> -> vector<8x512xf32>
    %224 = arith.addf %219, %223 : vector<8x512xf32>
    %225 = vector.extract_strided_slice %224 {offsets = [0, 0], sizes = [8, 128], strides = [1, 1]} : vector<8x512xf32> to vector<8x128xf32>
    %226 = arith.negf %225 : vector<8x128xf32>
    %227 = math.exp %226 : vector<8x128xf32>
    %cst_67 = arith.constant 1.000000e+00 : f32
    %228 = vector.broadcast %cst_67 : f32 to vector<8x128xf32>
    %229 = arith.addf %228, %227 : vector<8x128xf32>
    %230 = arith.divf %228, %229 : vector<8x128xf32>
    %231 = vector.extract_strided_slice %224 {offsets = [0, 128], sizes = [8, 128], strides = [1, 1]} : vector<8x512xf32> to vector<8x128xf32>
    %232 = arith.negf %231 : vector<8x128xf32>
    %233 = math.exp %232 : vector<8x128xf32>
    %cst_68 = arith.constant 1.000000e+00 : f32
    %234 = vector.broadcast %cst_68 : f32 to vector<8x128xf32>
    %235 = arith.addf %234, %233 : vector<8x128xf32>
    %236 = arith.divf %234, %235 : vector<8x128xf32>
    %237 = vector.extract_strided_slice %224 {offsets = [0, 256], sizes = [8, 128], strides = [1, 1]} : vector<8x512xf32> to vector<8x128xf32>
    %238 = math.tanh %237 : vector<8x128xf32>
    %239 = vector.extract_strided_slice %224 {offsets = [0, 384], sizes = [8, 128], strides = [1, 1]} : vector<8x512xf32> to vector<8x128xf32>
    %240 = arith.negf %239 : vector<8x128xf32>
    %241 = math.exp %240 : vector<8x128xf32>
    %cst_69 = arith.constant 1.000000e+00 : f32
    %242 = vector.broadcast %cst_69 : f32 to vector<8x128xf32>
    %243 = arith.addf %242, %241 : vector<8x128xf32>
    %244 = arith.divf %242, %243 : vector<8x128xf32>
    %245 = arith.mulf %236, %210 : vector<8x128xf32>
    %246 = arith.mulf %230, %238 : vector<8x128xf32>
    %247 = arith.addf %245, %246 : vector<8x128xf32>
    %248 = math.tanh %247 : vector<8x128xf32>
    %249 = arith.mulf %244, %248 : vector<8x128xf32>
    %250 = arith.truncf %214 : vector<8x128xf32> to vector<8x128xbf16>
    %c0_70 = arith.constant 0 : index
    %c0_71 = arith.constant 0 : index
    %251 = vector.load %arg10[%c0_70, %c0_71] : memref<128x512xbf16, #tpu.memory_space<vmem>>, vector<128x512xbf16>
    %cst_72 = arith.constant dense<0.000000e+00> : vector<8x512xf32>
    %252 = tpu.matmul %250, %251, %cst_72 {dimension_numbers = #tpu.dot_dimension_numbers<[1], [0], [0], [1], [0, 0, 1, 1], [], []>} : vector<8x128xbf16>, vector<128x512xbf16>, vector<8x512xf32> -> vector<8x512xf32>
    %253 = arith.addf %220, %252 : vector<8x512xf32>
    %254 = vector.extract_strided_slice %253 {offsets = [0, 0], sizes = [8, 128], strides = [1, 1]} : vector<8x512xf32> to vector<8x128xf32>
    %255 = arith.negf %254 : vector<8x128xf32>
    %256 = math.exp %255 : vector<8x128xf32>
    %cst_73 = arith.constant 1.000000e+00 : f32
    %257 = vector.broadcast %cst_73 : f32 to vector<8x128xf32>
    %258 = arith.addf %257, %256 : vector<8x128xf32>
    %259 = arith.divf %257, %258 : vector<8x128xf32>
    %260 = vector.extract_strided_slice %253 {offsets = [0, 128], sizes = [8, 128], strides = [1, 1]} : vector<8x512xf32> to vector<8x128xf32>
    %261 = arith.negf %260 : vector<8x128xf32>
    %262 = math.exp %261 : vector<8x128xf32>
    %cst_74 = arith.constant 1.000000e+00 : f32
    %263 = vector.broadcast %cst_74 : f32 to vector<8x128xf32>
    %264 = arith.addf %263, %262 : vector<8x128xf32>
    %265 = arith.divf %263, %264 : vector<8x128xf32>
    %266 = vector.extract_strided_slice %253 {offsets = [0, 256], sizes = [8, 128], strides = [1, 1]} : vector<8x512xf32> to vector<8x128xf32>
    %267 = math.tanh %266 : vector<8x128xf32>
    %268 = vector.extract_strided_slice %253 {offsets = [0, 384], sizes = [8, 128], strides = [1, 1]} : vector<8x512xf32> to vector<8x128xf32>
    %269 = arith.negf %268 : vector<8x128xf32>
    %270 = math.exp %269 : vector<8x128xf32>
    %cst_75 = arith.constant 1.000000e+00 : f32
    %271 = vector.broadcast %cst_75 : f32 to vector<8x128xf32>
    %272 = arith.addf %271, %270 : vector<8x128xf32>
    %273 = arith.divf %271, %272 : vector<8x128xf32>
    %274 = arith.mulf %265, %218 : vector<8x128xf32>
    %275 = arith.mulf %259, %267 : vector<8x128xf32>
    %276 = arith.addf %274, %275 : vector<8x128xf32>
    %277 = math.tanh %276 : vector<8x128xf32>
    %278 = arith.mulf %273, %277 : vector<8x128xf32>
    %c2_i32 = arith.constant 2 : i32
    %279 = vector.broadcast %c2_i32 : i32 to vector<8x1xi32>
    %280 = arith.cmpi sgt, %0, %279 : vector<8x1xi32>
    %c5_i32 = arith.constant 5 : i32
    %281 = vector.broadcast %c5_i32 : i32 to vector<8x1xi32>
    %282 = arith.cmpi sgt, %0, %281 : vector<8x1xi32>
    %cst_76 = arith.constant 0.000000e+00 : f32
    %283 = vector.shape_cast %280 : vector<8x1xi1> to vector<8x1xi1>
    %284 = vector.broadcast %283 : vector<8x1xi1> to vector<8x128xi1>
    %285 = vector.broadcast %cst_76 : f32 to vector<8x128xf32>
    %286 = arith.select %284, %249, %285 : vector<8x128xi1>, vector<8x128xf32>
    %cst_77 = arith.constant 0.000000e+00 : f32
    %287 = vector.shape_cast %280 : vector<8x1xi1> to vector<8x1xi1>
    %288 = vector.broadcast %287 : vector<8x1xi1> to vector<8x128xi1>
    %289 = vector.broadcast %cst_77 : f32 to vector<8x128xf32>
    %290 = arith.select %288, %247, %289 : vector<8x128xi1>, vector<8x128xf32>
    %cst_78 = arith.constant 0.000000e+00 : f32
    %291 = vector.shape_cast %282 : vector<8x1xi1> to vector<8x1xi1>
    %292 = vector.broadcast %291 : vector<8x1xi1> to vector<8x128xi1>
    %293 = vector.broadcast %cst_78 : f32 to vector<8x128xf32>
    %294 = arith.select %292, %278, %293 : vector<8x128xi1>, vector<8x128xf32>
    %cst_79 = arith.constant 0.000000e+00 : f32
    %295 = vector.shape_cast %282 : vector<8x1xi1> to vector<8x1xi1>
    %296 = vector.broadcast %295 : vector<8x1xi1> to vector<8x128xi1>
    %297 = vector.broadcast %cst_79 : f32 to vector<8x128xf32>
    %298 = arith.select %296, %276, %297 : vector<8x128xi1>, vector<8x128xf32>
    %c24 = arith.constant 24 : index
    %c0_80 = arith.constant 0 : index
    %299 = vector.load %arg15[%c24, %c0_80] : memref<64x1024xf32, #tpu.memory_space<vmem>>, vector<8x512xf32>
    %c32 = arith.constant 32 : index
    %c512_81 = arith.constant 512 : index
    %300 = vector.load %arg15[%c32, %c512_81] : memref<64x1024xf32, #tpu.memory_space<vmem>>, vector<8x512xf32>
    %301 = arith.truncf %286 : vector<8x128xf32> to vector<8x128xbf16>
    %c0_82 = arith.constant 0 : index
    %c0_83 = arith.constant 0 : index
    %302 = vector.load %arg9[%c0_82, %c0_83] : memref<128x512xbf16, #tpu.memory_space<vmem>>, vector<128x512xbf16>
    %cst_84 = arith.constant dense<0.000000e+00> : vector<8x512xf32>
    %303 = tpu.matmul %301, %302, %cst_84 {dimension_numbers = #tpu.dot_dimension_numbers<[1], [0], [0], [1], [0, 0, 1, 1], [], []>} : vector<8x128xbf16>, vector<128x512xbf16>, vector<8x512xf32> -> vector<8x512xf32>
    %304 = arith.addf %299, %303 : vector<8x512xf32>
    %305 = vector.extract_strided_slice %304 {offsets = [0, 0], sizes = [8, 128], strides = [1, 1]} : vector<8x512xf32> to vector<8x128xf32>
    %306 = arith.negf %305 : vector<8x128xf32>
    %307 = math.exp %306 : vector<8x128xf32>
    %cst_85 = arith.constant 1.000000e+00 : f32
    %308 = vector.broadcast %cst_85 : f32 to vector<8x128xf32>
    %309 = arith.addf %308, %307 : vector<8x128xf32>
    %310 = arith.divf %308, %309 : vector<8x128xf32>
    %311 = vector.extract_strided_slice %304 {offsets = [0, 128], sizes = [8, 128], strides = [1, 1]} : vector<8x512xf32> to vector<8x128xf32>
    %312 = arith.negf %311 : vector<8x128xf32>
    %313 = math.exp %312 : vector<8x128xf32>
    %cst_86 = arith.constant 1.000000e+00 : f32
    %314 = vector.broadcast %cst_86 : f32 to vector<8x128xf32>
    %315 = arith.addf %314, %313 : vector<8x128xf32>
    %316 = arith.divf %314, %315 : vector<8x128xf32>
    %317 = vector.extract_strided_slice %304 {offsets = [0, 256], sizes = [8, 128], strides = [1, 1]} : vector<8x512xf32> to vector<8x128xf32>
    %318 = math.tanh %317 : vector<8x128xf32>
    %319 = vector.extract_strided_slice %304 {offsets = [0, 384], sizes = [8, 128], strides = [1, 1]} : vector<8x512xf32> to vector<8x128xf32>
    %320 = arith.negf %319 : vector<8x128xf32>
    %321 = math.exp %320 : vector<8x128xf32>
    %cst_87 = arith.constant 1.000000e+00 : f32
    %322 = vector.broadcast %cst_87 : f32 to vector<8x128xf32>
    %323 = arith.addf %322, %321 : vector<8x128xf32>
    %324 = arith.divf %322, %323 : vector<8x128xf32>
    %325 = arith.mulf %316, %290 : vector<8x128xf32>
    %326 = arith.mulf %310, %318 : vector<8x128xf32>
    %327 = arith.addf %325, %326 : vector<8x128xf32>
    %328 = math.tanh %327 : vector<8x128xf32>
    %329 = arith.mulf %324, %328 : vector<8x128xf32>
    %330 = arith.truncf %294 : vector<8x128xf32> to vector<8x128xbf16>
    %c0_88 = arith.constant 0 : index
    %c0_89 = arith.constant 0 : index
    %331 = vector.load %arg10[%c0_88, %c0_89] : memref<128x512xbf16, #tpu.memory_space<vmem>>, vector<128x512xbf16>
    %cst_90 = arith.constant dense<0.000000e+00> : vector<8x512xf32>
    %332 = tpu.matmul %330, %331, %cst_90 {dimension_numbers = #tpu.dot_dimension_numbers<[1], [0], [0], [1], [0, 0, 1, 1], [], []>} : vector<8x128xbf16>, vector<128x512xbf16>, vector<8x512xf32> -> vector<8x512xf32>
    %333 = arith.addf %300, %332 : vector<8x512xf32>
    %334 = vector.extract_strided_slice %333 {offsets = [0, 0], sizes = [8, 128], strides = [1, 1]} : vector<8x512xf32> to vector<8x128xf32>
    %335 = arith.negf %334 : vector<8x128xf32>
    %336 = math.exp %335 : vector<8x128xf32>
    %cst_91 = arith.constant 1.000000e+00 : f32
    %337 = vector.broadcast %cst_91 : f32 to vector<8x128xf32>
    %338 = arith.addf %337, %336 : vector<8x128xf32>
    %339 = arith.divf %337, %338 : vector<8x128xf32>
    %340 = vector.extract_strided_slice %333 {offsets = [0, 128], sizes = [8, 128], strides = [1, 1]} : vector<8x512xf32> to vector<8x128xf32>
    %341 = arith.negf %340 : vector<8x128xf32>
    %342 = math.exp %341 : vector<8x128xf32>
    %cst_92 = arith.constant 1.000000e+00 : f32
    %343 = vector.broadcast %cst_92 : f32 to vector<8x128xf32>
    %344 = arith.addf %343, %342 : vector<8x128xf32>
    %345 = arith.divf %343, %344 : vector<8x128xf32>
    %346 = vector.extract_strided_slice %333 {offsets = [0, 256], sizes = [8, 128], strides = [1, 1]} : vector<8x512xf32> to vector<8x128xf32>
    %347 = math.tanh %346 : vector<8x128xf32>
    %348 = vector.extract_strided_slice %333 {offsets = [0, 384], sizes = [8, 128], strides = [1, 1]} : vector<8x512xf32> to vector<8x128xf32>
    %349 = arith.negf %348 : vector<8x128xf32>
    %350 = math.exp %349 : vector<8x128xf32>
    %cst_93 = arith.constant 1.000000e+00 : f32
    %351 = vector.broadcast %cst_93 : f32 to vector<8x128xf32>
    %352 = arith.addf %351, %350 : vector<8x128xf32>
    %353 = arith.divf %351, %352 : vector<8x128xf32>
    %354 = arith.mulf %345, %298 : vector<8x128xf32>
    %355 = arith.mulf %339, %347 : vector<8x128xf32>
    %356 = arith.addf %354, %355 : vector<8x128xf32>
    %357 = math.tanh %356 : vector<8x128xf32>
    %358 = arith.mulf %353, %357 : vector<8x128xf32>
    %c3_i32 = arith.constant 3 : i32
    %359 = vector.broadcast %c3_i32 : i32 to vector<8x1xi32>
    %360 = arith.cmpi sgt, %0, %359 : vector<8x1xi32>
    %c4_i32 = arith.constant 4 : i32
    %361 = vector.broadcast %c4_i32 : i32 to vector<8x1xi32>
    %362 = arith.cmpi sgt, %0, %361 : vector<8x1xi32>
    %cst_94 = arith.constant 0.000000e+00 : f32
    %363 = vector.shape_cast %360 : vector<8x1xi1> to vector<8x1xi1>
    %364 = vector.broadcast %363 : vector<8x1xi1> to vector<8x128xi1>
    %365 = vector.broadcast %cst_94 : f32 to vector<8x128xf32>
    %366 = arith.select %364, %329, %365 : vector<8x128xi1>, vector<8x128xf32>
    %cst_95 = arith.constant 0.000000e+00 : f32
    %367 = vector.shape_cast %360 : vector<8x1xi1> to vector<8x1xi1>
    %368 = vector.broadcast %367 : vector<8x1xi1> to vector<8x128xi1>
    %369 = vector.broadcast %cst_95 : f32 to vector<8x128xf32>
    %370 = arith.select %368, %327, %369 : vector<8x128xi1>, vector<8x128xf32>
    %cst_96 = arith.constant 0.000000e+00 : f32
    %371 = vector.shape_cast %362 : vector<8x1xi1> to vector<8x1xi1>
    %372 = vector.broadcast %371 : vector<8x1xi1> to vector<8x128xi1>
    %373 = vector.broadcast %cst_96 : f32 to vector<8x128xf32>
    %374 = arith.select %372, %358, %373 : vector<8x128xi1>, vector<8x128xf32>
    %cst_97 = arith.constant 0.000000e+00 : f32
    %375 = vector.shape_cast %362 : vector<8x1xi1> to vector<8x1xi1>
    %376 = vector.broadcast %375 : vector<8x1xi1> to vector<8x128xi1>
    %377 = vector.broadcast %cst_97 : f32 to vector<8x128xf32>
    %378 = arith.select %376, %356, %377 : vector<8x128xi1>, vector<8x128xf32>
    %c32_98 = arith.constant 32 : index
    %c0_99 = arith.constant 0 : index
    %379 = vector.load %arg15[%c32_98, %c0_99] : memref<64x1024xf32, #tpu.memory_space<vmem>>, vector<8x512xf32>
    %c24_100 = arith.constant 24 : index
    %c512_101 = arith.constant 512 : index
    %380 = vector.load %arg15[%c24_100, %c512_101] : memref<64x1024xf32, #tpu.memory_space<vmem>>, vector<8x512xf32>
    %381 = arith.truncf %366 : vector<8x128xf32> to vector<8x128xbf16>
    %c0_102 = arith.constant 0 : index
    %c0_103 = arith.constant 0 : index
    %382 = vector.load %arg9[%c0_102, %c0_103] : memref<128x512xbf16, #tpu.memory_space<vmem>>, vector<128x512xbf16>
    %cst_104 = arith.constant dense<0.000000e+00> : vector<8x512xf32>
    %383 = tpu.matmul %381, %382, %cst_104 {dimension_numbers = #tpu.dot_dimension_numbers<[1], [0], [0], [1], [0, 0, 1, 1], [], []>} : vector<8x128xbf16>, vector<128x512xbf16>, vector<8x512xf32> -> vector<8x512xf32>
    %384 = arith.addf %379, %383 : vector<8x512xf32>
    %385 = vector.extract_strided_slice %384 {offsets = [0, 0], sizes = [8, 128], strides = [1, 1]} : vector<8x512xf32> to vector<8x128xf32>
    %386 = arith.negf %385 : vector<8x128xf32>
    %387 = math.exp %386 : vector<8x128xf32>
    %cst_105 = arith.constant 1.000000e+00 : f32
    %388 = vector.broadcast %cst_105 : f32 to vector<8x128xf32>
    %389 = arith.addf %388, %387 : vector<8x128xf32>
    %390 = arith.divf %388, %389 : vector<8x128xf32>
    %391 = vector.extract_strided_slice %384 {offsets = [0, 128], sizes = [8, 128], strides = [1, 1]} : vector<8x512xf32> to vector<8x128xf32>
    %392 = arith.negf %391 : vector<8x128xf32>
    %393 = math.exp %392 : vector<8x128xf32>
    %cst_106 = arith.constant 1.000000e+00 : f32
    %394 = vector.broadcast %cst_106 : f32 to vector<8x128xf32>
    %395 = arith.addf %394, %393 : vector<8x128xf32>
    %396 = arith.divf %394, %395 : vector<8x128xf32>
    %397 = vector.extract_strided_slice %384 {offsets = [0, 256], sizes = [8, 128], strides = [1, 1]} : vector<8x512xf32> to vector<8x128xf32>
    %398 = math.tanh %397 : vector<8x128xf32>
    %399 = vector.extract_strided_slice %384 {offsets = [0, 384], sizes = [8, 128], strides = [1, 1]} : vector<8x512xf32> to vector<8x128xf32>
    %400 = arith.negf %399 : vector<8x128xf32>
    %401 = math.exp %400 : vector<8x128xf32>
    %cst_107 = arith.constant 1.000000e+00 : f32
    %402 = vector.broadcast %cst_107 : f32 to vector<8x128xf32>
    %403 = arith.addf %402, %401 : vector<8x128xf32>
    %404 = arith.divf %402, %403 : vector<8x128xf32>
    %405 = arith.mulf %396, %370 : vector<8x128xf32>
    %406 = arith.mulf %390, %398 : vector<8x128xf32>
    %407 = arith.addf %405, %406 : vector<8x128xf32>
    %408 = math.tanh %407 : vector<8x128xf32>
    %409 = arith.mulf %404, %408 : vector<8x128xf32>
    %410 = arith.truncf %374 : vector<8x128xf32> to vector<8x128xbf16>
    %c0_108 = arith.constant 0 : index
    %c0_109 = arith.constant 0 : index
    %411 = vector.load %arg10[%c0_108, %c0_109] : memref<128x512xbf16, #tpu.memory_space<vmem>>, vector<128x512xbf16>
    %cst_110 = arith.constant dense<0.000000e+00> : vector<8x512xf32>
    %412 = tpu.matmul %410, %411, %cst_110 {dimension_numbers = #tpu.dot_dimension_numbers<[1], [0], [0], [1], [0, 0, 1, 1], [], []>} : vector<8x128xbf16>, vector<128x512xbf16>, vector<8x512xf32> -> vector<8x512xf32>
    %413 = arith.addf %380, %412 : vector<8x512xf32>
    %414 = vector.extract_strided_slice %413 {offsets = [0, 0], sizes = [8, 128], strides = [1, 1]} : vector<8x512xf32> to vector<8x128xf32>
    %415 = arith.negf %414 : vector<8x128xf32>
    %416 = math.exp %415 : vector<8x128xf32>
    %cst_111 = arith.constant 1.000000e+00 : f32
    %417 = vector.broadcast %cst_111 : f32 to vector<8x128xf32>
    %418 = arith.addf %417, %416 : vector<8x128xf32>
    %419 = arith.divf %417, %418 : vector<8x128xf32>
    %420 = vector.extract_strided_slice %413 {offsets = [0, 128], sizes = [8, 128], strides = [1, 1]} : vector<8x512xf32> to vector<8x128xf32>
    %421 = arith.negf %420 : vector<8x128xf32>
    %422 = math.exp %421 : vector<8x128xf32>
    %cst_112 = arith.constant 1.000000e+00 : f32
    %423 = vector.broadcast %cst_112 : f32 to vector<8x128xf32>
    %424 = arith.addf %423, %422 : vector<8x128xf32>
    %425 = arith.divf %423, %424 : vector<8x128xf32>
    %426 = vector.extract_strided_slice %413 {offsets = [0, 256], sizes = [8, 128], strides = [1, 1]} : vector<8x512xf32> to vector<8x128xf32>
    %427 = math.tanh %426 : vector<8x128xf32>
    %428 = vector.extract_strided_slice %413 {offsets = [0, 384], sizes = [8, 128], strides = [1, 1]} : vector<8x512xf32> to vector<8x128xf32>
    %429 = arith.negf %428 : vector<8x128xf32>
    %430 = math.exp %429 : vector<8x128xf32>
    %cst_113 = arith.constant 1.000000e+00 : f32
    %431 = vector.broadcast %cst_113 : f32 to vector<8x128xf32>
    %432 = arith.addf %431, %430 : vector<8x128xf32>
    %433 = arith.divf %431, %432 : vector<8x128xf32>
    %434 = arith.mulf %425, %378 : vector<8x128xf32>
    %435 = arith.mulf %419, %427 : vector<8x128xf32>
    %436 = arith.addf %434, %435 : vector<8x128xf32>
    %437 = math.tanh %436 : vector<8x128xf32>
    %438 = arith.mulf %433, %437 : vector<8x128xf32>
    %c4_i32_114 = arith.constant 4 : i32
    %439 = vector.broadcast %c4_i32_114 : i32 to vector<8x1xi32>
    %440 = arith.cmpi sgt, %0, %439 : vector<8x1xi32>
    %c3_i32_115 = arith.constant 3 : i32
    %441 = vector.broadcast %c3_i32_115 : i32 to vector<8x1xi32>
    %442 = arith.cmpi sgt, %0, %441 : vector<8x1xi32>
    %cst_116 = arith.constant 0.000000e+00 : f32
    %443 = vector.shape_cast %440 : vector<8x1xi1> to vector<8x1xi1>
    %444 = vector.broadcast %443 : vector<8x1xi1> to vector<8x128xi1>
    %445 = vector.broadcast %cst_116 : f32 to vector<8x128xf32>
    %446 = arith.select %444, %409, %445 : vector<8x128xi1>, vector<8x128xf32>
    %cst_117 = arith.constant 0.000000e+00 : f32
    %447 = vector.shape_cast %440 : vector<8x1xi1> to vector<8x1xi1>
    %448 = vector.broadcast %447 : vector<8x1xi1> to vector<8x128xi1>
    %449 = vector.broadcast %cst_117 : f32 to vector<8x128xf32>
    %450 = arith.select %448, %407, %449 : vector<8x128xi1>, vector<8x128xf32>
    %cst_118 = arith.constant 0.000000e+00 : f32
    %451 = vector.shape_cast %442 : vector<8x1xi1> to vector<8x1xi1>
    %452 = vector.broadcast %451 : vector<8x1xi1> to vector<8x128xi1>
    %453 = vector.broadcast %cst_118 : f32 to vector<8x128xf32>
    %454 = arith.select %452, %438, %453 : vector<8x128xi1>, vector<8x128xf32>
    %cst_119 = arith.constant 0.000000e+00 : f32
    %455 = vector.shape_cast %442 : vector<8x1xi1> to vector<8x1xi1>
    %456 = vector.broadcast %455 : vector<8x1xi1> to vector<8x128xi1>
    %457 = vector.broadcast %cst_119 : f32 to vector<8x128xf32>
    %458 = arith.select %456, %436, %457 : vector<8x128xi1>, vector<8x128xf32>
    %c40_120 = arith.constant 40 : index
    %c0_121 = arith.constant 0 : index
    %459 = vector.load %arg15[%c40_120, %c0_121] : memref<64x1024xf32, #tpu.memory_space<vmem>>, vector<8x512xf32>
    %c16_122 = arith.constant 16 : index
    %c512_123 = arith.constant 512 : index
    %460 = vector.load %arg15[%c16_122, %c512_123] : memref<64x1024xf32, #tpu.memory_space<vmem>>, vector<8x512xf32>
    %461 = arith.truncf %446 : vector<8x128xf32> to vector<8x128xbf16>
    %c0_124 = arith.constant 0 : index
    %c0_125 = arith.constant 0 : index
    %462 = vector.load %arg9[%c0_124, %c0_125] : memref<128x512xbf16, #tpu.memory_space<vmem>>, vector<128x512xbf16>
    %cst_126 = arith.constant dense<0.000000e+00> : vector<8x512xf32>
    %463 = tpu.matmul %461, %462, %cst_126 {dimension_numbers = #tpu.dot_dimension_numbers<[1], [0], [0], [1], [0, 0, 1, 1], [], []>} : vector<8x128xbf16>, vector<128x512xbf16>, vector<8x512xf32> -> vector<8x512xf32>
    %464 = arith.addf %459, %463 : vector<8x512xf32>
    %465 = vector.extract_strided_slice %464 {offsets = [0, 0], sizes = [8, 128], strides = [1, 1]} : vector<8x512xf32> to vector<8x128xf32>
    %466 = arith.negf %465 : vector<8x128xf32>
    %467 = math.exp %466 : vector<8x128xf32>
    %cst_127 = arith.constant 1.000000e+00 : f32
    %468 = vector.broadcast %cst_127 : f32 to vector<8x128xf32>
    %469 = arith.addf %468, %467 : vector<8x128xf32>
    %470 = arith.divf %468, %469 : vector<8x128xf32>
    %471 = vector.extract_strided_slice %464 {offsets = [0, 128], sizes = [8, 128], strides = [1, 1]} : vector<8x512xf32> to vector<8x128xf32>
    %472 = arith.negf %471 : vector<8x128xf32>
    %473 = math.exp %472 : vector<8x128xf32>
    %cst_128 = arith.constant 1.000000e+00 : f32
    %474 = vector.broadcast %cst_128 : f32 to vector<8x128xf32>
    %475 = arith.addf %474, %473 : vector<8x128xf32>
    %476 = arith.divf %474, %475 : vector<8x128xf32>
    %477 = vector.extract_strided_slice %464 {offsets = [0, 256], sizes = [8, 128], strides = [1, 1]} : vector<8x512xf32> to vector<8x128xf32>
    %478 = math.tanh %477 : vector<8x128xf32>
    %479 = vector.extract_strided_slice %464 {offsets = [0, 384], sizes = [8, 128], strides = [1, 1]} : vector<8x512xf32> to vector<8x128xf32>
    %480 = arith.negf %479 : vector<8x128xf32>
    %481 = math.exp %480 : vector<8x128xf32>
    %cst_129 = arith.constant 1.000000e+00 : f32
    %482 = vector.broadcast %cst_129 : f32 to vector<8x128xf32>
    %483 = arith.addf %482, %481 : vector<8x128xf32>
    %484 = arith.divf %482, %483 : vector<8x128xf32>
    %485 = arith.mulf %476, %450 : vector<8x128xf32>
    %486 = arith.mulf %470, %478 : vector<8x128xf32>
    %487 = arith.addf %485, %486 : vector<8x128xf32>
    %488 = math.tanh %487 : vector<8x128xf32>
    %489 = arith.mulf %484, %488 : vector<8x128xf32>
    %490 = arith.truncf %454 : vector<8x128xf32> to vector<8x128xbf16>
    %c0_130 = arith.constant 0 : index
    %c0_131 = arith.constant 0 : index
    %491 = vector.load %arg10[%c0_130, %c0_131] : memref<128x512xbf16, #tpu.memory_space<vmem>>, vector<128x512xbf16>
    %cst_132 = arith.constant dense<0.000000e+00> : vector<8x512xf32>
    %492 = tpu.matmul %490, %491, %cst_132 {dimension_numbers = #tpu.dot_dimension_numbers<[1], [0], [0], [1], [0, 0, 1, 1], [], []>} : vector<8x128xbf16>, vector<128x512xbf16>, vector<8x512xf32> -> vector<8x512xf32>
    %493 = arith.addf %460, %492 : vector<8x512xf32>
    %494 = vector.extract_strided_slice %493 {offsets = [0, 0], sizes = [8, 128], strides = [1, 1]} : vector<8x512xf32> to vector<8x128xf32>
    %495 = arith.negf %494 : vector<8x128xf32>
    %496 = math.exp %495 : vector<8x128xf32>
    %cst_133 = arith.constant 1.000000e+00 : f32
    %497 = vector.broadcast %cst_133 : f32 to vector<8x128xf32>
    %498 = arith.addf %497, %496 : vector<8x128xf32>
    %499 = arith.divf %497, %498 : vector<8x128xf32>
    %500 = vector.extract_strided_slice %493 {offsets = [0, 128], sizes = [8, 128], strides = [1, 1]} : vector<8x512xf32> to vector<8x128xf32>
    %501 = arith.negf %500 : vector<8x128xf32>
    %502 = math.exp %501 : vector<8x128xf32>
    %cst_134 = arith.constant 1.000000e+00 : f32
    %503 = vector.broadcast %cst_134 : f32 to vector<8x128xf32>
    %504 = arith.addf %503, %502 : vector<8x128xf32>
    %505 = arith.divf %503, %504 : vector<8x128xf32>
    %506 = vector.extract_strided_slice %493 {offsets = [0, 256], sizes = [8, 128], strides = [1, 1]} : vector<8x512xf32> to vector<8x128xf32>
    %507 = math.tanh %506 : vector<8x128xf32>
    %508 = vector.extract_strided_slice %493 {offsets = [0, 384], sizes = [8, 128], strides = [1, 1]} : vector<8x512xf32> to vector<8x128xf32>
    %509 = arith.negf %508 : vector<8x128xf32>
    %510 = math.exp %509 : vector<8x128xf32>
    %cst_135 = arith.constant 1.000000e+00 : f32
    %511 = vector.broadcast %cst_135 : f32 to vector<8x128xf32>
    %512 = arith.addf %511, %510 : vector<8x128xf32>
    %513 = arith.divf %511, %512 : vector<8x128xf32>
    %514 = arith.mulf %505, %458 : vector<8x128xf32>
    %515 = arith.mulf %499, %507 : vector<8x128xf32>
    %516 = arith.addf %514, %515 : vector<8x128xf32>
    %517 = math.tanh %516 : vector<8x128xf32>
    %518 = arith.mulf %513, %517 : vector<8x128xf32>
    %c5_i32_136 = arith.constant 5 : i32
    %519 = vector.broadcast %c5_i32_136 : i32 to vector<8x1xi32>
    %520 = arith.cmpi sgt, %0, %519 : vector<8x1xi32>
    %c2_i32_137 = arith.constant 2 : i32
    %521 = vector.broadcast %c2_i32_137 : i32 to vector<8x1xi32>
    %522 = arith.cmpi sgt, %0, %521 : vector<8x1xi32>
    %cst_138 = arith.constant 0.000000e+00 : f32
    %523 = vector.shape_cast %520 : vector<8x1xi1> to vector<8x1xi1>
    %524 = vector.broadcast %523 : vector<8x1xi1> to vector<8x128xi1>
    %525 = vector.broadcast %cst_138 : f32 to vector<8x128xf32>
    %526 = arith.select %524, %489, %525 : vector<8x128xi1>, vector<8x128xf32>
    %cst_139 = arith.constant 0.000000e+00 : f32
    %527 = vector.shape_cast %520 : vector<8x1xi1> to vector<8x1xi1>
    %528 = vector.broadcast %527 : vector<8x1xi1> to vector<8x128xi1>
    %529 = vector.broadcast %cst_139 : f32 to vector<8x128xf32>
    %530 = arith.select %528, %487, %529 : vector<8x128xi1>, vector<8x128xf32>
    %cst_140 = arith.constant 0.000000e+00 : f32
    %531 = vector.shape_cast %522 : vector<8x1xi1> to vector<8x1xi1>
    %532 = vector.broadcast %531 : vector<8x1xi1> to vector<8x128xi1>
    %533 = vector.broadcast %cst_140 : f32 to vector<8x128xf32>
    %534 = arith.select %532, %518, %533 : vector<8x128xi1>, vector<8x128xf32>
    %cst_141 = arith.constant 0.000000e+00 : f32
    %535 = vector.shape_cast %522 : vector<8x1xi1> to vector<8x1xi1>
    %536 = vector.broadcast %535 : vector<8x1xi1> to vector<8x128xi1>
    %537 = vector.broadcast %cst_141 : f32 to vector<8x128xf32>
    %538 = arith.select %536, %516, %537 : vector<8x128xi1>, vector<8x128xf32>
    %c48_142 = arith.constant 48 : index
    %c0_143 = arith.constant 0 : index
    %539 = vector.load %arg15[%c48_142, %c0_143] : memref<64x1024xf32, #tpu.memory_space<vmem>>, vector<8x512xf32>
    %c8_144 = arith.constant 8 : index
    %c512_145 = arith.constant 512 : index
    %540 = vector.load %arg15[%c8_144, %c512_145] : memref<64x1024xf32, #tpu.memory_space<vmem>>, vector<8x512xf32>
    %541 = arith.truncf %526 : vector<8x128xf32> to vector<8x128xbf16>
    %c0_146 = arith.constant 0 : index
    %c0_147 = arith.constant 0 : index
    %542 = vector.load %arg9[%c0_146, %c0_147] : memref<128x512xbf16, #tpu.memory_space<vmem>>, vector<128x512xbf16>
    %cst_148 = arith.constant dense<0.000000e+00> : vector<8x512xf32>
    %543 = tpu.matmul %541, %542, %cst_148 {dimension_numbers = #tpu.dot_dimension_numbers<[1], [0], [0], [1], [0, 0, 1, 1], [], []>} : vector<8x128xbf16>, vector<128x512xbf16>, vector<8x512xf32> -> vector<8x512xf32>
    %544 = arith.addf %539, %543 : vector<8x512xf32>
    %545 = vector.extract_strided_slice %544 {offsets = [0, 0], sizes = [8, 128], strides = [1, 1]} : vector<8x512xf32> to vector<8x128xf32>
    %546 = arith.negf %545 : vector<8x128xf32>
    %547 = math.exp %546 : vector<8x128xf32>
    %cst_149 = arith.constant 1.000000e+00 : f32
    %548 = vector.broadcast %cst_149 : f32 to vector<8x128xf32>
    %549 = arith.addf %548, %547 : vector<8x128xf32>
    %550 = arith.divf %548, %549 : vector<8x128xf32>
    %551 = vector.extract_strided_slice %544 {offsets = [0, 128], sizes = [8, 128], strides = [1, 1]} : vector<8x512xf32> to vector<8x128xf32>
    %552 = arith.negf %551 : vector<8x128xf32>
    %553 = math.exp %552 : vector<8x128xf32>
    %cst_150 = arith.constant 1.000000e+00 : f32
    %554 = vector.broadcast %cst_150 : f32 to vector<8x128xf32>
    %555 = arith.addf %554, %553 : vector<8x128xf32>
    %556 = arith.divf %554, %555 : vector<8x128xf32>
    %557 = vector.extract_strided_slice %544 {offsets = [0, 256], sizes = [8, 128], strides = [1, 1]} : vector<8x512xf32> to vector<8x128xf32>
    %558 = math.tanh %557 : vector<8x128xf32>
    %559 = vector.extract_strided_slice %544 {offsets = [0, 384], sizes = [8, 128], strides = [1, 1]} : vector<8x512xf32> to vector<8x128xf32>
    %560 = arith.negf %559 : vector<8x128xf32>
    %561 = math.exp %560 : vector<8x128xf32>
    %cst_151 = arith.constant 1.000000e+00 : f32
    %562 = vector.broadcast %cst_151 : f32 to vector<8x128xf32>
    %563 = arith.addf %562, %561 : vector<8x128xf32>
    %564 = arith.divf %562, %563 : vector<8x128xf32>
    %565 = arith.mulf %556, %530 : vector<8x128xf32>
    %566 = arith.mulf %550, %558 : vector<8x128xf32>
    %567 = arith.addf %565, %566 : vector<8x128xf32>
    %568 = math.tanh %567 : vector<8x128xf32>
    %569 = arith.mulf %564, %568 : vector<8x128xf32>
    %570 = arith.truncf %534 : vector<8x128xf32> to vector<8x128xbf16>
    %c0_152 = arith.constant 0 : index
    %c0_153 = arith.constant 0 : index
    %571 = vector.load %arg10[%c0_152, %c0_153] : memref<128x512xbf16, #tpu.memory_space<vmem>>, vector<128x512xbf16>
    %cst_154 = arith.constant dense<0.000000e+00> : vector<8x512xf32>
    %572 = tpu.matmul %570, %571, %cst_154 {dimension_numbers = #tpu.dot_dimension_numbers<[1], [0], [0], [1], [0, 0, 1, 1], [], []>} : vector<8x128xbf16>, vector<128x512xbf16>, vector<8x512xf32> -> vector<8x512xf32>
    %573 = arith.addf %540, %572 : vector<8x512xf32>
    %574 = vector.extract_strided_slice %573 {offsets = [0, 0], sizes = [8, 128], strides = [1, 1]} : vector<8x512xf32> to vector<8x128xf32>
    %575 = arith.negf %574 : vector<8x128xf32>
    %576 = math.exp %575 : vector<8x128xf32>
    %cst_155 = arith.constant 1.000000e+00 : f32
    %577 = vector.broadcast %cst_155 : f32 to vector<8x128xf32>
    %578 = arith.addf %577, %576 : vector<8x128xf32>
    %579 = arith.divf %577, %578 : vector<8x128xf32>
    %580 = vector.extract_strided_slice %573 {offsets = [0, 128], sizes = [8, 128], strides = [1, 1]} : vector<8x512xf32> to vector<8x128xf32>
    %581 = arith.negf %580 : vector<8x128xf32>
    %582 = math.exp %581 : vector<8x128xf32>
    %cst_156 = arith.constant 1.000000e+00 : f32
    %583 = vector.broadcast %cst_156 : f32 to vector<8x128xf32>
    %584 = arith.addf %583, %582 : vector<8x128xf32>
    %585 = arith.divf %583, %584 : vector<8x128xf32>
    %586 = vector.extract_strided_slice %573 {offsets = [0, 256], sizes = [8, 128], strides = [1, 1]} : vector<8x512xf32> to vector<8x128xf32>
    %587 = math.tanh %586 : vector<8x128xf32>
    %588 = vector.extract_strided_slice %573 {offsets = [0, 384], sizes = [8, 128], strides = [1, 1]} : vector<8x512xf32> to vector<8x128xf32>
    %589 = arith.negf %588 : vector<8x128xf32>
    %590 = math.exp %589 : vector<8x128xf32>
    %cst_157 = arith.constant 1.000000e+00 : f32
    %591 = vector.broadcast %cst_157 : f32 to vector<8x128xf32>
    %592 = arith.addf %591, %590 : vector<8x128xf32>
    %593 = arith.divf %591, %592 : vector<8x128xf32>
    %594 = arith.mulf %585, %538 : vector<8x128xf32>
    %595 = arith.mulf %579, %587 : vector<8x128xf32>
    %596 = arith.addf %594, %595 : vector<8x128xf32>
    %597 = math.tanh %596 : vector<8x128xf32>
    %598 = arith.mulf %593, %597 : vector<8x128xf32>
    %c6_i32_158 = arith.constant 6 : i32
    %599 = vector.broadcast %c6_i32_158 : i32 to vector<8x1xi32>
    %600 = arith.cmpi sgt, %0, %599 : vector<8x1xi32>
    %c1_i32_159 = arith.constant 1 : i32
    %601 = vector.broadcast %c1_i32_159 : i32 to vector<8x1xi32>
    %602 = arith.cmpi sgt, %0, %601 : vector<8x1xi32>
    %cst_160 = arith.constant 0.000000e+00 : f32
    %603 = vector.shape_cast %600 : vector<8x1xi1> to vector<8x1xi1>
    %604 = vector.broadcast %603 : vector<8x1xi1> to vector<8x128xi1>
    %605 = vector.broadcast %cst_160 : f32 to vector<8x128xf32>
    %606 = arith.select %604, %569, %605 : vector<8x128xi1>, vector<8x128xf32>
    %cst_161 = arith.constant 0.000000e+00 : f32
    %607 = vector.shape_cast %600 : vector<8x1xi1> to vector<8x1xi1>
    %608 = vector.broadcast %607 : vector<8x1xi1> to vector<8x128xi1>
    %609 = vector.broadcast %cst_161 : f32 to vector<8x128xf32>
    %610 = arith.select %608, %567, %609 : vector<8x128xi1>, vector<8x128xf32>
    %cst_162 = arith.constant 0.000000e+00 : f32
    %611 = vector.shape_cast %602 : vector<8x1xi1> to vector<8x1xi1>
    %612 = vector.broadcast %611 : vector<8x1xi1> to vector<8x128xi1>
    %613 = vector.broadcast %cst_162 : f32 to vector<8x128xf32>
    %614 = arith.select %612, %598, %613 : vector<8x128xi1>, vector<8x128xf32>
    %cst_163 = arith.constant 0.000000e+00 : f32
    %615 = vector.shape_cast %602 : vector<8x1xi1> to vector<8x1xi1>
    %616 = vector.broadcast %615 : vector<8x1xi1> to vector<8x128xi1>
    %617 = vector.broadcast %cst_163 : f32 to vector<8x128xf32>
    %618 = arith.select %616, %596, %617 : vector<8x128xi1>, vector<8x128xf32>
    %c56_164 = arith.constant 56 : index
    %c0_165 = arith.constant 0 : index
    %619 = vector.load %arg15[%c56_164, %c0_165] : memref<64x1024xf32, #tpu.memory_space<vmem>>, vector<8x512xf32>
    %c0_166 = arith.constant 0 : index
    %c512_167 = arith.constant 512 : index
    %620 = vector.load %arg15[%c0_166, %c512_167] : memref<64x1024xf32, #tpu.memory_space<vmem>>, vector<8x512xf32>
    %621 = arith.truncf %606 : vector<8x128xf32> to vector<8x128xbf16>
    %c0_168 = arith.constant 0 : index
    %c0_169 = arith.constant 0 : index
    %622 = vector.load %arg9[%c0_168, %c0_169] : memref<128x512xbf16, #tpu.memory_space<vmem>>, vector<128x512xbf16>
    %cst_170 = arith.constant dense<0.000000e+00> : vector<8x512xf32>
    %623 = tpu.matmul %621, %622, %cst_170 {dimension_numbers = #tpu.dot_dimension_numbers<[1], [0], [0], [1], [0, 0, 1, 1], [], []>} : vector<8x128xbf16>, vector<128x512xbf16>, vector<8x512xf32> -> vector<8x512xf32>
    %624 = arith.addf %619, %623 : vector<8x512xf32>
    %625 = vector.extract_strided_slice %624 {offsets = [0, 0], sizes = [8, 128], strides = [1, 1]} : vector<8x512xf32> to vector<8x128xf32>
    %626 = arith.negf %625 : vector<8x128xf32>
    %627 = math.exp %626 : vector<8x128xf32>
    %cst_171 = arith.constant 1.000000e+00 : f32
    %628 = vector.broadcast %cst_171 : f32 to vector<8x128xf32>
    %629 = arith.addf %628, %627 : vector<8x128xf32>
    %630 = arith.divf %628, %629 : vector<8x128xf32>
    %631 = vector.extract_strided_slice %624 {offsets = [0, 128], sizes = [8, 128], strides = [1, 1]} : vector<8x512xf32> to vector<8x128xf32>
    %632 = arith.negf %631 : vector<8x128xf32>
    %633 = math.exp %632 : vector<8x128xf32>
    %cst_172 = arith.constant 1.000000e+00 : f32
    %634 = vector.broadcast %cst_172 : f32 to vector<8x128xf32>
    %635 = arith.addf %634, %633 : vector<8x128xf32>
    %636 = arith.divf %634, %635 : vector<8x128xf32>
    %637 = vector.extract_strided_slice %624 {offsets = [0, 256], sizes = [8, 128], strides = [1, 1]} : vector<8x512xf32> to vector<8x128xf32>
    %638 = math.tanh %637 : vector<8x128xf32>
    %639 = vector.extract_strided_slice %624 {offsets = [0, 384], sizes = [8, 128], strides = [1, 1]} : vector<8x512xf32> to vector<8x128xf32>
    %640 = arith.negf %639 : vector<8x128xf32>
    %641 = math.exp %640 : vector<8x128xf32>
    %cst_173 = arith.constant 1.000000e+00 : f32
    %642 = vector.broadcast %cst_173 : f32 to vector<8x128xf32>
    %643 = arith.addf %642, %641 : vector<8x128xf32>
    %644 = arith.divf %642, %643 : vector<8x128xf32>
    %645 = arith.mulf %636, %610 : vector<8x128xf32>
    %646 = arith.mulf %630, %638 : vector<8x128xf32>
    %647 = arith.addf %645, %646 : vector<8x128xf32>
    %648 = math.tanh %647 : vector<8x128xf32>
    %649 = arith.mulf %644, %648 : vector<8x128xf32>
    %650 = arith.truncf %614 : vector<8x128xf32> to vector<8x128xbf16>
    %c0_174 = arith.constant 0 : index
    %c0_175 = arith.constant 0 : index
    %651 = vector.load %arg10[%c0_174, %c0_175] : memref<128x512xbf16, #tpu.memory_space<vmem>>, vector<128x512xbf16>
    %cst_176 = arith.constant dense<0.000000e+00> : vector<8x512xf32>
    %652 = tpu.matmul %650, %651, %cst_176 {dimension_numbers = #tpu.dot_dimension_numbers<[1], [0], [0], [1], [0, 0, 1, 1], [], []>} : vector<8x128xbf16>, vector<128x512xbf16>, vector<8x512xf32> -> vector<8x512xf32>
    %653 = arith.addf %620, %652 : vector<8x512xf32>
    %654 = vector.extract_strided_slice %653 {offsets = [0, 0], sizes = [8, 128], strides = [1, 1]} : vector<8x512xf32> to vector<8x128xf32>
    %655 = arith.negf %654 : vector<8x128xf32>
    %656 = math.exp %655 : vector<8x128xf32>
    %cst_177 = arith.constant 1.000000e+00 : f32
    %657 = vector.broadcast %cst_177 : f32 to vector<8x128xf32>
    %658 = arith.addf %657, %656 : vector<8x128xf32>
    %659 = arith.divf %657, %658 : vector<8x128xf32>
    %660 = vector.extract_strided_slice %653 {offsets = [0, 128], sizes = [8, 128], strides = [1, 1]} : vector<8x512xf32> to vector<8x128xf32>
    %661 = arith.negf %660 : vector<8x128xf32>
    %662 = math.exp %661 : vector<8x128xf32>
    %cst_178 = arith.constant 1.000000e+00 : f32
    %663 = vector.broadcast %cst_178 : f32 to vector<8x128xf32>
    %664 = arith.addf %663, %662 : vector<8x128xf32>
    %665 = arith.divf %663, %664 : vector<8x128xf32>
    %666 = vector.extract_strided_slice %653 {offsets = [0, 256], sizes = [8, 128], strides = [1, 1]} : vector<8x512xf32> to vector<8x128xf32>
    %667 = math.tanh %666 : vector<8x128xf32>
    %668 = vector.extract_strided_slice %653 {offsets = [0, 384], sizes = [8, 128], strides = [1, 1]} : vector<8x512xf32> to vector<8x128xf32>
    %669 = arith.negf %668 : vector<8x128xf32>
    %670 = math.exp %669 : vector<8x128xf32>
    %cst_179 = arith.constant 1.000000e+00 : f32
    %671 = vector.broadcast %cst_179 : f32 to vector<8x128xf32>
    %672 = arith.addf %671, %670 : vector<8x128xf32>
    %673 = arith.divf %671, %672 : vector<8x128xf32>
    %674 = arith.mulf %665, %618 : vector<8x128xf32>
    %675 = arith.mulf %659, %667 : vector<8x128xf32>
    %676 = arith.addf %674, %675 : vector<8x128xf32>
    %677 = math.tanh %676 : vector<8x128xf32>
    %678 = arith.mulf %673, %677 : vector<8x128xf32>
    %c7_i32_180 = arith.constant 7 : i32
    %679 = vector.broadcast %c7_i32_180 : i32 to vector<8x1xi32>
    %680 = arith.cmpi sgt, %0, %679 : vector<8x1xi32>
    %c0_i32_181 = arith.constant 0 : i32
    %681 = vector.broadcast %c0_i32_181 : i32 to vector<8x1xi32>
    %682 = arith.cmpi sgt, %0, %681 : vector<8x1xi32>
    %cst_182 = arith.constant 0.000000e+00 : f32
    %683 = vector.shape_cast %680 : vector<8x1xi1> to vector<8x1xi1>
    %684 = vector.broadcast %683 : vector<8x1xi1> to vector<8x128xi1>
    %685 = vector.broadcast %cst_182 : f32 to vector<8x128xf32>
    %686 = arith.select %684, %649, %685 : vector<8x128xi1>, vector<8x128xf32>
    %cst_183 = arith.constant 0.000000e+00 : f32
    %687 = vector.shape_cast %682 : vector<8x1xi1> to vector<8x1xi1>
    %688 = vector.broadcast %687 : vector<8x1xi1> to vector<8x128xi1>
    %689 = vector.broadcast %cst_183 : f32 to vector<8x128xf32>
    %690 = arith.select %688, %678, %689 : vector<8x128xi1>, vector<8x128xf32>
    %691 = tpu.concatenate %126, %690 in 1 : vector<8x128xf32>, vector<8x128xf32> -> vector<8x256xf32>
    %692 = tpu.concatenate %206, %614 in 1 : vector<8x128xf32>, vector<8x128xf32> -> vector<8x256xf32>
    %693 = tpu.concatenate %286, %534 in 1 : vector<8x128xf32>, vector<8x128xf32> -> vector<8x256xf32>
    %694 = tpu.concatenate %366, %454 in 1 : vector<8x128xf32>, vector<8x128xf32> -> vector<8x256xf32>
    %695 = tpu.concatenate %446, %374 in 1 : vector<8x128xf32>, vector<8x128xf32> -> vector<8x256xf32>
    %696 = tpu.concatenate %526, %294 in 1 : vector<8x128xf32>, vector<8x128xf32> -> vector<8x256xf32>
    %697 = tpu.concatenate %606, %214 in 1 : vector<8x128xf32>, vector<8x128xf32> -> vector<8x256xf32>
    %698 = tpu.concatenate %686, %134 in 1 : vector<8x128xf32>, vector<8x128xf32> -> vector<8x256xf32>
    %699 = tpu.concatenate %691, %692, %693, %694, %695, %696, %697, %698 in 0 : vector<8x256xf32>, vector<8x256xf32>, vector<8x256xf32>, vector<8x256xf32>, vector<8x256xf32>, vector<8x256xf32>, vector<8x256xf32>, vector<8x256xf32> -> vector<64x256xf32>
    %700 = arith.truncf %699 : vector<64x256xf32> to vector<64x256xbf16>
    %c0_184 = arith.constant 0 : index
    %c0_185 = arith.constant 0 : index
    %701 = vector.load %arg11[%c0_184, %c0_185] : memref<256x128xbf16, #tpu.memory_space<vmem>>, vector<256x128xbf16>
    %cst_186 = arith.constant dense<0.000000e+00> : vector<64x128xf32>
    %702 = tpu.matmul %700, %701, %cst_186 {dimension_numbers = #tpu.dot_dimension_numbers<[1], [0], [0], [1], [0, 0, 1, 1], [], []>} : vector<64x256xbf16>, vector<256x128xbf16>, vector<64x128xf32> -> vector<64x128xf32>
    %c0_187 = arith.constant 0 : index
    %c0_188 = arith.constant 0 : index
    %703 = vector.load %arg12[%c0_187, %c0_188] : memref<1x128xf32, #tpu.memory_space<vmem>>, vector<1x128xf32>
    %704 = vector.broadcast %703 : vector<1x128xf32> to vector<64x128xf32>
    %705 = arith.addf %702, %704 : vector<64x128xf32>
    %706 = math.tanh %705 : vector<64x128xf32>
    %c0_189 = arith.constant 0 : index
    %c0_190 = arith.constant 0 : index
    %707 = vector.load %arg13[%c0_189, %c0_190] : memref<128x1xf32, #tpu.memory_space<vmem>>, vector<128x1xf32>
    %cst_191 = arith.constant dense<0.000000e+00> : vector<64x1xf32>
    %708 = tpu.matmul %706, %707, %cst_191 {dimension_numbers = #tpu.dot_dimension_numbers<[1], [0], [0], [1], [0, 0, 1, 1], [], []>} : vector<64x128xf32>, vector<128x1xf32>, vector<64x1xf32> -> vector<64x1xf32>
    %cst_192 = arith.constant -1.000000e+30 : f32
    %709 = vector.broadcast %cst_192 : f32 to vector<8x1xf32>
    %c0_i32_193 = arith.constant 0 : i32
    %710 = vector.broadcast %c0_i32_193 : i32 to vector<8x1xi32>
    %711 = arith.cmpi sgt, %0, %710 : vector<8x1xi32>
    %712 = vector.extract_strided_slice %708 {offsets = [0, 0], sizes = [8, 1], strides = [1, 1]} : vector<64x1xf32> to vector<8x1xf32>
    %cst_194 = arith.constant -1.000000e+30 : f32
    %713 = vector.broadcast %cst_194 : f32 to vector<8x1xf32>
    %714 = arith.select %711, %712, %713 : vector<8x1xi1>, vector<8x1xf32>
    %715 = arith.maximumf %709, %714 : vector<8x1xf32>
    %c1_i32_195 = arith.constant 1 : i32
    %716 = vector.broadcast %c1_i32_195 : i32 to vector<8x1xi32>
    %717 = arith.cmpi sgt, %0, %716 : vector<8x1xi32>
    %718 = vector.extract_strided_slice %708 {offsets = [8, 0], sizes = [8, 1], strides = [1, 1]} : vector<64x1xf32> to vector<8x1xf32>
    %cst_196 = arith.constant -1.000000e+30 : f32
    %719 = vector.broadcast %cst_196 : f32 to vector<8x1xf32>
    %720 = arith.select %717, %718, %719 : vector<8x1xi1>, vector<8x1xf32>
    %721 = arith.maximumf %715, %720 : vector<8x1xf32>
    %c2_i32_197 = arith.constant 2 : i32
    %722 = vector.broadcast %c2_i32_197 : i32 to vector<8x1xi32>
    %723 = arith.cmpi sgt, %0, %722 : vector<8x1xi32>
    %724 = vector.extract_strided_slice %708 {offsets = [16, 0], sizes = [8, 1], strides = [1, 1]} : vector<64x1xf32> to vector<8x1xf32>
    %cst_198 = arith.constant -1.000000e+30 : f32
    %725 = vector.broadcast %cst_198 : f32 to vector<8x1xf32>
    %726 = arith.select %723, %724, %725 : vector<8x1xi1>, vector<8x1xf32>
    %727 = arith.maximumf %721, %726 : vector<8x1xf32>
    %c3_i32_199 = arith.constant 3 : i32
    %728 = vector.broadcast %c3_i32_199 : i32 to vector<8x1xi32>
    %729 = arith.cmpi sgt, %0, %728 : vector<8x1xi32>
    %730 = vector.extract_strided_slice %708 {offsets = [24, 0], sizes = [8, 1], strides = [1, 1]} : vector<64x1xf32> to vector<8x1xf32>
    %cst_200 = arith.constant -1.000000e+30 : f32
    %731 = vector.broadcast %cst_200 : f32 to vector<8x1xf32>
    %732 = arith.select %729, %730, %731 : vector<8x1xi1>, vector<8x1xf32>
    %733 = arith.maximumf %727, %732 : vector<8x1xf32>
    %c4_i32_201 = arith.constant 4 : i32
    %734 = vector.broadcast %c4_i32_201 : i32 to vector<8x1xi32>
    %735 = arith.cmpi sgt, %0, %734 : vector<8x1xi32>
    %736 = vector.extract_strided_slice %708 {offsets = [32, 0], sizes = [8, 1], strides = [1, 1]} : vector<64x1xf32> to vector<8x1xf32>
    %cst_202 = arith.constant -1.000000e+30 : f32
    %737 = vector.broadcast %cst_202 : f32 to vector<8x1xf32>
    %738 = arith.select %735, %736, %737 : vector<8x1xi1>, vector<8x1xf32>
    %739 = arith.maximumf %733, %738 : vector<8x1xf32>
    %c5_i32_203 = arith.constant 5 : i32
    %740 = vector.broadcast %c5_i32_203 : i32 to vector<8x1xi32>
    %741 = arith.cmpi sgt, %0, %740 : vector<8x1xi32>
    %742 = vector.extract_strided_slice %708 {offsets = [40, 0], sizes = [8, 1], strides = [1, 1]} : vector<64x1xf32> to vector<8x1xf32>
    %cst_204 = arith.constant -1.000000e+30 : f32
    %743 = vector.broadcast %cst_204 : f32 to vector<8x1xf32>
    %744 = arith.select %741, %742, %743 : vector<8x1xi1>, vector<8x1xf32>
    %745 = arith.maximumf %739, %744 : vector<8x1xf32>
    %c6_i32_205 = arith.constant 6 : i32
    %746 = vector.broadcast %c6_i32_205 : i32 to vector<8x1xi32>
    %747 = arith.cmpi sgt, %0, %746 : vector<8x1xi32>
    %748 = vector.extract_strided_slice %708 {offsets = [48, 0], sizes = [8, 1], strides = [1, 1]} : vector<64x1xf32> to vector<8x1xf32>
    %cst_206 = arith.constant -1.000000e+30 : f32
    %749 = vector.broadcast %cst_206 : f32 to vector<8x1xf32>
    %750 = arith.select %747, %748, %749 : vector<8x1xi1>, vector<8x1xf32>
    %751 = arith.maximumf %745, %750 : vector<8x1xf32>
    %c7_i32_207 = arith.constant 7 : i32
    %752 = vector.broadcast %c7_i32_207 : i32 to vector<8x1xi32>
    %753 = arith.cmpi sgt, %0, %752 : vector<8x1xi32>
    %754 = vector.extract_strided_slice %708 {offsets = [56, 0], sizes = [8, 1], strides = [1, 1]} : vector<64x1xf32> to vector<8x1xf32>
    %cst_208 = arith.constant -1.000000e+30 : f32
    %755 = vector.broadcast %cst_208 : f32 to vector<8x1xf32>
    %756 = arith.select %753, %754, %755 : vector<8x1xi1>, vector<8x1xf32>
    %757 = arith.maximumf %751, %756 : vector<8x1xf32>
    %cst_209 = arith.constant 0.000000e+00 : f32
    %758 = vector.broadcast %cst_209 : f32 to vector<8x1xf32>
    %c0_i32_210 = arith.constant 0 : i32
    %759 = vector.broadcast %c0_i32_210 : i32 to vector<8x1xi32>
    %760 = arith.cmpi sgt, %0, %759 : vector<8x1xi32>
    %761 = vector.extract_strided_slice %708 {offsets = [0, 0], sizes = [8, 1], strides = [1, 1]} : vector<64x1xf32> to vector<8x1xf32>
    %762 = arith.subf %761, %757 : vector<8x1xf32>
    %763 = math.exp %762 : vector<8x1xf32>
    %cst_211 = arith.constant 0.000000e+00 : f32
    %764 = vector.broadcast %cst_211 : f32 to vector<8x1xf32>
    %765 = arith.select %760, %763, %764 : vector<8x1xi1>, vector<8x1xf32>
    %766 = arith.addf %758, %765 : vector<8x1xf32>
    %c1_i32_212 = arith.constant 1 : i32
    %767 = vector.broadcast %c1_i32_212 : i32 to vector<8x1xi32>
    %768 = arith.cmpi sgt, %0, %767 : vector<8x1xi32>
    %769 = vector.extract_strided_slice %708 {offsets = [8, 0], sizes = [8, 1], strides = [1, 1]} : vector<64x1xf32> to vector<8x1xf32>
    %770 = arith.subf %769, %757 : vector<8x1xf32>
    %771 = math.exp %770 : vector<8x1xf32>
    %cst_213 = arith.constant 0.000000e+00 : f32
    %772 = vector.broadcast %cst_213 : f32 to vector<8x1xf32>
    %773 = arith.select %768, %771, %772 : vector<8x1xi1>, vector<8x1xf32>
    %774 = arith.addf %766, %773 : vector<8x1xf32>
    %c2_i32_214 = arith.constant 2 : i32
    %775 = vector.broadcast %c2_i32_214 : i32 to vector<8x1xi32>
    %776 = arith.cmpi sgt, %0, %775 : vector<8x1xi32>
    %777 = vector.extract_strided_slice %708 {offsets = [16, 0], sizes = [8, 1], strides = [1, 1]} : vector<64x1xf32> to vector<8x1xf32>
    %778 = arith.subf %777, %757 : vector<8x1xf32>
    %779 = math.exp %778 : vector<8x1xf32>
    %cst_215 = arith.constant 0.000000e+00 : f32
    %780 = vector.broadcast %cst_215 : f32 to vector<8x1xf32>
    %781 = arith.select %776, %779, %780 : vector<8x1xi1>, vector<8x1xf32>
    %782 = arith.addf %774, %781 : vector<8x1xf32>
    %c3_i32_216 = arith.constant 3 : i32
    %783 = vector.broadcast %c3_i32_216 : i32 to vector<8x1xi32>
    %784 = arith.cmpi sgt, %0, %783 : vector<8x1xi32>
    %785 = vector.extract_strided_slice %708 {offsets = [24, 0], sizes = [8, 1], strides = [1, 1]} : vector<64x1xf32> to vector<8x1xf32>
    %786 = arith.subf %785, %757 : vector<8x1xf32>
    %787 = math.exp %786 : vector<8x1xf32>
    %cst_217 = arith.constant 0.000000e+00 : f32
    %788 = vector.broadcast %cst_217 : f32 to vector<8x1xf32>
    %789 = arith.select %784, %787, %788 : vector<8x1xi1>, vector<8x1xf32>
    %790 = arith.addf %782, %789 : vector<8x1xf32>
    %c4_i32_218 = arith.constant 4 : i32
    %791 = vector.broadcast %c4_i32_218 : i32 to vector<8x1xi32>
    %792 = arith.cmpi sgt, %0, %791 : vector<8x1xi32>
    %793 = vector.extract_strided_slice %708 {offsets = [32, 0], sizes = [8, 1], strides = [1, 1]} : vector<64x1xf32> to vector<8x1xf32>
    %794 = arith.subf %793, %757 : vector<8x1xf32>
    %795 = math.exp %794 : vector<8x1xf32>
    %cst_219 = arith.constant 0.000000e+00 : f32
    %796 = vector.broadcast %cst_219 : f32 to vector<8x1xf32>
    %797 = arith.select %792, %795, %796 : vector<8x1xi1>, vector<8x1xf32>
    %798 = arith.addf %790, %797 : vector<8x1xf32>
    %c5_i32_220 = arith.constant 5 : i32
    %799 = vector.broadcast %c5_i32_220 : i32 to vector<8x1xi32>
    %800 = arith.cmpi sgt, %0, %799 : vector<8x1xi32>
    %801 = vector.extract_strided_slice %708 {offsets = [40, 0], sizes = [8, 1], strides = [1, 1]} : vector<64x1xf32> to vector<8x1xf32>
    %802 = arith.subf %801, %757 : vector<8x1xf32>
    %803 = math.exp %802 : vector<8x1xf32>
    %cst_221 = arith.constant 0.000000e+00 : f32
    %804 = vector.broadcast %cst_221 : f32 to vector<8x1xf32>
    %805 = arith.select %800, %803, %804 : vector<8x1xi1>, vector<8x1xf32>
    %806 = arith.addf %798, %805 : vector<8x1xf32>
    %c6_i32_222 = arith.constant 6 : i32
    %807 = vector.broadcast %c6_i32_222 : i32 to vector<8x1xi32>
    %808 = arith.cmpi sgt, %0, %807 : vector<8x1xi32>
    %809 = vector.extract_strided_slice %708 {offsets = [48, 0], sizes = [8, 1], strides = [1, 1]} : vector<64x1xf32> to vector<8x1xf32>
    %810 = arith.subf %809, %757 : vector<8x1xf32>
    %811 = math.exp %810 : vector<8x1xf32>
    %cst_223 = arith.constant 0.000000e+00 : f32
    %812 = vector.broadcast %cst_223 : f32 to vector<8x1xf32>
    %813 = arith.select %808, %811, %812 : vector<8x1xi1>, vector<8x1xf32>
    %814 = arith.addf %806, %813 : vector<8x1xf32>
    %c7_i32_224 = arith.constant 7 : i32
    %815 = vector.broadcast %c7_i32_224 : i32 to vector<8x1xi32>
    %816 = arith.cmpi sgt, %0, %815 : vector<8x1xi32>
    %817 = vector.extract_strided_slice %708 {offsets = [56, 0], sizes = [8, 1], strides = [1, 1]} : vector<64x1xf32> to vector<8x1xf32>
    %818 = arith.subf %817, %757 : vector<8x1xf32>
    %819 = math.exp %818 : vector<8x1xf32>
    %cst_225 = arith.constant 0.000000e+00 : f32
    %820 = vector.broadcast %cst_225 : f32 to vector<8x1xf32>
    %821 = arith.select %816, %819, %820 : vector<8x1xi1>, vector<8x1xf32>
    %822 = arith.addf %814, %821 : vector<8x1xf32>
    %cst_226 = arith.constant 1.000000e-30 : f32
    %823 = vector.broadcast %cst_226 : f32 to vector<8x1xf32>
    %824 = arith.addf %822, %823 : vector<8x1xf32>
    %cst_227 = arith.constant 1.000000e+00 : f32
    %825 = vector.broadcast %cst_227 : f32 to vector<8x1xf32>
    %826 = arith.divf %825, %824 : vector<8x1xf32>
    %cst_228 = arith.constant 0.000000e+00 : f32
    %827 = vector.broadcast %cst_228 : f32 to vector<8x256xf32>
    %828 = arith.mulf %765, %826 : vector<8x1xf32>
    %829 = vector.broadcast %828 : vector<8x1xf32> to vector<8x256xf32>
    %830 = arith.mulf %829, %691 : vector<8x256xf32>
    %831 = arith.addf %827, %830 : vector<8x256xf32>
    %832 = arith.mulf %773, %826 : vector<8x1xf32>
    %833 = vector.broadcast %832 : vector<8x1xf32> to vector<8x256xf32>
    %834 = arith.mulf %833, %692 : vector<8x256xf32>
    %835 = arith.addf %831, %834 : vector<8x256xf32>
    %836 = arith.mulf %781, %826 : vector<8x1xf32>
    %837 = vector.broadcast %836 : vector<8x1xf32> to vector<8x256xf32>
    %838 = arith.mulf %837, %693 : vector<8x256xf32>
    %839 = arith.addf %835, %838 : vector<8x256xf32>
    %840 = arith.mulf %789, %826 : vector<8x1xf32>
    %841 = vector.broadcast %840 : vector<8x1xf32> to vector<8x256xf32>
    %842 = arith.mulf %841, %694 : vector<8x256xf32>
    %843 = arith.addf %839, %842 : vector<8x256xf32>
    %844 = arith.mulf %797, %826 : vector<8x1xf32>
    %845 = vector.broadcast %844 : vector<8x1xf32> to vector<8x256xf32>
    %846 = arith.mulf %845, %695 : vector<8x256xf32>
    %847 = arith.addf %843, %846 : vector<8x256xf32>
    %848 = arith.mulf %805, %826 : vector<8x1xf32>
    %849 = vector.broadcast %848 : vector<8x1xf32> to vector<8x256xf32>
    %850 = arith.mulf %849, %696 : vector<8x256xf32>
    %851 = arith.addf %847, %850 : vector<8x256xf32>
    %852 = arith.mulf %813, %826 : vector<8x1xf32>
    %853 = vector.broadcast %852 : vector<8x1xf32> to vector<8x256xf32>
    %854 = arith.mulf %853, %697 : vector<8x256xf32>
    %855 = arith.addf %851, %854 : vector<8x256xf32>
    %856 = arith.mulf %821, %826 : vector<8x1xf32>
    %857 = vector.broadcast %856 : vector<8x1xf32> to vector<8x256xf32>
    %858 = arith.mulf %857, %698 : vector<8x256xf32>
    %859 = arith.addf %855, %858 : vector<8x256xf32>
    %c0_229 = arith.constant 0 : index
    %c0_230 = arith.constant 0 : index
    %860 = vector.load %arg3[%c0_229, %c0_230] : memref<8x1xf32, #tpu.memory_space<vmem>>, vector<8x1xf32>
    %861 = arith.subf %57, %859 : vector<8x256xf32>
    %862 = arith.mulf %861, %861 : vector<8x256xf32>
    %cst_231 = arith.constant dense<0.000000e+00> : vector<8xf32>
    %863 = vector.multi_reduction <add>, %862, %cst_231 [1] : vector<8x256xf32> to vector<8xf32>
    %864 = vector.shape_cast %863 : vector<8xf32> to vector<8x1xf32>
    %cst_232 = arith.constant 9.99999996E-13 : f32
    %865 = vector.broadcast %cst_232 : f32 to vector<8x1xf32>
    %866 = arith.addf %864, %865 : vector<8x1xf32>
    %867 = math.sqrt %866 : vector<8x1xf32>
    %cst_233 = arith.constant 1.000000e+00 : f32
    %868 = vector.broadcast %cst_233 : f32 to vector<8x1xf32>
    %869 = arith.subf %868, %867 : vector<8x1xf32>
    %cst_234 = arith.constant 0.000000e+00 : f32
    %870 = vector.broadcast %cst_234 : f32 to vector<8x1xf32>
    %871 = arith.maximumf %869, %870 : vector<8x1xf32>
    %872 = arith.mulf %860, %864 : vector<8x1xf32>
    %cst_235 = arith.constant 1.000000e+00 : f32
    %873 = vector.broadcast %cst_235 : f32 to vector<8x1xf32>
    %874 = arith.subf %873, %860 : vector<8x1xf32>
    %875 = arith.mulf %874, %871 : vector<8x1xf32>
    %876 = arith.mulf %875, %871 : vector<8x1xf32>
    %877 = arith.addf %872, %876 : vector<8x1xf32>
    %cst_236 = arith.constant 5.000000e-01 : f32
    %878 = vector.broadcast %cst_236 : f32 to vector<8x1xf32>
    %879 = arith.mulf %878, %877 : vector<8x1xf32>
    %880 = arith.mulf %57, %859 : vector<8x256xf32>
    %cst_237 = arith.constant dense<0.000000e+00> : vector<8xf32>
    %881 = vector.multi_reduction <add>, %880, %cst_237 [1] : vector<8x256xf32> to vector<8xf32>
    %882 = vector.shape_cast %881 : vector<8xf32> to vector<8x1xf32>
    %883 = arith.mulf %57, %57 : vector<8x256xf32>
    %cst_238 = arith.constant dense<0.000000e+00> : vector<8xf32>
    %884 = vector.multi_reduction <add>, %883, %cst_238 [1] : vector<8x256xf32> to vector<8xf32>
    %885 = vector.shape_cast %884 : vector<8xf32> to vector<8x1xf32>
    %886 = math.sqrt %885 : vector<8x1xf32>
    %887 = arith.mulf %859, %859 : vector<8x256xf32>
    %cst_239 = arith.constant dense<0.000000e+00> : vector<8xf32>
    %888 = vector.multi_reduction <add>, %887, %cst_239 [1] : vector<8x256xf32> to vector<8xf32>
    %889 = vector.shape_cast %888 : vector<8xf32> to vector<8x1xf32>
    %890 = math.sqrt %889 : vector<8x1xf32>
    %891 = arith.mulf %886, %890 : vector<8x1xf32>
    %cst_240 = arith.constant 9.99999996E-13 : f32
    %892 = vector.broadcast %cst_240 : f32 to vector<8x1xf32>
    %893 = arith.addf %891, %892 : vector<8x1xf32>
    %894 = arith.divf %882, %893 : vector<8x1xf32>
    %895 = tpu.concatenate %879, %894 in 1 : vector<8x1xf32>, vector<8x1xf32> -> vector<8x2xf32>
    %c0_241 = arith.constant 0 : index
    %c0_242 = arith.constant 0 : index
    %896 = vector.load %arg14[%c0_241, %c0_242] : memref<8x2xf32, #tpu.memory_space<vmem>>, vector<8x2xf32>
    tpu.vector_store %arg14[%c0_241, %c0_242], %895 {strides = array<i32>} : memref<8x2xf32, #tpu.memory_space<vmem>>, vector<8x2xf32>,
    return
  }
  func.func @transform_0(%arg0: i32) -> (i32, i32) {
    %c0_i32 = arith.constant 0 : i32
    %c0_i32_0 = arith.constant 0 : i32
    return %arg0, %c0_i32 : i32, i32
  }
  func.func @transform_1(%arg0: i32) -> (i32, i32) {
    %c0_i32 = arith.constant 0 : i32
    %c0_i32_0 = arith.constant 0 : i32
    return %arg0, %c0_i32 : i32, i32
  }
  func.func @transform_2(%arg0: i32) -> (i32, i32) {
    %c0_i32 = arith.constant 0 : i32
    %c0_i32_0 = arith.constant 0 : i32
    return %arg0, %c0_i32 : i32, i32
  }
  func.func @transform_3(%arg0: i32) -> (i32, i32) {
    %c0_i32 = arith.constant 0 : i32
    %c0_i32_0 = arith.constant 0 : i32
    return %arg0, %c0_i32 : i32, i32
  }
  func.func @transform_4(%arg0: i32) -> (i32, i32) {
    %c0_i32 = arith.constant 0 : i32
    %c0_i32_0 = arith.constant 0 : i32
    %c0_i32_1 = arith.constant 0 : i32
    return %c0_i32, %c0_i32_0 : i32, i32
  }
  func.func @transform_5(%arg0: i32) -> (i32, i32) {
    %c0_i32 = arith.constant 0 : i32
    %c0_i32_0 = arith.constant 0 : i32
    %c0_i32_1 = arith.constant 0 : i32
    return %c0_i32, %c0_i32_0 : i32, i32
  }
  func.func @transform_6(%arg0: i32) -> (i32, i32) {
    %c0_i32 = arith.constant 0 : i32
    %c0_i32_0 = arith.constant 0 : i32
    %c0_i32_1 = arith.constant 0 : i32
    return %c0_i32, %c0_i32_0 : i32, i32
  }
  func.func @transform_7(%arg0: i32) -> (i32, i32) {
    %c0_i32 = arith.constant 0 : i32
    %c0_i32_0 = arith.constant 0 : i32
    %c0_i32_1 = arith.constant 0 : i32
    return %c0_i32, %c0_i32_0 : i32, i32
  }
  func.func @transform_8(%arg0: i32) -> (i32, i32) {
    %c0_i32 = arith.constant 0 : i32
    %c0_i32_0 = arith.constant 0 : i32
    %c0_i32_1 = arith.constant 0 : i32
    return %c0_i32, %c0_i32_0 : i32, i32
  }
  func.func @transform_9(%arg0: i32) -> (i32, i32) {
    %c0_i32 = arith.constant 0 : i32
    %c0_i32_0 = arith.constant 0 : i32
    %c0_i32_1 = arith.constant 0 : i32
    return %c0_i32, %c0_i32_0 : i32, i32
  }
  func.func @transform_10(%arg0: i32) -> (i32, i32) {
    %c0_i32 = arith.constant 0 : i32
    %c0_i32_0 = arith.constant 0 : i32
    %c0_i32_1 = arith.constant 0 : i32
    return %c0_i32, %c0_i32_0 : i32, i32
  }
  func.func @transform_11(%arg0: i32) -> (i32, i32) {
    %c0_i32 = arith.constant 0 : i32
    %c0_i32_0 = arith.constant 0 : i32
    %c0_i32_1 = arith.constant 0 : i32
    return %c0_i32, %c0_i32_0 : i32, i32
  }
  func.func @transform_12(%arg0: i32) -> (i32, i32) {
    %c0_i32 = arith.constant 0 : i32
    %c0_i32_0 = arith.constant 0 : i32
    %c0_i32_1 = arith.constant 0 : i32
    return %c0_i32, %c0_i32_0 : i32, i32
  }
  func.func @transform_13(%arg0: i32) -> (i32, i32) {
    %c0_i32 = arith.constant 0 : i32
    %c0_i32_0 = arith.constant 0 : i32
    return %arg0, %c0_i32 : i32, i32
  }
}

</mosaic_0001>

<bundles_post_ra>
// kernel: forward.1
= control target key start
LH: loop header
LB: loop body
LE: loop exit
PB: predicated region body
PF: predicated region fallthrough
CT: control target
= control target key end

     0   :  { %s9283_s0 = inlined_call_operand.vmem [shape: s32[16,8], index: 0, kind: input, shape index: {}]   ;;  %s9284_s1 = inlined_call_operand.vmem [shape: s32[16,1], index: 1, kind: input, shape index: {}]   ;;  %s9285_s2 = inlined_call_operand.vmem [shape: f32[16,1], index: 2, kind: input, shape index: {}]   ;;  %s9286_s3 = inlined_call_operand.hbm [shape: f32[16,768], index: 3, kind: input, shape index: {}]   ;;  %s9287_s4 = inlined_call_operand.vmem [shape: f32[16,1024], index: 4, kind: input, shape index: {}]   ;;  %s9288_s5 = inlined_call_operand.hbm [shape: bf16[768,256], index: 5, kind: input, shape index: {}]   ;;  %s9289_s6 = inlined_call_operand.vmem [shape: f32[1,256], index: 6, kind: input, shape index: {}]   ;;  %s9290_s7 = inlined_call_operand.hbm [shape: bf16[256,256], index: 7, kind: input, shape index: {}]   ;;  %s9291_s8 = inlined_call_operand.hbm [shape: bf16[128,512], index: 8, kind: input, shape index: {}]   ;;  %s9292_s9 = inlined_call_operand.hbm [shape: bf16[128,512], index: 9, kind: input, shape index: {}]   ;;  %s9293_s10 = inlined_call_operand.hbm [shape: bf16[256,128], index: 10, kind: input, shape index: {}]   ;;  %s9294_s11 = inlined_call_operand.vmem [shape: f32[1,128], index: 11, kind: input, shape index: {}]   ;;  %s9295_s12 = inlined_call_operand.vmem [shape: f32[128,1], index: 12, kind: input, shape index: {}]   ;;  %s9296_s13 = inlined_call_operand.vmem [shape: f32[16,2], index: 13, kind: output, shape index: {}]  }
   0x1   :  { %9445 = sst [smem:[#allocation125_spill]] %s9285_s2 }
   0x2   :  { %9446 = sst [smem:[#allocation126_spill]] %s9288_s5 }
   0x3   :  { %9447 = sst [smem:[#allocation127_spill]] %s9291_s8 }
   0x4   :  { %9448 = sst [smem:[#allocation128_spill]] %s9294_s11 }
   0x5   :  { %9449 = sst [smem:[#allocation129_spill]] %s9296_s13 }
   0x6   :  { %18 = vsyncpa [#allocation4], 0 }
   0x7   :  { %20 = vsyncpa [#allocation4 + $0x1], 0 }
   0x8   :  { %21 = vsyncpa [#allocation6], 0 }
   0x9   :  { %22 = vsyncpa [#allocation9], 0 }
   0xa   :  { %23 = vsyncpa [#allocation12], 0  ;;  %s7291_s25 = smov 0   ;;  %s7293_s26 = smov 0  }
   0xb   :  { %s7295_s27 = smov 0   ;;  %s7297_s28 = smov 0  }
   0xc LB: > { %s9450_s5 = sld [smem:[#allocation126_spill]]  ;;  %s7315_s15 = sadd.s32 4294967295, %s7199_s28   ;;  %s7199_s28 = sphi %s7297_s28, %s9936_s28   ;;  %s7195_s27 = sphi %s7295_s27, %s9935_s27   ;;  %s7191_s26 = sphi %s7293_s26, %s9934_s26   ;;  %s7187_s25 = sphi %s7291_s25, %s9933_s25  }
   0xd   : > { %p5175_p0 = scmp.ge.s32.totalorder %s7199_s28, 1  ;;  %p128_p1 = scmp.eq.s32.totalorder %s7315_s15, 0 }
   0xe   : > { %p353_p2 = scmp.lt.s32.totalorder %s7199_s28, 3  ;;  %s7201_s17 = smov [#allocation5]  }
   0xf   : > { %s369_s18 = sshll.u32 %s7201_s17, 4  ;;  %s9452_s8 = sld [smem:[#allocation127_spill]]  ;;  %s370_s18 = int_to_ptr.vmem [resolvable:$true] %s369_s18 }
  0x10   : > { %p7320_p3 = pnand %p5175_p0, %p353_p2  ;;  %s7202_s23 = smov [#allocation8]  }
  0x11   : > { %s400_s24 = sshll.u32 %s7202_s23, 4  ;;  %s7203_s29 = smov 128   ;;  %s401_s24 = int_to_ptr.vmem [resolvable:$true] %s400_s24 }
  0x12   : > { %s367_s14 = sshll.u32 %s9450_s5, 4  ;;  %p6580_p4 = pneg %p7320_p3  ;;  %s368_s14 = int_to_ptr.hbm [resolvable:$true] %s367_s14 }
  0x13   : > { %s7204_s30 = smov 8   ;;  %s7205_s17 = smov 256  }
  0x14   : > { %p7331_p5 = pnand %p6580_p4, %p128_p1  ;;  %s7206_s19 = smov 16  }
  0x15   : > { %s398_s21 = sshll.u32 %s9452_s8, 4  ;;  %s384_s8 = sshll.u32 %s9290_s7, 4  ;;  %s399_s21 = int_to_ptr.hbm [resolvable:$true] %s398_s21  ;;  %s385_s8 = int_to_ptr.hbm [resolvable:$true] %s384_s8 }
  0x16   : > { %6583 = dma.hbm_to_vmem [thread:$0]  (!%p7331_p5), %s368_s14, 12288, %s370_s18, [#allocation6], %s7203_s29, %s7203_s29, %s7204_s30  }
  0x17   : > { %6589 = dma.hbm_to_vmem [thread:$0]  (!%p7331_p5), %s399_s21, 4096, %s401_s24, [#allocation9], %s7205_s17, %s7205_s17, %s7206_s19  }
  0x18   : > { %s7207_s13 = smov [#allocation7]   ;;  %s412_s14 = sshll.u32 %s9292_s9, 4  ;;  %s413_s14 = int_to_ptr.hbm [resolvable:$true] %s412_s14 }
  0x19   : > { %s386_s2 = sshll.u32 %s7207_s13, 4  ;;  %s7208_s18 = smov [#allocation10]   ;;  %s387_s2 = int_to_ptr.vmem [resolvable:$true] %s386_s2 }
  0x1a   : > { %6586 = dma.hbm_to_vmem [thread:$0]  (!%p7331_p5), %s385_s8, 4096, %s387_s2, [#allocation6], %s7203_s29, %s7203_s29, %s7204_s30  }
  0x1b   : > { %s414_s5 = sshll.u32 %s7208_s18, 4  ;;  %s426_s13 = sshll.u32 %s9293_s10, 4  ;;  %s415_s5 = int_to_ptr.vmem [resolvable:$true] %s414_s5  ;;  %s427_s13 = int_to_ptr.hbm [resolvable:$true] %s426_s13 }
  0x1c   : > { %6592 = dma.hbm_to_vmem [thread:$0]  (!%p7331_p5), %s413_s14, 4096, %s415_s5, [#allocation9], %s7205_s17, %s7205_s17, %s7206_s19  }
  0x1d   : > { %s7209_s2 = smov [#allocation11]   ;;  %s7210_s11 = smov 64  }
  0x1e   : > { %s428_s8 = sshll.u32 %s7209_s2, 4  ;;  %s7211_s29 = smov 4   ;;  %s429_s8 = int_to_ptr.vmem [resolvable:$true] %s428_s8 }
  0x1f   : > { %6595 = dma.hbm_to_vmem [thread:$0]  (!%p7331_p5), %s427_s13, 2048, %s429_s8, [#allocation12], %s7210_s11, %s7210_s11, %s7211_s29  }
  0x20   : > { %s7355_s30 = sadd.s32 1, %s7199_s28   ;;  %s114_s23 = sadd.s32 1, %s7195_s27 }
  0x21   : > { %s111_s20 = ssub.s32 %s7199_s28, %s7355_s30  ;;  %p121_p7 = scmp.ne.s32.totalorder %s7195_s27, %s7191_s26 }
  0x22   : > { %p112_p6 = scmp.eq.s32.totalorder %s111_s20, 0  ;;  %p122_p8 = scmp.eq.s32.totalorder %s7199_s28, 0 }
  0x23   : > { %p127_p9 = scmp.ne.s32.totalorder %s7191_s26, %s7187_s25  ;;  %p6605_p12 = scmp.lt.s32.totalorder %s7199_s28, 2 }
  0x24   : > { %s7366_s17 = scalar_select %p112_p6, %s7195_s27, %s114_s23  }
  0x25   : > { %p123_p10 = por %p122_p8, %p121_p7  ;;  %p7370_p11 = por %p128_p1, %p127_p9 }
  0x26   : > { %s469_s22 = sand.u32 1, %s7195_s27   ;;  %s6556_s18 = smul.u32 48, %s7199_s28 }
  0x27   : > { %s6555_s14 = smul.u32 48, %s469_s22  ;;  %p7377_p13 = pnand %p6605_p12, %p123_p10 }
  0x28   : > { %s478_s25 = scalar_lea.hbm %s9286_s3, %s6556_s18  ;;  %s470_s11 = scalar_lea.sflag [#allocation4], %s469_s22 }
  0x29   : > { %s473_s13 = scalar_lea.vmem [#allocation3], %s6555_s14  ;;  %s480_s8 = sshll.u32 %s478_s25, 4  ;;  %s481_s8 = int_to_ptr.hbm [resolvable:$true] %s480_s8 }
  0x2a   : > { %s482_s2 = sshll.u32 %s473_s13, 4  ;;  %s7123_s29 = sshra.s32 %s481_s8, 4  ;;  %s483_s2 = int_to_ptr.vmem [resolvable:$true] %s482_s2  ;;  %s7124_s29 = int_to_ptr.hbm [resolvable:$true] %s7123_s29 }
  0x2b   : > { %s7125_s20 = scalar_lea.hbm %s7124_s29, 48  ;;  %p7127_p2 = pneg %p7377_p13 }
  0x2c   : > { %p7126_p0 = scmp.ne.s32.totalorder %s7124_s29, %s7125_s20  ;;  %s7130_s21 = scalar_lea.hbm %s9286_s3, 96 }
  0x2d   : > { %p7131_p6 = scmp.lt.s32.totalorder %s7124_s29, %s9286_s3  ;;  %p7132_p7 = scmp.lt.s32.totalorder %s7130_s21, %s7125_s20 }
  0x2e   : > { %p7128_p4 = pnand %p7127_p2, %p7126_p0 }
  0x2f   : > { %p7133_p8 = por %p7132_p7, %p7131_p6 }
  0x30   : > { %p7129_p5 = pneg %p7128_p4 }
  0x32   : > { %p7134_p9 = pnand %p7133_p8, %p7129_p5 }
  0x34   : > { %7137 = shalt.err (!%p7134_p9)
}
  0x35   : > { %6599 = dma.hbm_to_vmem [thread:$0]  (!%p7377_p13), %s481_s8, 768, %s483_s2, %s470_s11  }
  0x36   : > { %491 = sbr.rel (%p7320_p3) target bundleno = 2641 (0xa51), region = 72 }
  0x3b   : > { %s493_s22 = sand.u32 1, %s7191_s26  }
  0x3c   : > { %s6557_s14 = smul.u32 48, %s493_s22  ;;  %s494_s25 = scalar_lea.sflag [#allocation4], %s493_s22 }
  0x3e   : > { %s7397_s13 = scalar_lea.vmem [#allocation3], %s6557_s14 }
  0x3f   : > { %7170 = dma.done.wait (%p7370_p11), %s494_s25, 768  }
  0x40   : > { %7172 = vsyncadd (%p7370_p11), %s494_s25, 4294966528 }
  0x41   : > { %7174 = dma.done.wait (%p128_p1), [#allocation6], 16384  }
  0x42   : > { %7176 = vsyncadd (%p128_p1), [#allocation6], 4294950912 }
  0x43   : > { %7178 = dma.done.wait (%p128_p1), [#allocation9], 8192  }
  0x44   : > { %7180 = vsyncadd (%p128_p1), [#allocation9], 4294959104 }
  0x45   : > { %7182 = dma.done.wait (%p128_p1), [#allocation12], 2048  }
  0x46   : > { %7184 = vsyncadd (%p128_p1), [#allocation12], 4294965248  ;;  %p577_p3 = scmp.lt.s32.totalorder %s7315_s15, 1  ;;  %v7212_v0 = vmov 6   ;;  %v9297_v1 = vmov 0   ;;  %v7214_v2 = vmov 2   ;;  %v595_v15 = vlaneseq }
  0x47   : > { %6663 = vset.pattern.permute.xlu0 %v7212_v0  ;;  %6665 = vset.pattern.permute.xlu1 %v9297_v1  ;;  %v655_v4 = vld [vmem:[%s9287_s4 + $0x48] sm:$0xff]  ;;  %v7215_v5 = vmov 1   ;;  %v7216_v6 = vmov 7   ;;  %v7217_v7 = vmov 3   ;;  %v7218_v8 = vmov 4   ;;  %v654_v10 = vld [vmem:[%s9287_s4 + $0x40] sm:$0xff] }
  0x48   : > { %s9938_s15 = smov (!%p577_p3, %s7315_s15), 1  ;;  %6667 = vset.pattern.permute.xlu2 %v7214_v2  ;;  %6547 = vmatpush.msra.mxu3 %v655_v4  ;;  %v7219_v9 = vmov 5   ;;  %v647_v11 = vld [vmem:[%s9287_s4 + $0x8] sm:$0xff]  ;;  %v646_v12 = vld [vmem:[%s9287_s4] sm:$0xff]  ;;  %v656_v13 = vld [vmem:[%s9287_s4 + $0x50] sm:$0xff]  ;;  %v7445_v16 = vand.u32 127, %v595_v15 }
  0x49   : > { %s7418_s16 = sshll.u32 %s9938_s15, 3  ;;  %742 = vmatpush.msra.mxu1 %v655_v4  ;;  %701 = vmatpush.msra.mxu0 %v654_v10  ;;  %v648_v14 = vld [vmem:[%s9287_s4 + $0x10] sm:$0xff]  ;;  %vm662_vm0 = vcmask 130048   ;;  %v657_v19 = vld [vmem:[%s9287_s4 + $0x58] sm:$0xff]  ;;  %v7220_v20 = vmov 0.0   ;;  %v658_v23 = vld [vmem:[%s9287_s4 + $0x60] sm:$0xff] }
  0x4a   : > { %s580_s2 = scalar_lea.vmem %s9283_s0, %s7418_s16  ;;  %6548 = vmatpush.msra.mxu3 %v647_v11  ;;  %6549 = vmatpush.msra.mxu2 %v656_v13  ;;  %v649_v24 = vld [vmem:[%s9287_s4 + $0x18] sm:$0xff]  ;;  %v659_v30 = vld [vmem:[%s9287_s4 + $0x68] sm:$0xff]  ;;  %v660_v34 = vld [vmem:[%s9287_s4 + $0x70] sm:$0xff]  ;;  %s584_s29 = scalar_lea.vmem %s9284_s1, %s7418_s16 }
  0x4b   : > { %v597_v3 = vld [vmem:[%s580_s2] sm:$0xff]  ;;  %743 = vmatpush.msra.mxu1 %v647_v11  ;;  %702 = vmatpush.msra.mxu0 %v646_v12  ;;  %v651_v31 = vld [vmem:[%s9287_s4 + $0x28] sm:$0xff]  ;;  %v652_v35 = vld [vmem:[%s9287_s4 + $0x30] sm:$0xff]  ;;  %s9899_s20 = sld [smem:[#allocation128_spill]] }
  0x4c   : > { %599 = vperm.xlu1 %6665, %v597_v3   ;;  %635 = vperm.xlu0 %6663, %v597_v3   ;;  %v650_v38 = vld [vmem:[%s9287_s4 + $0x20] sm:$0xff]  ;;  %v661_v42 = vld [vmem:[%s9287_s4 + $0x78] sm:$0xff]  ;;  %v5451_v44 = vld [vmem:[#allocation5 + $0x170] sm:$0xf]  ;;  %s9931_s21 = sld [smem:[#allocation125_spill]] }
  0x4d   : > { %611 = vperm.xlu2 %6667, %v597_v3   ;;  %6550 = vmatpush.msrb.mxu3 %v656_v13  ;;  %v653_v43 = vld [vmem:[%s9287_s4 + $0x38] sm:$0xff]  ;;  %v5323_v46 = vld [vmem:[#allocation5 + $0x70] sm:$0xf]  ;;  %v5443_v52 = vld [vmem:[#allocation5 + $0x160] sm:$0xf]  ;;  %s9932_s14 = sld [smem:[#allocation129_spill]] }
  0x4e   : > { %783 = vmatpush.msrb.mxu0 %v656_v13  ;;  %6551 = vmatpush.msra.mxu2 %v648_v14  ;;  %v6386_v45 = vld [vmem:[#allocation5 + $0x174] sm:$0xf0]  ;;  %v5387_v50 = vld [vmem:[#allocation5 + $0xf0] sm:$0xf]  ;;  %v6384_v54 = vld [vmem:[#allocation5 + $0x164] sm:$0xf0] }
  0x4f   : > { %6552 = vmatpush.msrb.mxu3 %v648_v14  ;;  %906 = vmatpush.msrb.mxu1 %v659_v30  ;;  %v5452_v47 = vor.u32 %v6386_v45, %v5451_v44  ;;  %v6354_v48 = vld [vmem:[#allocation5 + $0x74] sm:$0xf0]  ;;  %v5515_v55 = vld [vmem:[#allocation5 + $0x1f0] sm:$0xf]  ;;  %v5444_v57 = vor.u32 %v6384_v54, %v5443_v52  ;;  %v5315_v58 = vld [vmem:[#allocation5 + $0x60] sm:$0xf] }
  0x50   : > { %784 = vmatpush.msrb.mxu0 %v648_v14  ;;  %947 = vmatpush.msrb.mxu2 %v660_v34  ;;  %v5324_v49 = vor.u32 %v6354_v48, %v5323_v46  ;;  %v6370_v51 = vld [vmem:[#allocation5 + $0xf4] sm:$0xf0]  ;;  %v6352_v60 = vld [vmem:[#allocation5 + $0x64] sm:$0xf0]  ;;  %v5379_v62 = vld [vmem:[#allocation5 + $0xe0] sm:$0xf] }
  0x51   : > { %907 = vmatpush.msrb.mxu1 %v651_v31  ;;  %v5388_v53 = vor.u32 %v6370_v51, %v5387_v50  ;;  %v6402_v56 = vld [vmem:[#allocation5 + $0x1f4] sm:$0xf0]  ;;  %v5316_v61 = vor.u32 %v6352_v60, %v5315_v58  ;;  %v6368_v63 = vld [vmem:[#allocation5 + $0xe4] sm:$0xf0]  ;;  %v5435_v0 = vld [vmem:[#allocation5 + $0x150] sm:$0xf] }
  0x52   : > { %948 = vmatpush.msrb.mxu2 %v652_v35  ;;  %v5516_v59 = vor.u32 %v6402_v56, %v5515_v55  ;;  %v5380_v2 = vor.u32 %v6368_v63, %v5379_v62  ;;  %v5427_v10 = vld [vmem:[#allocation5 + $0x140] sm:$0xf]  ;;  %v6380_v12 = vld [vmem:[#allocation5 + $0x144] sm:$0xf0]  ;;  %v5291_v30 = vld [vmem:[#allocation5 + $0x30] sm:$0xf]  ;;  %s588_s24 = scalar_lea.vmem %s9931_s21, %s7418_s16 }
  0x53   : > { %v5507_v13 = vld [vmem:[#allocation5 + $0x1e0] sm:$0xf]  ;;  %v6400_v14 = vld [vmem:[#allocation5 + $0x1e4] sm:$0xf0]  ;;  %v5428_v15 = vor.u32 %v6380_v12, %v5427_v10  ;;  %v6346_v31 = vld [vmem:[#allocation5 + $0x34] sm:$0xf0]  ;;  %s592_s25 = scalar_lea.vmem %s9932_s14, %s7418_s16 }
  0x54   : > { %6666 = vset.pattern.permute.xlu1 %v7215_v5  ;;  %6664 = vset.pattern.permute.xlu0 %v7216_v6  ;;  %v5307_v5 = vld [vmem:[#allocation5 + $0x50] sm:$0xf]  ;;  %v6350_v6 = vld [vmem:[#allocation5 + $0x54] sm:$0xf0]  ;;  %v5292_v34 = vor.u32 %v6346_v31, %v5291_v30  ;;  %v6376_v44 = vld [vmem:[#allocation5 + $0x124] sm:$0xf0] }
  0x55   : > { %605 = vperm.xlu1 %6666, %v597_v3   ;;  %641 = vperm.xlu0 %6664, %v597_v3   ;;  %v6398_v35 = vld [vmem:[#allocation5 + $0x1d4] sm:$0xf0]  ;;  %v5283_v46 = vld [vmem:[#allocation5 + $0x20] sm:$0xf]  ;;  %v6396_v50 = vld [vmem:[#allocation5 + $0x1c4] sm:$0xf0] }
  0x56   : > { %6668 = vset.pattern.permute.xlu2 %v7217_v7  ;;  %v5308_v7 = vor.u32 %v6350_v6, %v5307_v5  ;;  %v5491_v48 = vld [vmem:[#allocation5 + $0x1c0] sm:$0xf]  ;;  %v5403_v54 = vld [vmem:[#allocation5 + $0x110] sm:$0xf]  ;;  %v6374_v56 = vld [vmem:[#allocation5 + $0x114] sm:$0xf0] }
  0x57   : > { %617 = vperm.xlu2 %6668, %v597_v3   ;;  %v5492_v51 = vor.u32 %v6396_v50, %v5491_v48  ;;  %v5347_v52 = vld [vmem:[#allocation5 + $0xa0] sm:$0xf]  ;;  %v5275_v58 = vld [vmem:[#allocation5 + $0x10] sm:$0xf]  ;;  %v6394_v62 = vld [vmem:[#allocation5 + $0x1b4] sm:$0xf0] }
  0x58   : > { %v5483_v60 = vld [vmem:[#allocation5 + $0x1b0] sm:$0xf]  ;;  %v6372_v5 = vld [vmem:[#allocation5 + $0x104] sm:$0xf0]  ;;  %v6353_v6 = vld [vmem:[#allocation5 + $0x74] sm:$0xf] }
  0x59   : > { %v5484_v63 = vor.u32 %v6394_v62, %v5483_v60  ;;  %v5267_v10 = vld [vmem:[#allocation5] sm:$0xf]  ;;  %v5317_v30 = vld [vmem:[#allocation5 + $0x68] sm:$0xf0]  ;;  %v5467_v31 = vld [vmem:[#allocation5 + $0x190] sm:$0xf] }
  0x5a   : > { %v5475_v12 = vld [vmem:[#allocation5 + $0x1a0] sm:$0xf]  ;;  %v6388_v48 = vld [vmem:[#allocation5 + $0x184] sm:$0xf0]  ;;  %v5301_v60 = vld [vmem:[#allocation5 + $0x48] sm:$0xf0] }
  0x5b   : > { %v5555_v62 = vld [vmem:[#allocation5 + $0x240] sm:$0xf] }
  0x5d   : > { %6669 = vset.pattern.permute.xlu1 %v7218_v8  ;;  %6671 = vset.pattern.permute.xlu0 %v9297_v1  ;;  %v5371_v8 = vld [vmem:[#allocation5 + $0xd0] sm:$0xf] }
  0x5e   : > { %623 = vperm.xlu1 %6669, %v597_v3  }
  0x5f   : > { %6670 = vset.pattern.permute.xlu2 %v7219_v9  ;;  %v6366_v9 = vld [vmem:[#allocation5 + $0xd4] sm:$0xf0] }
  0x60   : > { %629 = vperm.xlu2 %6670, %v597_v3   ;;  %v6382_v3 = vld [vmem:[#allocation5 + $0x154] sm:$0xf0]  ;;  %v5372_v11 = vor.u32 %v6366_v9, %v5371_v8 }
  0x61   : > { %v5436_v4 = vor.u32 %v6382_v3, %v5435_v0  ;;  %v5339_v0 = vld [vmem:[#allocation5 + $0x90] sm:$0xf]  ;;  %v5395_v3 = vld [vmem:[#allocation5 + $0x100] sm:$0xf] }
  0x62   : > { %v5396_v8 = vor.u32 %v6372_v5, %v5395_v3  ;;  %v5381_v3 = vld [vmem:[#allocation5 + $0xe8] sm:$0xf0]  ;;  %v5619_v5 = vld [vmem:[#allocation5 + $0x2c0] sm:$0xf] }
  0x66   : > { %6672 = vset.pattern.permute.xlu1 %v9297_v1 }
  0x68   : > { %6673 = vset.pattern.permute.xlu2 %v9297_v1  ;;  %v5683_v1 = vld [vmem:[#allocation7 + $0x40] sm:$0xf] }
  0xa7   : > { %v612_v25 = vpop.permute.xlu2 %611 }
  0xa8   : > { %vm613_vm5 = vcmp.eq.s32.totalorder %v7445_v16, %v612_v25 }
  0xa9   : > { %v7489_v32 = vsel %vm613_vm5, 1.0, %v7220_v20 }
  0xb1   : > { %v618_v33 = vpop.permute.xlu2 %617 }
  0xb2   : > { %vm619_vm6 = vcmp.eq.s32.totalorder %v7445_v16, %v618_v33  ;;  %v5499_v33 = vld [vmem:[#allocation5 + $0x1d0] sm:$0xf] }
  0xb3   : > { %v7506_v36 = vsel %vm619_vm6, 1.0, %v7220_v20 }
  0xba   : > { %v630_v40 = vpop.permute.xlu2 %629 }
  0xbb   : > { %vm631_vm8 = vcmp.eq.s32.totalorder %v7445_v16, %v630_v40  ;;  %v6362_v40 = vld [vmem:[#allocation5 + $0xb4] sm:$0xf0] }
  0xbc   : > { %v7531_v41 = vsel %vm631_vm8, 1.0, %v7220_v20 }
  0xbe   : > { %v636_v17 = vpop.permute.xlu0 %635  ;;  %v600_v18 = vpop.permute.xlu1 %599 }
  0xbf   : > { %vm637_vm1 = vcmp.eq.s32.totalorder %v7445_v16, %v636_v17  ;;  %vm601_vm2 = vcmp.eq.s32.totalorder %v7445_v16, %v600_v18  ;;  %v5508_v17 = vor.u32 %v6400_v14, %v5507_v13  ;;  %v6348_v18 = vld [vmem:[#allocation5 + $0x44] sm:$0xf0] }
  0xc0   : > { %v7452_v21 = vsel %vm637_vm1, 1.0, %v7220_v20  ;;  %v7454_v22 = vsel %vm601_vm2, 1.0, %v7220_v20  ;;  %v6392_v14 = vld [vmem:[#allocation5 + $0x1a4] sm:$0xf0] }
  0xc1   : > { %5215 = vmatmul.msk.f32.vlgmr.msra.gmra.mxu3 %vm662_vm0, %v7452_v21  ;;  %5201 = vmatmul.msk.f32.vlgmr.msra.gmra.mxu0 %vm662_vm0, %v7454_v22 }
  0xc2   : > { %5209 = vmatmul.msk.f32.vlgmr.msra.gmra.mxu1 %vm662_vm0, %v7454_v22  ;;  %824 = vmatpush.msra.mxu3 %v657_v19 }
  0xc3   : > { %865 = vmatpush.msra.mxu0 %v658_v23  ;;  %1686 = vmatpush.bf16.msra.mxu1 %v5388_v53  ;;  %v6360_v53 = vld [vmem:[#allocation5 + $0xa4] sm:$0xf0] }
  0xc4   : > { %825 = vmatpush.msra.mxu3 %v649_v24  ;;  %v5419_v24 = vld [vmem:[#allocation5 + $0x130] sm:$0xf]  ;;  %v5348_v55 = vor.u32 %v6360_v53, %v5347_v52  ;;  %v6414_v52 = vld [vmem:[#allocation5 + $0x254] sm:$0xf0]  ;;  %v6369_v53 = vld [vmem:[#allocation5 + $0xf4] sm:$0xf] }
  0xc5   : > { %866 = vmatpush.msra.mxu0 %v650_v38 }
  0xc7   : > { %v606_v26 = vpop.permute.xlu1 %605  ;;  %v642_v27 = vpop.permute.xlu0 %641  ;;  %1687 = vmatpush.bf16.msra.mxu1 %v5380_v2  ;;  %v6358_v2 = vld [vmem:[#allocation5 + $0x94] sm:$0xf0] }
  0xc8   : > { %vm607_vm3 = vcmp.eq.s32.totalorder %v7445_v16, %v606_v26  ;;  %vm643_vm4 = vcmp.eq.s32.totalorder %v7445_v16, %v642_v27  ;;  %v6378_v26 = vld [vmem:[#allocation5 + $0x134] sm:$0xf0] }
  0xc9   : > { %v7470_v28 = vsel %vm607_vm3, 1.0, %v7220_v20  ;;  %v7472_v29 = vsel %vm643_vm4, 1.0, %v7220_v20  ;;  %v5420_v27 = vor.u32 %v6378_v26, %v5419_v24  ;;  %v5643_v24 = vld [vmem:[#allocation5 + $0x2f0] sm:$0xf]  ;;  %v6351_v26 = vld [vmem:[#allocation5 + $0x64] sm:$0xf] }
  0xca   : > { %5202 = vmatmul.msk.f32.gmra.mxu0 %vm662_vm0, %v7470_v28  ;;  %5210 = vmatmul.msk.f32.gmra.mxu1 %vm662_vm0, %v7470_v28 }
  0xcb   : > { %5216 = vmatmul.msk.f32.gmra.mxu3 %vm662_vm0, %v7472_v29  ;;  %5218 = vmatmul.msk.f32.vlgmr.msra.gmra.mxu2 %vm662_vm0, %v7470_v28 }
  0xcc   : > { %1699 = vmatpush.bf16.msra.mxu2 %v5452_v47  ;;  %1688 = vmatpush.bf16.msra.mxu1 %v5372_v11  ;;  %v6344_v47 = vld [vmem:[#allocation5 + $0x24] sm:$0xf0] }
  0xcd   : > { %v6340_v11 = vld [vmem:[#allocation5 + $0x4] sm:$0xf0] }
  0xce   : > { %v5268_v13 = vor.u32 %v6340_v11, %v5267_v10 }
  0xd0   : > { %v624_v37 = vpop.permute.xlu1 %623  ;;  %1700 = vmatpush.bf16.msra.mxu2 %v5444_v57  ;;  %v5404_v57 = vor.u32 %v6374_v56, %v5403_v54 }
  0xd1   : > { %vm625_vm7 = vcmp.eq.s32.totalorder %v7445_v16, %v624_v37  ;;  %v5299_v16 = vld [vmem:[#allocation5 + $0x40] sm:$0xf]  ;;  %v5500_v37 = vor.u32 %v6398_v35, %v5499_v33  ;;  %v6390_v33 = vld [vmem:[#allocation5 + $0x194] sm:$0xf0] }
  0xd2   : > { %5203 = vmatmul.msk.f32.gmra.mxu0 %vm662_vm0, %v7489_v32  ;;  %5211 = vmatmul.msk.f32.gmra.mxu1 %vm662_vm0, %v7489_v32  ;;  %v7520_v39 = vsel %vm625_vm7, 1.0, %v7220_v20  ;;  %v5300_v19 = vor.u32 %v6348_v18, %v5299_v16  ;;  %v5363_v20 = vld [vmem:[#allocation5 + $0xc0] sm:$0xf]  ;;  %v6418_v16 = vld [vmem:[#allocation5 + $0x274] sm:$0xf0]  ;;  %v5468_v35 = vor.u32 %v6390_v33, %v5467_v31 }
  0xd3   : > { %5219 = vmatmul.msk.f32.gmra.mxu2 %vm662_vm0, %v7489_v32  ;;  %5224 = vmatmul.msk.f32.vlgmr.msrb.gmra.mxu3 %vm662_vm0, %v7472_v29  ;;  %v5365_v33 = vld [vmem:[#allocation5 + $0xc8] sm:$0xf0] }
  0xd4   : > { %6553 = vmatpush.msrb.mxu3 %v658_v23  ;;  %1701 = vmatpush.bf16.msra.mxu2 %v5436_v4  ;;  %v6364_v23 = vld [vmem:[#allocation5 + $0xc4] sm:$0xf0]  ;;  %v5340_v4 = vor.u32 %v6358_v2, %v5339_v0  ;;  %v6367_v0 = vld [vmem:[#allocation5 + $0xe4] sm:$0xf] }
  0xd5   : > { %v5364_v25 = vor.u32 %v6364_v23, %v5363_v20  ;;  %v6356_v20 = vld [vmem:[#allocation5 + $0x84] sm:$0xf0] }
  0xd6   : > { %6554 = vmatpush.msrb.mxu3 %v650_v38  ;;  %v5355_v38 = vld [vmem:[#allocation5 + $0xb0] sm:$0xf] }
  0xd7   : > { %1689 = vmatpush.bf16.msra.mxu1 %v5364_v25  ;;  %v6434_v25 = vld [vmem:[#allocation5 + $0x2f4] sm:$0xf0] }
  0xd8   : > { %1702 = vmatpush.bf16.msra.mxu2 %v5428_v15  ;;  %v5579_v15 = vld [vmem:[#allocation5 + $0x270] sm:$0xf] }
  0xd9   : > { %v5580_v18 = vor.u32 %v6418_v16, %v5579_v15  ;;  %v5373_v16 = vld [vmem:[#allocation5 + $0xd8] sm:$0xf0] }
  0xda   : > { %5204 = vmatmul.msk.f32.gmra.mxu0 %vm662_vm0, %v7506_v36  ;;  %5212 = vmatmul.msk.f32.gmra.mxu1 %vm662_vm0, %v7506_v36 }
  0xdb   : > { %5220 = vmatmul.msk.f32.gmra.mxu2 %vm662_vm0, %v7506_v36  ;;  %5225 = vmatmul.msk.f32.vlgmr.msra.gmra.mxu3 %vm662_vm0, %v7454_v22 }
  0xdc   : > { %988 = vmatpush.msra.mxu3 %v661_v42  ;;  %1703 = vmatpush.bf16.msra.mxu2 %v5420_v27  ;;  %v5411_v42 = vld [vmem:[#allocation5 + $0x120] sm:$0xf]  ;;  %v5644_v27 = vor.u32 %v6434_v25, %v5643_v24 }
  0xdd   : > { %v5412_v45 = vor.u32 %v6376_v44, %v5411_v42  ;;  %v5635_v42 = vld [vmem:[#allocation5 + $0x2e0] sm:$0xf]  ;;  %v6349_v44 = vld [vmem:[#allocation5 + $0x54] sm:$0xf] }
  0xde   : > { %989 = vmatpush.msra.mxu3 %v653_v43  ;;  %v5356_v43 = vor.u32 %v6362_v40, %v5355_v38  ;;  %v6416_v38 = vld [vmem:[#allocation5 + $0x264] sm:$0xf0]  ;;  %v5539_v25 = vld [vmem:[#allocation5 + $0x220] sm:$0xf] }
  0xe0   : > { %1690 = vmatpush.bf16.msra.mxu1 %v5356_v43  ;;  %1704 = vmatpush.bf16.msra.mxu2 %v5412_v45  ;;  %v6432_v43 = vld [vmem:[#allocation5 + $0x2e4] sm:$0xf0] }
  0xe1   : > { %v5636_v45 = vor.u32 %v6432_v43, %v5635_v42  ;;  %v5277_v42 = vld [vmem:[#allocation5 + $0x18] sm:$0xf0] }
  0xe2   : > { %5205 = vmatmul.msk.f32.gmra.mxu0 %vm662_vm0, %v7520_v39  ;;  %5213 = vmatmul.msk.f32.gmra.mxu1 %vm662_vm0, %v7520_v39 }
  0xe3   : > { %5221 = vmatmul.msk.f32.gmra.mxu2 %vm662_vm0, %v7520_v39  ;;  %5226 = vmatmul.msk.f32.gmra.mxu3 %vm662_vm0, %v7470_v28 }
  0xe4   : > { %1691 = vmatpush.bf16.msra.mxu1 %v5348_v55  ;;  %1705 = vmatpush.bf16.msra.mxu2 %v5404_v57  ;;  %v5389_v55 = vld [vmem:[#allocation5 + $0xf8] sm:$0xf0]  ;;  %v5627_v57 = vld [vmem:[#allocation5 + $0x2d0] sm:$0xf] }
  0xe5   : > { %v5392_v56 = vor.u32 %v6369_v53, %v5389_v55  ;;  %v6422_v53 = vld [vmem:[#allocation5 + $0x294] sm:$0xf0] }
  0xe8   : > { %1692 = vmatpush.bf16.msra.mxu1 %v5340_v4  ;;  %1706 = vmatpush.bf16.msra.mxu2 %v5396_v8  ;;  %v5384_v4 = vor.u32 %v6367_v0, %v5381_v3  ;;  %v6359_v3 = vld [vmem:[#allocation5 + $0xa4] sm:$0xf] }
  0xea   : > { %5206 = vmatmul.msk.f32.gmra.mxu0 %vm662_vm0, %v7531_v41  ;;  %5214 = vmatmul.msk.f32.gmra.mxu1 %vm662_vm0, %v7531_v41 }
  0xeb   : > { %5222 = vmatmul.msk.f32.gmra.mxu2 %vm662_vm0, %v7531_v41  ;;  %5227 = vmatmul.msk.f32.gmra.mxu3 %vm662_vm0, %v7489_v32 }
  0xf2   : > { %5207 = vmatmul.msk.f32.gmra.mxu0 %vm662_vm0, %v7452_v21  ;;  %5241 = vmatmul.msk.f32.vlgmr.msrb.gmra.mxu1 %vm662_vm0, %v7454_v22 }
  0xf3   : > { %5223 = vmatmul.msk.f32.gmra.mxu2 %vm662_vm0, %v7452_v21  ;;  %5228 = vmatmul.msk.f32.gmra.mxu3 %vm662_vm0, %v7506_v36 }
  0xfa   : > { %5208 = vmatmul.msk.f32.gmra.mxu0 %vm662_vm0, %v7472_v29  ;;  %5242 = vmatmul.msk.f32.gmra.mxu1 %vm662_vm0, %v7470_v28 }
  0xfb   : > { %5229 = vmatmul.msk.f32.gmra.mxu3 %vm662_vm0, %v7520_v39  ;;  %5249 = vmatmul.msk.f32.vlgmr.msrb.gmra.mxu2 %vm662_vm0, %v7454_v22 }
 0x102   : > { %5217 = vmatmul.msk.f32.vlgmr.msrb.gmra.mxu0 %vm662_vm0, %v7454_v22  ;;  %5243 = vmatmul.msk.f32.gmra.mxu1 %vm662_vm0, %v7489_v32 }
 0x103   : > { %5230 = vmatmul.msk.f32.gmra.mxu3 %vm662_vm0, %v7531_v41  ;;  %5250 = vmatmul.msk.f32.gmra.mxu2 %vm662_vm0, %v7470_v28 }
 0x104   : > { %1673 = vmatpush.bf16.msrb.mxu0 %v5324_v49  ;;  %v5284_v49 = vor.u32 %v6344_v47, %v5283_v46  ;;  %v5309_v46 = vld [vmem:[#allocation5 + $0x58] sm:$0xf0]  ;;  %v5459_v47 = vld [vmem:[#allocation5 + $0x180] sm:$0xf] }
 0x105   : > { %v5460_v50 = vor.u32 %v6388_v48, %v5459_v47  ;;  %v5357_v48 = vld [vmem:[#allocation5 + $0xb8] sm:$0xf0] }
 0x108   : > { %1674 = vmatpush.bf16.msrb.mxu0 %v5316_v61 }
 0x10a   : > { %5233 = vmatmul.msk.f32.vlgmr.msra.gmra.mxu0 %vm662_vm0, %v7454_v22  ;;  %5244 = vmatmul.msk.f32.gmra.mxu1 %vm662_vm0, %v7506_v36 }
 0x10b   : > { %5231 = vmatmul.msk.f32.gmra.mxu3 %vm662_vm0, %v7452_v21  ;;  %5251 = vmatmul.msk.f32.gmra.mxu2 %vm662_vm0, %v7489_v32 }
 0x10c   : > { %1675 = vmatpush.bf16.msrb.mxu0 %v5308_v7  ;;  %v5325_v7 = vld [vmem:[#allocation5 + $0x78] sm:$0xf0] }
 0x10d   : > { %v5328_v9 = vor.u32 %v6353_v6, %v5325_v7  ;;  %v6428_v6 = vld [vmem:[#allocation5 + $0x2c4] sm:$0xf0]  ;;  %v6345_v7 = vld [vmem:[#allocation5 + $0x34] sm:$0xf] }
 0x10e   : > { %v5620_v8 = vor.u32 %v6428_v6, %v5619_v5 }
 0x10f   : > { %1751 = vmatpush.bf16.msrb.mxu2 %v5328_v9  ;;  %v5293_v9 = vld [vmem:[#allocation5 + $0x38] sm:$0xf0] }
 0x110   : > { %1676 = vmatpush.bf16.msrb.mxu0 %v5300_v19  ;;  %v5331_v19 = vld [vmem:[#allocation5 + $0x80] sm:$0xf]  ;;  %v5296_v11 = vor.u32 %v6345_v7, %v5293_v9  ;;  %v6385_v7 = vld [vmem:[#allocation5 + $0x174] sm:$0xf]  ;;  %v1080_v9 = vld [vmem:[%s7397_s13 + $0x8] sm:$0xff] }
 0x111   : > { %v5332_v23 = vor.u32 %v6356_v20, %v5331_v19  ;;  %v6426_v19 = vld [vmem:[#allocation5 + $0x2b4] sm:$0xf0]  ;;  %v6343_v20 = vld [vmem:[#allocation5 + $0x24] sm:$0xf] }
 0x112   : > { %5234 = vmatmul.msk.f32.gmra.mxu0 %vm662_vm0, %v7470_v28  ;;  %5245 = vmatmul.msk.f32.gmra.mxu1 %vm662_vm0, %v7520_v39 }
 0x113   : > { %5232 = vmatmul.msk.f32.gmra.mxu3 %vm662_vm0, %v7472_v29  ;;  %5252 = vmatmul.msk.f32.gmra.mxu2 %vm662_vm0, %v7506_v36 }
 0x114   : > { %1677 = vmatpush.bf16.msrb.mxu0 %v5292_v34  ;;  %v5320_v34 = vor.u32 %v6351_v26, %v5317_v30  ;;  %1693 = vmatpush.bf16.msra.mxu1 %v5332_v23  ;;  %v6408_v26 = vld [vmem:[#allocation5 + $0x224] sm:$0xf0] }
 0x115   : > { %v5540_v31 = vor.u32 %v6408_v26, %v5539_v25  ;;  %v6383_v25 = vld [vmem:[#allocation5 + $0x164] sm:$0xf] }
 0x116   : > { %1752 = vmatpush.bf16.msrb.mxu2 %v5320_v34 }
 0x118   : > { %1678 = vmatpush.bf16.msrb.mxu0 %v5284_v49  ;;  %1738 = vmatpush.bf16.msrb.mxu1 %v5644_v27  ;;  %v5312_v49 = vor.u32 %v6349_v44, %v5309_v46  ;;  %v6363_v27 = vld [vmem:[#allocation5 + $0xc4] sm:$0xf]  ;;  %v5531_v44 = vld [vmem:[#allocation5 + $0x210] sm:$0xf]  ;;  %v6361_v46 = vld [vmem:[#allocation5 + $0xb4] sm:$0xf] }
 0x119   : > { %v5368_v34 = vor.u32 %v6363_v27, %v5365_v33  ;;  %v5445_v33 = vld [vmem:[#allocation5 + $0x168] sm:$0xf0] }
 0x11a   : > { %5235 = vmatmul.msk.f32.gmra.mxu0 %vm662_vm0, %v7489_v32  ;;  %5246 = vmatmul.msk.f32.gmra.mxu1 %vm662_vm0, %v7531_v41 }
 0x11b   : > { %5237 = vmatmul.msk.f32.vlgmr.msrb.gmra.mxu3 %vm662_vm0, %v7520_v39  ;;  %5253 = vmatmul.msk.f32.gmra.mxu2 %vm662_vm0, %v7520_v39 }
 0x11c   : > { %1712 = vmatpush.bf16.msrb.mxu3 %v5516_v59  ;;  %v6342_v59 = vld [vmem:[#allocation5 + $0x14] sm:$0xf0]  ;;  %1739 = vmatpush.bf16.msrb.mxu1 %v5636_v45 }
 0x11d   : > { %v5276_v61 = vor.u32 %v6342_v59, %v5275_v58  ;;  %1753 = vmatpush.bf16.msrb.mxu2 %v5312_v49  ;;  %v6430_v58 = vld [vmem:[#allocation5 + $0x2d4] sm:$0xf0]  ;;  %v6347_v59 = vld [vmem:[#allocation5 + $0x44] sm:$0xf] }
 0x11e   : > { %v6406_v45 = vld [vmem:[#allocation5 + $0x214] sm:$0xf0] }
 0x11f   : > { %1679 = vmatpush.bf16.msrb.mxu0 %v5276_v61  ;;  %v5304_v61 = vor.u32 %v6347_v59, %v5301_v60  ;;  %v5532_v47 = vor.u32 %v6406_v45, %v5531_v44  ;;  %v1079_v60 = vld [vmem:[%s7397_s13] sm:$0xff]  ;;  %v5333_v45 = vld [vmem:[#allocation5 + $0x88] sm:$0xf0] }
 0x120   : > { %1713 = vmatpush.bf16.msrb.mxu3 %v5508_v17  ;;  %v5476_v17 = vor.u32 %v6392_v14, %v5475_v12  ;;  %v5547_v12 = vld [vmem:[#allocation5 + $0x230] sm:$0xf]  ;;  %v6365_v14 = vld [vmem:[#allocation5 + $0xd4] sm:$0xf]  ;;  %v7633_v0 = vpack.c.bf16 %v1079_v60, %v1079_v60  ;;  %v5429_v60 = vld [vmem:[#allocation5 + $0x148] sm:$0xf0] }
 0x121   : > { %1754 = vmatpush.bf16.msrb.mxu2 %v5304_v61  ;;  %v5523_v61 = vld [vmem:[#allocation5 + $0x200] sm:$0xf] }
 0x122   : > { %5236 = vmatmul.msk.f32.gmra.mxu0 %vm662_vm0, %v7506_v36  ;;  %5247 = vmatmul.msk.f32.gmra.mxu1 %vm662_vm0, %v7452_v21 }
 0x123   : > { %5238 = vmatmul.msk.f32.gmra.mxu3 %vm662_vm0, %v7531_v41  ;;  %5254 = vmatmul.msk.f32.gmra.mxu2 %vm662_vm0, %v7531_v41 }
 0x124   : > { %1714 = vmatpush.bf16.msrb.mxu3 %v5500_v37  ;;  %1680 = vmatpush.bf16.msrb.mxu0 %v5268_v13  ;;  %v5571_v37 = vld [vmem:[#allocation5 + $0x260] sm:$0xf]  ;;  %v6410_v13 = vld [vmem:[#allocation5 + $0x234] sm:$0xf0] }
 0x125   : > { %v5572_v40 = vor.u32 %v6416_v38, %v5571_v37  ;;  %v5548_v15 = vor.u32 %v6410_v13, %v5547_v12  ;;  %1755 = vmatpush.bf16.msrb.mxu2 %v5296_v11  ;;  %v6424_v37 = vld [vmem:[#allocation5 + $0x2a4] sm:$0xf0]  ;;  %v6341_v38 = vld [vmem:[#allocation5 + $0x14] sm:$0xf]  ;;  %v7641_v13 = vpack.c.bf16 %v1080_v9, %v1080_v9 }
 0x126   : > { %v5280_v43 = vor.u32 %v6341_v38, %v5277_v42  ;;  %v6413_v38 = vld [vmem:[#allocation5 + $0x254] sm:$0xf]  ;;  %v5565_v42 = vld [vmem:[#allocation5 + $0x258] sm:$0xf0] }
 0x127   : > { %v5568_v44 = vor.u32 %v6413_v38, %v5565_v42 }
 0x128   : > { %1715 = vmatpush.bf16.msrb.mxu3 %v5492_v51  ;;  %1725 = vmatpush.bf16.msra.mxu0 %v5580_v18  ;;  %v5563_v51 = vld [vmem:[#allocation5 + $0x250] sm:$0xf] }
 0x129   : > { %v5564_v54 = vor.u32 %v6414_v52, %v5563_v51  ;;  %v5611_v18 = vld [vmem:[#allocation5 + $0x2b0] sm:$0xf]  ;;  %v5360_v51 = vor.u32 %v6361_v46, %v5357_v48  ;;  %v6381_v46 = vld [vmem:[#allocation5 + $0x154] sm:$0xf] }
 0x12a   : > { %5248 = vmatmul.msk.f32.gmra.mxu1 %vm662_vm0, %v7472_v29  ;;  %v5612_v23 = vor.u32 %v6426_v19, %v5611_v18  ;;  %v5595_v52 = vld [vmem:[#allocation5 + $0x290] sm:$0xf]  ;;  %1681 = vmatmul.bf16.vlgmr.msrb.gmra.mxu0 %v7633_v0  ;;  %v5517_v18 = vld [vmem:[#allocation5 + $0x1f8] sm:$0xf0]  ;;  %v6415_v19 = vld [vmem:[#allocation5 + $0x264] sm:$0xf] }
 0x12b   : > { %5239 = vmatmul.msk.f32.gmra.mxu3 %vm662_vm0, %v7452_v21  ;;  %5255 = vmatmul.msk.f32.gmra.mxu2 %vm662_vm0, %v7452_v21  ;;  %v5596_v55 = vor.u32 %v6422_v53, %v5595_v52  ;;  %v6397_v52 = vld [vmem:[#allocation5 + $0x1d4] sm:$0xf]  ;;  %v5501_v53 = vld [vmem:[#allocation5 + $0x1d8] sm:$0xf0] }
 0x12c   : > { %1716 = vmatpush.bf16.msrb.mxu3 %v5484_v63  ;;  %1726 = vmatpush.bf16.msra.mxu0 %v5572_v40  ;;  %v6412_v63 = vld [vmem:[#allocation5 + $0x244] sm:$0xf0] }
 0x12d   : > { %v5556_v2 = vor.u32 %v6412_v63, %v5555_v62 }
 0x130   : > { %1717 = vmatpush.bf16.msrb.mxu3 %v5476_v17  ;;  %1727 = vmatpush.bf16.msra.mxu0 %v5564_v54  ;;  %v5376_v17 = vor.u32 %v6365_v14, %v5373_v16  ;;  %v5587_v14 = vld [vmem:[#allocation5 + $0x280] sm:$0xf]  ;;  %v6401_v16 = vld [vmem:[#allocation5 + $0x1f4] sm:$0xf] }
 0x132   : > { %1694 = vmatmul.bf16.vlgmr.msra.gmra.mxu1 %v7641_v13 }
 0x133   : > { %5240 = vmatmul.msk.f32.gmra.mxu3 %vm662_vm0, %v7472_v29  ;;  %5256 = vmatmul.msk.f32.gmra.mxu2 %vm662_vm0, %v7472_v29 }
 0x134   : > { %1718 = vmatpush.bf16.msrb.mxu3 %v5468_v35  ;;  %1728 = vmatpush.bf16.msra.mxu0 %v5556_v2  ;;  %v5603_v35 = vld [vmem:[#allocation5 + $0x2a0] sm:$0xf]  ;;  %v6404_v2 = vld [vmem:[#allocation5 + $0x204] sm:$0xf0] }
 0x135   : > { %v5604_v40 = vor.u32 %v6424_v37, %v5603_v35  ;;  %v5524_v5 = vor.u32 %v6404_v2, %v5523_v61  ;;  %v6399_v35 = vld [vmem:[#allocation5 + $0x1e4] sm:$0xf]  ;;  %v5509_v37 = vld [vmem:[#allocation5 + $0x1e8] sm:$0xf0] }
 0x138   : > { %1719 = vmatpush.bf16.msrb.mxu3 %v5460_v50  ;;  %1729 = vmatpush.bf16.msra.mxu0 %v5548_v15  ;;  %v6420_v15 = vld [vmem:[#allocation5 + $0x284] sm:$0xf0] }
 0x13b   : > { %5257 = vmatmul.msk.f32.vlgmr.msra.gmra.mxu3 %vm662_vm0, %v7454_v22  ;;  %v5628_v22 = vor.u32 %v6430_v58, %v5627_v57  ;;  %v5269_v57 = vld [vmem:[#allocation5 + $0x8] sm:$0xf0]  ;;  %v6417_v58 = vld [vmem:[#allocation5 + $0x274] sm:$0xf] }
 0x13c   : > { %1764 = vmatpush.bf16.msra.mxu3 %v5392_v56  ;;  %1730 = vmatpush.bf16.msra.mxu0 %v5540_v31  ;;  %v6339_v56 = vld [vmem:[#allocation5 + $0x4] sm:$0xf] }
 0x13d   : > { %1740 = vmatpush.bf16.msrb.mxu1 %v5628_v22  ;;  %v5272_v59 = vor.u32 %v6339_v56, %v5269_v57  ;;  %v5581_v22 = vld [vmem:[#allocation5 + $0x278] sm:$0xf0]  ;;  %v5504_v56 = vor.u32 %v6397_v52, %v5501_v53  ;;  %v5557_v57 = vld [vmem:[#allocation5 + $0x248] sm:$0xf0] }
 0x13e   : > { %v7631_v62 = vpop.f32.mrf.mxu0  ;;  %v5584_v63 = vor.u32 %v6417_v58, %v5581_v22  ;;  %v6379_v22 = vld [vmem:[#allocation5 + $0x144] sm:$0xf]  ;;  %v5525_v53 = vld [vmem:[#allocation5 + $0x208] sm:$0xf0] }
 0x13f   : > { %v7619_v30 = vpop.f32.mrf.mxu1  ;;  %9460 = vst [vmem:[#allocation21_spill] sm:$0xff] %v7631_v62  ;;  %v6032_v62 = vld [vmem:[#allocation10 + $0xf8] sm:$0xf0] }
 0x140   : > { %1765 = vmatpush.bf16.msra.mxu3 %v5384_v4  ;;  %9457 = vst [vmem:[#allocation18_spill] sm:$0xff] %v7619_v30  ;;  %1731 = vmatpush.bf16.msra.mxu0 %v5532_v47  ;;  %v5349_v4 = vld [vmem:[#allocation5 + $0xa8] sm:$0xf0]  ;;  %v5437_v47 = vld [vmem:[#allocation5 + $0x158] sm:$0xf0] }
 0x141   : > { %1741 = vmatpush.bf16.msrb.mxu1 %v5620_v8  ;;  %v5352_v6 = vor.u32 %v6359_v3, %v5349_v4  ;;  %v5453_v8 = vld [vmem:[#allocation5 + $0x178] sm:$0xf0]  ;;  %v5493_v3 = vld [vmem:[#allocation5 + $0x1c8] sm:$0xf0]  ;;  %v6409_v4 = vld [vmem:[#allocation5 + $0x234] sm:$0xf] }
 0x142   : > { %v5456_v12 = vor.u32 %v6385_v7, %v5453_v8  ;;  %v1083_v7 = vld [vmem:[%s7397_s13 + $0x20] sm:$0xff]  ;;  %v6502_v30 = vld [vmem:[#allocation10 + $0x14] sm:$0xf0] }
 0x143   : > { %5258 = vmatmul.msk.f32.gmra.mxu3 %vm662_vm0, %v7470_v28  ;;  %v5285_v28 = vld [vmem:[#allocation5 + $0x28] sm:$0xf0]  ;;  %v6377_v8 = vld [vmem:[#allocation5 + $0x134] sm:$0xf] }
 0x144   : > { %v7617_v10 = vpop.f32.mrf.mxu3  ;;  %v5288_v24 = vor.u32 %v6343_v20, %v5285_v28  ;;  %1766 = vmatpush.bf16.msra.mxu3 %v5376_v17  ;;  %v5588_v17 = vor.u32 %v6420_v15, %v5587_v14  ;;  %v5573_v20 = vld [vmem:[#allocation5 + $0x268] sm:$0xf0]  ;;  %1732 = vmatpush.bf16.msra.mxu0 %v5524_v5  ;;  %v5421_v14 = vld [vmem:[#allocation5 + $0x138] sm:$0xf0] }
 0x145   : > { %9456 = vst [vmem:[#allocation17_spill] sm:$0xff] %v7617_v10  ;;  %1742 = vmatpush.bf16.msrb.mxu1 %v5612_v23  ;;  %v5520_v23 = vor.u32 %v6401_v16, %v5517_v18  ;;  %v5576_v28 = vor.u32 %v6415_v19, %v5573_v20  ;;  %v5424_v15 = vor.u32 %v6377_v8, %v5421_v14  ;;  %v1084_v16 = vld [vmem:[%s7397_s13 + $0x28] sm:$0xff]  ;;  %v6393_v18 = vld [vmem:[#allocation5 + $0x1b4] sm:$0xf]  ;;  %v6407_v20 = vld [vmem:[#allocation5 + $0x224] sm:$0xf] }
 0x146   : > { %1756 = vmatpush.bf16.msrb.mxu2 %v5288_v24  ;;  %v6357_v24 = vld [vmem:[#allocation5 + $0x94] sm:$0xf]  ;;  %v5485_v19 = vld [vmem:[#allocation5 + $0x1b8] sm:$0xf0] }
 0x147   : > { %v7637_v11 = vpop.f32.mrf.mxu1  ;;  %v5645_v8 = vld [vmem:[#allocation5 + $0x2f8] sm:$0xf0] }
 0x148   : > { %1767 = vmatpush.bf16.msra.mxu3 %v5368_v34  ;;  %9461 = vst [vmem:[#allocation22_spill] sm:$0xff] %v7637_v11  ;;  %1777 = vmatpush.bf16.msrb.mxu0 %v5456_v12  ;;  %v5448_v34 = vor.u32 %v6383_v25, %v5445_v33  ;;  %v7660_v12 = vpack.c.bf16 %v1083_v7, %v1083_v7  ;;  %v5413_v25 = vld [vmem:[#allocation5 + $0x128] sm:$0xf0]  ;;  %v6433_v7 = vld [vmem:[#allocation5 + $0x2f4] sm:$0xf] }
 0x149   : > { %1743 = vmatpush.bf16.msrb.mxu1 %v5604_v40  ;;  %v5512_v40 = vor.u32 %v6399_v35, %v5509_v37  ;;  %v5477_v35 = vld [vmem:[#allocation5 + $0x1a8] sm:$0xf0]  ;;  %v6405_v37 = vld [vmem:[#allocation5 + $0x214] sm:$0xf]  ;;  %v5648_v14 = vor.u32 %v6433_v7, %v5645_v8  ;;  %v5757_v10 = vld [vmem:[#allocation7 + $0xd8] sm:$0xf0] }
 0x14a   : > { %1757 = vmatpush.bf16.msrb.mxu2 %v5280_v43  ;;  %v6355_v43 = vld [vmem:[#allocation5 + $0x84] sm:$0xf]  ;;  %1733 = vmatmul.bf16.vlgmr.msra.gmra.mxu0 %v7660_v12  ;;  %v6526_v11 = vld [vmem:[#allocation10 + $0xd4] sm:$0xf0] }
 0x14b   : > { %5259 = vmatmul.msk.f32.gmra.mxu3 %vm662_vm0, %v7489_v32  ;;  %v1081_v32 = vld [vmem:[%s7397_s13 + $0x10] sm:$0xff]  ;;  %v5336_v48 = vor.u32 %v6355_v43, %v5333_v45  ;;  %v5405_v45 = vld [vmem:[#allocation5 + $0x118] sm:$0xf0] }
 0x14c   : > { %v7628_v54 = vpack.c.bf16 %v1081_v32, %v1081_v32  ;;  %1768 = vmatpush.bf16.msra.mxu3 %v5360_v51  ;;  %1778 = vmatpush.bf16.msrb.mxu0 %v5448_v34  ;;  %v5440_v51 = vor.u32 %v6381_v46, %v5437_v47  ;;  %v7649_v32 = vpop.f32.mrf.mxu0  ;;  %v6391_v34 = vld [vmem:[#allocation5 + $0x1a4] sm:$0xf]  ;;  %v6389_v47 = vld [vmem:[#allocation5 + $0x194] sm:$0xf] }
 0x14d   : > { %1744 = vmatpush.bf16.msrb.mxu1 %v5596_v55  ;;  %9464 = vst [vmem:[#allocation25_spill] sm:$0xff] %v7649_v32  ;;  %v6411_v55 = vld [vmem:[#allocation5 + $0x244] sm:$0xf]  ;;  %v5480_v38 = vor.u32 %v6391_v34, %v5477_v35  ;;  %v6425_v35 = vld [vmem:[#allocation5 + $0x2b4] sm:$0xf] }
 0x14e   : > { %v7623_v49 = vpop.f32.mrf.mxu3  ;;  %v7625_v50 = vpop.f32.mrf.mxu2  ;;  %1707 = vmatmul.bf16.vlgmr.msra.gmra.mxu2 %v7628_v54  ;;  %v6513_v32 = vld [vmem:[#allocation10 + $0x6c] sm:$0xf0] }
 0x14f   : > { %9458 = vst [vmem:[#allocation19_spill] sm:$0xff] %v7623_v49  ;;  %1758 = vmatpush.bf16.msrb.mxu2 %v5272_v59  ;;  %v7653_v58 = vpop.f32.mrf.mxu1  ;;  %v5560_v59 = vor.u32 %v6411_v55, %v5557_v57  ;;  %v5397_v57 = vld [vmem:[#allocation5 + $0x108] sm:$0xf0] }
 0x150   : > { %9459 = vst [vmem:[#allocation20_spill] sm:$0xff] %v7625_v50  ;;  %1769 = vmatpush.bf16.msra.mxu3 %v5352_v6  ;;  %1779 = vmatpush.bf16.msrb.mxu0 %v5440_v51  ;;  %v5549_v6 = vld [vmem:[#allocation5 + $0x238] sm:$0xf0]  ;;  %v6403_v51 = vld [vmem:[#allocation5 + $0x204] sm:$0xf] }
 0x151   : > { %1745 = vmatpush.bf16.msrb.mxu1 %v5588_v17  ;;  %9465 = vst [vmem:[#allocation26_spill] sm:$0xff] %v7653_v58  ;;  %v5552_v9 = vor.u32 %v6409_v4, %v5549_v6  ;;  %v7666_v17 = vpack.c.bf16 %v1084_v16, %v1084_v16  ;;  %v5528_v55 = vor.u32 %v6403_v51, %v5525_v53  ;;  %v1082_v4 = vld [vmem:[%s7397_s13 + $0x18] sm:$0xff]  ;;  %v6431_v16 = vld [vmem:[#allocation5 + $0x2e4] sm:$0xf] }
 0x152   : > { %v1088_v6 = vpack.c.bf16 %v1082_v4, %v1082_v4  ;;  %v5597_v51 = vld [vmem:[#allocation5 + $0x298] sm:$0xf0] }
 0x153   : > { %5260 = vmatmul.msk.f32.gmra.mxu3 %vm662_vm0, %v7506_v36  ;;  %1803 = vmatpush.bf16.msra.mxu2 %v5584_v63  ;;  %v5341_v36 = vld [vmem:[#allocation5 + $0x98] sm:$0xf0]  ;;  %v5432_v63 = vor.u32 %v6379_v22, %v5429_v60 }
 0x154   : > { %v5344_v31 = vor.u32 %v6357_v24, %v5341_v36  ;;  %v7668_v24 = vpop.f32.mrf.mxu0  ;;  %1746 = vmatmul.bf16.vlgmr.msrb.gmra.mxu1 %v7666_v17  ;;  %v5805_v50 = vld [vmem:[#allocation8 + $0x38] sm:$0xf0] }
 0x155   : > { %1790 = vmatpush.bf16.msra.mxu1 %v5520_v23  ;;  %1780 = vmatpush.bf16.msrb.mxu0 %v5432_v63  ;;  %v5488_v23 = vor.u32 %v6393_v18, %v5485_v19  ;;  %9468 = vst [vmem:[#allocation29_spill] sm:$0xff] %v7668_v24  ;;  %v6387_v63 = vld [vmem:[#allocation5 + $0x184] sm:$0xf]  ;;  %v5637_v18 = vld [vmem:[#allocation5 + $0x2e8] sm:$0xf0] }
 0x156   : > { %v7644_v26 = vpop.f32.mrf.mxu2  ;;  %v7646_v27 = vpop.f32.mrf.mxu3  ;;  %1770 = vmatpush.bf16.msra.mxu3 %v5344_v31  ;;  %v5821_v24 = vld [vmem:[#allocation8 + $0x58] sm:$0xf0] }
 0x157   : > { %9462 = vst [vmem:[#allocation23_spill] sm:$0xff] %v7644_v26  ;;  %1804 = vmatpush.bf16.msra.mxu2 %v5576_v28  ;;  %v5541_v28 = vld [vmem:[#allocation5 + $0x228] sm:$0xf0]  ;;  %v7674_v33 = vpop.f32.mrf.mxu1 }
 0x158   : > { %9463 = vst [vmem:[#allocation24_spill] sm:$0xff] %v7646_v27  ;;  %v5544_v36 = vor.u32 %v6407_v20, %v5541_v28  ;;  %v6429_v20 = vld [vmem:[#allocation5 + $0x2d4] sm:$0xf]  ;;  %v6440_v27 = vld [vmem:[#allocation7 + $0x24] sm:$0xf0] }
 0x159   : > { %1791 = vmatpush.bf16.msra.mxu1 %v5512_v40  ;;  %1781 = vmatpush.bf16.msrb.mxu0 %v5424_v15  ;;  %9470 = vst [vmem:[#allocation31_spill] sm:$0xff] %v7674_v33  ;;  %v5533_v40 = vld [vmem:[#allocation5 + $0x218] sm:$0xf0]  ;;  %v6476_v26 = vld [vmem:[#allocation8 + $0x4c] sm:$0xf] }
 0x15a   : > { %1771 = vmatpush.bf16.msra.mxu3 %v5336_v48  ;;  %v5536_v43 = vor.u32 %v6405_v37, %v5533_v40  ;;  %v5469_v48 = vld [vmem:[#allocation5 + $0x198] sm:$0xf0] }
 0x15b   : > { %5261 = vmatmul.msk.f32.gmra.mxu3 %vm662_vm0, %v7520_v39  ;;  %1805 = vmatpush.bf16.msra.mxu2 %v5568_v44  ;;  %v6395_v39 = vld [vmem:[#allocation5 + $0x1c4] sm:$0xf]  ;;  %v6373_v44 = vld [vmem:[#allocation5 + $0x114] sm:$0xf]  ;;  %v5472_v52 = vor.u32 %v6389_v47, %v5469_v48  ;;  %v5613_v37 = vld [vmem:[#allocation5 + $0x2b8] sm:$0xf0] }
 0x15c   : > { %v5496_v5 = vor.u32 %v6395_v39, %v5493_v3  ;;  %v5408_v46 = vor.u32 %v6373_v44, %v5405_v45  ;;  %v7682_v60 = vpop.f32.mrf.mxu0  ;;  %v5461_v39 = vld [vmem:[#allocation5 + $0x188] sm:$0xf0]  ;;  %v6423_v44 = vld [vmem:[#allocation5 + $0x2a4] sm:$0xf]  ;;  %v6421_v48 = vld [vmem:[#allocation5 + $0x294] sm:$0xf] }
 0x15d   : > { %1792 = vmatpush.bf16.msra.mxu1 %v5504_v56  ;;  %v6371_v56 = vld [vmem:[#allocation5 + $0x104] sm:$0xf]  ;;  %9473 = vst [vmem:[#allocation34_spill] sm:$0xff] %v7682_v60  ;;  %v5605_v45 = vld [vmem:[#allocation5 + $0x2a8] sm:$0xf0] }
 0x15e   : > { %v7655_v61 = vpop.f32.mrf.mxu3  ;;  %v7657_v2 = vpop.f32.mrf.mxu2  ;;  %1759 = vmatmul.bf16.vlgmr.msrb.gmra.mxu2 %v7633_v0  ;;  %v6375_v0 = vld [vmem:[#allocation5 + $0x124] sm:$0xf]  ;;  %v5400_v22 = vor.u32 %v6371_v56, %v5397_v57  ;;  %v5853_v60 = vld [vmem:[#allocation8 + $0x98] sm:$0xf0] }
 0x15f   : > { %9466 = vst [vmem:[#allocation27_spill] sm:$0xff] %v7655_v61  ;;  %1806 = vmatpush.bf16.msra.mxu2 %v5560_v59  ;;  %v7684_v3 = vpop.f32.mrf.mxu1  ;;  %v6419_v57 = vld [vmem:[#allocation5 + $0x284] sm:$0xf]  ;;  %v5918_v61 = vld [vmem:[#allocation10 + $0x8] sm:$0xf] }
 0x160   : > { %9467 = vst [vmem:[#allocation28_spill] sm:$0xff] %v7657_v2  ;;  %v5869_v2 = vld [vmem:[#allocation8 + $0xb8] sm:$0xf0] }
 0x161   : > { %1793 = vmatpush.bf16.msra.mxu1 %v5496_v5  ;;  %9474 = vst [vmem:[#allocation35_spill] sm:$0xff] %v7684_v3  ;;  %v5717_v3 = vld [vmem:[#allocation7 + $0x88] sm:$0xf0] }
 0x163   : > { %5262 = vmatmul.msk.f32.gmra.mxu3 %vm662_vm0, %v7531_v41  ;;  %1807 = vmatpush.bf16.msra.mxu2 %v5552_v9  ;;  %v5416_v41 = vor.u32 %v6375_v0, %v5413_v25  ;;  %v5621_v0 = vld [vmem:[#allocation5 + $0x2c8] sm:$0xf0] }
 0x164   : > { %v7695_v15 = vpop.f32.mrf.mxu0 }
 0x165   : > { %1794 = vmatpush.bf16.msra.mxu1 %v5488_v23  ;;  %1782 = vmatpush.bf16.msrb.mxu0 %v5416_v41  ;;  %9477 = vst [vmem:[#allocation38_spill] sm:$0xff] %v7695_v15  ;;  %v5629_v23 = vld [vmem:[#allocation5 + $0x2d8] sm:$0xf0]  ;;  %v6470_v15 = vld [vmem:[#allocation8 + $0x14] sm:$0xf0] }
 0x166   : > { %v7671_v31 = vpop.f32.mrf.mxu3  ;;  %v7676_v42 = vpop.f32.mrf.mxu2 }
 0x167   : > { %9469 = vst [vmem:[#allocation30_spill] sm:$0xff] %v7671_v31  ;;  %1808 = vmatpush.bf16.msra.mxu2 %v5544_v36  ;;  %v7697_v19 = vpop.f32.mrf.mxu1  ;;  %v6427_v36 = vld [vmem:[#allocation5 + $0x2c4] sm:$0xf] }
 0x168   : > { %9471 = vst [vmem:[#allocation32_spill] sm:$0xff] %v7676_v42  ;;  %v5624_v41 = vor.u32 %v6427_v36, %v5621_v0  ;;  %v5709_v0 = vld [vmem:[#allocation7 + $0x78] sm:$0xf0] }
 0x169   : > { %1795 = vmatpush.bf16.msra.mxu1 %v5480_v38  ;;  %1783 = vmatpush.bf16.msrb.mxu0 %v5408_v46  ;;  %9478 = vst [vmem:[#allocation39_spill] sm:$0xff] %v7697_v19  ;;  %v5608_v46 = vor.u32 %v6423_v44, %v5605_v45  ;;  %v6447_v44 = vld [vmem:[#allocation7 + $0x64] sm:$0xf]  ;;  %v5701_v45 = vld [vmem:[#allocation7 + $0x68] sm:$0xf0] }
 0x16a   : > { %v5827_v19 = vld [vmem:[#allocation8 + $0x60] sm:$0xf] }
 0x16b   : > { %5263 = vmatmul.msk.f32.gmra.mxu3 %vm662_vm0, %v7452_v21  ;;  %1809 = vmatpush.bf16.msra.mxu2 %v5536_v43  ;;  %v5464_v21 = vor.u32 %v6387_v63, %v5461_v39  ;;  %v5616_v43 = vor.u32 %v6425_v35, %v5613_v37  ;;  %v6448_v35 = vld [vmem:[#allocation7 + $0x64] sm:$0xf0] }
 0x16c   : > { %v7703_v25 = vpop.f32.mrf.mxu0 }
 0x16d   : > { %1796 = vmatpush.bf16.msra.mxu1 %v5472_v52  ;;  %1784 = vmatpush.bf16.msrb.mxu0 %v5400_v22  ;;  %9481 = vst [vmem:[#allocation42_spill] sm:$0xff] %v7703_v25  ;;  %v5589_v22 = vld [vmem:[#allocation5 + $0x288] sm:$0xf0]  ;;  %v6481_v25 = vld [vmem:[#allocation8 + $0x6c] sm:$0xf0] }
 0x16e   : > { %v7680_v59 = vpop.f32.mrf.mxu3  ;;  %v7687_v5 = vpop.f32.mrf.mxu2  ;;  %v5592_v63 = vor.u32 %v6419_v57, %v5589_v22  ;;  %v6446_v57 = vld [vmem:[#allocation7 + $0x54] sm:$0xf0]  ;;  %v6445_v22 = vld [vmem:[#allocation7 + $0x54] sm:$0xf] }
 0x16f   : > { %9472 = vst [vmem:[#allocation33_spill] sm:$0xff] %v7680_v59  ;;  %1810 = vmatpush.bf16.msra.mxu2 %v5528_v55  ;;  %v7705_v34 = vpop.f32.mrf.mxu1  ;;  %v5600_v55 = vor.u32 %v6421_v48, %v5597_v51  ;;  %v5704_v48 = vor.u32 %v6447_v44, %v5701_v45  ;;  %v5675_v45 = vld [vmem:[#allocation7 + $0x30] sm:$0xf] }
 0x170   : > { %9475 = vst [vmem:[#allocation36_spill] sm:$0xff] %v7687_v5  ;;  %1785 = vmatmul.bf16.vlgmr.msrb.gmra.mxu0 %v7628_v54  ;;  %v5632_v54 = vor.u32 %v6429_v20, %v5629_v23  ;;  %v5707_v20 = vld [vmem:[#allocation7 + $0x70] sm:$0xf]  ;;  %v6450_v23 = vld [vmem:[#allocation7 + $0x74] sm:$0xf0] }
 0x171   : > { %1797 = vmatpush.bf16.msra.mxu1 %v5464_v21  ;;  %9482 = vst [vmem:[#allocation43_spill] sm:$0xff] %v7705_v34  ;;  %v5677_v34 = vld [vmem:[#allocation7 + $0x38] sm:$0xf0] }
 0x172   : > { %1811 = vmatmul.bf16.vlgmr.msra.gmra.mxu2 %v7660_v12  ;;  %v5741_v5 = vld [vmem:[#allocation7 + $0xb8] sm:$0xf0] }
 0x173   : > { %5264 = vmatmul.msk.f32.gmra.mxu3 %vm662_vm0, %v7472_v29  ;;  %v5640_v29 = vor.u32 %v6431_v16, %v5637_v18 }
 0x174   : > { %1798 = vmatmul.bf16.vlgmr.msra.gmra.mxu1 %v1088_v6  ;;  %v7712_v47 = vpop.f32.mrf.mxu0 }
 0x175   : > { %9485 = vst [vmem:[#allocation46_spill] sm:$0xff] %v7712_v47 }
 0x176   : > { %v7693_v9 = vpop.f32.mrf.mxu3  ;;  %v7699_v12 = vpop.f32.mrf.mxu2 }
 0x177   : > { %9476 = vst [vmem:[#allocation37_spill] sm:$0xff] %v7693_v9  ;;  %v7716_v53 = vpop.f32.mrf.mxu1 }
 0x178   : > { %9479 = vst [vmem:[#allocation40_spill] sm:$0xff] %v7699_v12 }
 0x179   : > { %9487 = vst [vmem:[#allocation48_spill] sm:$0xff] %v7716_v53 }
 0x17b   : > { %1720 = vmatmul.bf16.vlgmr.msrb.gmra.mxu3 %v1088_v6 }
 0x17c   : > { %1816 = vmatpush.bf16.msrb.mxu3 %v5648_v14 }
 0x17e   : > { %v7701_v28 = vpop.f32.mrf.mxu3  ;;  %v7709_v40 = vpop.f32.mrf.mxu2 }
 0x17f   : > { %9480 = vst [vmem:[#allocation41_spill] sm:$0xff] %v7701_v28  ;;  %v7724_v21 = vpop.f32.mrf.mxu1 }
 0x180   : > { %1817 = vmatpush.bf16.msrb.mxu3 %v5640_v29  ;;  %9484 = vst [vmem:[#allocation45_spill] sm:$0xff] %v7709_v40  ;;  %v6444_v40 = vld [vmem:[#allocation7 + $0x44] sm:$0xf0] }
 0x181   : > { %9491 = vst [vmem:[#allocation52_spill] sm:$0xff] %v7724_v21  ;;  %v6458_v21 = vld [vmem:[#allocation7 + $0xb4] sm:$0xf0] }
 0x184   : > { %1818 = vmatpush.bf16.msrb.mxu3 %v5632_v54  ;;  %v6449_v54 = vld [vmem:[#allocation7 + $0x74] sm:$0xf] }
 0x186   : > { %v7707_v38 = vpop.f32.mrf.mxu3  ;;  %v7718_v56 = vpop.f32.mrf.mxu2 }
 0x187   : > { %9483 = vst [vmem:[#allocation44_spill] sm:$0xff] %v7707_v38  ;;  %v7733_v8 = vpop.f32.mrf.mxu1 }
 0x188   : > { %1819 = vmatpush.bf16.msrb.mxu3 %v5624_v41  ;;  %9488 = vst [vmem:[#allocation49_spill] sm:$0xff] %v7718_v56  ;;  %v5699_v41 = vld [vmem:[#allocation7 + $0x60] sm:$0xf] }
 0x189   : > { %9495 = vst [vmem:[#allocation56_spill] sm:$0xff] %v7733_v8  ;;  %v5795_v8 = vld [vmem:[#allocation8 + $0x20] sm:$0xf] }
 0x18b   : > { %1772 = vmatmul.bf16.vlgmr.msra.gmra.mxu3 %v7641_v13  ;;  %v7722_v13 = vpop.f32.mrf.mxu0 }
 0x18c   : > { %1820 = vmatpush.bf16.msrb.mxu3 %v5616_v43  ;;  %9490 = vst [vmem:[#allocation51_spill] sm:$0xff] %v7722_v13  ;;  %v5712_v43 = vor.u32 %v6449_v54, %v5709_v0  ;;  %v6465_v13 = vld [vmem:[#allocation7 + $0xf4] sm:$0xf] }
 0x18e   : > { %v7714_v52 = vpop.f32.mrf.mxu3  ;;  %v7726_v4 = vpop.f32.mrf.mxu2  ;;  %2051 = vmatpush.bf16.msrb.mxu2 %v5712_v43 }
 0x18f   : > { %9486 = vst [vmem:[#allocation47_spill] sm:$0xff] %v7714_v52  ;;  %v7741_v29 = vpop.f32.mrf.mxu1  ;;  %v6461_v52 = vld [vmem:[#allocation7 + $0xd4] sm:$0xf] }
 0x190   : > { %1821 = vmatpush.bf16.msrb.mxu3 %v5608_v46  ;;  %9492 = vst [vmem:[#allocation53_spill] sm:$0xff] %v7726_v4  ;;  %v5700_v46 = vor.u32 %v6448_v35, %v5699_v41  ;;  %v5685_v41 = vld [vmem:[#allocation7 + $0x48] sm:$0xf0]  ;;  %v5684_v35 = vor.u32 %v6444_v40, %v5683_v1  ;;  %v5843_v4 = vld [vmem:[#allocation8 + $0x80] sm:$0xf] }
 0x191   : > { %9499 = vst [vmem:[#allocation60_spill] sm:$0xff] %v7741_v29  ;;  %v5669_v1 = vld [vmem:[#allocation7 + $0x28] sm:$0xf0] }
 0x192   : > { %2052 = vmatpush.bf16.msrb.mxu2 %v5704_v48  ;;  %v6441_v48 = vld [vmem:[#allocation7 + $0x34] sm:$0xf] }
 0x193   : > { %v7731_v7 = vpop.f32.mrf.mxu0 }
 0x194   : > { %1822 = vmatpush.bf16.msrb.mxu3 %v5600_v55  ;;  %9494 = vst [vmem:[#allocation55_spill] sm:$0xff] %v7731_v7  ;;  %v5691_v55 = vld [vmem:[#allocation7 + $0x50] sm:$0xf] }
 0x196   : > { %v7720_v39 = vpop.f32.mrf.mxu3  ;;  %v7735_v14 = vpop.f32.mrf.mxu2 }
 0x197   : > { %9489 = vst [vmem:[#allocation50_spill] sm:$0xff] %v7720_v39  ;;  %v7751_v54 = vpop.f32.mrf.mxu1  ;;  %v5661_v39 = vld [vmem:[#allocation7 + $0x18] sm:$0xf0] }
 0x198   : > { %1823 = vmatpush.bf16.msrb.mxu3 %v5592_v63  ;;  %9496 = vst [vmem:[#allocation57_spill] sm:$0xff] %v7735_v14  ;;  %v5835_v14 = vld [vmem:[#allocation8 + $0x68] sm:$0xf] }
 0x199   : > { %9504 = vst [vmem:[#allocation65_spill] sm:$0xff] %v7751_v54  ;;  %v6480_v54 = vld [vmem:[#allocation8 + $0x6c] sm:$0xf] }
 0x19b   : > { %1824 = vmatmul.bf16.vlgmr.msrb.gmra.mxu3 %v7666_v17  ;;  %v7739_v18 = vpop.f32.mrf.mxu0  ;;  %v5708_v17 = vor.u32 %v6450_v23, %v5707_v20  ;;  %v5692_v20 = vor.u32 %v6446_v57, %v5691_v55  ;;  %v5693_v23 = vld [vmem:[#allocation7 + $0x58] sm:$0xf0] }
 0x19c   : > { %9498 = vst [vmem:[#allocation59_spill] sm:$0xff] %v7739_v18  ;;  %v5696_v0 = vor.u32 %v6445_v22, %v5693_v23  ;;  %v5667_v18 = vld [vmem:[#allocation7 + $0x20] sm:$0xf]  ;;  %v5680_v23 = vor.u32 %v6441_v48, %v5677_v34  ;;  %v6436_v48 = vld [vmem:[#allocation7 + $0x4] sm:$0xf0] }
 0x19d   : > { %2025 = vmatpush.bf16.msra.mxu0 %v5708_v17  ;;  %v6443_v17 = vld [vmem:[#allocation7 + $0x44] sm:$0xf]  ;;  %v5668_v40 = vor.u32 %v6440_v27, %v5667_v18  ;;  %v5651_v34 = vld [vmem:[#allocation7] sm:$0xf]  ;;  %v6466_v27 = vld [vmem:[#allocation7 + $0xf4] sm:$0xf0] }
 0x19e   : > { %v7729_v6 = vpop.f32.mrf.mxu3  ;;  %v7745_v37 = vpop.f32.mrf.mxu2  ;;  %2053 = vmatpush.bf16.msrb.mxu2 %v5696_v0  ;;  %v5688_v44 = vor.u32 %v6443_v17, %v5685_v41  ;;  %v6435_v18 = vld [vmem:[#allocation7 + $0x4] sm:$0xf] }
 0x19f   : > { %9493 = vst [vmem:[#allocation54_spill] sm:$0xff] %v7729_v6  ;;  %v7759_v0 = vpop.f32.mrf.mxu1 }
 0x1a0   : > { %9501 = vst [vmem:[#allocation62_spill] sm:$0xff] %v7745_v37  ;;  %v6496_v37 = vld [vmem:[#allocation8 + $0xec] sm:$0xf] }
 0x1a1   : > { %2026 = vmatpush.bf16.msra.mxu0 %v5700_v46  ;;  %v6442_v46 = vld [vmem:[#allocation7 + $0x34] sm:$0xf0]  ;;  %9508 = vst [vmem:[#allocation69_spill] sm:$0xff] %v7759_v0  ;;  %v6030_v0 = vld [vmem:[#allocation10 + $0xe8] sm:$0xf] }
 0x1a2   : > { %2054 = vmatpush.bf16.msrb.mxu2 %v5688_v44  ;;  %v5676_v57 = vor.u32 %v6442_v46, %v5675_v45  ;;  %v6438_v44 = vld [vmem:[#allocation7 + $0x14] sm:$0xf0]  ;;  %v6437_v45 = vld [vmem:[#allocation7 + $0x14] sm:$0xf] }
 0x1a3   : > { %v7747_v51 = vpop.f32.mrf.mxu0  ;;  %v5664_v49 = vor.u32 %v6437_v45, %v5661_v39  ;;  %v6498_v39 = vld [vmem:[#allocation8 + $0xf4] sm:$0xf0] }
 0x1a4   : > { %9502 = vst [vmem:[#allocation63_spill] sm:$0xff] %v7747_v51 }
 0x1a5   : > { %2027 = vmatpush.bf16.msra.mxu0 %v5692_v20  ;;  %v6439_v20 = vld [vmem:[#allocation7 + $0x24] sm:$0xf] }
 0x1a6   : > { %v7737_v16 = vpop.f32.mrf.mxu3  ;;  %v7753_v43 = vpop.f32.mrf.mxu2  ;;  %2055 = vmatpush.bf16.msrb.mxu2 %v5680_v23  ;;  %v5672_v17 = vor.u32 %v6439_v20, %v5669_v1  ;;  %v5652_v23 = vor.u32 %v6436_v48, %v5651_v34  ;;  %v5653_v1 = vld [vmem:[#allocation7 + $0x8] sm:$0xf0]  ;;  %v6463_v48 = vld [vmem:[#allocation7 + $0xe4] sm:$0xf] }
 0x1a7   : > { %9497 = vst [vmem:[#allocation58_spill] sm:$0xff] %v7737_v16  ;;  %v5656_v56 = vor.u32 %v6435_v18, %v5653_v1  ;;  %v7769_v45 = vpop.f32.mrf.mxu1  ;;  %v5875_v18 = vld [vmem:[#allocation8 + $0xc0] sm:$0xf]  ;;  %v5883_v1 = vld [vmem:[#allocation8 + $0xc8] sm:$0xf] }
 0x1a8   : > { %9505 = vst [vmem:[#allocation66_spill] sm:$0xff] %v7753_v43  ;;  %v6479_v43 = vld [vmem:[#allocation8 + $0x64] sm:$0xf]  ;;  %v5813_v16 = vld [vmem:[#allocation8 + $0x50] sm:$0xf0] }
 0x1a9   : > { %2028 = vmatpush.bf16.msra.mxu0 %v5684_v35  ;;  %v5659_v35 = vld [vmem:[#allocation7 + $0x10] sm:$0xf]  ;;  %9513 = vst [vmem:[#allocation74_spill] sm:$0xff] %v7769_v45  ;;  %v5910_v45 = vld [vmem:[#allocation10] sm:$0xf] }
 0x1aa   : > { %2056 = vmatpush.bf16.msrb.mxu2 %v5672_v17 }
 0x1ab   : > { %v7757_v22 = vpop.f32.mrf.mxu0 }
 0x1ac   : > { %9507 = vst [vmem:[#allocation68_spill] sm:$0xff] %v7757_v22  ;;  %v6457_v22 = vld [vmem:[#allocation7 + $0xb4] sm:$0xf] }
 0x1ad   : > { %2029 = vmatpush.bf16.msra.mxu0 %v5676_v57  ;;  %v5771_v57 = vld [vmem:[#allocation7 + $0xf0] sm:$0xf] }
 0x1ae   : > { %v7743_v36 = vpop.f32.mrf.mxu3  ;;  %v7761_v41 = vpop.f32.mrf.mxu2  ;;  %v5772_v20 = vor.u32 %v6466_v27, %v5771_v57  ;;  %2057 = vmatpush.bf16.msrb.mxu2 %v5664_v49  ;;  %v5763_v49 = vld [vmem:[#allocation7 + $0xe0] sm:$0xf]  ;;  %v5765_v27 = vld [vmem:[#allocation7 + $0xe8] sm:$0xf0] }
 0x1af   : > { %9500 = vst [vmem:[#allocation61_spill] sm:$0xff] %v7743_v36  ;;  %v6006_v36 = vld [vmem:[#allocation10 + $0xc0] sm:$0xf] }
 0x1b0   : > { %9509 = vst [vmem:[#allocation70_spill] sm:$0xff] %v7761_v41  ;;  %2038 = vmatpush.bf16.msrb.mxu1 %v5772_v20  ;;  %v5768_v20 = vor.u32 %v6463_v48, %v5765_v27  ;;  %v6489_v48 = vld [vmem:[#allocation8 + $0xac] sm:$0xf0]  ;;  %v5867_v27 = vld [vmem:[#allocation8 + $0xa8] sm:$0xf] }
 0x1b1   : > { %2030 = vmatpush.bf16.msra.mxu0 %v5668_v40  ;;  %v5773_v40 = vld [vmem:[#allocation7 + $0xf8] sm:$0xf0] }
 0x1b2   : > { %v5776_v53 = vor.u32 %v6465_v13, %v5773_v40  ;;  %2058 = vmatpush.bf16.msrb.mxu2 %v5656_v56  ;;  %v6464_v13 = vld [vmem:[#allocation7 + $0xe4] sm:$0xf0]  ;;  %v6494_v40 = vld [vmem:[#allocation8 + $0xd4] sm:$0xf0]  ;;  %v5755_v56 = vld [vmem:[#allocation7 + $0xd0] sm:$0xf] }
 0x1b3   : > { %v7765_v17 = vpop.f32.mrf.mxu0 }
 0x1b4   : > { %9511 = vst [vmem:[#allocation72_spill] sm:$0xff] %v7765_v17  ;;  %2064 = vmatpush.bf16.msra.mxu3 %v5776_v53  ;;  %v6493_v53 = vld [vmem:[#allocation8 + $0xcc] sm:$0xf0] }
 0x1b5   : > { %v6473_v17 = vld [vmem:[#allocation8 + $0x2c] sm:$0xf0] }
 0x1b6   : > { %v7749_v63 = vpop.f32.mrf.mxu3  ;;  %v7773_v34 = vpop.f32.mrf.mxu2 }
 0x1b7   : > { %9503 = vst [vmem:[#allocation64_spill] sm:$0xff] %v7749_v63  ;;  %v6528_v63 = vld [vmem:[#allocation10 + $0xec] sm:$0xf] }
 0x1b8   : > { %9515 = vst [vmem:[#allocation76_spill] sm:$0xff] %v7773_v34  ;;  %2065 = vmatpush.bf16.msra.mxu3 %v5768_v20  ;;  %v5966_v34 = vld [vmem:[#allocation10 + $0x68] sm:$0xf] }
 0x1be   : > { %v7755_v55 = vpop.f32.mrf.mxu3 }
 0x1bf   : > { %9506 = vst [vmem:[#allocation67_spill] sm:$0xff] %v7755_v55  ;;  %v5660_v55 = vor.u32 %v6438_v44, %v5659_v35  ;;  %v6497_v35 = vld [vmem:[#allocation8 + $0xec] sm:$0xf0]  ;;  %v5899_v44 = vld [vmem:[#allocation8 + $0xe8] sm:$0xf] }
 0x1c1   : > { %2031 = vmatpush.bf16.msra.mxu0 %v5660_v55  ;;  %v7771_v55 = vor.u32 %v6498_v39, %v5899_v44  ;;  %v7781_v44 = vpop.f32.mrf.mxu0  ;;  %v7783_v39 = vor.u32 %v6494_v40, %v5883_v1  ;;  %v5747_v1 = vld [vmem:[#allocation7 + $0xc0] sm:$0xf]  ;;  %v6460_v40 = vld [vmem:[#allocation7 + $0xc4] sm:$0xf0] }
 0x1c3   : > { %9514 = vst [vmem:[#allocation75_spill] sm:$0xff] %v7771_v55  ;;  %2303 = vmatpush.bf16.msra.mxu2 %v7771_v55 }
 0x1c4   : > { %9518 = vst [vmem:[#allocation79_spill] sm:$0xff] %v7783_v39 }
 0x1c5   : > { %2032 = vmatpush.bf16.msra.mxu0 %v5652_v23  ;;  %v7779_v23 = vor.u32 %v6493_v53, %v5875_v18  ;;  %v7787_v18 = vpop.f32.mrf.mxu1 }
 0x1c6   : > { %v7763_v46 = vpop.f32.mrf.mxu3 }
 0x1c7   : > { %9510 = vst [vmem:[#allocation71_spill] sm:$0xff] %v7763_v46  ;;  %v5891_v46 = vld [vmem:[#allocation8 + $0xe0] sm:$0xf]  ;;  %2304 = vmatpush.bf16.msra.mxu2 %v7783_v39 }
 0x1c8   : > { %v7767_v51 = vor.u32 %v6497_v35, %v5891_v46  ;;  %v5764_v46 = vor.u32 %v6464_v13, %v5763_v49  ;;  %9517 = vst [vmem:[#allocation78_spill] sm:$0xff] %v7779_v23  ;;  %v6462_v35 = vld [vmem:[#allocation7 + $0xd4] sm:$0xf0]  ;;  %v5859_v49 = vld [vmem:[#allocation8 + $0xa0] sm:$0xf]  ;;  %v5760_v13 = vor.u32 %v6461_v52, %v5757_v10  ;;  %v5748_v10 = vor.u32 %v6460_v40, %v5747_v1 }
 0x1c9   : > { %v5756_v12 = vor.u32 %v6462_v35, %v5755_v56  ;;  %v7789_v53 = vor.u32 %v6489_v48, %v5859_v49  ;;  %v6459_v56 = vld [vmem:[#allocation7 + $0xc4] sm:$0xf]  ;;  %v5749_v52 = vld [vmem:[#allocation7 + $0xc8] sm:$0xf0]  ;;  %v1684_v38 = vpop.f32.mrf.mxu0  ;;  %v5744_v40 = vor.u32 %v6457_v22, %v5741_v5 }
 0x1ca   : > { %9512 = vst [vmem:[#allocation73_spill] sm:$0xff] %v7767_v51  ;;  %2277 = vmatpush.bf16.msrb.mxu0 %v7767_v51  ;;  %2039 = vmatpush.bf16.msrb.mxu1 %v5764_v46  ;;  %v6490_v46 = vld [vmem:[#allocation8 + $0xb4] sm:$0xf0]  ;;  %v5752_v49 = vor.u32 %v6459_v56, %v5749_v52  ;;  %v5731_v38 = vld [vmem:[#allocation7 + $0xa0] sm:$0xf] }
 0x1cb   : > { %9519 = vst [vmem:[#allocation80_spill] sm:$0xff] %v7789_v53  ;;  %v7791_v47 = vor.u32 %v6490_v46, %v5867_v27  ;;  %2066 = vmatpush.bf16.msra.mxu3 %v5760_v13  ;;  %v6486_v27 = vld [vmem:[#allocation8 + $0x94] sm:$0xf0]  ;;  %v5739_v46 = vld [vmem:[#allocation7 + $0xb0] sm:$0xf] }
 0x1cc   : > { %v5740_v1 = vor.u32 %v6458_v21, %v5739_v46  ;;  %v6455_v21 = vld [vmem:[#allocation7 + $0xa4] sm:$0xf] }
 0x1cd   : > { %9520 = vst [vmem:[#allocation81_spill] sm:$0xff] %v7791_v47  ;;  %2305 = vmatpush.bf16.msra.mxu2 %v7791_v47  ;;  %v1697_v56 = vpop.f32.mrf.mxu1 }
 0x1ce   : > { %v7776_v57 = vpop.f32.mrf.mxu3  ;;  %2278 = vmatpush.bf16.msrb.mxu0 %v7779_v23  ;;  %2040 = vmatpush.bf16.msrb.mxu1 %v5756_v12  ;;  %v5851_v12 = vld [vmem:[#allocation8 + $0x88] sm:$0xf]  ;;  %v6454_v56 = vld [vmem:[#allocation7 + $0x94] sm:$0xf0] }
 0x1cf   : > { %9516 = vst [vmem:[#allocation77_spill] sm:$0xff] %v7776_v57  ;;  %v6485_v57 = vld [vmem:[#allocation8 + $0x8c] sm:$0xf0]  ;;  %v7801_v13 = vor.u32 %v6486_v27, %v5851_v12  ;;  %2067 = vmatpush.bf16.msra.mxu3 %v5752_v49  ;;  %v6456_v49 = vld [vmem:[#allocation7 + $0xa4] sm:$0xf0] }
 0x1d0   : > { %v7799_v48 = vor.u32 %v6485_v57, %v5843_v4  ;;  %v7804_v4 = vor.u32 %v6481_v25, %v5827_v19  ;;  %v6482_v57 = vld [vmem:[#allocation8 + $0x74] sm:$0xf0]  ;;  %v5732_v22 = vor.u32 %v6456_v49, %v5731_v38  ;;  %v5733_v12 = vld [vmem:[#allocation7 + $0xa8] sm:$0xf0]  ;;  %v5811_v19 = vld [vmem:[#allocation8 + $0x40] sm:$0xf] }
 0x1d1   : > { %v7793_v20 = vpop.f32.mrf.mxu2  ;;  %9523 = vst [vmem:[#allocation84_spill] sm:$0xff] %v7801_v13  ;;  %2306 = vmatpush.bf16.msra.mxu2 %v7801_v13  ;;  %v6477_v25 = vld [vmem:[#allocation8 + $0x4c] sm:$0xf0]  ;;  %v5736_v27 = vor.u32 %v6455_v21, %v5733_v12  ;;  %v5725_v49 = vld [vmem:[#allocation7 + $0x98] sm:$0xf0] }
 0x1d2   : > { %2279 = vmatpush.bf16.msrb.mxu0 %v7789_v53  ;;  %9522 = vst [vmem:[#allocation83_spill] sm:$0xff] %v7799_v48  ;;  %2041 = vmatpush.bf16.msrb.mxu1 %v5748_v10  ;;  %v7807_v10 = vor.u32 %v6482_v57, %v5835_v14  ;;  %v7813_v46 = vor.u32 %v6477_v25, %v5811_v19  ;;  %v5819_v14 = vld [vmem:[#allocation8 + $0x48] sm:$0xf]  ;;  %v5723_v57 = vld [vmem:[#allocation7 + $0x90] sm:$0xf] }
 0x1d3   : > { %2068 = vmatpush.bf16.msra.mxu3 %v5744_v40  ;;  %v5724_v38 = vor.u32 %v6454_v56, %v5723_v57  ;;  %v5803_v19 = vld [vmem:[#allocation8 + $0x28] sm:$0xf]  ;;  %v6474_v25 = vld [vmem:[#allocation8 + $0x34] sm:$0xf0]  ;;  %v6451_v56 = vld [vmem:[#allocation7 + $0x84] sm:$0xf] }
 0x1d4   : > { %v6452_v57 = vld [vmem:[#allocation7 + $0x84] sm:$0xf0] }
 0x1d5   : > { %2307 = vmatpush.bf16.msra.mxu2 %v7807_v10  ;;  %v7821_v21 = vpop.f32.mrf.mxu1 }
 0x1d6   : > { %v7795_v35 = vpop.f32.mrf.mxu3  ;;  %2280 = vmatpush.bf16.msrb.mxu0 %v7799_v48  ;;  %2042 = vmatpush.bf16.msrb.mxu1 %v5740_v1  ;;  %v6478_v1 = vld [vmem:[#allocation8 + $0x54] sm:$0xf0] }
 0x1d7   : > { %9521 = vst [vmem:[#allocation82_spill] sm:$0xff] %v7795_v35  ;;  %v7815_v40 = vor.u32 %v6478_v1, %v5819_v14  ;;  %2069 = vmatpush.bf16.msra.mxu3 %v5736_v27  ;;  %v7817_v35 = vpop.f32.mrf.mxu0  ;;  %v7825_v27 = vor.u32 %v6474_v25, %v5803_v19  ;;  %v5715_v1 = vld [vmem:[#allocation7 + $0x80] sm:$0xf]  ;;  %v5893_v19 = vld [vmem:[#allocation8 + $0xf0] sm:$0xf0] }
 0x1d8   : > { %v5716_v28 = vor.u32 %v6452_v57, %v5715_v1  ;;  %v5787_v25 = vld [vmem:[#allocation8 + $0x8] sm:$0xf]  ;;  %v5901_v1 = vld [vmem:[#allocation8 + $0xf8] sm:$0xf0] }
 0x1d9   : > { %v1710_v52 = vpop.f32.mrf.mxu2  ;;  %2308 = vmatpush.bf16.msra.mxu2 %v7815_v40 }
 0x1da   : > { %2281 = vmatpush.bf16.msrb.mxu0 %v7804_v4  ;;  %2043 = vmatpush.bf16.msrb.mxu1 %v5732_v22  ;;  %v6453_v52 = vld [vmem:[#allocation7 + $0x94] sm:$0xf]  ;;  %v7823_v22 = vor.u32 %v6473_v17, %v5795_v8  ;;  %v6469_v8 = vld [vmem:[#allocation8 + $0xc] sm:$0xf0]  ;;  %v5720_v17 = vor.u32 %v6451_v56, %v5717_v3  ;;  %v7841_v3 = vor.u32 %v6496_v37, %v5901_v1  ;;  %v6491_v56 = vld [vmem:[#allocation8 + $0xc4] sm:$0xf] }
 0x1db   : > { %v5728_v12 = vor.u32 %v6453_v52, %v5725_v49  ;;  %v5779_v52 = vld [vmem:[#allocation8] sm:$0xf]  ;;  %v6495_v49 = vld [vmem:[#allocation8 + $0xe4] sm:$0xf] }
 0x1dc   : > { %v6487_v1 = vld [vmem:[#allocation8 + $0xa4] sm:$0xf] }
 0x1dd   : > { %2070 = vmatpush.bf16.msra.mxu3 %v5728_v12  ;;  %2309 = vmatpush.bf16.msra.mxu2 %v7825_v27  ;;  %v7835_v12 = vor.u32 %v6495_v49, %v5893_v19  ;;  %v5885_v49 = vld [vmem:[#allocation8 + $0xd8] sm:$0xf0] }
 0x1de   : > { %v7809_v5 = vpop.f32.mrf.mxu3  ;;  %2282 = vmatpush.bf16.msrb.mxu0 %v7813_v46  ;;  %2044 = vmatpush.bf16.msrb.mxu1 %v5724_v38  ;;  %v7833_v38 = vor.u32 %v6469_v8, %v5779_v52  ;;  %v5877_v52 = vld [vmem:[#allocation8 + $0xd0] sm:$0xf0]  ;;  %v6492_v8 = vld [vmem:[#allocation8 + $0xcc] sm:$0xf] }
 0x1df   : > { %9524 = vst [vmem:[#allocation85_spill] sm:$0xff] %v7809_v5  ;;  %v7837_v5 = vor.u32 %v6470_v15, %v5787_v25  ;;  %v1736_v57 = vpop.f32.mrf.mxu0  ;;  %v7847_v15 = vld [vmem:[%s9289_s6] sm:$0x3]  ;;  %v7852_v19 = vor.u32 %v6492_v8, %v5885_v49  ;;  %v5845_v8 = vld [vmem:[#allocation8 + $0x90] sm:$0xf0] }
 0x1e0   : > { %v5861_v57 = vld [vmem:[#allocation8 + $0xb0] sm:$0xf0]  ;;  %v1189_v29 = vperm.slane %v7847_v15, 0  ;;  %v6484_v49 = vld [vmem:[#allocation8 + $0x8c] sm:$0xf] }
 0x1e1   : > { %v7827_v14 = vpop.f32.mrf.mxu2  ;;  %2071 = vmatpush.bf16.msra.mxu3 %v5720_v17  ;;  %9526 = vst [vmem:[#allocation87_spill] sm:$0xff] %v7837_v5  ;;  %2310 = vmatpush.bf16.msra.mxu2 %v7837_v5  ;;  %v7850_v17 = vor.u32 %v6491_v56, %v5877_v52  ;;  %v7858_v6 = vor.u32 %v6487_v1, %v5861_v57  ;;  %v6483_v52 = vld [vmem:[#allocation8 + $0x84] sm:$0xf] }
 0x1e2   : > { %2283 = vmatpush.bf16.msrb.mxu0 %v7823_v22  ;;  %2045 = vmatpush.bf16.msrb.mxu1 %v5716_v28  ;;  %v1749_v28 = vpop.f32.mrf.mxu1  ;;  %v7867_v33 = vor.u32 %v6483_v52, %v5845_v8  ;;  %v7872_v57 = vor.u32 %v6484_v49, %v5853_v60  ;;  %v5837_v52 = vld [vmem:[#allocation8 + $0x78] sm:$0xf0]  ;;  %v6475_v49 = vld [vmem:[#allocation8 + $0x44] sm:$0xf] }
 0x1e3   : > { %v6488_v28 = vld [vmem:[#allocation8 + $0xac] sm:$0xf]  ;;  %v7883_v8 = vor.u32 %v6480_v54, %v5837_v52  ;;  %v7887_v58 = vor.u32 %v6475_v49, %v5813_v16  ;;  %v6471_v54 = vld [vmem:[#allocation8 + $0x24] sm:$0xf]  ;;  %v5797_v52 = vld [vmem:[#allocation8 + $0x30] sm:$0xf0] }
 0x1e4   : > { %v7861_v9 = vor.u32 %v6488_v28, %v5869_v2  ;;  %v5781_v49 = vld [vmem:[#allocation8 + $0x10] sm:$0xf0] }
 0x1e5   : > { %2316 = vmatpush.bf16.msrb.mxu3 %v7841_v3 }
 0x1e6   : > { %v7829_v42 = vpop.f32.mrf.mxu3  ;;  %2284 = vmatpush.bf16.msrb.mxu0 %v7833_v38  ;;  %2290 = vmatpush.bf16.msra.mxu1 %v7835_v12 }
 0x1e7   : > { %9525 = vst [vmem:[#allocation86_spill] sm:$0xff] %v7829_v42  ;;  %v5829_v42 = vld [vmem:[#allocation8 + $0x70] sm:$0xf0] }
 0x1e9   : > { %v1762_v37 = vpop.f32.mrf.mxu2  ;;  %2317 = vmatpush.bf16.msrb.mxu3 %v7852_v19 }
 0x1ea   : > { %2291 = vmatpush.bf16.msra.mxu1 %v7850_v17  ;;  %v1683_v37 = vadd.f32 %v7781_v44, %v1189_v29  ;;  %v7880_v44 = vor.u32 %v6479_v43, %v5829_v42  ;;  %v7890_v43 = vor.u32 %v6476_v26, %v5821_v24  ;;  %v6529_v26 = vld [vmem:[#allocation10 + $0xec] sm:$0xf0]  ;;  %v6467_v24 = vld [vmem:[#allocation8 + $0x4] sm:$0xf] }
 0x1ec   : > { %v1696_v29 = vadd.f32 %v7787_v18, %v1683_v37 }
 0x1ed   : > { %v7863_v56 = vpop.f32.mrf.mxu0  ;;  %2318 = vmatpush.bf16.msrb.mxu3 %v7861_v9 }
 0x1ee   : > { %v7854_v25 = vpop.f32.mrf.mxu3  ;;  %2292 = vmatpush.bf16.msra.mxu1 %v7858_v6  ;;  %v1709_v59 = vadd.f32 %v7793_v20, %v1696_v29  ;;  %v6022_v29 = vld [vmem:[#allocation10 + $0xe0] sm:$0xf] }
 0x1ef   : > { %9527 = vst [vmem:[#allocation88_spill] sm:$0xff] %v7854_v25  ;;  %v7893_v25 = vor.u32 %v6471_v54, %v5797_v52  ;;  %v5789_v54 = vld [vmem:[#allocation8 + $0x18] sm:$0xf0] }
 0x1f1   : > { %v7870_v1 = vpop.f32.mrf.mxu1  ;;  %2319 = vmatpush.bf16.msrb.mxu3 %v7872_v57 }
 0x1f2   : > { %2293 = vmatpush.bf16.msra.mxu1 %v7867_v33 }
 0x1f5   : > { %v7876_v28 = vpop.f32.mrf.mxu2  ;;  %v1788_v60 = vpop.f32.mrf.mxu0  ;;  %2320 = vmatpush.bf16.msrb.mxu3 %v7883_v8 }
 0x1f6   : > { %v7874_v2 = vpop.f32.mrf.mxu3  ;;  %2294 = vmatpush.bf16.msra.mxu1 %v7880_v44  ;;  %v6472_v60 = vld [vmem:[#allocation8 + $0x2c] sm:$0xf] }
 0x1f7   : > { %9528 = vst [vmem:[#allocation89_spill] sm:$0xff] %v7874_v2  ;;  %v7896_v16 = vor.u32 %v6472_v60, %v5805_v50  ;;  %v9540_v2 = vmov 0  }
 0x1f9   : > { %v1801_v42 = vpop.f32.mrf.mxu1  ;;  %2321 = vmatpush.bf16.msrb.mxu3 %v7890_v43 }
 0x1fa   : > { %2295 = vmatpush.bf16.msra.mxu1 %v7887_v58  ;;  %v6468_v42 = vld [vmem:[#allocation8 + $0xc] sm:$0xf] }
 0x1fb   : > { %v7904_v50 = vor.u32 %v6468_v42, %v5789_v54  ;;  %v5998_v42 = vld [vmem:[#allocation10 + $0xa8] sm:$0xf] }
 0x1fd   : > { %v1814_v37 = vpop.f32.mrf.mxu2  ;;  %2322 = vmatpush.bf16.msrb.mxu3 %v7896_v16  ;;  %9529 = vst [vmem:[#allocation90_spill] sm:$0xff] %v7904_v50 }
 0x1fe   : > { %v1721_v18 = vpop.f32.mrf.mxu3  ;;  %2296 = vmatpush.bf16.msra.mxu1 %v7893_v25 }
 0x1ff   : > { %v1722_v41 = vadd.f32 %v1721_v18, %v1709_v59  ;;  %v6530_v59 = vld [vmem:[#allocation10 + $0xf4] sm:$0xf0]  ;;  %v7901_v18 = vor.u32 %v6467_v24, %v5781_v49  ;;  %v1190_v24 = vperm.slane %v7847_v15, 1  ;;  %v6521_v49 = vld [vmem:[#allocation10 + $0xac] sm:$0xf0] }
 0x200   : > { %v7908_v60 = vor.u32 %v6530_v59, %v6030_v0 }
 0x201   : > { %v1735_v20 = vadd.f32 %v7817_v35, %v1722_v41  ;;  %v7906_v35 = vor.u32 %v6529_v26, %v6022_v29  ;;  %2323 = vmatpush.bf16.msrb.mxu3 %v7904_v50  ;;  %v5990_v26 = vld [vmem:[#allocation10 + $0xa0] sm:$0xf]  ;;  %v1761_v59 = vadd.f32 %v7827_v14, %v1190_v24  ;;  %v6016_v50 = vld [vmem:[#allocation10 + $0xd8] sm:$0xf0] }
 0x202   : > { %9531 = vst [vmem:[#allocation92_spill] sm:$0xff] %v7908_v60  ;;  %2297 = vmatpush.bf16.msra.mxu1 %v7901_v18  ;;  %v5958_v24 = vld [vmem:[#allocation10 + $0x60] sm:$0xf] }
 0x203   : > { %v1748_v37 = vadd.f32 %v7821_v21, %v1735_v20  ;;  %9530 = vst [vmem:[#allocation91_spill] sm:$0xff] %v7906_v35  ;;  %v6525_v21 = vld [vmem:[#allocation10 + $0xcc] sm:$0xf0]  ;;  %v6014_v20 = vld [vmem:[#allocation10 + $0xc8] sm:$0xf] }
 0x204   : > { %v7915_v29 = vor.u32 %v6525_v21, %v6006_v36  ;;  %v7917_v0 = vor.u32 %v6526_v11, %v6014_v20  ;;  %v6517_v36 = vld [vmem:[#allocation10 + $0x8c] sm:$0xf0]  ;;  %v6518_v11 = vld [vmem:[#allocation10 + $0x94] sm:$0xf0] }
 0x205   : > { %v1829_v52 = vmax.f32 %v1748_v37, 0.0  ;;  %v6522_v37 = vld [vmem:[#allocation10 + $0xb4] sm:$0xf0] }
 0x206   : > { %v1723_v41 = vpop.f32.mrf.mxu3  ;;  %9532 = vst [vmem:[#allocation93_spill] sm:$0xff] %v7915_v29  ;;  %v7924_v15 = vor.u32 %v6522_v37, %v5998_v42  ;;  %v7935_v37 = vor.u32 %v6513_v32, %v5958_v24  ;;  %v5934_v24 = vld [vmem:[#allocation10 + $0x28] sm:$0xf] }
 0x207   : > { %v1831_v31 = vpack.c.bf16 %v1829_v52, %v1829_v52  ;;  %9533 = vst [vmem:[#allocation94_spill] sm:$0xff] %v7917_v0  ;;  %v5974_v52 = vld [vmem:[#allocation10 + $0x80] sm:$0xf]  ;;  %v5982_v41 = vld [vmem:[#allocation10 + $0x88] sm:$0xf] }
 0x208   : > { %9535 = vst [vmem:[#allocation96_spill] sm:$0xff] %v7924_v15  ;;  %v7928_v20 = vor.u32 %v6517_v36, %v5974_v52  ;;  %v7930_v14 = vor.u32 %v6518_v11, %v5982_v41  ;;  %v6509_v52 = vld [vmem:[#allocation10 + $0x4c] sm:$0xf0]  ;;  %v5950_v36 = vld [vmem:[#allocation10 + $0x48] sm:$0xf] }
 0x209   : > { %2033 = vmatmul.bf16.vlgmr.msra.gmra.mxu0 %v1831_v31  ;;  %2059 = vmatmul.bf16.vlgmr.msrb.gmra.mxu2 %v1831_v31  ;;  %v7922_v31 = vor.u32 %v6521_v49, %v5990_v26  ;;  %v6514_v26 = vld [vmem:[#allocation10 + $0x74] sm:$0xf0]  ;;  %9538 = vst [vmem:[#allocation99_spill] sm:$0xff] %v7935_v37 }
 0x20a   : > { %2588 = vmatpush.bf16.msra.mxu0 %v7906_v35  ;;  %2614 = vmatpush.bf16.msrb.mxu2 %v7908_v60  ;;  %9536 = vst [vmem:[#allocation97_spill] sm:$0xff] %v7928_v20  ;;  %v6510_v41 = vld [vmem:[#allocation10 + $0x54] sm:$0xf0] }
 0x20b   : > { %9534 = vst [vmem:[#allocation95_spill] sm:$0xff] %v7922_v31  ;;  %v7946_v32 = vor.u32 %v6510_v41, %v5950_v36  ;;  %v6527_v36 = vld [vmem:[#allocation10 + $0xe4] sm:$0xf]  ;;  %v6024_v41 = vld [vmem:[#allocation10 + $0xf0] sm:$0xf0] }
 0x20c   : > { %9537 = vst [vmem:[#allocation98_spill] sm:$0xff] %v7930_v14 }
 0x20d   : > { %9542 = vst [vmem:[#allocation102_spill] sm:$0xff] %v7946_v32 }
 0x20e   : > { %v1773_v54 = vpop.f32.mrf.mxu3  ;;  %2589 = vmatpush.bf16.msra.mxu0 %v7915_v29  ;;  %2615 = vmatpush.bf16.msrb.mxu2 %v7917_v0 }
 0x20f   : > { %v1774_v21 = vadd.f32 %v1773_v54, %v1761_v59  ;;  %v7937_v59 = vor.u32 %v6514_v26, %v5966_v34  ;;  %v5942_v54 = vld [vmem:[#allocation10 + $0x40] sm:$0xf]  ;;  %v6506_v26 = vld [vmem:[#allocation10 + $0x34] sm:$0xf0] }
 0x210   : > { %v5926_v34 = vld [vmem:[#allocation10 + $0x20] sm:$0xf] }
 0x211   : > { %v1787_v49 = vadd.f32 %v7863_v56, %v1774_v21  ;;  %9539 = vst [vmem:[#allocation100_spill] sm:$0xff] %v7937_v59  ;;  %v7944_v56 = vor.u32 %v6509_v52, %v5942_v54  ;;  %v6505_v21 = vld [vmem:[#allocation10 + $0x2c] sm:$0xf0] }
 0x212   : > { %2590 = vmatpush.bf16.msra.mxu0 %v7922_v31  ;;  %2616 = vmatpush.bf16.msrb.mxu2 %v7924_v15  ;;  %v6501_v54 = vld [vmem:[#allocation10 + $0xc] sm:$0xf0] }
 0x213   : > { %v1800_v11 = vadd.f32 %v7870_v1, %v1787_v49  ;;  %9541 = vst [vmem:[#allocation101_spill] sm:$0xff] %v7944_v56  ;;  %v7951_v1 = vor.u32 %v6505_v21, %v5926_v34  ;;  %v7953_v49 = vor.u32 %v6506_v26, %v5934_v24  ;;  %v7959_v34 = vor.u32 %v6527_v36, %v6024_v41  ;;  %v6523_v26 = vld [vmem:[#allocation10 + $0xc4] sm:$0xf] }
 0x214   : > { %v7961_v24 = vor.u32 %v6502_v30, %v5918_v61  ;;  %v6519_v30 = vld [vmem:[#allocation10 + $0xa4] sm:$0xf] }
 0x215   : > { %9543 = vst [vmem:[#allocation103_spill] sm:$0xff] %v7951_v1 }
 0x216   : > { %v1775_v42 = vpop.f32.mrf.mxu3  ;;  %2591 = vmatpush.bf16.msra.mxu0 %v7928_v20  ;;  %2617 = vmatpush.bf16.msrb.mxu2 %v7930_v14  ;;  %9544 = vst [vmem:[#allocation104_spill] sm:$0xff] %v7953_v49 }
 0x217   : > { %v1813_v42 = vadd.f32 %v7876_v28, %v1800_v11  ;;  %v7957_v11 = vor.u32 %v6501_v54, %v5910_v45  ;;  %9546 = vst [vmem:[#allocation106_spill] sm:$0xff] %v7959_v34  ;;  %v6000_v54 = vld [vmem:[#allocation10 + $0xb8] sm:$0xf0] }
 0x218   : > { %9547 = vst [vmem:[#allocation107_spill] sm:$0xff] %v7961_v24 }
 0x219   : > { %2285 = vmatmul.bf16.vlgmr.msrb.gmra.mxu0 %v9540_v2  ;;  %2311 = vmatmul.bf16.vlgmr.msra.gmra.mxu2 %v9540_v2  ;;  %9545 = vst [vmem:[#allocation105_spill] sm:$0xff] %v7957_v11 }
 0x21a   : > { %2592 = vmatpush.bf16.msra.mxu0 %v7935_v37  ;;  %2618 = vmatpush.bf16.msrb.mxu2 %v7937_v59 }
 0x21e   : > { %v1825_v7 = vpop.f32.mrf.mxu3  ;;  %2593 = vmatpush.bf16.msra.mxu0 %v7944_v56  ;;  %2619 = vmatpush.bf16.msrb.mxu2 %v7946_v32 }
 0x21f   : > { %v1826_v52 = vadd.f32 %v1825_v7, %v1813_v42  ;;  %v7963_v7 = vor.u32 %v6528_v63, %v6032_v62  ;;  %v6008_v42 = vld [vmem:[#allocation10 + $0xd0] sm:$0xf0]  ;;  %v7973_v62 = vld [vmem:[%s584_s29] sm:$0xff] }
 0x220   : > { %v7971_v45 = vor.u32 %v6523_v26, %v6008_v42  ;;  %9550 = vst [vmem:[#allocation110_spill] sm:$0xff] %v7973_v62  ;;  %v5992_v63 = vld [vmem:[#allocation10 + $0xb0] sm:$0xf0]  ;;  %vm9409_vm9 = vcmp.gt.s32.totalorder %v7973_v62, 0  ;;  %vm9385_vm10 = vcmp.gt.s32.totalorder %v7973_v62, 7  ;;  %vm9408_vm11 = vcmp.gt.s32.totalorder %v7973_v62, 1 }
 0x221   : > { %v1830_v28 = vmax.f32 %v1826_v52, 0.0  ;;  %9548 = vst [vmem:[#allocation108_spill] sm:$0xff] %v7963_v7  ;;  %v6524_v52 = vld [vmem:[#allocation10 + $0xcc] sm:$0xf]  ;;  %v2709_v36 = vsel %vm9409_vm9, 1, %v9540_v2  ;;  %v2716_v41 = vsel %vm9385_vm10, 1, %v9540_v2 }
 0x222   : > { %2594 = vmatpush.bf16.msra.mxu0 %v7951_v1  ;;  %2620 = vmatpush.bf16.msrb.mxu2 %v7953_v49  ;;  %9549 = vst [vmem:[#allocation109_spill] sm:$0xff] %v7971_v45  ;;  %v7977_v61 = vor.u32 %v6524_v52, %v6016_v50  ;;  %v2973_v50 = vsel %vm9408_vm11, 1, %v9540_v2  ;;  %v6515_v26 = vld [vmem:[#allocation10 + $0x84] sm:$0xf]  ;;  %v5976_v42 = vld [vmem:[#allocation10 + $0x90] sm:$0xf0] }
 0x223   : > { %v1832_v21 = vpack.c.bf16 %v1830_v28, %v1830_v28  ;;  %2711 = vperm.xlu0 %6671, %v2709_v36   ;;  %v7996_v28 = vor.u32 %v6519_v30, %v5992_v63  ;;  %2718 = vperm.xlu1 %6672, %v2716_v41   ;;  %vm9392_vm12 = vcmp.gt.s32.totalorder %v7973_v62, 5  ;;  %v6516_v52 = vld [vmem:[#allocation10 + $0x8c] sm:$0xf]  ;;  %v5984_v36 = vld [vmem:[#allocation10 + $0x98] sm:$0xf0]  ;;  %vm9386_vm13 = vcmp.gt.s32.totalorder %v7973_v62, 6 }
 0x224   : > { %9551 = vst [vmem:[#allocation111_spill] sm:$0xff] %v7977_v61  ;;  %2975 = vperm.xlu2 %6673, %v2973_v50   ;;  %v8006_v30 = vor.u32 %v6515_v26, %v5976_v42  ;;  %v3244_v63 = vsel %vm9392_vm12, 1, %v9540_v2  ;;  %vm9407_vm14 = vcmp.gt.s32.totalorder %v7973_v62, 2  ;;  %v5960_v41 = vld [vmem:[#allocation10 + $0x70] sm:$0xf0]  ;;  %vm9406_vm15 = vcmp.gt.s32.totalorder %v7973_v62, 3 }
 0x225   : > { %2046 = vmatmul.bf16.vlgmr.msrb.gmra.mxu1 %v1832_v21  ;;  %2072 = vmatmul.bf16.vlgmr.msra.gmra.mxu3 %v1832_v21  ;;  %9552 = vst [vmem:[#allocation112_spill] sm:$0xff] %v7996_v28  ;;  %v6512_v50 = vld [vmem:[#allocation10 + $0x6c] sm:$0xf]  ;;  %v3237_v26 = vsel %vm9407_vm14, 1, %v9540_v2  ;;  %vm9393_vm0 = vcmp.gt.s32.totalorder %v7973_v62, 4 }
 0x226   : > { %v1827_v49 = vpop.f32.mrf.mxu3  ;;  %2595 = vmatpush.bf16.msra.mxu0 %v7957_v11  ;;  %2601 = vmatpush.bf16.msrb.mxu1 %v7959_v34  ;;  %9554 = vst [vmem:[#allocation114_spill] sm:$0xff] %v8006_v30 }
 0x227   : > { %2621 = vmatpush.bf16.msrb.mxu2 %v7961_v24  ;;  %2627 = vmatpush.bf16.msra.mxu3 %v7963_v7  ;;  %v6520_v49 = vld [vmem:[#allocation10 + $0xac] sm:$0xf] }
 0x228   : > { %v7999_v21 = vor.u32 %v6520_v49, %v6000_v54  ;;  %v8013_v49 = vor.u32 %v6516_v52, %v5984_v36  ;;  %v6511_v54 = vld [vmem:[#allocation10 + $0x64] sm:$0xf] }
 0x229   : > { %2596 = vmatmul.bf16.vlgmr.msra.gmra.mxu0 %v9540_v2  ;;  %v8024_v42 = vor.u32 %v6511_v54, %v5960_v41  ;;  %v6507_v36 = vld [vmem:[#allocation10 + $0x44] sm:$0xf]  ;;  %v5928_v54 = vld [vmem:[#allocation10 + $0x30] sm:$0xf0]  ;;  %v6504_v41 = vld [vmem:[#allocation10 + $0x2c] sm:$0xf] }
 0x22a   : > { %2732 = vmatpush.bf16.msrb.mxu0 %v7767_v51  ;;  %2622 = vmatmul.bf16.vlgmr.msrb.gmra.mxu2 %v9540_v2  ;;  %9553 = vst [vmem:[#allocation113_spill] sm:$0xff] %v7999_v21  ;;  %v6508_v51 = vld [vmem:[#allocation10 + $0x4c] sm:$0xf] }
 0x22b   : > { %2758 = vmatpush.bf16.msra.mxu2 %v7771_v55  ;;  %2602 = vmatpush.bf16.msrb.mxu1 %v7971_v45  ;;  %9555 = vst [vmem:[#allocation115_spill] sm:$0xff] %v8013_v49  ;;  %v5944_v55 = vld [vmem:[#allocation10 + $0x50] sm:$0xf0] }
 0x22c   : > { %2628 = vmatpush.bf16.msra.mxu3 %v7977_v61  ;;  %3246 = vperm.xlu0 %6671, %v3244_v63   ;;  %9556 = vst [vmem:[#allocation116_spill] sm:$0xff] %v8024_v42  ;;  %v8034_v63 = vor.u32 %v6507_v36, %v5944_v55  ;;  %v3508_v55 = vsel %vm9393_vm0, 1, %v9540_v2 }
 0x22d   : > { %3239 = vperm.xlu2 %6673, %v3237_v26   ;;  %v3501_v26 = vsel %vm9406_vm15, 1, %v9540_v2 }
 0x22e   : > { %2733 = vmatpush.bf16.msrb.mxu0 %v7779_v23  ;;  %v5968_v23 = vld [vmem:[#allocation10 + $0x78] sm:$0xf0]  ;;  %9558 = vst [vmem:[#allocation118_spill] sm:$0xff] %v8034_v63 }
 0x22f   : > { %2759 = vmatpush.bf16.msra.mxu2 %v7783_v39  ;;  %2603 = vmatpush.bf16.msrb.mxu1 %v7996_v28  ;;  %v2980_v39 = vsel %vm9386_vm13, 1, %v9540_v2  ;;  %v8027_v52 = vor.u32 %v6512_v50, %v5968_v23  ;;  %v5936_v50 = vld [vmem:[#allocation10 + $0x38] sm:$0xf0] }
 0x230   : > { %2629 = vmatpush.bf16.msra.mxu3 %v7999_v21  ;;  %2982 = vperm.xlu1 %6672, %v2980_v39   ;;  %v6503_v39 = vld [vmem:[#allocation10 + $0x24] sm:$0xf] }
 0x231   : > { %9557 = vst [vmem:[#allocation117_spill] sm:$0xff] %v8027_v52  ;;  %v8049_v36 = vor.u32 %v6503_v39, %v5928_v54 }
 0x232   : > { %2734 = vmatpush.bf16.msrb.mxu0 %v7789_v53  ;;  %v5952_v53 = vld [vmem:[#allocation10 + $0x58] sm:$0xf0] }
 0x233   : > { %2760 = vmatpush.bf16.msra.mxu2 %v7791_v47  ;;  %2604 = vmatpush.bf16.msrb.mxu1 %v8006_v30  ;;  %v8039_v23 = vor.u32 %v6508_v51, %v5952_v53  ;;  %9560 = vst [vmem:[#allocation120_spill] sm:$0xff] %v8049_v36  ;;  %v8053_v51 = vor.u32 %v6504_v41, %v5936_v50  ;;  %v6499_v53 = vld [vmem:[#allocation10 + $0x4] sm:$0xf]  ;;  %v5920_v47 = vld [vmem:[#allocation10 + $0x18] sm:$0xf0] }
 0x234   : > { %2630 = vmatpush.bf16.msra.mxu3 %v8013_v49 }
 0x235   : > { %2298 = vmatmul.bf16.vlgmr.msra.gmra.mxu1 %v9540_v2  ;;  %2324 = vmatmul.bf16.vlgmr.msrb.gmra.mxu3 %v9540_v2  ;;  %9559 = vst [vmem:[#allocation119_spill] sm:$0xff] %v8039_v23 }
 0x236   : > { %2735 = vmatpush.bf16.msrb.mxu0 %v7799_v48  ;;  %9561 = vst [vmem:[#allocation121_spill] sm:$0xff] %v8053_v51  ;;  %v6500_v48 = vld [vmem:[#allocation10 + $0xc] sm:$0xf]  ;;  %3510 = vperm.xlu2 %6673, %v3508_v55  }
 0x237   : > { %2605 = vmatpush.bf16.msrb.mxu1 %v8024_v42  ;;  %2761 = vmatpush.bf16.msra.mxu2 %v7801_v13  ;;  %v5912_v13 = vld [vmem:[#allocation10 + $0x10] sm:$0xf0]  ;;  %v8061_v39 = vor.u32 %v6500_v48, %v5920_v47  ;;  %v9564_v47 = vld [vmem:[#allocation104_spill] sm:$0xff]  ;;  %v9565_v48 = vld [vmem:[#allocation90_spill] sm:$0xff] }
 0x238   : > { %2631 = vmatpush.bf16.msra.mxu3 %v8027_v52  ;;  %3503 = vperm.xlu1 %6672, %v3501_v26   ;;  %v8057_v62 = vor.u32 %v6499_v53, %v5912_v13  ;;  %v9566_v26 = vld [vmem:[#allocation21_spill] sm:$0xff] }
 0x239   : > { %9563 = vst [vmem:[#allocation123_spill] sm:$0xff] %v8061_v39 }
 0x23a   : > { %2736 = vmatpush.bf16.msrb.mxu0 %v7804_v4  ;;  %9562 = vst [vmem:[#allocation122_spill] sm:$0xff] %v8057_v62 }
 0x23b   : > { %2606 = vmatpush.bf16.msrb.mxu1 %v8034_v63  ;;  %2762 = vmatpush.bf16.msra.mxu2 %v7807_v10 }
 0x23c   : > { %2632 = vmatpush.bf16.msra.mxu3 %v8039_v23 }
 0x23e   : > { %2737 = vmatpush.bf16.msrb.mxu0 %v7813_v46 }
 0x23f   : > { %2607 = vmatpush.bf16.msrb.mxu1 %v8049_v36  ;;  %2763 = vmatpush.bf16.msra.mxu2 %v7815_v40 }
 0x240   : > { %2633 = vmatpush.bf16.msra.mxu3 %v8053_v51 }
 0x242   : > { %2738 = vmatpush.bf16.msrb.mxu0 %v7823_v22 }
 0x243   : > { %2608 = vmatpush.bf16.msrb.mxu1 %v8057_v62  ;;  %2764 = vmatpush.bf16.msra.mxu2 %v7825_v27 }
 0x244   : > { %2634 = vmatpush.bf16.msra.mxu3 %v8061_v39 }
 0x246   : > { %2739 = vmatpush.bf16.msrb.mxu0 %v7833_v38  ;;  %2609 = vmatmul.bf16.vlgmr.msrb.gmra.mxu1 %v9540_v2 }
 0x247   : > { %2745 = vmatpush.bf16.msra.mxu1 %v7835_v12  ;;  %2635 = vmatmul.bf16.vlgmr.msra.gmra.mxu3 %v9540_v2 }
 0x248   : > { %2771 = vmatpush.bf16.msrb.mxu3 %v7841_v3  ;;  %2765 = vmatpush.bf16.msra.mxu2 %v7837_v5 }
 0x24a   : > { %2852 = vmatpush.bf16.msra.mxu0 %v7906_v35 }
 0x24b   : > { %2746 = vmatpush.bf16.msra.mxu1 %v7850_v17 }
 0x24c   : > { %2878 = vmatpush.bf16.msrb.mxu2 %v7908_v60  ;;  %2772 = vmatpush.bf16.msrb.mxu3 %v7852_v19 }
 0x24e   : > { %2853 = vmatpush.bf16.msra.mxu0 %v7915_v29 }
 0x24f   : > { %2747 = vmatpush.bf16.msra.mxu1 %v7858_v6 }
 0x250   : > { %2879 = vmatpush.bf16.msrb.mxu2 %v7917_v0  ;;  %2773 = vmatpush.bf16.msrb.mxu3 %v7861_v9 }
 0x252   : > { %2854 = vmatpush.bf16.msra.mxu0 %v7922_v31 }
 0x253   : > { %2748 = vmatpush.bf16.msra.mxu1 %v7867_v33 }
 0x254   : > { %2880 = vmatpush.bf16.msrb.mxu2 %v7924_v15  ;;  %2774 = vmatpush.bf16.msrb.mxu3 %v7872_v57 }
 0x256   : > { %2855 = vmatpush.bf16.msra.mxu0 %v7928_v20 }
 0x257   : > { %2749 = vmatpush.bf16.msra.mxu1 %v7880_v44 }
 0x258   : > { %2881 = vmatpush.bf16.msrb.mxu2 %v7930_v14  ;;  %2775 = vmatpush.bf16.msrb.mxu3 %v7883_v8 }
 0x25a   : > { %2856 = vmatpush.bf16.msra.mxu0 %v7935_v37 }
 0x25b   : > { %2750 = vmatpush.bf16.msra.mxu1 %v7887_v58 }
 0x25c   : > { %2882 = vmatpush.bf16.msrb.mxu2 %v7937_v59  ;;  %2776 = vmatpush.bf16.msrb.mxu3 %v7890_v43 }
 0x25e   : > { %2857 = vmatpush.bf16.msra.mxu0 %v7944_v56 }
 0x25f   : > { %2751 = vmatpush.bf16.msra.mxu1 %v7893_v25 }
 0x260   : > { %2883 = vmatpush.bf16.msrb.mxu2 %v7946_v32  ;;  %2777 = vmatpush.bf16.msrb.mxu3 %v7896_v16 }
 0x262   : > { %2858 = vmatpush.bf16.msra.mxu0 %v7951_v1 }
 0x263   : > { %2752 = vmatpush.bf16.msra.mxu1 %v7901_v18 }
 0x264   : > { %2884 = vmatpush.bf16.msrb.mxu2 %v9564_v47  ;;  %2778 = vmatpush.bf16.msrb.mxu3 %v9565_v48 }
 0x266   : > { %2859 = vmatpush.bf16.msra.mxu0 %v7957_v11 }
 0x267   : > { %2865 = vmatpush.bf16.msrb.mxu1 %v7959_v34 }
 0x268   : > { %2891 = vmatpush.bf16.msra.mxu3 %v7963_v7  ;;  %2885 = vmatpush.bf16.msrb.mxu2 %v7961_v24 }
 0x26b   : > { %2866 = vmatpush.bf16.msrb.mxu1 %v7971_v45 }
 0x26c   : > { %2892 = vmatpush.bf16.msra.mxu3 %v7977_v61 }
 0x26f   : > { %2867 = vmatpush.bf16.msrb.mxu1 %v7996_v28 }
 0x270   : > { %2893 = vmatpush.bf16.msra.mxu3 %v7999_v21 }
 0x273   : > { %2868 = vmatpush.bf16.msrb.mxu1 %v8006_v30 }
 0x274   : > { %2894 = vmatpush.bf16.msra.mxu3 %v8013_v49 }
 0x277   : > { %2869 = vmatpush.bf16.msrb.mxu1 %v8024_v42 }
 0x278   : > { %2895 = vmatpush.bf16.msra.mxu3 %v8027_v52 }
 0x27b   : > { %2870 = vmatpush.bf16.msrb.mxu1 %v8034_v63  ;;  %v9569_v63 = vld [vmem:[#allocation64_spill] sm:$0xff] }
 0x27c   : > { %2896 = vmatpush.bf16.msra.mxu3 %v8039_v23 }
 0x27f   : > { %2871 = vmatpush.bf16.msrb.mxu1 %v8049_v36 }
 0x280   : > { %2897 = vmatpush.bf16.msra.mxu3 %v8053_v51 }
 0x283   : > { %2872 = vmatpush.bf16.msrb.mxu1 %v8057_v62 }
 0x284   : > { %2898 = vmatpush.bf16.msra.mxu3 %v8061_v39 }
 0x286   : > { %v2034_v13 = vpop.f32.mrf.mxu0 }
 0x28c   : > { %v2060_v2 = vpop.f32.mrf.mxu2 }
 0x28e   : > { %v2036_v54 = vpop.f32.mrf.mxu0 }
 0x294   : > { %v2062_v41 = vpop.f32.mrf.mxu2 }
 0x296   : > { %v2286_v50 = vpop.f32.mrf.mxu0 }
 0x297   : > { %v2329_v55 = vadd.f32 %v2286_v50, %v9566_v26 }
 0x299   : > { %v5905_v11 = vmul.f32 -1.442695, %v2329_v55 }
 0x29b   : > { %6675 = vpow2.f32 %v5905_v11 }
 0x29c   : > { %v2312_v53 = vpop.f32.mrf.mxu2 }
 0x29e   : > { %v2288_v24 = vpop.f32.mrf.mxu0 }
 0x2a1   : > { %v6676_v39 = vpop.eup %6675 }
 0x2a2   : > { %v2047_v47 = vpop.f32.mrf.mxu1  ;;  %v2336_v41 = vadd.f32 1.0, %v6676_v39 }
 0x2a3   : > { %v8120_v1 = vadd.f32 %v2047_v47, %v2034_v13  ;;  %v9570_v47 = vld [vmem:[#allocation18_spill] sm:$0xff] }
 0x2a4   : > { %v2314_v36 = vpop.f32.mrf.mxu2  ;;  %6677 = vrcp.f32 %v2336_v41  ;;  %vm2342_vm2 = vweird.f32 %v2336_v41 }
 0x2a5   : > { %9567 = vst [vmem:[#allocation21_spill] sm:$0xff] %v8120_v1 }
 0x2a6   : > { %v2597_v51 = vpop.f32.mrf.mxu0 }
 0x2a7   : > { %v2640_v54 = vadd.f32 %v2597_v51, %v9569_v63 }
 0x2a8   : > { %v2073_v23 = vpop.f32.mrf.mxu3 }
 0x2a9   : > { %v8122_v62 = vadd.f32 %v2073_v23, %v2060_v2  ;;  %v6036_v26 = vmul.f32 -1.442695, %v2640_v54  ;;  %v9571_v2 = vld [vmem:[#allocation27_spill] sm:$0xff] }
 0x2aa   : > { %v2049_v32 = vpop.f32.mrf.mxu1  ;;  %v6678_v1 = vpop.eup %6677 }
 0x2ab   : > { %9568 = vst [vmem:[#allocation124_spill] sm:$0xff] %v8122_v62  ;;  %6679 = vpow2.f32 %v6036_v26  ;;  %v2338_v63 = vmul.f32 %v6678_v1, %v2336_v41  ;;  %vm2343_vm1 = vweird.f32 %v6678_v1 }
 0x2ac   : > { %vm8139_vm3 = vmor %vm2342_vm2, %vm2343_vm1 }
 0x2ad   : > { %v8125_v56 = vpop.f32.mrf.mxu2  ;;  %v2339_v54 = vsub.f32 1.0, %v2338_v63  ;;  %v2348_v63 = vand.u32 2147483648, %v2336_v41 }
 0x2ae   : > { %v2599_v50 = vpop.f32.mrf.mxu0 }
 0x2af   : > { %v2340_v26 = vmul.f32 %v6678_v1, %v2339_v54  ;;  %v2346_v54 = vand.u32 2147483647, %v2336_v41 }
 0x2b0   : > { %v2075_v24 = vpop.f32.mrf.mxu3 }
 0x2b1   : > { %v6680_v62 = vpop.eup %6679  ;;  %vm2347_vm5 = vcmp.eq.f32.partialorder %v2346_v54, 8.507059e+37 }
 0x2b2   : > { %v2299_v55 = vpop.f32.mrf.mxu1  ;;  %v8129_v50 = vadd.f32 1.0, %v6680_v62  ;;  %v2341_v62 = vadd.f32 %v6678_v1, %v2340_v26 }
 0x2b3   : > { %v2330_v13 = vadd.f32 %v2299_v55, %v9570_v47 }
 0x2b4   : > { %v2345_v26 = vsel %vm8139_vm3, %v6678_v1, %v2341_v62 }
 0x2b5   : > { %v5906_v11 = vmul.f32 -1.442695, %v2330_v13  ;;  %v2625_v36 = vpop.f32.mrf.mxu2 }
 0x2b7   : > { %6681 = vpow2.f32 %v5906_v11  ;;  %v9572_v11 = vld [vmem:[#allocation74_spill] sm:$0xff] }
 0x2b8   : > { %v2325_v23 = vpop.f32.mrf.mxu3 }
 0x2b9   : > { %v2332_v32 = vadd.f32 %v2325_v23, %v9571_v2  ;;  %v9573_v2 = vld [vmem:[#allocation55_spill] sm:$0xff] }
 0x2ba   : > { %v2301_v51 = vpop.f32.mrf.mxu1 }
 0x2bb   : > { %v5907_v39 = vmul.f32 -1.442695, %v2332_v32  ;;  %v2331_v51 = vadd.f32 %v2312_v53, %v9573_v2 }
 0x2bd   : > { %v6682_v52 = vpop.eup %6681  ;;  %6683 = vpow2.f32 %v5907_v39 }
 0x2be   : > { %v2355_v24 = vadd.f32 1.0, %v6682_v52 }
 0x2c0   : > { %6685 = vrcp.f32 %v2355_v24  ;;  %v2327_v55 = vpop.f32.mrf.mxu3  ;;  %v2365_v41 = vand.u32 2147483647, %v2355_v24  ;;  %vm2361_vm6 = vweird.f32 %v2355_v24 }
 0x2c1   : > { %6687 = vrcp.f32 %v8129_v50 }
 0x2c2   : > { %vm2366_vm8 = vcmp.eq.f32.partialorder %v2365_v41, 8.507059e+37 }
 0x2c3   : > { %v2610_v47 = vpop.f32.mrf.mxu1  ;;  %v6684_v13 = vpop.eup %6683 }
 0x2c4   : > { %v2641_v36 = vadd.f32 %v2610_v47, %v9572_v11  ;;  %v8133_v23 = vadd.f32 1.0, %v6684_v13  ;;  %v2367_v11 = vand.u32 2147483648, %v2355_v24 }
 0x2c6   : > { %v6037_v32 = vmul.f32 -1.442695, %v2641_v36  ;;  %v6686_v59 = vpop.eup %6685  ;;  %6689 = vrcp.f32 %v8133_v23  ;;  %v9576_v36 = vld [vmem:[#allocation89_spill] sm:$0xff]  ;;  %vm2381_vm3 = vweird.f32 %v8133_v23 }
 0x2c7   : > { %v8137_v52 = vpop.eup %6687  ;;  %v2357_v39 = vmul.f32 %v6686_v59, %v2355_v24  ;;  %vm2362_vm4 = vweird.f32 %v6686_v59 }
 0x2c8   : > { %6691 = vpow2.f32 %v6037_v32  ;;  %v2649_v13 = vmul.f32 %v8137_v52, %v8129_v50  ;;  %v2349_v32 = vor.u32 1.1754944e-38, %v2348_v63  ;;  %vm2363_vm7 = vmor %vm2361_vm6, %vm2362_vm4  ;;  %vm2654_vm2 = vweird.f32 %v8137_v52 }
 0x2c9   : > { %6693 = vtanh.f32 %v2331_v51  ;;  %v2358_v47 = vsub.f32 1.0, %v2357_v39 }
 0x2ca   : > { %v2636_v53 = vpop.f32.mrf.mxu3  ;;  %v2350_v39 = vsel %vm2347_vm5, %v2349_v32, %v2345_v26  ;;  %v2650_v62 = vsub.f32 1.0, %v2649_v13  ;;  %vm2653_vm5 = vweird.f32 %v8129_v50 }
 0x2cb   : > { %v2643_v2 = vadd.f32 %v2636_v53, %v9576_v36  ;;  %v2612_v42 = vpop.f32.mrf.mxu1  ;;  %v2359_v37 = vmul.f32 %v6686_v59, %v2358_v47  ;;  %v2368_v53 = vor.u32 1.1754944e-38, %v2367_v11  ;;  %vm8175_vm6 = vmor %vm2653_vm5, %vm2654_vm2 }
 0x2cc   : > { %v6690_v49 = vpop.eup %6689  ;;  %v2651_v32 = vmul.f32 %v8137_v52, %v2650_v62 }
 0x2cd   : > { %v6038_v14 = vmul.f32 -1.442695, %v2643_v2  ;;  %v2377_v55 = vmul.f32 %v6690_v49, %v8133_v23  ;;  %v2360_v1 = vadd.f32 %v6686_v59, %v2359_v37  ;;  %vm2382_vm1 = vweird.f32 %v6690_v49 }
 0x2ce   : > { %v6692_v51 = vpop.eup %6691  ;;  %vm8165_vm4 = vmor %vm2381_vm3, %vm2382_vm1 }
 0x2cf   : > { %v8149_v30 = vadd.f32 1.0, %v6692_v51  ;;  %6695 = vpow2.f32 %v6038_v14  ;;  %v6694_v42 = vpop.eup %6693  ;;  %v2378_v63 = vsub.f32 1.0, %v2377_v55  ;;  %v2364_v47 = vsel %vm2363_vm7, %v6686_v59, %v2360_v1  ;;  %v9577_v14 = vld [vmem:[#allocation76_spill] sm:$0xff] }
 0x2d0   : > { %v2369_v54 = vsel %vm2366_vm8, %v2368_v53, %v2364_v47  ;;  %v2392_v36 = vmul.f32 %v6694_v42, %v2350_v39  ;;  %v2642_v11 = vadd.f32 %v8125_v56, %v9577_v14  ;;  %v2387_v59 = vand.u32 2147483648, %v8133_v23 }
 0x2d1   : > { %6697 = vrcp.f32 %v8149_v30  ;;  %v2379_v2 = vmul.f32 %v6690_v49, %v2378_v63  ;;  %v2391_v24 = vmul.f32 0.0, %v2369_v54  ;;  %v2652_v55 = vadd.f32 %v8137_v52, %v2651_v32 }
 0x2d2   : > { %v2638_v26 = vpop.f32.mrf.mxu3  ;;  %v2385_v1 = vand.u32 2147483647, %v8133_v23  ;;  %v2659_v53 = vand.u32 2147483648, %v8129_v50  ;;  %v2657_v23 = vand.u32 2147483647, %v8129_v50  ;;  %v2388_v47 = vor.u32 1.1754944e-38, %v2387_v59 }
 0x2d3   : > { %v8153_v37 = vadd.f32 %v2392_v36, %v2391_v24  ;;  %v2380_v51 = vadd.f32 %v6690_v49, %v2379_v2  ;;  %v8180_v36 = vpop.permute.xlu0 %2711  ;;  %v2656_v2 = vsel %vm8175_vm6, %v8137_v52, %v2652_v55  ;;  %v2678_v26 = vand.u32 2147483648, %v8149_v30 }
 0x2d4   : > { %9582 = vst [vmem:[#allocation64_spill] sm:$0xff] %v8180_v36  ;;  %vm2386_vm7 = vcmp.eq.f32.partialorder %v2385_v1, 8.507059e+37  ;;  %vm9428_vm1 = vcmp.eq.s32.totalorder %v8180_v36, 1  ;;  %vm2658_vm2 = vcmp.eq.f32.partialorder %v2657_v23, 8.507059e+37  ;;  %vm2672_vm3 = vweird.f32 %v8149_v30  ;;  %v9658_v36 = vld [vmem:[#allocation103_spill] sm:$0xff] }
 0x2d5   : > { %v6696_v13 = vpop.eup %6695  ;;  %6699 = vtanh.f32 %v8153_v37  ;;  %v2384_v42 = vsel %vm8165_vm4, %v6690_v49, %v2380_v51  ;;  %v2660_v51 = vor.u32 1.1754944e-38, %v2659_v53  ;;  %vm8194_vm4 = vmpackc.low %vm9428_vm1, %vm9428_vm1  ;;  %v2679_v1 = vor.u32 1.1754944e-38, %v2678_v26 }
 0x2d6   : > { %v8158_v41 = vadd.f32 1.0, %v6696_v13  ;;  %v2389_v49 = vsel %vm2386_vm7, %v2388_v47, %v2384_v42  ;;  %v2676_v13 = vand.u32 2147483647, %v8149_v30 }
 0x2d7   : > { %v6698_v39 = vpop.eup %6697  ;;  %v2661_v59 = vsel %vm2658_vm2, %v2660_v51, %v2656_v2  ;;  %v9587_v2 = vld [vmem:[#allocation75_spill] sm:$0xff] }
 0x2d8   : > { %v2668_v56 = vmul.f32 %v6698_v39, %v8149_v30  ;;  %6701 = vrcp.f32 %v8158_v41  ;;  %vm2673_vm8 = vweird.f32 %v6698_v39  ;;  %vm2677_vm6 = vcmp.eq.f32.partialorder %v2676_v13, 8.507059e+37  ;;  %v9589_v13 = vld [vmem:[#allocation79_spill] sm:$0xff] }
 0x2d9   : > { %6703 = vtanh.f32 %v2642_v11  ;;  %vm2674_vm5 = vmor %vm2672_vm3, %vm2673_vm8  ;;  %vm2692_vm8 = vweird.f32 %v8158_v41 }
 0x2da   : > { %v2669_v54 = vsub.f32 1.0, %v2668_v56 }
 0x2db   : > { %v6700_v24 = vpop.eup %6699 }
 0x2dc   : > { %v2670_v32 = vmul.f32 %v6698_v39, %v2669_v54  ;;  %v8187_v50 = vmul.f32 %v6700_v24, %v2389_v49  ;;  %v2698_v24 = vand.u32 2147483648, %v8158_v41  ;;  %v2696_v49 = vand.u32 2147483647, %v8158_v41 }
 0x2de   : > { %9583 = vst [vmem:[#allocation18_spill] sm:$0xff] %v8187_v50  ;;  %v6702_v14 = vpop.eup %6701  ;;  %v2671_v11 = vadd.f32 %v6698_v39, %v2670_v32  ;;  %v6040_v62 = vpack.c.bf16 %v8187_v50, %v8187_v50  ;;  %v9588_v32 = vld [vmem:[#allocation78_spill] sm:$0xff]  ;;  %v2699_v52 = vor.u32 1.1754944e-38, %v2698_v24  ;;  %vm2697_vm3 = vcmp.eq.f32.partialorder %v2696_v49, 8.507059e+37  ;;  %v9602_v24 = vld [vmem:[#allocation117_spill] sm:$0xff] }
 0x2df   : > { %v2688_v55 = vmul.f32 %v6702_v14, %v8158_v41  ;;  %v6704_v53 = vpop.eup %6703  ;;  %vm2693_vm7 = vweird.f32 %v6702_v14  ;;  %v9592_v41 = vld [vmem:[#allocation81_spill] sm:$0xff] }
 0x2e0   : > { %v2675_v56 = vsel %vm2674_vm5, %v6698_v39, %v2671_v11  ;;  %6041 = vmatmul.msk.bf16.vlgmr.msrb.gmra.mxu0 %vm8194_vm4, %v6040_v62  ;;  %6044 = vmatmul.msk.bf16.vlgmr.msra.gmra.mxu1 %vm8194_vm4, %v6040_v62  ;;  %v2703_v63 = vmul.f32 %v6704_v53, %v2661_v59  ;;  %v9586_v39 = vld [vmem:[#allocation73_spill] sm:$0xff]  ;;  %vm2694_vm2 = vmor %vm2692_vm8, %vm2693_vm7  ;;  %v9590_v11 = vld [vmem:[#allocation80_spill] sm:$0xff] }
 0x2e1   : > { %v2689_v30 = vsub.f32 1.0, %v2688_v55  ;;  %v2680_v42 = vsel %vm2677_vm6, %v2679_v1, %v2675_v56  ;;  %6047 = vmatmul.msk.bf16.vlgmr.msra.gmra.mxu2 %vm8194_vm4, %v6040_v62  ;;  %6050 = vmatmul.msk.bf16.vlgmr.msrb.gmra.mxu3 %vm8194_vm4, %v6040_v62  ;;  %v8225_v1 = vpop.permute.xlu1 %2718  ;;  %v9594_v56 = vld [vmem:[#allocation83_spill] sm:$0xff]  ;;  %v9595_v53 = vld [vmem:[#allocation84_spill] sm:$0xff]  ;;  %v9603_v49 = vld [vmem:[#allocation101_spill] sm:$0xff] }
 0x2e2   : > { %v2702_v23 = vmul.f32 0.0, %v2680_v42  ;;  %2996 = vmatpush.bf16.msrb.mxu0 %v9586_v39  ;;  %3009 = vmatpush.bf16.msra.mxu1 %v7835_v12  ;;  %9591 = vst [vmem:[#allocation27_spill] sm:$0xff] %v8225_v1  ;;  %vm9422_vm4 = vcmp.eq.s32.totalorder %v8225_v1, 1  ;;  %v9597_v42 = vld [vmem:[#allocation98_spill] sm:$0xff]  ;;  %v9610_v50 = vld [vmem:[#allocation121_spill] sm:$0xff]  ;;  %v9657_v1 = vld [vmem:[#allocation119_spill] sm:$0xff] }
 0x2e3   : > { %v2690_v47 = vmul.f32 %v6702_v14, %v2689_v30  ;;  %3022 = vmatpush.bf16.msra.mxu2 %v9587_v2  ;;  %3035 = vmatpush.bf16.msrb.mxu3 %v7841_v3  ;;  %vm6054_vm5 = vmpackc.low %vm9422_vm4, %vm9422_vm4  ;;  %v9596_v30 = vld [vmem:[#allocation114_spill] sm:$0xff] }
 0x2e4   : > { %v8211_v54 = vadd.f32 %v2703_v63, %v2702_v23  ;;  %v9598_v63 = vld [vmem:[#allocation115_spill] sm:$0xff] }
 0x2e5   : > { %v2691_v26 = vadd.f32 %v6702_v14, %v2690_v47  ;;  %v9599_v23 = vld [vmem:[#allocation99_spill] sm:$0xff]  ;;  %v9600_v47 = vld [vmem:[#allocation116_spill] sm:$0xff] }
 0x2e6   : > { %6705 = vtanh.f32 %v8211_v54  ;;  %2997 = vmatpush.bf16.msrb.mxu0 %v9588_v32  ;;  %3010 = vmatpush.bf16.msra.mxu1 %v7850_v17 }
 0x2e7   : > { %3023 = vmatpush.bf16.msra.mxu2 %v9589_v13  ;;  %3036 = vmatpush.bf16.msrb.mxu3 %v7852_v19  ;;  %v2695_v51 = vsel %vm2694_vm2, %v6702_v14, %v2691_v26  ;;  %v9601_v26 = vld [vmem:[#allocation100_spill] sm:$0xff] }
 0x2e8   : > { %v2700_v55 = vsel %vm2697_vm3, %v2699_v52, %v2695_v51  ;;  %v9604_v51 = vld [vmem:[#allocation118_spill] sm:$0xff] }
 0x2e9   : > { %v9605_v52 = vld [vmem:[#allocation102_spill] sm:$0xff] }
 0x2ea   : > { %2998 = vmatpush.bf16.msrb.mxu0 %v9590_v11  ;;  %3011 = vmatpush.bf16.msra.mxu1 %v7858_v6 }
 0x2eb   : > { %3024 = vmatpush.bf16.msra.mxu2 %v9592_v41  ;;  %3037 = vmatpush.bf16.msrb.mxu3 %v7861_v9 }
 0x2ec   : > { %v6706_v59 = vpop.eup %6705 }
 0x2ed   : > { %v8229_v62 = vmul.f32 %v6706_v59, %v2700_v55  ;;  %v9606_v59 = vld [vmem:[#allocation119_spill] sm:$0xff] }
 0x2ee   : > { %2999 = vmatpush.bf16.msrb.mxu0 %v9594_v56  ;;  %3012 = vmatpush.bf16.msra.mxu1 %v7867_v33  ;;  %v9607_v55 = vld [vmem:[#allocation103_spill] sm:$0xff] }
 0x2ef   : > { %9593 = vst [vmem:[#allocation74_spill] sm:$0xff] %v8229_v62  ;;  %v6055_v14 = vpack.c.bf16 %v8229_v62, %v8229_v62  ;;  %3025 = vmatpush.bf16.msra.mxu2 %v9595_v53  ;;  %3038 = vmatpush.bf16.msrb.mxu3 %v7872_v57  ;;  %v9609_v62 = vld [vmem:[#allocation104_spill] sm:$0xff] }
 0x2f1   : > { %6056 = vmatmul.msk.bf16.vlgmr.msra.gmra.mxu0 %vm6054_vm5, %v6055_v14  ;;  %6059 = vmatmul.msk.bf16.vlgmr.msrb.gmra.mxu1 %vm6054_vm5, %v6055_v14 }
 0x2f2   : > { %6062 = vmatmul.msk.bf16.vlgmr.msrb.gmra.mxu2 %vm6054_vm5, %v6055_v14  ;;  %6065 = vmatmul.msk.bf16.vlgmr.msra.gmra.mxu3 %vm6054_vm5, %v6055_v14  ;;  %v9608_v14 = vld [vmem:[#allocation120_spill] sm:$0xff] }
 0x2f3   : > { %3000 = vmatpush.bf16.msrb.mxu0 %v7804_v4  ;;  %3013 = vmatpush.bf16.msra.mxu1 %v7880_v44 }
 0x2f4   : > { %3026 = vmatpush.bf16.msra.mxu2 %v7807_v10  ;;  %3039 = vmatpush.bf16.msrb.mxu3 %v7883_v8 }
 0x2f7   : > { %3001 = vmatpush.bf16.msrb.mxu0 %v7813_v46  ;;  %3014 = vmatpush.bf16.msra.mxu1 %v7887_v58 }
 0x2f8   : > { %3027 = vmatpush.bf16.msra.mxu2 %v7815_v40  ;;  %3040 = vmatpush.bf16.msrb.mxu3 %v7890_v43 }
 0x2fb   : > { %3002 = vmatpush.bf16.msrb.mxu0 %v7823_v22  ;;  %3015 = vmatpush.bf16.msra.mxu1 %v7893_v25 }
 0x2fc   : > { %3028 = vmatpush.bf16.msra.mxu2 %v7825_v27  ;;  %3041 = vmatpush.bf16.msrb.mxu3 %v7896_v16 }
 0x2ff   : > { %3003 = vmatpush.bf16.msrb.mxu0 %v7833_v38  ;;  %3016 = vmatpush.bf16.msra.mxu1 %v7901_v18 }
 0x300   : > { %3029 = vmatpush.bf16.msra.mxu2 %v7837_v5  ;;  %3042 = vmatpush.bf16.msrb.mxu3 %v9565_v48 }
 0x303   : > { %3116 = vmatpush.bf16.msra.mxu0 %v7906_v35  ;;  %3129 = vmatpush.bf16.msrb.mxu1 %v7959_v34 }
 0x304   : > { %3142 = vmatpush.bf16.msrb.mxu2 %v7908_v60  ;;  %3155 = vmatpush.bf16.msra.mxu3 %v7963_v7 }
 0x307   : > { %3117 = vmatpush.bf16.msra.mxu0 %v7915_v29  ;;  %3130 = vmatpush.bf16.msrb.mxu1 %v7971_v45 }
 0x308   : > { %3143 = vmatpush.bf16.msrb.mxu2 %v7917_v0  ;;  %3156 = vmatpush.bf16.msra.mxu3 %v7977_v61 }
 0x30b   : > { %3118 = vmatpush.bf16.msra.mxu0 %v7922_v31  ;;  %3131 = vmatpush.bf16.msrb.mxu1 %v7996_v28 }
 0x30c   : > { %3144 = vmatpush.bf16.msrb.mxu2 %v7924_v15  ;;  %3157 = vmatpush.bf16.msra.mxu3 %v7999_v21 }
 0x30f   : > { %3119 = vmatpush.bf16.msra.mxu0 %v7928_v20  ;;  %3132 = vmatpush.bf16.msrb.mxu1 %v9596_v30  ;;  %v9617_v30 = vld [vmem:[#allocation30_spill] sm:$0xff] }
 0x310   : > { %3145 = vmatpush.bf16.msrb.mxu2 %v9597_v42  ;;  %3158 = vmatpush.bf16.msra.mxu3 %v9598_v63  ;;  %v9616_v63 = vld [vmem:[#allocation22_spill] sm:$0xff] }
 0x313   : > { %3120 = vmatpush.bf16.msra.mxu0 %v9599_v23  ;;  %3133 = vmatpush.bf16.msrb.mxu1 %v9600_v47  ;;  %v9611_v47 = vld [vmem:[#allocation105_spill] sm:$0xff] }
 0x314   : > { %3146 = vmatpush.bf16.msrb.mxu2 %v9601_v26  ;;  %3159 = vmatpush.bf16.msra.mxu3 %v9602_v24  ;;  %v9612_v26 = vld [vmem:[#allocation122_spill] sm:$0xff]  ;;  %v9613_v24 = vld [vmem:[#allocation107_spill] sm:$0xff]  ;;  %v9615_v23 = vld [vmem:[#allocation25_spill] sm:$0xff] }
 0x317   : > { %3121 = vmatpush.bf16.msra.mxu0 %v9603_v49  ;;  %3134 = vmatpush.bf16.msrb.mxu1 %v9604_v51  ;;  %v9614_v49 = vld [vmem:[#allocation123_spill] sm:$0xff] }
 0x318   : > { %3147 = vmatpush.bf16.msrb.mxu2 %v9605_v52  ;;  %3160 = vmatpush.bf16.msra.mxu3 %v9606_v59 }
 0x31b   : > { %3122 = vmatpush.bf16.msra.mxu0 %v9607_v55  ;;  %3135 = vmatpush.bf16.msrb.mxu1 %v9608_v14 }
 0x31c   : > { %3148 = vmatpush.bf16.msrb.mxu2 %v9609_v62  ;;  %3161 = vmatpush.bf16.msra.mxu3 %v9610_v50 }
 0x31f   : > { %3123 = vmatpush.bf16.msra.mxu0 %v9611_v47  ;;  %3136 = vmatpush.bf16.msrb.mxu1 %v9612_v26 }
 0x320   : > { %3149 = vmatpush.bf16.msrb.mxu2 %v9613_v24  ;;  %3162 = vmatpush.bf16.msra.mxu3 %v9614_v49 }
 0x35d   : > { %v2741_v51 = vpop.f32.mrf.mxu0  ;;  %v2754_v52 = vpop.f32.mrf.mxu1 }
 0x35e   : > { %v2784_v59 = vadd.f32 %v2741_v51, %v9615_v23  ;;  %v2785_v55 = vadd.f32 %v2754_v52, %v9616_v63 }
 0x360   : > { %v6051_v42 = vmul.f32 -1.442695, %v2784_v59  ;;  %v6052_v14 = vmul.f32 -1.442695, %v2785_v55  ;;  %v9619_v55 = vld [vmem:[#allocation69_spill] sm:$0xff] }
 0x362   : > { %6707 = vpow2.f32 %v6051_v42  ;;  %v9618_v42 = vld [vmem:[#allocation61_spill] sm:$0xff] }
 0x363   : > { %6709 = vpow2.f32 %v6052_v14 }
 0x364   : > { %v2767_v62 = vpop.f32.mrf.mxu2  ;;  %v2780_v50 = vpop.f32.mrf.mxu3 }
 0x365   : > { %v2787_v47 = vadd.f32 %v2780_v50, %v9617_v30  ;;  %v2743_v20 = vpop.f32.mrf.mxu0  ;;  %v2756_v26 = vpop.f32.mrf.mxu1  ;;  %v9620_v50 = vld [vmem:[#allocation20_spill] sm:$0xff] }
 0x366   : > { %v2786_v20 = vadd.f32 %v2767_v62, %v9620_v50  ;;  %v9621_v50 = vld [vmem:[#allocation88_spill] sm:$0xff] }
 0x367   : > { %v6053_v21 = vmul.f32 -1.442695, %v2787_v47 }
 0x368   : > { %v6708_v24 = vpop.eup %6707 }
 0x369   : > { %v6710_v15 = vpop.eup %6709  ;;  %v2791_v49 = vadd.f32 1.0, %v6708_v24  ;;  %6711 = vpow2.f32 %v6053_v21 }
 0x36a   : > { %v2810_v28 = vadd.f32 1.0, %v6710_v15 }
 0x36b   : > { %6713 = vrcp.f32 %v2791_v49  ;;  %v2801_v61 = vand.u32 2147483647, %v2791_v49  ;;  %v2803_v0 = vand.u32 2147483648, %v2791_v49  ;;  %vm2797_vm2 = vweird.f32 %v2791_v49 }
 0x36c   : > { %6715 = vrcp.f32 %v2810_v28  ;;  %v2769_v23 = vpop.f32.mrf.mxu2  ;;  %v2782_v63 = vpop.f32.mrf.mxu3  ;;  %vm2816_vm8 = vweird.f32 %v2810_v28 }
 0x36d   : > { %vm2802_vm5 = vcmp.eq.f32.partialorder %v2801_v61, 8.507059e+37 }
 0x36e   : > { %v2861_v51 = vpop.f32.mrf.mxu0  ;;  %v2874_v52 = vpop.f32.mrf.mxu1 }
 0x36f   : > { %v2904_v59 = vadd.f32 %v2861_v51, %v9618_v42  ;;  %v2905_v14 = vadd.f32 %v2874_v52, %v9619_v55  ;;  %v6712_v31 = vpop.eup %6711  ;;  %v2822_v55 = vand.u32 2147483648, %v2810_v28 }
 0x370   : > { %v8295_v30 = vadd.f32 1.0, %v6712_v31 }
 0x371   : > { %v6066_v47 = vmul.f32 -1.442695, %v2904_v59  ;;  %v6714_v26 = vpop.eup %6713  ;;  %v6067_v24 = vmul.f32 -1.442695, %v2905_v14  ;;  %v2820_v14 = vand.u32 2147483647, %v2810_v28 }
 0x372   : > { %v6716_v21 = vpop.eup %6715  ;;  %v2793_v15 = vmul.f32 %v6714_v26, %v2791_v49  ;;  %6717 = vrcp.f32 %v8295_v30  ;;  %vm2798_vm6 = vweird.f32 %v6714_v26 }
 0x373   : > { %v2812_v23 = vmul.f32 %v6716_v21, %v2810_v28  ;;  %6719 = vtanh.f32 %v2786_v20  ;;  %vm2817_vm7 = vweird.f32 %v6716_v21  ;;  %vm2799_vm3 = vmor %vm2797_vm2, %vm2798_vm6  ;;  %vm2821_vm13 = vcmp.eq.f32.partialorder %v2820_v14, 8.507059e+37 }
 0x374   : > { %v2794_v63 = vsub.f32 1.0, %v2793_v15  ;;  %6721 = vpow2.f32 %v6066_v47  ;;  %vm2818_vm10 = vmor %vm2816_vm8, %vm2817_vm7  ;;  %vm2836_vm6 = vweird.f32 %v8295_v30 }
 0x375   : > { %v2887_v51 = vpop.f32.mrf.mxu2  ;;  %v2900_v42 = vpop.f32.mrf.mxu3  ;;  %v2813_v52 = vsub.f32 1.0, %v2812_v23  ;;  %6723 = vpow2.f32 %v6067_v24  ;;  %v2804_v23 = vor.u32 1.1754944e-38, %v2803_v0 }
 0x376   : > { %v2863_v31 = vpop.f32.mrf.mxu0  ;;  %v2876_v62 = vpop.f32.mrf.mxu1  ;;  %v2795_v59 = vmul.f32 %v6714_v26, %v2794_v63  ;;  %v2907_v45 = vadd.f32 %v2900_v42, %v9621_v50  ;;  %v2823_v63 = vor.u32 1.1754944e-38, %v2822_v55 }
 0x377   : > { %v2814_v29 = vmul.f32 %v6716_v21, %v2813_v52 }
 0x378   : > { %v6718_v7 = vpop.eup %6717  ;;  %v2796_v20 = vadd.f32 %v6714_v26, %v2795_v59  ;;  %v6068_v47 = vmul.f32 -1.442695, %v2907_v45  ;;  %v2715_v45 = vsel %vm9428_vm1, %v8153_v37, 0.0  ;;  %v2840_v37 = vand.u32 2147483647, %v8295_v30 }
 0x379   : > { %v6720_v15 = vpop.eup %6719  ;;  %v2815_v60 = vadd.f32 %v6716_v21, %v2814_v29  ;;  %v2832_v24 = vmul.f32 %v6718_v7, %v8295_v30 }
 0x37a   : > { %v6722_v31 = vpop.eup %6721  ;;  %v2800_v62 = vsel %vm2799_vm3, %v6714_v26, %v2796_v20  ;;  %6725 = vpow2.f32 %v6068_v47  ;;  %vm2841_vm8 = vcmp.eq.f32.partialorder %v2840_v37, 8.507059e+37 }
 0x37b   : > { %v6724_v42 = vpop.eup %6723  ;;  %v2805_v52 = vsel %vm2802_vm5, %v2804_v23, %v2800_v62  ;;  %v2819_v50 = vsel %vm2818_vm10, %v6716_v21, %v2815_v60  ;;  %v2833_v28 = vsub.f32 1.0, %v2832_v24  ;;  %v2911_v59 = vadd.f32 1.0, %v6722_v31  ;;  %v9622_v21 = vld [vmem:[#allocation70_spill] sm:$0xff] }
 0x37c   : > { %v2824_v61 = vsel %vm2821_vm13, %v2823_v63, %v2819_v50  ;;  %v2847_v0 = vmul.f32 %v6720_v15, %v2805_v52  ;;  %v2930_v29 = vadd.f32 1.0, %v6724_v42  ;;  %vm2837_vm10 = vweird.f32 %v6718_v7 }
 0x37d   : > { %v2889_v49 = vpop.f32.mrf.mxu2  ;;  %v2902_v34 = vpop.f32.mrf.mxu3  ;;  %v2846_v35 = vmul.f32 %v2824_v61, %v2715_v45  ;;  %v2834_v48 = vmul.f32 %v6718_v7, %v2833_v28  ;;  %6727 = vrcp.f32 %v2911_v59  ;;  %v2842_v60 = vand.u32 2147483648, %v8295_v30  ;;  %vm2838_vm13 = vmor %vm2836_vm6, %vm2837_vm10 }
 0x37e   : > { %6729 = vrcp.f32 %v2930_v29  ;;  %v2906_v20 = vadd.f32 %v2887_v51, %v9622_v21  ;;  %v2942_v42 = vand.u32 2147483648, %v2930_v29  ;;  %v2923_v52 = vand.u32 2147483648, %v2911_v59 }
 0x37f   : > { %v8303_v26 = vadd.f32 %v2847_v0, %v2846_v35  ;;  %v2835_v14 = vadd.f32 %v6718_v7, %v2834_v48  ;;  %v8313_v48 = vpop.permute.xlu2 %2975  ;;  %v2843_v24 = vor.u32 1.1754944e-38, %v2842_v60  ;;  %v2921_v28 = vand.u32 2147483647, %v2911_v59 }
 0x380   : > { %v6726_v55 = vpop.eup %6725  ;;  %9623 = vst [vmem:[#allocation55_spill] sm:$0xff] %v8313_v48  ;;  %vm9427_vm7 = vcmp.eq.s32.totalorder %v8313_v48, 1  ;;  %v9625_v45 = vmov 0  ;;  %v2940_v0 = vand.u32 2147483647, %v2930_v29  ;;  %vm2917_vm10 = vweird.f32 %v2911_v59  ;;  %v9709_v48 = vld [vmem:[#allocation120_spill] sm:$0xff] }
 0x381   : > { %6731 = vtanh.f32 %v8303_v26  ;;  %v8310_v34 = vadd.f32 1.0, %v6726_v55  ;;  %v2839_v35 = vsel %vm2838_vm13, %v6718_v7, %v2835_v14  ;;  %vm8321_vm3 = vmpackc.low %vm9427_vm7, %vm9427_vm7  ;;  %vm2936_vm6 = vweird.f32 %v2930_v29 }
 0x382   : > { %v2844_v51 = vsel %vm2841_vm8, %v2843_v24, %v2839_v35  ;;  %v9626_v45 = vsel %vm8321_vm3, 4294967295, %v9625_v45  ;;  %v2924_v60 = vor.u32 1.1754944e-38, %v2923_v52  ;;  %v2943_v35 = vor.u32 1.1754944e-38, %v2942_v42 }
 0x383   : > { %v6728_v47 = vpop.eup %6727  ;;  %6733 = vrcp.f32 %v8310_v34  ;;  %9627 = vst [vmem:[#allocation76_spill] sm:$0xff] %v9626_v45  ;;  %vm2922_vm12 = vcmp.eq.f32.partialorder %v2921_v28, 8.507059e+37  ;;  %vm2941_vm0 = vcmp.eq.f32.partialorder %v2940_v0, 8.507059e+37  ;;  %v2960_v42 = vand.u32 2147483647, %v8310_v34  ;;  %v9660_v45 = vld [vmem:[#allocation104_spill] sm:$0xff] }
 0x384   : > { %v6730_v15 = vpop.eup %6729  ;;  %v2913_v23 = vmul.f32 %v6728_v47, %v2911_v59  ;;  %6735 = vtanh.f32 %v2906_v20  ;;  %vm2918_vm2 = vweird.f32 %v6728_v47 }
 0x385   : > { %v2932_v31 = vmul.f32 %v6730_v15, %v2930_v29  ;;  %vm2937_vm5 = vweird.f32 %v6730_v15  ;;  %vm2919_vm13 = vmor %vm2917_vm10, %vm2918_vm2 }
 0x386   : > { %v2914_v63 = vsub.f32 1.0, %v2913_v23  ;;  %vm2938_vm8 = vmor %vm2936_vm6, %vm2937_vm5  ;;  %vm2961_vm5 = vcmp.eq.f32.partialorder %v2960_v42, 8.507059e+37  ;;  %v9650_v42 = vld [vmem:[#allocation99_spill] sm:$0xff] }
 0x387   : > { %v6732_v30 = vpop.eup %6731  ;;  %v2933_v62 = vsub.f32 1.0, %v2932_v31 }
 0x388   : > { %v8316_v50 = vmul.f32 %v6732_v30, %v2844_v51  ;;  %v2915_v7 = vmul.f32 %v6728_v47, %v2914_v63 }
 0x389   : > { %v2934_v61 = vmul.f32 %v6730_v15, %v2933_v62  ;;  %v6734_v49 = vpop.eup %6733 }
 0x38a   : > { %9624 = vst [vmem:[#allocation89_spill] sm:$0xff] %v8316_v50  ;;  %v2916_v55 = vadd.f32 %v6728_v47, %v2915_v7  ;;  %v6070_v14 = vpack.c.bf16 %v8316_v50, %v8316_v50  ;;  %v2952_v21 = vmul.f32 %v6734_v49, %v8310_v34  ;;  %v6736_v20 = vpop.eup %6735  ;;  %v9659_v50 = vld [vmem:[#allocation120_spill] sm:$0xff] }
 0x38b   : > { %v2935_v37 = vadd.f32 %v6730_v15, %v2934_v61  ;;  %v8357_v61 = vpop.permute.xlu1 %2982 }
 0x38c   : > { %v2920_v23 = vsel %vm2919_vm13, %v6728_v47, %v2916_v55  ;;  %6071 = vmatmul.msk.bf16.vlgmr.msrb.gmra.mxu0 %vm8321_vm3, %v6070_v14  ;;  %6074 = vmatmul.msk.bf16.vlgmr.msra.gmra.mxu1 %vm8321_vm3, %v6070_v14  ;;  %v2953_v29 = vsub.f32 1.0, %v2952_v21  ;;  %v2722_v47 = vsel %vm9422_vm4, %v8211_v54, 0.0  ;;  %v2962_v54 = vand.u32 2147483648, %v8310_v34  ;;  %9628 = vst [vmem:[#allocation73_spill] sm:$0xff] %v8357_v61  ;;  %v9636_v21 = vld [vmem:[#allocation92_spill] sm:$0xff] }
 0x38d   : > { %v2925_v59 = vsel %vm2922_vm12, %v2924_v60, %v2920_v23  ;;  %v2939_v24 = vsel %vm2938_vm8, %v6730_v15, %v2935_v37  ;;  %6077 = vmatmul.msk.bf16.vlgmr.msra.gmra.mxu2 %vm8321_vm3, %v6070_v14  ;;  %6080 = vmatmul.msk.bf16.vlgmr.msrb.gmra.mxu3 %vm8321_vm3, %v6070_v14  ;;  %vm2957_vm12 = vweird.f32 %v6734_v49  ;;  %vm9423_vm10 = vcmp.eq.s32.totalorder %v8357_v61, 1  ;;  %v9633_v14 = vld [vmem:[#allocation90_spill] sm:$0xff]  ;;  %v9634_v60 = vld [vmem:[#allocation91_spill] sm:$0xff]  ;;  %v9639_v23 = vld [vmem:[#allocation109_spill] sm:$0xff] }
 0x38e   : > { %v2944_v31 = vsel %vm2941_vm0, %v2943_v35, %v2939_v24  ;;  %v2967_v63 = vmul.f32 %v6736_v20, %v2925_v59  ;;  %3260 = vmatpush.bf16.msrb.mxu0 %v9586_v39  ;;  %3273 = vmatpush.bf16.msra.mxu1 %v7835_v12  ;;  %v2954_v15 = vmul.f32 %v6734_v49, %v2953_v29  ;;  %vm2956_vm0 = vweird.f32 %v8310_v34  ;;  %vm8371_vm6 = vmpackc.low %vm9423_vm10, %vm9423_vm10  ;;  %v9635_v37 = vld [vmem:[#allocation106_spill] sm:$0xff]  ;;  %v9637_v20 = vld [vmem:[#allocation108_spill] sm:$0xff] }
 0x38f   : > { %v2966_v30 = vmul.f32 %v2944_v31, %v2722_v47  ;;  %3286 = vmatpush.bf16.msra.mxu2 %v9587_v2  ;;  %3299 = vmatpush.bf16.msrb.mxu3 %v7841_v3  ;;  %vm2958_vm2 = vmor %vm2956_vm0, %vm2957_vm12  ;;  %v2963_v7 = vor.u32 1.1754944e-38, %v2962_v54  ;;  %v9638_v35 = vld [vmem:[#allocation93_spill] sm:$0xff]  ;;  %v9640_v59 = vld [vmem:[#allocation94_spill] sm:$0xff] }
 0x390   : > { %v2955_v62 = vadd.f32 %v6734_v49, %v2954_v15  ;;  %v9641_v24 = vld [vmem:[#allocation111_spill] sm:$0xff]  ;;  %v9643_v47 = vld [vmem:[#allocation112_spill] sm:$0xff]  ;;  %v9647_v15 = vld [vmem:[#allocation114_spill] sm:$0xff] }
 0x391   : > { %v8343_v51 = vadd.f32 %v2967_v63, %v2966_v30  ;;  %v9642_v29 = vld [vmem:[#allocation95_spill] sm:$0xff]  ;;  %v9644_v31 = vld [vmem:[#allocation96_spill] sm:$0xff]  ;;  %v9645_v63 = vld [vmem:[#allocation113_spill] sm:$0xff] }
 0x392   : > { %3261 = vmatpush.bf16.msrb.mxu0 %v9588_v32  ;;  %3274 = vmatpush.bf16.msra.mxu1 %v7850_v17  ;;  %v2959_v52 = vsel %vm2958_vm2, %v6734_v49, %v2955_v62  ;;  %v9630_v49 = vmov 0  ;;  %v9646_v30 = vld [vmem:[#allocation97_spill] sm:$0xff]  ;;  %v9648_v62 = vld [vmem:[#allocation98_spill] sm:$0xff]  ;;  %v9649_v54 = vld [vmem:[#allocation115_spill] sm:$0xff] }
 0x393   : > { %6737 = vtanh.f32 %v8343_v51  ;;  %3287 = vmatpush.bf16.msra.mxu2 %v9589_v13  ;;  %3300 = vmatpush.bf16.msrb.mxu3 %v7852_v19  ;;  %v2964_v0 = vsel %vm2961_vm5, %v2963_v7, %v2959_v52  ;;  %v9631_v49 = vsel %vm8371_vm6, 4294967295, %v9630_v49  ;;  %v9651_v52 = vld [vmem:[#allocation116_spill] sm:$0xff]  ;;  %v9707_v61 = vld [vmem:[#allocation119_spill] sm:$0xff] }
 0x394   : > { %9632 = vst [vmem:[#allocation78_spill] sm:$0xff] %v9631_v49  ;;  %v9652_v7 = vld [vmem:[#allocation100_spill] sm:$0xff]  ;;  %v9661_v49 = vld [vmem:[#allocation121_spill] sm:$0xff] }
 0x396   : > { %3262 = vmatpush.bf16.msrb.mxu0 %v9590_v11  ;;  %3275 = vmatpush.bf16.msra.mxu1 %v7858_v6 }
 0x397   : > { %3288 = vmatpush.bf16.msra.mxu2 %v9592_v41  ;;  %3301 = vmatpush.bf16.msrb.mxu3 %v7861_v9 }
 0x399   : > { %v6738_v28 = vpop.eup %6737 }
 0x39a   : > { %v8360_v55 = vmul.f32 %v6738_v28, %v2964_v0  ;;  %3263 = vmatpush.bf16.msrb.mxu0 %v9594_v56  ;;  %3276 = vmatpush.bf16.msra.mxu1 %v7867_v33  ;;  %v9653_v28 = vld [vmem:[#allocation117_spill] sm:$0xff] }
 0x39b   : > { %3289 = vmatpush.bf16.msra.mxu2 %v9595_v53  ;;  %3302 = vmatpush.bf16.msrb.mxu3 %v7872_v57  ;;  %v9654_v0 = vld [vmem:[#allocation101_spill] sm:$0xff] }
 0x39c   : > { %9629 = vst [vmem:[#allocation75_spill] sm:$0xff] %v8360_v55  ;;  %v6085_v34 = vpack.c.bf16 %v8360_v55, %v8360_v55  ;;  %v9656_v55 = vld [vmem:[#allocation102_spill] sm:$0xff] }
 0x39e   : > { %6086 = vmatmul.msk.bf16.vlgmr.msra.gmra.mxu0 %vm8371_vm6, %v6085_v34  ;;  %6089 = vmatmul.msk.bf16.vlgmr.msrb.gmra.mxu1 %vm8371_vm6, %v6085_v34 }
 0x39f   : > { %6092 = vmatmul.msk.bf16.vlgmr.msrb.gmra.mxu2 %vm8371_vm6, %v6085_v34  ;;  %6095 = vmatmul.msk.bf16.vlgmr.msra.gmra.mxu3 %vm8371_vm6, %v6085_v34  ;;  %v9655_v34 = vld [vmem:[#allocation118_spill] sm:$0xff] }
 0x3a0   : > { %3264 = vmatpush.bf16.msrb.mxu0 %v7804_v4  ;;  %3277 = vmatpush.bf16.msra.mxu1 %v7880_v44 }
 0x3a1   : > { %3290 = vmatpush.bf16.msra.mxu2 %v7807_v10  ;;  %3303 = vmatpush.bf16.msrb.mxu3 %v7883_v8 }
 0x3a4   : > { %3265 = vmatpush.bf16.msrb.mxu0 %v7813_v46  ;;  %3278 = vmatpush.bf16.msra.mxu1 %v7887_v58 }
 0x3a5   : > { %3291 = vmatpush.bf16.msra.mxu2 %v7815_v40  ;;  %3304 = vmatpush.bf16.msrb.mxu3 %v7890_v43 }
 0x3a8   : > { %3266 = vmatpush.bf16.msrb.mxu0 %v7823_v22  ;;  %3279 = vmatpush.bf16.msra.mxu1 %v7893_v25 }
 0x3a9   : > { %3292 = vmatpush.bf16.msra.mxu2 %v7825_v27  ;;  %3305 = vmatpush.bf16.msrb.mxu3 %v7896_v16 }
 0x3ac   : > { %3267 = vmatpush.bf16.msrb.mxu0 %v7833_v38  ;;  %3280 = vmatpush.bf16.msra.mxu1 %v7901_v18 }
 0x3ad   : > { %3293 = vmatpush.bf16.msra.mxu2 %v7837_v5  ;;  %3306 = vmatpush.bf16.msrb.mxu3 %v9633_v14 }
 0x3b0   : > { %3380 = vmatpush.bf16.msra.mxu0 %v9634_v60  ;;  %3393 = vmatpush.bf16.msrb.mxu1 %v9635_v37 }
 0x3b1   : > { %3406 = vmatpush.bf16.msrb.mxu2 %v9636_v21  ;;  %3419 = vmatpush.bf16.msra.mxu3 %v9637_v20 }
 0x3b4   : > { %3381 = vmatpush.bf16.msra.mxu0 %v9638_v35  ;;  %3394 = vmatpush.bf16.msrb.mxu1 %v9639_v23 }
 0x3b5   : > { %3407 = vmatpush.bf16.msrb.mxu2 %v9640_v59  ;;  %3420 = vmatpush.bf16.msra.mxu3 %v9641_v24 }
 0x3b8   : > { %3382 = vmatpush.bf16.msra.mxu0 %v9642_v29  ;;  %3395 = vmatpush.bf16.msrb.mxu1 %v9643_v47 }
 0x3b9   : > { %3408 = vmatpush.bf16.msrb.mxu2 %v9644_v31  ;;  %3421 = vmatpush.bf16.msra.mxu3 %v9645_v63 }
 0x3bc   : > { %3383 = vmatpush.bf16.msra.mxu0 %v9646_v30  ;;  %3396 = vmatpush.bf16.msrb.mxu1 %v9647_v15  ;;  %v9668_v15 = vld [vmem:[#allocation33_spill] sm:$0xff] }
 0x3bd   : > { %3409 = vmatpush.bf16.msrb.mxu2 %v9648_v62  ;;  %3422 = vmatpush.bf16.msra.mxu3 %v9649_v54  ;;  %v9667_v54 = vld [vmem:[#allocation26_spill] sm:$0xff] }
 0x3c0   : > { %3384 = vmatpush.bf16.msra.mxu0 %v9650_v42  ;;  %3397 = vmatpush.bf16.msrb.mxu1 %v9651_v52  ;;  %v9662_v52 = vld [vmem:[#allocation105_spill] sm:$0xff] }
 0x3c1   : > { %3410 = vmatpush.bf16.msrb.mxu2 %v9652_v7  ;;  %3423 = vmatpush.bf16.msra.mxu3 %v9653_v28  ;;  %v9663_v7 = vld [vmem:[#allocation122_spill] sm:$0xff]  ;;  %v9664_v28 = vld [vmem:[#allocation107_spill] sm:$0xff]  ;;  %v9666_v42 = vld [vmem:[#allocation29_spill] sm:$0xff] }
 0x3c4   : > { %3385 = vmatpush.bf16.msra.mxu0 %v9654_v0  ;;  %3398 = vmatpush.bf16.msrb.mxu1 %v9655_v34  ;;  %v9665_v0 = vld [vmem:[#allocation123_spill] sm:$0xff] }
 0x3c5   : > { %3411 = vmatpush.bf16.msrb.mxu2 %v9656_v55  ;;  %3424 = vmatpush.bf16.msra.mxu3 %v9657_v1 }
 0x3c8   : > { %3386 = vmatpush.bf16.msra.mxu0 %v9658_v36  ;;  %3399 = vmatpush.bf16.msrb.mxu1 %v9659_v50 }
 0x3c9   : > { %3412 = vmatpush.bf16.msrb.mxu2 %v9660_v45  ;;  %3425 = vmatpush.bf16.msra.mxu3 %v9661_v49 }
 0x3cc   : > { %3387 = vmatpush.bf16.msra.mxu0 %v9662_v52  ;;  %3400 = vmatpush.bf16.msrb.mxu1 %v9663_v7 }
 0x3cd   : > { %3413 = vmatpush.bf16.msrb.mxu2 %v9664_v28  ;;  %3426 = vmatpush.bf16.msra.mxu3 %v9665_v0 }
 0x409   : > { %v3005_v34 = vpop.f32.mrf.mxu0  ;;  %v3018_v55 = vpop.f32.mrf.mxu1 }
 0x40a   : > { %v3048_v1 = vadd.f32 %v3005_v34, %v9666_v42  ;;  %v3049_v36 = vadd.f32 %v3018_v55, %v9667_v54 }
 0x40c   : > { %v6081_v62 = vmul.f32 -1.442695, %v3048_v1  ;;  %v6082_v50 = vmul.f32 -1.442695, %v3049_v36 }
 0x40e   : > { %6739 = vpow2.f32 %v6081_v62 }
 0x40f   : > { %6741 = vpow2.f32 %v6082_v50  ;;  %v9669_v50 = vld [vmem:[#allocation23_spill] sm:$0xff] }
 0x410   : > { %v3031_v45 = vpop.f32.mrf.mxu2  ;;  %v3044_v49 = vpop.f32.mrf.mxu3 }
 0x411   : > { %v3051_v52 = vadd.f32 %v3044_v49, %v9668_v15  ;;  %v3007_v30 = vpop.f32.mrf.mxu0  ;;  %v3020_v7 = vpop.f32.mrf.mxu1  ;;  %v3050_v54 = vadd.f32 %v3031_v45, %v9669_v50  ;;  %v9670_v49 = vld [vmem:[#allocation58_spill] sm:$0xff]  ;;  %v9671_v15 = vld [vmem:[#allocation65_spill] sm:$0xff] }
 0x413   : > { %v6083_v63 = vmul.f32 -1.442695, %v3051_v52 }
 0x414   : > { %v6740_v28 = vpop.eup %6739 }
 0x415   : > { %v6742_v31 = vpop.eup %6741  ;;  %v3055_v0 = vadd.f32 1.0, %v6740_v28  ;;  %6743 = vpow2.f32 %v6083_v63 }
 0x416   : > { %v3074_v47 = vadd.f32 1.0, %v6742_v31 }
 0x417   : > { %6745 = vrcp.f32 %v3055_v0  ;;  %v3065_v23 = vand.u32 2147483647, %v3055_v0  ;;  %v3067_v45 = vand.u32 2147483648, %v3055_v0  ;;  %vm3061_vm12 = vweird.f32 %v3055_v0 }
 0x418   : > { %6747 = vrcp.f32 %v3074_v47  ;;  %v3033_v42 = vpop.f32.mrf.mxu2  ;;  %v3046_v55 = vpop.f32.mrf.mxu3  ;;  %v3084_v59 = vand.u32 2147483647, %v3074_v47  ;;  %v3086_v50 = vand.u32 2147483648, %v3074_v47  ;;  %vm3080_vm0 = vweird.f32 %v3074_v47 }
 0x419   : > { %vm3066_vm15 = vcmp.eq.f32.partialorder %v3065_v23, 8.507059e+37 }
 0x41a   : > { %v3087_v21 = vor.u32 1.1754944e-38, %v3086_v50  ;;  %vm3085_vm14 = vcmp.eq.f32.partialorder %v3084_v59, 8.507059e+37 }
 0x41b   : > { %v6744_v1 = vpop.eup %6743  ;;  %v3125_v36 = vpop.f32.mrf.mxu0 }
 0x41c   : > { %v3138_v62 = vpop.f32.mrf.mxu1  ;;  %v8435_v34 = vadd.f32 1.0, %v6744_v1  ;;  %v3168_v30 = vadd.f32 %v3125_v36, %v9670_v49 }
 0x41d   : > { %v3169_v52 = vadd.f32 %v3138_v62, %v9671_v15  ;;  %v6746_v7 = vpop.eup %6745  ;;  %v9672_v15 = vld [vmem:[#allocation86_spill] sm:$0xff] }
 0x41e   : > { %v6748_v29 = vpop.eup %6747  ;;  %v3057_v28 = vmul.f32 %v6746_v7, %v3055_v0  ;;  %6749 = vrcp.f32 %v8435_v34  ;;  %v6096_v42 = vmul.f32 -1.442695, %v3168_v30  ;;  %vm3062_vm13 = vweird.f32 %v6746_v7 }
 0x41f   : > { %v3076_v31 = vmul.f32 %v6748_v29, %v3074_v47  ;;  %6751 = vtanh.f32 %v3050_v54  ;;  %v6097_v55 = vmul.f32 -1.442695, %v3169_v52  ;;  %vm3081_vm8 = vweird.f32 %v6748_v29  ;;  %vm3063_vm2 = vmor %vm3061_vm12, %vm3062_vm13 }
 0x420   : > { %v3058_v63 = vsub.f32 1.0, %v3057_v28  ;;  %6753 = vpow2.f32 %v6096_v42  ;;  %vm3082_vm5 = vmor %vm3080_vm0, %vm3081_vm8  ;;  %v2979_v47 = vsel %vm9427_vm7, %v8303_v26, 0.0  ;;  %v3106_v26 = vand.u32 2147483648, %v8435_v34 }
 0x421   : > { %v3077_v24 = vsub.f32 1.0, %v3076_v31  ;;  %6755 = vpow2.f32 %v6097_v55  ;;  %v3068_v31 = vor.u32 1.1754944e-38, %v3067_v45 }
 0x422   : > { %v3059_v1 = vmul.f32 %v6746_v7, %v3058_v63  ;;  %v3151_v36 = vpop.f32.mrf.mxu2  ;;  %v3164_v62 = vpop.f32.mrf.mxu3 }
 0x423   : > { %v3078_v49 = vmul.f32 %v6748_v29, %v3077_v24  ;;  %v3171_v35 = vadd.f32 %v3164_v62, %v9672_v15  ;;  %v3127_v20 = vpop.f32.mrf.mxu0 }
 0x424   : > { %v3140_v28 = vpop.f32.mrf.mxu1  ;;  %v6750_v54 = vpop.eup %6749  ;;  %v3060_v30 = vadd.f32 %v6746_v7, %v3059_v1 }
 0x425   : > { %v3079_v52 = vadd.f32 %v6748_v29, %v3078_v49  ;;  %v3096_v63 = vmul.f32 %v6750_v54, %v8435_v34  ;;  %v6752_v42 = vpop.eup %6751  ;;  %v6098_v55 = vmul.f32 -1.442695, %v3171_v35 }
 0x426   : > { %v3064_v24 = vsel %vm3063_vm2, %v6746_v7, %v3060_v30  ;;  %v6754_v28 = vpop.eup %6753 }
 0x427   : > { %v3069_v62 = vsel %vm3066_vm15, %v3068_v31, %v3064_v24  ;;  %v3083_v20 = vsel %vm3082_vm5, %v6748_v29, %v3079_v52  ;;  %v3097_v15 = vsub.f32 1.0, %v3096_v63  ;;  %6757 = vpow2.f32 %v6098_v55  ;;  %v6756_v45 = vpop.eup %6755 }
 0x428   : > { %v3088_v0 = vsel %vm3085_vm14, %v3087_v21, %v3083_v20  ;;  %v3111_v1 = vmul.f32 %v6752_v42, %v3069_v62  ;;  %v3175_v60 = vadd.f32 1.0, %v6754_v28  ;;  %v3194_v50 = vadd.f32 1.0, %v6756_v45  ;;  %v9673_v42 = vld [vmem:[#allocation66_spill] sm:$0xff]  ;;  %v8456_v20 = vpop.permute.xlu2 %3239 }
 0x429   : > { %v3110_v49 = vmul.f32 %v3088_v0, %v2979_v47  ;;  %v3098_v37 = vmul.f32 %v6750_v54, %v3097_v15  ;;  %vm3101_vm15 = vweird.f32 %v6750_v54  ;;  %vm3100_vm14 = vweird.f32 %v8435_v34  ;;  %9674 = vst [vmem:[#allocation79_spill] sm:$0xff] %v8456_v20 }
 0x42a   : > { %v3153_v7 = vpop.f32.mrf.mxu2  ;;  %v3166_v23 = vpop.f32.mrf.mxu3  ;;  %6759 = vrcp.f32 %v3175_v60  ;;  %v3104_v29 = vand.u32 2147483647, %v8435_v34  ;;  %vm3102_vm13 = vmor %vm3100_vm14, %vm3101_vm15  ;;  %v3107_v63 = vor.u32 1.1754944e-38, %v3106_v26  ;;  %v3170_v24 = vadd.f32 %v3151_v36, %v9673_v42 }
 0x42b   : > { %v8446_v35 = vadd.f32 %v3111_v1, %v3110_v49  ;;  %v3099_v59 = vadd.f32 %v6750_v54, %v3098_v37  ;;  %6761 = vrcp.f32 %v3194_v50  ;;  %vm9439_vm12 = vcmp.eq.s32.totalorder %v8456_v20, 1  ;;  %v9754_v20 = vld [vmem:[#allocation103_spill] sm:$0xff] }
 0x42c   : > { %vm3105_vm8 = vcmp.eq.f32.partialorder %v3104_v29, 8.507059e+37  ;;  %v3206_v0 = vand.u32 2147483648, %v3194_v50  ;;  %v3187_v1 = vand.u32 2147483648, %v3175_v60  ;;  %v3185_v45 = vand.u32 2147483647, %v3175_v60  ;;  %vm8466_vm2 = vmpackc.low %vm9439_vm12, %vm9439_vm12 }
 0x42d   : > { %6763 = vtanh.f32 %v8446_v35  ;;  %v6758_v21 = vpop.eup %6757  ;;  %v3103_v52 = vsel %vm3102_vm13, %v6750_v54, %v3099_v59  ;;  %v9676_v23 = vmov 0  ;;  %v3204_v26 = vand.u32 2147483647, %v3194_v50 }
 0x42e   : > { %v8452_v30 = vadd.f32 1.0, %v6758_v21  ;;  %v3108_v15 = vsel %vm3105_vm8, %v3107_v63, %v3103_v52  ;;  %v9677_v23 = vsel %vm8466_vm2, 4294967295, %v9676_v23  ;;  %vm3181_vm15 = vweird.f32 %v3175_v60 }
 0x42f   : > { %9678 = vst [vmem:[#allocation81_spill] sm:$0xff] %v9677_v23  ;;  %vm3200_vm14 = vweird.f32 %v3194_v50  ;;  %v3188_v63 = vor.u32 1.1754944e-38, %v3187_v1  ;;  %vm3186_vm11 = vcmp.eq.f32.partialorder %v3185_v45, 8.507059e+37  ;;  %vm3205_vm9 = vcmp.eq.f32.partialorder %v3204_v26, 8.507059e+37  ;;  %v8501_v45 = vpop.permute.xlu0 %3246  ;;  %v9710_v23 = vld [vmem:[#allocation104_spill] sm:$0xff] }
 0x430   : > { %v6760_v31 = vpop.eup %6759  ;;  %6765 = vrcp.f32 %v8452_v30  ;;  %v3224_v1 = vand.u32 2147483647, %v8452_v30  ;;  %9679 = vst [vmem:[#allocation83_spill] sm:$0xff] %v8501_v45 }
 0x431   : > { %v6762_v37 = vpop.eup %6761  ;;  %v3177_v55 = vmul.f32 %v6760_v31, %v3175_v60  ;;  %6767 = vtanh.f32 %v3170_v24  ;;  %vm3182_vm0 = vweird.f32 %v6760_v31  ;;  %v3207_v60 = vor.u32 1.1754944e-38, %v3206_v0 }
 0x432   : > { %v3196_v28 = vmul.f32 %v6762_v37, %v3194_v50  ;;  %vm3201_vm5 = vweird.f32 %v6762_v37  ;;  %vm3183_vm13 = vmor %vm3181_vm15, %vm3182_vm0  ;;  %vm9440_vm15 = vcmp.eq.s32.totalorder %v8501_v45, 1  ;;  %v9755_v45 = vld [vmem:[#allocation120_spill] sm:$0xff] }
 0x433   : > { %v6764_v62 = vpop.eup %6763  ;;  %v3178_v47 = vsub.f32 1.0, %v3177_v55  ;;  %vm3202_vm8 = vmor %vm3200_vm14, %vm3201_vm5  ;;  %vm3225_vm5 = vcmp.eq.f32.partialorder %v3224_v1, 8.507059e+37  ;;  %v9700_v1 = vld [vmem:[#allocation99_spill] sm:$0xff] }
 0x434   : > { %v8459_v34 = vmul.f32 %v6764_v62, %v3108_v15  ;;  %v3197_v54 = vsub.f32 1.0, %v3196_v28  ;;  %v2986_v15 = vsel %vm9423_vm10, %v8343_v51, 0.0  ;;  %v3226_v51 = vand.u32 2147483648, %v8452_v30  ;;  %vm8517_vm14 = vmpackc.low %vm9440_vm15, %vm9440_vm15 }
 0x435   : > { %v3179_v36 = vmul.f32 %v6760_v31, %v3178_v47 }
 0x436   : > { %9675 = vst [vmem:[#allocation80_spill] sm:$0xff] %v8459_v34  ;;  %v6100_v49 = vpack.c.bf16 %v8459_v34, %v8459_v34  ;;  %v6766_v7 = vpop.eup %6765  ;;  %v3198_v59 = vmul.f32 %v6762_v37, %v3197_v54  ;;  %v9708_v34 = vld [vmem:[#allocation103_spill] sm:$0xff] }
 0x437   : > { %v3180_v21 = vadd.f32 %v6760_v31, %v3179_v36  ;;  %v3216_v29 = vmul.f32 %v6766_v7, %v8452_v30  ;;  %v6768_v55 = vpop.eup %6767 }
 0x438   : > { %6101 = vmatmul.msk.bf16.vlgmr.msrb.gmra.mxu0 %vm8466_vm2, %v6100_v49  ;;  %6104 = vmatmul.msk.bf16.vlgmr.msra.gmra.mxu1 %vm8466_vm2, %v6100_v49  ;;  %v3199_v52 = vadd.f32 %v6762_v37, %v3198_v59 }
 0x439   : > { %6107 = vmatmul.msk.bf16.vlgmr.msra.gmra.mxu2 %vm8466_vm2, %v6100_v49  ;;  %6110 = vmatmul.msk.bf16.vlgmr.msrb.gmra.mxu3 %vm8466_vm2, %v6100_v49  ;;  %v3184_v42 = vsel %vm3183_vm13, %v6760_v31, %v3180_v21  ;;  %v3217_v24 = vsub.f32 1.0, %v3216_v29  ;;  %v3227_v49 = vor.u32 1.1754944e-38, %v3226_v51  ;;  %v9681_v21 = vmov 0  ;;  %v9684_v29 = vld [vmem:[#allocation91_spill] sm:$0xff] }
 0x43a   : > { %3524 = vmatpush.bf16.msrb.mxu0 %v9586_v39  ;;  %3537 = vmatpush.bf16.msra.mxu1 %v7835_v12  ;;  %v3189_v50 = vsel %vm3186_vm11, %v3188_v63, %v3184_v42  ;;  %v3203_v62 = vsel %vm3202_vm8, %v6762_v37, %v3199_v52  ;;  %vm3221_vm11 = vweird.f32 %v6766_v7  ;;  %v9682_v21 = vsel %vm8517_vm14, 4294967295, %v9681_v21  ;;  %v9685_v52 = vld [vmem:[#allocation106_spill] sm:$0xff]  ;;  %v9686_v63 = vld [vmem:[#allocation92_spill] sm:$0xff]  ;;  %v9688_v42 = vld [vmem:[#allocation93_spill] sm:$0xff] }
 0x43b   : > { %3550 = vmatpush.bf16.msra.mxu2 %v9587_v2  ;;  %3563 = vmatpush.bf16.msrb.mxu3 %v7841_v3  ;;  %v3208_v28 = vsel %vm3205_vm9, %v3207_v60, %v3203_v62  ;;  %v3231_v31 = vmul.f32 %v6768_v55, %v3189_v50  ;;  %v3218_v47 = vmul.f32 %v6766_v7, %v3217_v24  ;;  %vm3220_vm9 = vweird.f32 %v8452_v30  ;;  %v9687_v60 = vld [vmem:[#allocation108_spill] sm:$0xff]  ;;  %v9689_v24 = vld [vmem:[#allocation109_spill] sm:$0xff]  ;;  %v9690_v55 = vld [vmem:[#allocation94_spill] sm:$0xff] }
 0x43c   : > { %v3230_v54 = vmul.f32 %v3208_v28, %v2986_v15  ;;  %vm3222_vm0 = vmor %vm3220_vm9, %vm3221_vm11  ;;  %9683 = vst [vmem:[#allocation25_spill] sm:$0xff] %v9682_v21  ;;  %v9691_v50 = vld [vmem:[#allocation111_spill] sm:$0xff]  ;;  %v9693_v15 = vld [vmem:[#allocation112_spill] sm:$0xff] }
 0x43d   : > { %v3219_v37 = vadd.f32 %v6766_v7, %v3218_v47  ;;  %v9692_v62 = vld [vmem:[#allocation95_spill] sm:$0xff]  ;;  %v9694_v28 = vld [vmem:[#allocation96_spill] sm:$0xff]  ;;  %v9696_v47 = vld [vmem:[#allocation97_spill] sm:$0xff] }
 0x43e   : > { %3525 = vmatpush.bf16.msrb.mxu0 %v9588_v32  ;;  %3538 = vmatpush.bf16.msra.mxu1 %v7850_v17  ;;  %v8489_v0 = vadd.f32 %v3231_v31, %v3230_v54  ;;  %v9695_v31 = vld [vmem:[#allocation113_spill] sm:$0xff]  ;;  %v9697_v54 = vld [vmem:[#allocation114_spill] sm:$0xff]  ;;  %v9699_v51 = vld [vmem:[#allocation115_spill] sm:$0xff] }
 0x43f   : > { %3551 = vmatpush.bf16.msra.mxu2 %v9589_v13  ;;  %3564 = vmatpush.bf16.msrb.mxu3 %v7852_v19  ;;  %v3223_v36 = vsel %vm3222_vm0, %v6766_v7, %v3219_v37  ;;  %v9698_v37 = vld [vmem:[#allocation98_spill] sm:$0xff]  ;;  %v9711_v21 = vld [vmem:[#allocation121_spill] sm:$0xff] }
 0x440   : > { %6769 = vtanh.f32 %v8489_v0  ;;  %v3228_v30 = vsel %vm3225_vm5, %v3227_v49, %v3223_v36  ;;  %v9701_v36 = vld [vmem:[#allocation116_spill] sm:$0xff] }
 0x441   : > { %v9702_v49 = vld [vmem:[#allocation100_spill] sm:$0xff] }
 0x442   : > { %3526 = vmatpush.bf16.msrb.mxu0 %v9590_v11  ;;  %3539 = vmatpush.bf16.msra.mxu1 %v7858_v6 }
 0x443   : > { %3552 = vmatpush.bf16.msra.mxu2 %v9592_v41  ;;  %3565 = vmatpush.bf16.msrb.mxu3 %v7861_v9 }
 0x446   : > { %3527 = vmatpush.bf16.msrb.mxu0 %v9594_v56  ;;  %3540 = vmatpush.bf16.msra.mxu1 %v7867_v33  ;;  %v6770_v59 = vpop.eup %6769 }
 0x447   : > { %3553 = vmatpush.bf16.msra.mxu2 %v9595_v53  ;;  %3566 = vmatpush.bf16.msrb.mxu3 %v7872_v57  ;;  %v8508_v26 = vmul.f32 %v6770_v59, %v3228_v30  ;;  %v9703_v59 = vld [vmem:[#allocation117_spill] sm:$0xff] }
 0x448   : > { %v9704_v30 = vld [vmem:[#allocation101_spill] sm:$0xff] }
 0x449   : > { %9680 = vst [vmem:[#allocation84_spill] sm:$0xff] %v8508_v26  ;;  %v6115_v7 = vpack.c.bf16 %v8508_v26, %v8508_v26  ;;  %v9706_v26 = vld [vmem:[#allocation102_spill] sm:$0xff] }
 0x44a   : > { %3528 = vmatpush.bf16.msrb.mxu0 %v7804_v4  ;;  %3541 = vmatpush.bf16.msra.mxu1 %v7880_v44 }
 0x44b   : > { %3554 = vmatpush.bf16.msra.mxu2 %v7807_v10  ;;  %3567 = vmatpush.bf16.msrb.mxu3 %v7883_v8 }
 0x44c   : > { %6116 = vmatmul.msk.bf16.vlgmr.msra.gmra.mxu0 %vm8517_vm14, %v6115_v7  ;;  %6119 = vmatmul.msk.bf16.vlgmr.msrb.gmra.mxu1 %vm8517_vm14, %v6115_v7 }
 0x44d   : > { %6122 = vmatmul.msk.bf16.vlgmr.msrb.gmra.mxu2 %vm8517_vm14, %v6115_v7  ;;  %6125 = vmatmul.msk.bf16.vlgmr.msra.gmra.mxu3 %vm8517_vm14, %v6115_v7  ;;  %v9705_v7 = vld [vmem:[#allocation118_spill] sm:$0xff] }
 0x44e   : > { %3529 = vmatpush.bf16.msrb.mxu0 %v7813_v46  ;;  %3542 = vmatpush.bf16.msra.mxu1 %v7887_v58 }
 0x44f   : > { %3555 = vmatpush.bf16.msra.mxu2 %v7815_v40  ;;  %3568 = vmatpush.bf16.msrb.mxu3 %v7890_v43 }
 0x452   : > { %3530 = vmatpush.bf16.msrb.mxu0 %v7823_v22  ;;  %3543 = vmatpush.bf16.msra.mxu1 %v7893_v25 }
 0x453   : > { %3556 = vmatpush.bf16.msra.mxu2 %v7825_v27  ;;  %3569 = vmatpush.bf16.msrb.mxu3 %v7896_v16 }
 0x456   : > { %3531 = vmatpush.bf16.msrb.mxu0 %v7833_v38  ;;  %3544 = vmatpush.bf16.msra.mxu1 %v7901_v18 }
 0x457   : > { %3557 = vmatpush.bf16.msra.mxu2 %v7837_v5  ;;  %3570 = vmatpush.bf16.msrb.mxu3 %v9633_v14 }
 0x45a   : > { %3644 = vmatpush.bf16.msra.mxu0 %v9684_v29  ;;  %3657 = vmatpush.bf16.msrb.mxu1 %v9685_v52 }
 0x45b   : > { %3670 = vmatpush.bf16.msrb.mxu2 %v9686_v63  ;;  %3683 = vmatpush.bf16.msra.mxu3 %v9687_v60 }
 0x45e   : > { %3645 = vmatpush.bf16.msra.mxu0 %v9688_v42  ;;  %3658 = vmatpush.bf16.msrb.mxu1 %v9689_v24 }
 0x45f   : > { %3671 = vmatpush.bf16.msrb.mxu2 %v9690_v55  ;;  %3684 = vmatpush.bf16.msra.mxu3 %v9691_v50 }
 0x462   : > { %3646 = vmatpush.bf16.msra.mxu0 %v9692_v62  ;;  %3659 = vmatpush.bf16.msrb.mxu1 %v9693_v15 }
 0x463   : > { %3672 = vmatpush.bf16.msrb.mxu2 %v9694_v28  ;;  %3685 = vmatpush.bf16.msra.mxu3 %v9695_v31 }
 0x466   : > { %3647 = vmatpush.bf16.msra.mxu0 %v9696_v47  ;;  %3660 = vmatpush.bf16.msrb.mxu1 %v9697_v54  ;;  %v9718_v54 = vld [vmem:[#allocation37_spill] sm:$0xff] }
 0x467   : > { %3673 = vmatpush.bf16.msrb.mxu2 %v9698_v37  ;;  %3686 = vmatpush.bf16.msra.mxu3 %v9699_v51  ;;  %v9717_v51 = vld [vmem:[#allocation31_spill] sm:$0xff] }
 0x46a   : > { %3648 = vmatpush.bf16.msra.mxu0 %v9700_v1  ;;  %3661 = vmatpush.bf16.msrb.mxu1 %v9701_v36  ;;  %v9712_v36 = vld [vmem:[#allocation105_spill] sm:$0xff]  ;;  %v9716_v1 = vld [vmem:[#allocation34_spill] sm:$0xff] }
 0x46b   : > { %3674 = vmatpush.bf16.msrb.mxu2 %v9702_v49  ;;  %3687 = vmatpush.bf16.msra.mxu3 %v9703_v59  ;;  %v9713_v49 = vld [vmem:[#allocation122_spill] sm:$0xff]  ;;  %v9714_v59 = vld [vmem:[#allocation107_spill] sm:$0xff] }
 0x46e   : > { %3649 = vmatpush.bf16.msra.mxu0 %v9704_v30  ;;  %3662 = vmatpush.bf16.msrb.mxu1 %v9705_v7  ;;  %v9715_v30 = vld [vmem:[#allocation123_spill] sm:$0xff] }
 0x46f   : > { %3675 = vmatpush.bf16.msrb.mxu2 %v9706_v26  ;;  %3688 = vmatpush.bf16.msra.mxu3 %v9707_v61 }
 0x472   : > { %3650 = vmatpush.bf16.msra.mxu0 %v9708_v34  ;;  %3663 = vmatpush.bf16.msrb.mxu1 %v9709_v48 }
 0x473   : > { %3676 = vmatpush.bf16.msrb.mxu2 %v9710_v23  ;;  %3689 = vmatpush.bf16.msra.mxu3 %v9711_v21 }
 0x476   : > { %3651 = vmatpush.bf16.msra.mxu0 %v9712_v36  ;;  %3664 = vmatpush.bf16.msrb.mxu1 %v9713_v49 }
 0x477   : > { %3677 = vmatpush.bf16.msrb.mxu2 %v9714_v59  ;;  %3690 = vmatpush.bf16.msra.mxu3 %v9715_v30 }
 0x4b5   : > { %v3269_v7 = vpop.f32.mrf.mxu0  ;;  %v3282_v26 = vpop.f32.mrf.mxu1 }
 0x4b6   : > { %v3312_v61 = vadd.f32 %v3269_v7, %v9716_v1  ;;  %v3313_v34 = vadd.f32 %v3282_v26, %v9717_v51 }
 0x4b8   : > { %v6111_v37 = vmul.f32 -1.442695, %v3312_v61  ;;  %v6112_v48 = vmul.f32 -1.442695, %v3313_v34  ;;  %v9719_v34 = vld [vmem:[#allocation28_spill] sm:$0xff] }
 0x4ba   : > { %6771 = vpow2.f32 %v6111_v37 }
 0x4bb   : > { %6773 = vpow2.f32 %v6112_v48 }
 0x4bc   : > { %v3295_v23 = vpop.f32.mrf.mxu2  ;;  %v3308_v21 = vpop.f32.mrf.mxu3 }
 0x4bd   : > { %v3315_v36 = vadd.f32 %v3308_v21, %v9718_v54  ;;  %v3271_v47 = vpop.f32.mrf.mxu0  ;;  %v3284_v49 = vpop.f32.mrf.mxu1  ;;  %v3314_v37 = vadd.f32 %v3295_v23, %v9719_v34 }
 0x4bf   : > { %v6113_v31 = vmul.f32 -1.442695, %v3315_v36 }
 0x4c0   : > { %v6772_v59 = vpop.eup %6771 }
 0x4c1   : > { %v6774_v28 = vpop.eup %6773  ;;  %v3319_v30 = vadd.f32 1.0, %v6772_v59  ;;  %6775 = vpow2.f32 %v6113_v31  ;;  %v9721_v59 = vld [vmem:[#allocation60_spill] sm:$0xff] }
 0x4c2   : > { %v3338_v15 = vadd.f32 1.0, %v6774_v28  ;;  %v9720_v28 = vld [vmem:[#allocation54_spill] sm:$0xff] }
 0x4c3   : > { %6777 = vrcp.f32 %v3319_v30  ;;  %v3329_v50 = vand.u32 2147483647, %v3319_v30  ;;  %v3331_v23 = vand.u32 2147483648, %v3319_v30  ;;  %vm3325_vm9 = vweird.f32 %v3319_v30 }
 0x4c4   : > { %6779 = vrcp.f32 %v3338_v15  ;;  %v3297_v1 = vpop.f32.mrf.mxu2  ;;  %v3310_v26 = vpop.f32.mrf.mxu3  ;;  %v3350_v62 = vand.u32 2147483648, %v3338_v15  ;;  %v3348_v42 = vand.u32 2147483647, %v3338_v15  ;;  %vm3344_vm11 = vweird.f32 %v3338_v15 }
 0x4c5   : > { %vm3330_vm4 = vcmp.eq.f32.partialorder %v3329_v50, 8.507059e+37 }
 0x4c6   : > { %vm3349_vm10 = vcmp.eq.f32.partialorder %v3348_v42, 8.507059e+37 }
 0x4c7   : > { %v6776_v61 = vpop.eup %6775 }
 0x4c8   : > { %v8579_v48 = vadd.f32 1.0, %v6776_v61 }
 0x4c9   : > { %v6778_v51 = vpop.eup %6777  ;;  %v3389_v7 = vpop.f32.mrf.mxu0 }
 0x4ca   : > { %v3402_v21 = vpop.f32.mrf.mxu1  ;;  %v6780_v47 = vpop.eup %6779  ;;  %v3321_v54 = vmul.f32 %v6778_v51, %v3319_v30  ;;  %6781 = vrcp.f32 %v8579_v48  ;;  %v3432_v31 = vadd.f32 %v3389_v7, %v9720_v28  ;;  %vm3326_vm13 = vweird.f32 %v6778_v51 }
 0x4cb   : > { %v3340_v36 = vmul.f32 %v6780_v47, %v3338_v15  ;;  %6783 = vtanh.f32 %v3314_v37  ;;  %v3433_v1 = vadd.f32 %v3402_v21, %v9721_v59  ;;  %vm3345_vm8 = vweird.f32 %v6780_v47  ;;  %vm3327_vm0 = vmor %vm3325_vm9, %vm3326_vm13  ;;  %v9722_v15 = vld [vmem:[#allocation85_spill] sm:$0xff] }
 0x4cc   : > { %v3322_v49 = vsub.f32 1.0, %v3321_v54  ;;  %v6126_v34 = vmul.f32 -1.442695, %v3432_v31  ;;  %v3332_v21 = vor.u32 1.1754944e-38, %v3331_v23  ;;  %vm3346_vm5 = vmor %vm3344_vm11, %vm3345_vm8  ;;  %v3351_v59 = vor.u32 1.1754944e-38, %v3350_v62 }
 0x4cd   : > { %v3341_v26 = vsub.f32 1.0, %v3340_v36  ;;  %v6127_v55 = vmul.f32 -1.442695, %v3433_v1 }
 0x4ce   : > { %v3323_v61 = vmul.f32 %v6778_v51, %v3322_v49  ;;  %6785 = vpow2.f32 %v6126_v34 }
 0x4cf   : > { %v3342_v24 = vmul.f32 %v6780_v47, %v3341_v26  ;;  %6787 = vpow2.f32 %v6127_v55 }
 0x4d0   : > { %v6782_v60 = vpop.eup %6781  ;;  %v3324_v63 = vadd.f32 %v6778_v51, %v3323_v61  ;;  %v3415_v37 = vpop.f32.mrf.mxu2 }
 0x4d1   : > { %v3428_v7 = vpop.f32.mrf.mxu3  ;;  %v3343_v54 = vadd.f32 %v6780_v47, %v3342_v24  ;;  %v3360_v36 = vmul.f32 %v6782_v60, %v8579_v48  ;;  %v3391_v49 = vpop.f32.mrf.mxu0  ;;  %v3243_v24 = vsel %vm9439_vm12, %v8446_v35, 0.0  ;;  %v3370_v35 = vand.u32 2147483648, %v8579_v48 }
 0x4d2   : > { %v3404_v28 = vpop.f32.mrf.mxu1  ;;  %v6784_v31 = vpop.eup %6783  ;;  %v3328_v1 = vsel %vm3327_vm0, %v6778_v51, %v3324_v63  ;;  %v3435_v26 = vadd.f32 %v3428_v7, %v9722_v15 }
 0x4d3   : > { %v3333_v30 = vsel %vm3330_vm4, %v3332_v21, %v3328_v1  ;;  %v3347_v61 = vsel %vm3346_vm5, %v6780_v47, %v3343_v54  ;;  %v3361_v34 = vsub.f32 1.0, %v3360_v36  ;;  %vm3365_vm4 = vweird.f32 %v6782_v60  ;;  %v8599_v36 = vpop.permute.xlu1 %3503 }
 0x4d4   : > { %v3352_v23 = vsel %vm3349_vm10, %v3351_v59, %v3347_v61  ;;  %v3375_v55 = vmul.f32 %v6784_v31, %v3333_v30  ;;  %v6128_v49 = vmul.f32 -1.442695, %v3435_v26  ;;  %v6786_v5 = vpop.eup %6785  ;;  %vm3364_vm10 = vweird.f32 %v8579_v48  ;;  %v9724_v26 = vld [vmem:[#allocation62_spill] sm:$0xff] }
 0x4d5   : > { %v3374_v28 = vmul.f32 %v3352_v23, %v3243_v24  ;;  %v3362_v14 = vmul.f32 %v6782_v60, %v3361_v34  ;;  %v6788_v62 = vpop.eup %6787  ;;  %v8592_v50 = vadd.f32 1.0, %v6786_v5  ;;  %v3368_v54 = vand.u32 2147483647, %v8579_v48  ;;  %vm3366_vm13 = vmor %vm3364_vm10, %vm3365_vm4  ;;  %v9772_v23 = vld [vmem:[#allocation90_spill] sm:$0xff] }
 0x4d6   : > { %6789 = vpow2.f32 %v6128_v49  ;;  %v3458_v51 = vadd.f32 1.0, %v6788_v62  ;;  %vm3505_vm11 = vcmp.eq.s32.totalorder %v8599_v36, 1  ;;  %v3434_v30 = vadd.f32 %v3415_v37, %v9724_v26 }
 0x4d7   : > { %v8590_v63 = vadd.f32 %v3375_v55, %v3374_v28  ;;  %v3363_v42 = vadd.f32 %v6782_v60, %v3362_v14  ;;  %v3371_v14 = vor.u32 1.1754944e-38, %v3370_v35  ;;  %vm3369_vm8 = vcmp.eq.f32.partialorder %v3368_v54, 8.507059e+37  ;;  %vm8614_vm9 = vmpackc.low %vm3505_vm11, %vm3505_vm11 }
 0x4d8   : > { %v3417_v47 = vpop.f32.mrf.mxu2  ;;  %v3451_v28 = vand.u32 2147483648, %v8592_v50  ;;  %v3468_v35 = vand.u32 2147483647, %v3458_v51  ;;  %vm3445_vm4 = vweird.f32 %v8592_v50  ;;  %vm3464_vm10 = vweird.f32 %v3458_v51 }
 0x4d9   : > { %v3430_v7 = vpop.f32.mrf.mxu3  ;;  %6791 = vtanh.f32 %v8590_v63  ;;  %v3367_v5 = vsel %vm3366_vm13, %v6782_v60, %v3363_v42  ;;  %v3470_v42 = vand.u32 2147483648, %v3458_v51  ;;  %v3449_v47 = vand.u32 2147483647, %v8592_v50 }
 0x4da   : > { %6793 = vrcp.f32 %v8592_v50  ;;  %v3372_v1 = vsel %vm3369_vm8, %v3371_v14, %v3367_v5  ;;  %v3452_v14 = vor.u32 1.1754944e-38, %v3451_v28  ;;  %vm3469_vm1 = vcmp.eq.f32.partialorder %v3468_v35, 8.507059e+37 }
 0x4db   : > { %6795 = vrcp.f32 %v3458_v51  ;;  %vm3450_vm7 = vcmp.eq.f32.partialorder %v3449_v47, 8.507059e+37 }
 0x4dc   : > { %v6790_v21 = vpop.eup %6789 }
 0x4dd   : > { %v8601_v31 = vadd.f32 1.0, %v6790_v21 }
 0x4df   : > { %v6792_v59 = vpop.eup %6791  ;;  %6797 = vrcp.f32 %v8601_v31  ;;  %v3488_v28 = vand.u32 2147483647, %v8601_v31 }
 0x4e0   : > { %v6794_v15 = vpop.eup %6793  ;;  %v8605_v48 = vmul.f32 %v6792_v59, %v3372_v1  ;;  %6799 = vtanh.f32 %v3434_v30  ;;  %v3471_v1 = vor.u32 1.1754944e-38, %v3470_v42 }
 0x4e1   : > { %v6796_v61 = vpop.eup %6795  ;;  %v3441_v60 = vmul.f32 %v6794_v15, %v8592_v50  ;;  %vm3446_vm0 = vweird.f32 %v6794_v15  ;;  %v3250_v50 = vsel %vm9440_vm15, %v8489_v0, 0.0  ;;  %v3490_v0 = vand.u32 2147483648, %v8601_v31 }
 0x4e2   : > { %9723 = vst [vmem:[#allocation22_spill] sm:$0xff] %v8605_v48  ;;  %v3460_v34 = vmul.f32 %v6796_v61, %v3458_v51  ;;  %v6130_v24 = vpack.c.bf16 %v8605_v48, %v8605_v48  ;;  %vm3465_vm5 = vweird.f32 %v6796_v61  ;;  %vm3447_vm13 = vmor %vm3445_vm4, %vm3446_vm0  ;;  %v9753_v48 = vld [vmem:[#allocation119_spill] sm:$0xff] }
 0x4e3   : > { %v3442_v55 = vsub.f32 1.0, %v3441_v60  ;;  %vm3466_vm8 = vmor %vm3464_vm10, %vm3465_vm5  ;;  %v3491_v42 = vor.u32 1.1754944e-38, %v3490_v0  ;;  %vm3489_vm5 = vcmp.eq.f32.partialorder %v3488_v28, 8.507059e+37  ;;  %v9745_v0 = vld [vmem:[#allocation115_spill] sm:$0xff] }
 0x4e4   : > { %v3461_v49 = vsub.f32 1.0, %v3460_v34  ;;  %6131 = vmatmul.msk.bf16.vlgmr.msrb.gmra.mxu0 %vm8614_vm9, %v6130_v24  ;;  %6134 = vmatmul.msk.bf16.vlgmr.msra.gmra.mxu1 %vm8614_vm9, %v6130_v24  ;;  %v9746_v28 = vld [vmem:[#allocation99_spill] sm:$0xff] }
 0x4e5   : > { %v6798_v37 = vpop.eup %6797  ;;  %v3443_v62 = vmul.f32 %v6794_v15, %v3442_v55  ;;  %6137 = vmatmul.msk.bf16.vlgmr.msra.gmra.mxu2 %vm8614_vm9, %v6130_v24  ;;  %6140 = vmatmul.msk.bf16.vlgmr.msrb.gmra.mxu3 %vm8614_vm9, %v6130_v24 }
 0x4e6   : > { %v3462_v7 = vmul.f32 %v6796_v61, %v3461_v49  ;;  %v3480_v54 = vmul.f32 %v6798_v37, %v8601_v31  ;;  %3776 = vmatpush.bf16.msrb.mxu0 %v9586_v39  ;;  %3789 = vmatpush.bf16.msra.mxu1 %v7835_v12  ;;  %v6800_v30 = vpop.eup %6799 }
 0x4e7   : > { %v3444_v21 = vadd.f32 %v6794_v15, %v3443_v62  ;;  %3802 = vmatpush.bf16.msra.mxu2 %v9587_v2  ;;  %3815 = vmatpush.bf16.msrb.mxu3 %v7841_v3 }
 0x4e8   : > { %v3463_v5 = vadd.f32 %v6796_v61, %v3462_v7  ;;  %v3481_v59 = vsub.f32 1.0, %v3480_v54  ;;  %v8656_v7 = vpop.permute.xlu2 %3510 }
 0x4e9   : > { %v3448_v26 = vsel %vm3447_vm13, %v6794_v15, %v3444_v21  ;;  %vm3512_vm4 = vcmp.eq.s32.totalorder %v8656_v7, 1  ;;  %v9730_v21 = vld [vmem:[#allocation87_spill] sm:$0xff] }
 0x4ea   : > { %v3453_v60 = vsel %vm3450_vm7, %v3452_v14, %v3448_v26  ;;  %v3467_v34 = vsel %vm3466_vm8, %v6796_v61, %v3463_v5  ;;  %3777 = vmatpush.bf16.msrb.mxu0 %v9588_v32  ;;  %3790 = vmatpush.bf16.msra.mxu1 %v7850_v17  ;;  %v3482_v55 = vmul.f32 %v6798_v37, %v3481_v59  ;;  %vm3485_vm7 = vweird.f32 %v6798_v37  ;;  %vm8670_vm10 = vmpackc.low %vm3512_vm4, %vm3512_vm4  ;;  %v9731_v5 = vld [vmem:[#allocation90_spill] sm:$0xff]  ;;  %v9732_v14 = vld [vmem:[#allocation92_spill] sm:$0xff] }
 0x4eb   : > { %v3472_v51 = vsel %vm3469_vm1, %v3471_v1, %v3467_v34  ;;  %v3495_v24 = vmul.f32 %v6800_v30, %v3453_v60  ;;  %3803 = vmatpush.bf16.msra.mxu2 %v9589_v13  ;;  %3816 = vmatpush.bf16.msrb.mxu3 %v7852_v19  ;;  %vm3484_vm1 = vweird.f32 %v8601_v31  ;;  %v9733_v59 = vld [vmem:[#allocation108_spill] sm:$0xff]  ;;  %v9734_v1 = vld [vmem:[#allocation93_spill] sm:$0xff]  ;;  %v9736_v30 = vld [vmem:[#allocation94_spill] sm:$0xff] }
 0x4ec   : > { %v3494_v15 = vmul.f32 %v3472_v51, %v3250_v50  ;;  %v3483_v61 = vadd.f32 %v6798_v37, %v3482_v55  ;;  %vm3486_vm0 = vmor %vm3484_vm1, %vm3485_vm7  ;;  %v9735_v26 = vld [vmem:[#allocation109_spill] sm:$0xff]  ;;  %v9737_v60 = vld [vmem:[#allocation111_spill] sm:$0xff] }
 0x4ed   : > { %v9738_v34 = vld [vmem:[#allocation95_spill] sm:$0xff]  ;;  %v9739_v50 = vld [vmem:[#allocation112_spill] sm:$0xff]  ;;  %v9742_v55 = vld [vmem:[#allocation97_spill] sm:$0xff] }
 0x4ee   : > { %v8642_v49 = vadd.f32 %v3495_v24, %v3494_v15  ;;  %3778 = vmatpush.bf16.msrb.mxu0 %v9590_v11  ;;  %3791 = vmatpush.bf16.msra.mxu1 %v7858_v6  ;;  %v3487_v62 = vsel %vm3486_vm0, %v6798_v37, %v3483_v61  ;;  %v9740_v51 = vld [vmem:[#allocation96_spill] sm:$0xff]  ;;  %v9741_v24 = vld [vmem:[#allocation113_spill] sm:$0xff]  ;;  %v9743_v15 = vld [vmem:[#allocation114_spill] sm:$0xff] }
 0x4ef   : > { %3804 = vmatpush.bf16.msra.mxu2 %v9592_v41  ;;  %3817 = vmatpush.bf16.msrb.mxu3 %v7861_v9  ;;  %v3492_v35 = vsel %vm3489_vm5, %v3491_v42, %v3487_v62  ;;  %v9744_v61 = vld [vmem:[#allocation98_spill] sm:$0xff]  ;;  %v9747_v62 = vld [vmem:[#allocation116_spill] sm:$0xff] }
 0x4f0   : > { %6801 = vtanh.f32 %v8642_v49  ;;  %v9748_v42 = vld [vmem:[#allocation100_spill] sm:$0xff] }
 0x4f2   : > { %3779 = vmatpush.bf16.msrb.mxu0 %v9594_v56  ;;  %3792 = vmatpush.bf16.msra.mxu1 %v7867_v33 }
 0x4f3   : > { %3805 = vmatpush.bf16.msra.mxu2 %v9595_v53  ;;  %3818 = vmatpush.bf16.msrb.mxu3 %v7872_v57 }
 0x4f6   : > { %v6802_v47 = vpop.eup %6801  ;;  %3780 = vmatpush.bf16.msrb.mxu0 %v7804_v4  ;;  %3793 = vmatpush.bf16.msra.mxu1 %v7880_v44 }
 0x4f7   : > { %v8660_v31 = vmul.f32 %v6802_v47, %v3492_v35  ;;  %3806 = vmatpush.bf16.msra.mxu2 %v7807_v10  ;;  %3819 = vmatpush.bf16.msrb.mxu3 %v7883_v8  ;;  %v9749_v47 = vld [vmem:[#allocation117_spill] sm:$0xff] }
 0x4f8   : > { %v9750_v35 = vld [vmem:[#allocation101_spill] sm:$0xff] }
 0x4f9   : > { %9727 = vst [vmem:[#allocation30_spill] sm:$0xff] %v8660_v31  ;;  %v6145_v37 = vpack.c.bf16 %v8660_v31, %v8660_v31  ;;  %v9752_v31 = vld [vmem:[#allocation102_spill] sm:$0xff] }
 0x4fa   : > { %3781 = vmatpush.bf16.msrb.mxu0 %v7813_v46  ;;  %3794 = vmatpush.bf16.msra.mxu1 %v7887_v58 }
 0x4fb   : > { %6146 = vmatmul.msk.bf16.vlgmr.msra.gmra.mxu0 %vm8670_vm10, %v6145_v37  ;;  %6149 = vmatmul.msk.bf16.vlgmr.msrb.gmra.mxu1 %vm8670_vm10, %v6145_v37 }
 0x4fc   : > { %6152 = vmatmul.msk.bf16.vlgmr.msrb.gmra.mxu2 %vm8670_vm10, %v6145_v37  ;;  %6155 = vmatmul.msk.bf16.vlgmr.msra.gmra.mxu3 %vm8670_vm10, %v6145_v37  ;;  %v9751_v37 = vld [vmem:[#allocation118_spill] sm:$0xff] }
 0x4fd   : > { %3807 = vmatpush.bf16.msra.mxu2 %v7815_v40  ;;  %3820 = vmatpush.bf16.msrb.mxu3 %v7890_v43 }
 0x4fe   : > { %3782 = vmatpush.bf16.msrb.mxu0 %v7823_v22  ;;  %3795 = vmatpush.bf16.msra.mxu1 %v7893_v25 }
 0x501   : > { %3808 = vmatpush.bf16.msra.mxu2 %v7825_v27  ;;  %3821 = vmatpush.bf16.msrb.mxu3 %v7896_v16 }
 0x502   : > { %3783 = vmatpush.bf16.msrb.mxu0 %v7833_v38  ;;  %3796 = vmatpush.bf16.msra.mxu1 %v7901_v18 }
 0x505   : > { %3809 = vmatpush.bf16.msra.mxu2 %v9730_v21  ;;  %3822 = vmatpush.bf16.msrb.mxu3 %v9731_v5 }
 0x506   : > { %3896 = vmatpush.bf16.msra.mxu0 %v9684_v29  ;;  %3909 = vmatpush.bf16.msrb.mxu1 %v9685_v52 }
 0x509   : > { %3922 = vmatpush.bf16.msrb.mxu2 %v9732_v14  ;;  %3935 = vmatpush.bf16.msra.mxu3 %v9733_v59 }
 0x50a   : > { %3897 = vmatpush.bf16.msra.mxu0 %v9734_v1  ;;  %3910 = vmatpush.bf16.msrb.mxu1 %v9735_v26 }
 0x50d   : > { %3923 = vmatpush.bf16.msrb.mxu2 %v9736_v30  ;;  %3936 = vmatpush.bf16.msra.mxu3 %v9737_v60 }
 0x50e   : > { %3898 = vmatpush.bf16.msra.mxu0 %v9738_v34  ;;  %3911 = vmatpush.bf16.msrb.mxu1 %v9739_v50 }
 0x511   : > { %3924 = vmatpush.bf16.msrb.mxu2 %v9740_v51  ;;  %3937 = vmatpush.bf16.msra.mxu3 %v9741_v24  ;;  %v9764_v24 = vld [vmem:[#allocation41_spill] sm:$0xff] }
 0x512   : > { %3899 = vmatpush.bf16.msra.mxu0 %v9742_v55  ;;  %3912 = vmatpush.bf16.msrb.mxu1 %v9743_v15  ;;  %v9763_v15 = vld [vmem:[#allocation35_spill] sm:$0xff] }
 0x515   : > { %3925 = vmatpush.bf16.msrb.mxu2 %v9744_v61  ;;  %3938 = vmatpush.bf16.msra.mxu3 %v9745_v0  ;;  %v9756_v0 = vld [vmem:[#allocation104_spill] sm:$0xff]  ;;  %v9762_v61 = vld [vmem:[#allocation38_spill] sm:$0xff] }
 0x516   : > { %3900 = vmatpush.bf16.msra.mxu0 %v9746_v28  ;;  %3913 = vmatpush.bf16.msrb.mxu1 %v9747_v62  ;;  %v9757_v28 = vld [vmem:[#allocation121_spill] sm:$0xff] }
 0x517   : > { %v9758_v62 = vld [vmem:[#allocation105_spill] sm:$0xff] }
 0x519   : > { %3926 = vmatpush.bf16.msrb.mxu2 %v9748_v42  ;;  %3939 = vmatpush.bf16.msra.mxu3 %v9749_v47  ;;  %v9759_v42 = vld [vmem:[#allocation122_spill] sm:$0xff]  ;;  %v9760_v47 = vld [vmem:[#allocation107_spill] sm:$0xff] }
 0x51a   : > { %3901 = vmatpush.bf16.msra.mxu0 %v9750_v35  ;;  %3914 = vmatpush.bf16.msrb.mxu1 %v9751_v37  ;;  %v9761_v35 = vld [vmem:[#allocation123_spill] sm:$0xff] }
 0x51d   : > { %3927 = vmatpush.bf16.msrb.mxu2 %v9752_v31  ;;  %3940 = vmatpush.bf16.msra.mxu3 %v9753_v48 }
 0x51e   : > { %3902 = vmatpush.bf16.msra.mxu0 %v9754_v20  ;;  %3915 = vmatpush.bf16.msrb.mxu1 %v9755_v45 }
 0x521   : > { %3928 = vmatpush.bf16.msrb.mxu2 %v9756_v0  ;;  %3941 = vmatpush.bf16.msra.mxu3 %v9757_v28 }
 0x522   : > { %3903 = vmatpush.bf16.msra.mxu0 %v9758_v62  ;;  %3916 = vmatpush.bf16.msrb.mxu1 %v9759_v42 }
 0x525   : > { %3929 = vmatpush.bf16.msrb.mxu2 %v9760_v47  ;;  %3942 = vmatpush.bf16.msra.mxu3 %v9761_v35 }
 0x561   : > { %v3533_v37 = vpop.f32.mrf.mxu0  ;;  %v3546_v31 = vpop.f32.mrf.mxu1 }
 0x562   : > { %v3576_v48 = vadd.f32 %v3533_v37, %v9762_v61  ;;  %v3577_v20 = vadd.f32 %v3546_v31, %v9763_v15 }
 0x564   : > { %v6141_v55 = vmul.f32 -1.442695, %v3576_v48  ;;  %v6142_v45 = vmul.f32 -1.442695, %v3577_v20  ;;  %v9765_v20 = vld [vmem:[#allocation32_spill] sm:$0xff] }
 0x566   : > { %6803 = vpow2.f32 %v6141_v55 }
 0x567   : > { %6805 = vpow2.f32 %v6142_v45 }
 0x568   : > { %v3559_v0 = vpop.f32.mrf.mxu2  ;;  %v3572_v28 = vpop.f32.mrf.mxu3 }
 0x569   : > { %v3579_v62 = vadd.f32 %v3572_v28, %v9764_v24  ;;  %v3535_v51 = vpop.f32.mrf.mxu0  ;;  %v3548_v42 = vpop.f32.mrf.mxu1  ;;  %v3578_v55 = vadd.f32 %v3559_v0, %v9765_v20  ;;  %v9767_v0 = vld [vmem:[#allocation56_spill] sm:$0xff] }
 0x56b   : > { %v6143_v50 = vmul.f32 -1.442695, %v3579_v62 }
 0x56c   : > { %v6804_v47 = vpop.eup %6803 }
 0x56d   : > { %v6806_v34 = vpop.eup %6805  ;;  %v3583_v35 = vadd.f32 1.0, %v6804_v47  ;;  %6807 = vpow2.f32 %v6143_v50 }
 0x56e   : > { %v3602_v60 = vadd.f32 1.0, %v6806_v34 }
 0x56f   : > { %6809 = vrcp.f32 %v3583_v35  ;;  %v3593_v42 = vand.u32 2147483647, %v3583_v35  ;;  %v3595_v47 = vand.u32 2147483648, %v3583_v35  ;;  %vm3589_vm1 = vweird.f32 %v3583_v35 }
 0x570   : > { %6811 = vrcp.f32 %v3602_v60  ;;  %v3561_v61 = vpop.f32.mrf.mxu2  ;;  %v3574_v31 = vpop.f32.mrf.mxu3  ;;  %v3614_v30 = vand.u32 2147483648, %v3602_v60  ;;  %v3612_v1 = vand.u32 2147483647, %v3602_v60  ;;  %vm3608_vm7 = vweird.f32 %v3602_v60 }
 0x571   : > { %v9766_v61 = vld [vmem:[#allocation72_spill] sm:$0xff]  ;;  %vm3594_vm12 = vcmp.eq.f32.partialorder %v3593_v42, 8.507059e+37 }
 0x572   : > { %vm3613_vm15 = vcmp.eq.f32.partialorder %v3612_v1, 8.507059e+37 }
 0x573   : > { %v6808_v48 = vpop.eup %6807 }
 0x574   : > { %v8730_v45 = vadd.f32 1.0, %v6808_v48 }
 0x575   : > { %v6810_v15 = vpop.eup %6809 }
 0x576   : > { %v6812_v37 = vpop.eup %6811  ;;  %v3585_v24 = vmul.f32 %v6810_v15, %v3583_v35  ;;  %6813 = vrcp.f32 %v8730_v45  ;;  %vm3590_vm13 = vweird.f32 %v6810_v15  ;;  %v3507_v35 = vsel %vm3505_vm11, %v8590_v63, 0.0 }
 0x577   : > { %v3604_v51 = vmul.f32 %v6812_v37, %v3602_v60  ;;  %6815 = vtanh.f32 %v3578_v55  ;;  %vm3609_vm8 = vweird.f32 %v6812_v37  ;;  %vm3591_vm0 = vmor %vm3589_vm1, %vm3590_vm13  ;;  %v3634_v63 = vand.u32 2147483648, %v8730_v45 }
 0x578   : > { %v3586_v28 = vsub.f32 1.0, %v3585_v24  ;;  %v3653_v62 = vpop.f32.mrf.mxu0  ;;  %v3666_v50 = vpop.f32.mrf.mxu1  ;;  %vm3610_vm5 = vmor %vm3608_vm7, %vm3609_vm8 }
 0x579   : > { %v3605_v34 = vsub.f32 1.0, %v3604_v51  ;;  %v3696_v31 = vadd.f32 %v3653_v62, %v9766_v61  ;;  %v3697_v48 = vadd.f32 %v3666_v50, %v9767_v0  ;;  %v3596_v51 = vor.u32 1.1754944e-38, %v3595_v47 }
 0x57a   : > { %v3587_v26 = vmul.f32 %v6810_v15, %v3586_v28  ;;  %v3615_v28 = vor.u32 1.1754944e-38, %v3614_v30 }
 0x57b   : > { %v3606_v20 = vmul.f32 %v6812_v37, %v3605_v34  ;;  %v6156_v59 = vmul.f32 -1.442695, %v3696_v31  ;;  %v6157_v55 = vmul.f32 -1.442695, %v3697_v48  ;;  %v9768_v48 = vld [vmem:[#allocation82_spill] sm:$0xff] }
 0x57c   : > { %v6814_v14 = vpop.eup %6813  ;;  %v3588_v24 = vadd.f32 %v6810_v15, %v3587_v26 }
 0x57d   : > { %v3607_v52 = vadd.f32 %v6812_v37, %v3606_v20  ;;  %v3624_v29 = vmul.f32 %v6814_v14, %v8730_v45  ;;  %6817 = vpow2.f32 %v6156_v59  ;;  %v6816_v62 = vpop.eup %6815 }
 0x57e   : > { %v3592_v61 = vsel %vm3591_vm0, %v6810_v15, %v3588_v24  ;;  %6819 = vpow2.f32 %v6157_v55 }
 0x57f   : > { %v3597_v50 = vsel %vm3594_vm12, %v3596_v51, %v3592_v61  ;;  %v3611_v34 = vsel %vm3610_vm5, %v6812_v37, %v3607_v52  ;;  %v3625_v31 = vsub.f32 1.0, %v3624_v29  ;;  %v3679_v60 = vpop.f32.mrf.mxu2  ;;  %v3692_v26 = vpop.f32.mrf.mxu3  ;;  %vm3629_vm12 = vweird.f32 %v6814_v14 }
 0x580   : > { %v3616_v47 = vsel %vm3613_vm15, %v3615_v28, %v3611_v34  ;;  %v3639_v0 = vmul.f32 %v6816_v62, %v3597_v50  ;;  %v3699_v59 = vadd.f32 %v3692_v26, %v9768_v48  ;;  %v3655_v20 = vpop.f32.mrf.mxu0  ;;  %v3668_v5 = vpop.f32.mrf.mxu1  ;;  %vm3628_vm15 = vweird.f32 %v8730_v45 }
 0x581   : > { %v3638_v30 = vmul.f32 %v3616_v47, %v3507_v35  ;;  %v3626_v15 = vmul.f32 %v6814_v14, %v3625_v31  ;;  %v3632_v5 = vand.u32 2147483647, %v8730_v45  ;;  %vm3630_vm13 = vmor %vm3628_vm15, %vm3629_vm12  ;;  %v3635_v61 = vor.u32 1.1754944e-38, %v3634_v63 }
 0x582   : > { %v6158_v42 = vmul.f32 -1.442695, %v3699_v59 }
 0x583   : > { %v6818_v24 = vpop.eup %6817  ;;  %v8740_v55 = vadd.f32 %v3639_v0, %v3638_v30  ;;  %v3627_v29 = vadd.f32 %v6814_v14, %v3626_v15  ;;  %vm3633_vm8 = vcmp.eq.f32.partialorder %v3632_v5, 8.507059e+37  ;;  %v9770_v0 = vld [vmem:[#allocation57_spill] sm:$0xff] }
 0x584   : > { %v6820_v52 = vpop.eup %6819  ;;  %v3703_v1 = vadd.f32 1.0, %v6818_v24  ;;  %6821 = vpow2.f32 %v6158_v42  ;;  %v3698_v48 = vadd.f32 %v3679_v60, %v9770_v0  ;;  %v3514_v0 = vsel %vm3512_vm4, %v8642_v49, 0.0 }
 0x585   : > { %6823 = vtanh.f32 %v8740_v55  ;;  %v3722_v37 = vadd.f32 1.0, %v6820_v52  ;;  %v3631_v28 = vsel %vm3630_vm13, %v6814_v14, %v3627_v29 }
 0x586   : > { %6825 = vrcp.f32 %v3703_v1  ;;  %v3636_v31 = vsel %vm3633_vm8, %v3635_v61, %v3631_v28  ;;  %v3715_v42 = vand.u32 2147483648, %v3703_v1  ;;  %v3713_v29 = vand.u32 2147483647, %v3703_v1 }
 0x587   : > { %6827 = vrcp.f32 %v3722_v37  ;;  %v3681_v51 = vpop.f32.mrf.mxu2  ;;  %v3694_v62 = vpop.f32.mrf.mxu3  ;;  %v3734_v24 = vand.u32 2147483648, %v3722_v37  ;;  %v3732_v63 = vand.u32 2147483647, %v3722_v37  ;;  %vm3709_vm0 = vweird.f32 %v3703_v1 }
 0x588   : > { %vm3728_vm5 = vweird.f32 %v3722_v37  ;;  %v3716_v62 = vor.u32 1.1754944e-38, %v3715_v42  ;;  %vm3714_vm15 = vcmp.eq.f32.partialorder %v3713_v29, 8.507059e+37 }
 0x589   : > { %v3735_v54 = vor.u32 1.1754944e-38, %v3734_v24  ;;  %vm3733_vm13 = vcmp.eq.f32.partialorder %v3732_v63, 8.507059e+37  ;;  %v9774_v63 = vld [vmem:[#allocation106_spill] sm:$0xff] }
 0x58a   : > { %v6822_v50 = vpop.eup %6821 }
 0x58b   : > { %v6824_v34 = vpop.eup %6823  ;;  %v8746_v26 = vadd.f32 1.0, %v6822_v50 }
 0x58c   : > { %v6826_v35 = vpop.eup %6825  ;;  %v8748_v47 = vmul.f32 %v6824_v34, %v3636_v31 }
 0x58d   : > { %v6828_v59 = vpop.eup %6827  ;;  %v3705_v45 = vmul.f32 %v6826_v35, %v3703_v1  ;;  %6829 = vrcp.f32 %v8746_v26  ;;  %vm3710_vm7 = vweird.f32 %v6826_v35  ;;  %v3754_v49 = vand.u32 2147483648, %v8746_v26 }
 0x58e   : > { %9769 = vst [vmem:[#allocation61_spill] sm:$0xff] %v8748_v47  ;;  %v3724_v20 = vmul.f32 %v6828_v59, %v3722_v37  ;;  %v6160_v14 = vpack.c.bf16 %v8748_v47, %v8748_v47  ;;  %6831 = vtanh.f32 %v3698_v48  ;;  %vm3729_vm1 = vweird.f32 %v6828_v59  ;;  %vm3711_vm12 = vmor %vm3709_vm0, %vm3710_vm7  ;;  %v9800_v47 = vld [vmem:[#allocation121_spill] sm:$0xff] }
 0x58f   : > { %v3706_v30 = vsub.f32 1.0, %v3705_v45  ;;  %vm3748_vm7 = vweird.f32 %v8746_v26  ;;  %v3755_v42 = vor.u32 1.1754944e-38, %v3754_v49  ;;  %v9792_v49 = vld [vmem:[#allocation117_spill] sm:$0xff] }
 0x590   : > { %v3725_v15 = vsub.f32 1.0, %v3724_v20  ;;  %6161 = vmatmul.msk.bf16.vlgmr.msrb.gmra.mxu0 %vm8670_vm10, %v6160_v14  ;;  %6164 = vmatmul.msk.bf16.vlgmr.msra.gmra.mxu1 %vm8670_vm10, %v6160_v14 }
 0x591   : > { %v3707_v52 = vmul.f32 %v6826_v35, %v3706_v30  ;;  %6167 = vmatmul.msk.bf16.vlgmr.msra.gmra.mxu2 %vm8670_vm10, %v6160_v14  ;;  %6170 = vmatmul.msk.bf16.vlgmr.msrb.gmra.mxu3 %vm8670_vm10, %v6160_v14  ;;  %vm3730_vm10 = vmor %vm3728_vm5, %vm3729_vm1  ;;  %v3752_v14 = vand.u32 2147483647, %v8746_v26 }
 0x592   : > { %v3726_v60 = vmul.f32 %v6828_v59, %v3725_v15  ;;  %4028 = vmatpush.bf16.msrb.mxu0 %v9586_v39  ;;  %4041 = vmatpush.bf16.msra.mxu1 %v7835_v12 }
 0x593   : > { %v6830_v5 = vpop.eup %6829  ;;  %v3708_v51 = vadd.f32 %v6826_v35, %v3707_v52  ;;  %4054 = vmatpush.bf16.msra.mxu2 %v9587_v2  ;;  %4067 = vmatpush.bf16.msrb.mxu3 %v7841_v3  ;;  %vm3753_vm0 = vcmp.eq.f32.partialorder %v3752_v14, 8.507059e+37  ;;  %v9793_v14 = vld [vmem:[#allocation101_spill] sm:$0xff] }
 0x594   : > { %v3727_v28 = vadd.f32 %v6828_v59, %v3726_v60  ;;  %v3744_v61 = vmul.f32 %v6830_v5, %v8746_v26  ;;  %v6832_v1 = vpop.eup %6831  ;;  %vm3749_vm8 = vweird.f32 %v6830_v5  ;;  %v9773_v60 = vld [vmem:[#allocation91_spill] sm:$0xff] }
 0x595   : > { %v3712_v50 = vsel %vm3711_vm12, %v6826_v35, %v3708_v51  ;;  %vm3750_vm1 = vmor %vm3748_vm7, %vm3749_vm8  ;;  %v9776_v51 = vld [vmem:[#allocation108_spill] sm:$0xff] }
 0x596   : > { %v3717_v34 = vsel %vm3714_vm15, %v3716_v62, %v3712_v50  ;;  %v3731_v31 = vsel %vm3730_vm10, %v6828_v59, %v3727_v28  ;;  %v3745_v37 = vsub.f32 1.0, %v3744_v61  ;;  %4029 = vmatpush.bf16.msrb.mxu0 %v9588_v32  ;;  %4042 = vmatpush.bf16.msra.mxu1 %v7850_v17  ;;  %v9777_v62 = vld [vmem:[#allocation93_spill] sm:$0xff]  ;;  %v9779_v61 = vld [vmem:[#allocation94_spill] sm:$0xff]  ;;  %v9781_v50 = vld [vmem:[#allocation95_spill] sm:$0xff] }
 0x597   : > { %v3736_v48 = vsel %vm3733_vm13, %v3735_v54, %v3731_v31  ;;  %v3759_v45 = vmul.f32 %v6832_v1, %v3717_v34  ;;  %4055 = vmatpush.bf16.msra.mxu2 %v9589_v13  ;;  %4068 = vmatpush.bf16.msrb.mxu3 %v7852_v19  ;;  %v9778_v28 = vld [vmem:[#allocation109_spill] sm:$0xff]  ;;  %v9780_v54 = vld [vmem:[#allocation111_spill] sm:$0xff]  ;;  %v9782_v1 = vld [vmem:[#allocation112_spill] sm:$0xff] }
 0x598   : > { %v3758_v20 = vmul.f32 %v3736_v48, %v3514_v0  ;;  %v3746_v30 = vmul.f32 %v6830_v5, %v3745_v37  ;;  %v9783_v34 = vld [vmem:[#allocation96_spill] sm:$0xff]  ;;  %v9784_v31 = vld [vmem:[#allocation113_spill] sm:$0xff]  ;;  %v9786_v0 = vld [vmem:[#allocation114_spill] sm:$0xff] }
 0x599   : > { %v9785_v37 = vld [vmem:[#allocation97_spill] sm:$0xff]  ;;  %v9787_v48 = vld [vmem:[#allocation98_spill] sm:$0xff] }
 0x59a   : > { %v8776_v35 = vadd.f32 %v3759_v45, %v3758_v20  ;;  %v3747_v59 = vadd.f32 %v6830_v5, %v3746_v30  ;;  %4030 = vmatpush.bf16.msrb.mxu0 %v9590_v11  ;;  %4043 = vmatpush.bf16.msra.mxu1 %v7858_v6  ;;  %v9788_v45 = vld [vmem:[#allocation115_spill] sm:$0xff]  ;;  %v9790_v30 = vld [vmem:[#allocation116_spill] sm:$0xff] }
 0x59b   : > { %4056 = vmatpush.bf16.msra.mxu2 %v9592_v41  ;;  %4069 = vmatpush.bf16.msrb.mxu3 %v7861_v9  ;;  %v9789_v20 = vld [vmem:[#allocation99_spill] sm:$0xff] }
 0x59c   : > { %6833 = vtanh.f32 %v8776_v35  ;;  %v3751_v15 = vsel %vm3750_vm1, %v6830_v5, %v3747_v59  ;;  %v9775_v5 = vld [vmem:[#allocation92_spill] sm:$0xff] }
 0x59d   : > { %v3756_v52 = vsel %vm3753_vm0, %v3755_v42, %v3751_v15  ;;  %v9791_v59 = vld [vmem:[#allocation100_spill] sm:$0xff]  ;;  %v9794_v15 = vld [vmem:[#allocation118_spill] sm:$0xff] }
 0x59e   : > { %4031 = vmatpush.bf16.msrb.mxu0 %v9594_v56  ;;  %4044 = vmatpush.bf16.msra.mxu1 %v7867_v33  ;;  %v9795_v42 = vld [vmem:[#allocation102_spill] sm:$0xff] }
 0x59f   : > { %4057 = vmatpush.bf16.msra.mxu2 %v9595_v53  ;;  %4070 = vmatpush.bf16.msrb.mxu3 %v7872_v57 }
 0x5a2   : > { %v6834_v24 = vpop.eup %6833  ;;  %4032 = vmatpush.bf16.msrb.mxu0 %v7804_v4  ;;  %4045 = vmatpush.bf16.msra.mxu1 %v7880_v44 }
 0x5a3   : > { %v8790_v29 = vmul.f32 %v6834_v24, %v3756_v52  ;;  %4058 = vmatpush.bf16.msra.mxu2 %v7807_v10  ;;  %4071 = vmatpush.bf16.msrb.mxu3 %v7883_v8  ;;  %v9796_v24 = vld [vmem:[#allocation119_spill] sm:$0xff] }
 0x5a4   : > { %v9797_v52 = vld [vmem:[#allocation103_spill] sm:$0xff] }
 0x5a5   : > { %9771 = vst [vmem:[#allocation69_spill] sm:$0xff] %v8790_v29  ;;  %v6175_v26 = vpack.c.bf16 %v8790_v29, %v8790_v29  ;;  %v9799_v29 = vld [vmem:[#allocation104_spill] sm:$0xff] }
 0x5a6   : > { %4033 = vmatpush.bf16.msrb.mxu0 %v7813_v46  ;;  %4046 = vmatpush.bf16.msra.mxu1 %v7887_v58 }
 0x5a7   : > { %6176 = vmatmul.msk.bf16.vlgmr.msra.gmra.mxu0 %vm8614_vm9, %v6175_v26  ;;  %6179 = vmatmul.msk.bf16.vlgmr.msrb.gmra.mxu1 %vm8614_vm9, %v6175_v26 }
 0x5a8   : > { %6182 = vmatmul.msk.bf16.vlgmr.msrb.gmra.mxu2 %vm8614_vm9, %v6175_v26  ;;  %6185 = vmatmul.msk.bf16.vlgmr.msra.gmra.mxu3 %vm8614_vm9, %v6175_v26  ;;  %v9798_v26 = vld [vmem:[#allocation120_spill] sm:$0xff] }
 0x5a9   : > { %4059 = vmatpush.bf16.msra.mxu2 %v7815_v40  ;;  %4072 = vmatpush.bf16.msrb.mxu3 %v7890_v43 }
 0x5aa   : > { %4034 = vmatpush.bf16.msrb.mxu0 %v7823_v22  ;;  %4047 = vmatpush.bf16.msra.mxu1 %v7893_v25 }
 0x5ad   : > { %4060 = vmatpush.bf16.msra.mxu2 %v7825_v27  ;;  %4073 = vmatpush.bf16.msrb.mxu3 %v7896_v16 }
 0x5ae   : > { %4035 = vmatpush.bf16.msrb.mxu0 %v7833_v38  ;;  %4048 = vmatpush.bf16.msra.mxu1 %v7901_v18 }
 0x5b1   : > { %4061 = vmatpush.bf16.msra.mxu2 %v9730_v21  ;;  %4074 = vmatpush.bf16.msrb.mxu3 %v9772_v23 }
 0x5b2   : > { %4148 = vmatpush.bf16.msra.mxu0 %v9773_v60  ;;  %4161 = vmatpush.bf16.msrb.mxu1 %v9774_v63 }
 0x5b5   : > { %4174 = vmatpush.bf16.msrb.mxu2 %v9775_v5  ;;  %4187 = vmatpush.bf16.msra.mxu3 %v9776_v51 }
 0x5b6   : > { %4149 = vmatpush.bf16.msra.mxu0 %v9777_v62  ;;  %4162 = vmatpush.bf16.msrb.mxu1 %v9778_v28 }
 0x5b9   : > { %4175 = vmatpush.bf16.msrb.mxu2 %v9779_v61  ;;  %4188 = vmatpush.bf16.msra.mxu3 %v9780_v54 }
 0x5ba   : > { %4150 = vmatpush.bf16.msra.mxu0 %v9781_v50  ;;  %4163 = vmatpush.bf16.msrb.mxu1 %v9782_v1 }
 0x5bd   : > { %4176 = vmatpush.bf16.msrb.mxu2 %v9783_v34  ;;  %4189 = vmatpush.bf16.msra.mxu3 %v9784_v31 }
 0x5be   : > { %4151 = vmatpush.bf16.msra.mxu0 %v9785_v37  ;;  %4164 = vmatpush.bf16.msrb.mxu1 %v9786_v0  ;;  %v9807_v0 = vld [vmem:[#allocation44_spill] sm:$0xff] }
 0x5c1   : > { %4177 = vmatpush.bf16.msrb.mxu2 %v9787_v48  ;;  %4190 = vmatpush.bf16.msra.mxu3 %v9788_v45  ;;  %v9806_v45 = vld [vmem:[#allocation39_spill] sm:$0xff] }
 0x5c2   : > { %4152 = vmatpush.bf16.msra.mxu0 %v9789_v20  ;;  %4165 = vmatpush.bf16.msrb.mxu1 %v9790_v30  ;;  %v9801_v30 = vld [vmem:[#allocation105_spill] sm:$0xff]  ;;  %v9805_v20 = vld [vmem:[#allocation42_spill] sm:$0xff] }
 0x5c5   : > { %4178 = vmatpush.bf16.msrb.mxu2 %v9791_v59  ;;  %4191 = vmatpush.bf16.msra.mxu3 %v9792_v49  ;;  %v9802_v59 = vld [vmem:[#allocation122_spill] sm:$0xff]  ;;  %v9803_v49 = vld [vmem:[#allocation107_spill] sm:$0xff] }
 0x5c6   : > { %4153 = vmatpush.bf16.msra.mxu0 %v9793_v14  ;;  %4166 = vmatpush.bf16.msrb.mxu1 %v9794_v15  ;;  %v9804_v14 = vld [vmem:[#allocation123_spill] sm:$0xff] }
 0x5c9   : > { %4179 = vmatpush.bf16.msrb.mxu2 %v9795_v42  ;;  %4192 = vmatpush.bf16.msra.mxu3 %v9796_v24 }
 0x5ca   : > { %4154 = vmatpush.bf16.msra.mxu0 %v9797_v52  ;;  %4167 = vmatpush.bf16.msrb.mxu1 %v9798_v26 }
 0x5cd   : > { %4180 = vmatpush.bf16.msrb.mxu2 %v9799_v29  ;;  %4193 = vmatpush.bf16.msra.mxu3 %v9800_v47 }
 0x5ce   : > { %4155 = vmatpush.bf16.msra.mxu0 %v9801_v30  ;;  %4168 = vmatpush.bf16.msrb.mxu1 %v9802_v59 }
 0x5d1   : > { %4181 = vmatpush.bf16.msrb.mxu2 %v9803_v49  ;;  %4194 = vmatpush.bf16.msra.mxu3 %v9804_v14 }
 0x60d   : > { %v3785_v15 = vpop.f32.mrf.mxu0  ;;  %v3798_v42 = vpop.f32.mrf.mxu1 }
 0x60e   : > { %v3828_v24 = vadd.f32 %v3785_v15, %v9805_v20  ;;  %v3829_v52 = vadd.f32 %v3798_v42, %v9806_v45  ;;  %v9808_v42 = vld [vmem:[#allocation36_spill] sm:$0xff] }
 0x610   : > { %v6171_v48 = vmul.f32 -1.442695, %v3828_v24  ;;  %v6172_v26 = vmul.f32 -1.442695, %v3829_v52 }
 0x612   : > { %6835 = vpow2.f32 %v6171_v48 }
 0x613   : > { %6837 = vpow2.f32 %v6172_v26 }
 0x614   : > { %v3811_v29 = vpop.f32.mrf.mxu2  ;;  %v3824_v47 = vpop.f32.mrf.mxu3 }
 0x615   : > { %v3831_v30 = vadd.f32 %v3824_v47, %v9807_v0  ;;  %v3787_v37 = vpop.f32.mrf.mxu0  ;;  %v3800_v59 = vpop.f32.mrf.mxu1  ;;  %v3830_v48 = vadd.f32 %v3811_v29, %v9808_v42 }
 0x617   : > { %v6173_v31 = vmul.f32 -1.442695, %v3831_v30 }
 0x618   : > { %v6836_v49 = vpop.eup %6835 }
 0x619   : > { %v6838_v34 = vpop.eup %6837  ;;  %v3835_v14 = vadd.f32 1.0, %v6836_v49  ;;  %6839 = vpow2.f32 %v6173_v31  ;;  %v9810_v49 = vld [vmem:[#allocation52_spill] sm:$0xff] }
 0x61a   : > { %v3854_v1 = vadd.f32 1.0, %v6838_v34  ;;  %v9809_v34 = vld [vmem:[#allocation68_spill] sm:$0xff] }
 0x61b   : > { %6841 = vrcp.f32 %v3835_v14  ;;  %v3845_v54 = vand.u32 2147483647, %v3835_v14  ;;  %v3847_v29 = vand.u32 2147483648, %v3835_v14  ;;  %vm3841_vm10 = vweird.f32 %v3835_v14 }
 0x61c   : > { %6843 = vrcp.f32 %v3854_v1  ;;  %v3813_v20 = vpop.f32.mrf.mxu2  ;;  %v3826_v45 = vpop.f32.mrf.mxu3  ;;  %v3866_v50 = vand.u32 2147483648, %v3854_v1  ;;  %v3864_v62 = vand.u32 2147483647, %v3854_v1  ;;  %vm3860_vm12 = vweird.f32 %v3854_v1 }
 0x61d   : > { %vm3846_vm8 = vcmp.eq.f32.partialorder %v3845_v54, 8.507059e+37 }
 0x61e   : > { %vm3865_vm7 = vcmp.eq.f32.partialorder %v3864_v62, 8.507059e+37 }
 0x61f   : > { %v6840_v15 = vpop.eup %6839 }
 0x620   : > { %v8854_v24 = vadd.f32 1.0, %v6840_v15 }
 0x621   : > { %v6842_v52 = vpop.eup %6841 }
 0x622   : > { %v6844_v26 = vpop.eup %6843  ;;  %v3837_v47 = vmul.f32 %v6842_v52, %v3835_v14  ;;  %6845 = vrcp.f32 %v8854_v24  ;;  %vm3842_vm9 = vweird.f32 %v6842_v52  ;;  %vm3880_vm0 = vweird.f32 %v8854_v24 }
 0x623   : > { %v3856_v37 = vmul.f32 %v6844_v26, %v3854_v1  ;;  %6847 = vtanh.f32 %v3830_v48  ;;  %vm3861_vm5 = vweird.f32 %v6844_v26  ;;  %vm3843_vm15 = vmor %vm3841_vm10, %vm3842_vm9  ;;  %v3848_v48 = vor.u32 1.1754944e-38, %v3847_v29 }
 0x624   : > { %v3905_v0 = vpop.f32.mrf.mxu0  ;;  %v3918_v30 = vpop.f32.mrf.mxu1  ;;  %v3838_v59 = vsub.f32 1.0, %v3837_v47  ;;  %vm3862_vm13 = vmor %vm3860_vm12, %vm3861_vm5 }
 0x625   : > { %v3948_v31 = vadd.f32 %v3905_v0, %v9809_v34  ;;  %v3949_v20 = vadd.f32 %v3918_v30, %v9810_v49  ;;  %v3857_v45 = vsub.f32 1.0, %v3856_v37  ;;  %v3867_v30 = vor.u32 1.1754944e-38, %v3866_v50 }
 0x626   : > { %v3839_v15 = vmul.f32 %v6842_v52, %v3838_v59 }
 0x627   : > { %v6186_v42 = vmul.f32 -1.442695, %v3948_v31  ;;  %v6187_v61 = vmul.f32 -1.442695, %v3949_v20  ;;  %v3858_v28 = vmul.f32 %v6844_v26, %v3857_v45 }
 0x628   : > { %v6846_v51 = vpop.eup %6845  ;;  %v3840_v5 = vadd.f32 %v6842_v52, %v3839_v15 }
 0x629   : > { %6849 = vpow2.f32 %v6186_v42  ;;  %v3859_v47 = vadd.f32 %v6844_v26, %v3858_v28  ;;  %v3876_v37 = vmul.f32 %v6846_v51, %v8854_v24  ;;  %v6848_v0 = vpop.eup %6847  ;;  %v3764_v28 = vsel %vm3512_vm4, %v8740_v55, 0.0 }
 0x62a   : > { %6851 = vpow2.f32 %v6187_v61  ;;  %v3844_v59 = vsel %vm3843_vm15, %v6842_v52, %v3840_v5  ;;  %v9811_v61 = vld [vmem:[#allocation77_spill] sm:$0xff]  ;;  %vm3881_vm1 = vweird.f32 %v6846_v51  ;;  %v3886_v55 = vand.u32 2147483648, %v8854_v24 }
 0x62b   : > { %v3931_v34 = vpop.f32.mrf.mxu2  ;;  %v3944_v31 = vpop.f32.mrf.mxu3  ;;  %v3849_v49 = vsel %vm3846_vm8, %v3848_v48, %v3844_v59  ;;  %v3863_v20 = vsel %vm3862_vm13, %v6844_v26, %v3859_v47  ;;  %v3877_v1 = vsub.f32 1.0, %v3876_v37  ;;  %v3884_v47 = vand.u32 2147483647, %v8854_v24  ;;  %vm3882_vm9 = vmor %vm3880_vm0, %vm3881_vm1 }
 0x62c   : > { %v3907_v45 = vpop.f32.mrf.mxu0  ;;  %v3920_v14 = vpop.f32.mrf.mxu1  ;;  %v3868_v29 = vsel %vm3865_vm7, %v3867_v30, %v3863_v20  ;;  %v3891_v15 = vmul.f32 %v6848_v0, %v3849_v49  ;;  %v3951_v42 = vadd.f32 %v3944_v31, %v9811_v61  ;;  %v3887_v30 = vor.u32 1.1754944e-38, %v3886_v55 }
 0x62d   : > { %v3890_v63 = vmul.f32 %v3868_v29, %v3764_v28  ;;  %v3878_v50 = vmul.f32 %v6846_v51, %v3877_v1  ;;  %vm3885_vm5 = vcmp.eq.f32.partialorder %v3884_v47, 8.507059e+37  ;;  %v9812_v14 = vld [vmem:[#allocation53_spill] sm:$0xff] }
 0x62e   : > { %v6188_v54 = vmul.f32 -1.442695, %v3951_v42  ;;  %v3950_v28 = vadd.f32 %v3931_v34, %v9812_v14 }
 0x62f   : > { %v6850_v5 = vpop.eup %6849  ;;  %v8864_v23 = vadd.f32 %v3891_v15, %v3890_v63  ;;  %v3879_v62 = vadd.f32 %v6846_v51, %v3878_v50 }
 0x630   : > { %v6852_v52 = vpop.eup %6851  ;;  %v3955_v26 = vadd.f32 1.0, %v6850_v5  ;;  %6853 = vpow2.f32 %v6188_v54 }
 0x631   : > { %v3974_v48 = vadd.f32 1.0, %v6852_v52  ;;  %6855 = vtanh.f32 %v8864_v23  ;;  %v3883_v63 = vsel %vm3882_vm9, %v6846_v51, %v3879_v62  ;;  %v9845_v62 = vld [vmem:[#allocation107_spill] sm:$0xff] }
 0x632   : > { %6857 = vrcp.f32 %v3955_v26  ;;  %v3888_v49 = vsel %vm3885_vm5, %v3887_v30, %v3883_v63  ;;  %v3967_v50 = vand.u32 2147483648, %v3955_v26  ;;  %v3965_v52 = vand.u32 2147483647, %v3955_v26 }
 0x633   : > { %v3933_v37 = vpop.f32.mrf.mxu2  ;;  %v3946_v0 = vpop.f32.mrf.mxu3  ;;  %6859 = vrcp.f32 %v3974_v48  ;;  %v3986_v5 = vand.u32 2147483648, %v3974_v48  ;;  %v3984_v55 = vand.u32 2147483647, %v3974_v48  ;;  %vm3961_vm15 = vweird.f32 %v3955_v26 }
 0x634   : > { %vm3980_vm13 = vweird.f32 %v3974_v48  ;;  %v3968_v0 = vor.u32 1.1754944e-38, %v3967_v50  ;;  %vm3966_vm7 = vcmp.eq.f32.partialorder %v3965_v52, 8.507059e+37  ;;  %v9841_v50 = vld [vmem:[#allocation104_spill] sm:$0xff]  ;;  %v9844_v52 = vld [vmem:[#allocation122_spill] sm:$0xff] }
 0x635   : > { %vm3985_vm1 = vcmp.eq.f32.partialorder %v3984_v55, 8.507059e+37 }
 0x636   : > { %v6854_v59 = vpop.eup %6853 }
 0x637   : > { %v6856_v31 = vpop.eup %6855  ;;  %v8870_v20 = vadd.f32 1.0, %v6854_v59  ;;  %v3987_v59 = vor.u32 1.1754944e-38, %v3986_v5  ;;  %v9842_v5 = vld [vmem:[#allocation121_spill] sm:$0xff] }
 0x638   : > { %v6858_v1 = vpop.eup %6857  ;;  %v8872_v45 = vmul.f32 %v6856_v31, %v3888_v49 }
 0x639   : > { %v6860_v29 = vpop.eup %6859  ;;  %v3957_v24 = vmul.f32 %v6858_v1, %v3955_v26  ;;  %6861 = vrcp.f32 %v8870_v20  ;;  %vm3962_vm12 = vweird.f32 %v6858_v1  ;;  %vm4000_vm9 = vweird.f32 %v8870_v20 }
 0x63a   : > { %v3976_v15 = vmul.f32 %v6860_v29, %v3974_v48  ;;  %v6190_v51 = vpack.c.bf16 %v8872_v45, %v8872_v45  ;;  %6863 = vtanh.f32 %v3950_v28  ;;  %vm3981_vm10 = vweird.f32 %v6860_v29  ;;  %vm3963_vm8 = vmor %vm3961_vm15, %vm3962_vm12 }
 0x63b   : > { %v3958_v61 = vsub.f32 1.0, %v3957_v24  ;;  %v3766_v48 = vsel %vm3505_vm11, %v8776_v35, 0.0  ;;  %v9833_v35 = vld [vmem:[#allocation100_spill] sm:$0xff]  ;;  %v9836_v24 = vld [vmem:[#allocation118_spill] sm:$0xff] }
 0x63c   : > { %v3977_v42 = vsub.f32 1.0, %v3976_v15  ;;  %6191 = vmatmul.msk.bf16.vlgmr.msrb.gmra.mxu0 %vm8517_vm14, %v6190_v51  ;;  %6194 = vmatmul.msk.bf16.vlgmr.msra.gmra.mxu1 %vm8517_vm14, %v6190_v51  ;;  %v9837_v15 = vld [vmem:[#allocation102_spill] sm:$0xff] }
 0x63d   : > { %v3959_v54 = vmul.f32 %v6858_v1, %v3958_v61  ;;  %6197 = vmatmul.msk.bf16.vlgmr.msra.gmra.mxu2 %vm8517_vm14, %v6190_v51  ;;  %6200 = vmatmul.msk.bf16.vlgmr.msrb.gmra.mxu3 %vm8517_vm14, %v6190_v51  ;;  %vm3982_vm14 = vmor %vm3980_vm13, %vm3981_vm10  ;;  %v9838_v61 = vld [vmem:[#allocation119_spill] sm:$0xff] }
 0x63e   : > { %v3978_v34 = vmul.f32 %v6860_v29, %v3977_v42  ;;  %4280 = vmatpush.bf16.msrb.mxu0 %v9586_v39  ;;  %4293 = vmatpush.bf16.msra.mxu1 %v7835_v12  ;;  %v9839_v51 = vld [vmem:[#allocation103_spill] sm:$0xff]  ;;  %v9840_v42 = vld [vmem:[#allocation120_spill] sm:$0xff] }
 0x63f   : > { %v6862_v47 = vpop.eup %6861  ;;  %v3960_v37 = vadd.f32 %v6858_v1, %v3959_v54  ;;  %4306 = vmatpush.bf16.msra.mxu2 %v9587_v2  ;;  %4319 = vmatpush.bf16.msrb.mxu3 %v7841_v3  ;;  %v9843_v54 = vld [vmem:[#allocation105_spill] sm:$0xff] }
 0x640   : > { %v3979_v63 = vadd.f32 %v6860_v29, %v3978_v34  ;;  %v3996_v30 = vmul.f32 %v6862_v47, %v8870_v20  ;;  %v6864_v26 = vpop.eup %6863  ;;  %vm4001_vm0 = vweird.f32 %v6862_v47  ;;  %v9846_v34 = vld [vmem:[#allocation123_spill] sm:$0xff] }
 0x641   : > { %v3964_v31 = vsel %vm3963_vm8, %v6858_v1, %v3960_v37  ;;  %vm4002_vm5 = vmor %vm4000_vm9, %vm4001_vm0  ;;  %v9847_v37 = vld [vmem:[#allocation46_spill] sm:$0xff] }
 0x642   : > { %v3969_v39 = vsel %vm3966_vm7, %v3968_v0, %v3964_v31  ;;  %v3983_v49 = vsel %vm3982_vm14, %v6860_v29, %v3979_v63  ;;  %v3997_v12 = vsub.f32 1.0, %v3996_v30  ;;  %4281 = vmatpush.bf16.msrb.mxu0 %v9588_v32  ;;  %4294 = vmatpush.bf16.msra.mxu1 %v7850_v17  ;;  %v4006_v32 = vand.u32 2147483648, %v8870_v20  ;;  %v9848_v63 = vld [vmem:[#allocation17_spill] sm:$0xff] }
 0x643   : > { %v3988_v14 = vsel %vm3985_vm1, %v3987_v59, %v3983_v49  ;;  %v4011_v28 = vmul.f32 %v6864_v26, %v3969_v39  ;;  %4307 = vmatpush.bf16.msra.mxu2 %v9589_v13  ;;  %4320 = vmatpush.bf16.msrb.mxu3 %v7852_v19  ;;  %v4004_v17 = vand.u32 2147483647, %v8870_v20  ;;  %v9835_v20 = vld [vmem:[#allocation101_spill] sm:$0xff]  ;;  %v9849_v49 = vld [vmem:[#allocation47_spill] sm:$0xff] }
 0x644   : > { %v4010_v3 = vmul.f32 %v3988_v14, %v3766_v48  ;;  %v3998_v2 = vmul.f32 %v6862_v47, %v3997_v12  ;;  %v4007_v13 = vor.u32 1.1754944e-38, %v4006_v32 }
 0x645   : > { %vm4005_vm12 = vcmp.eq.f32.partialorder %v4004_v17, 8.507059e+37 }
 0x646   : > { %v8900_v1 = vadd.f32 %v4011_v28, %v4010_v3  ;;  %v3999_v29 = vadd.f32 %v6862_v47, %v3998_v2  ;;  %4282 = vmatpush.bf16.msrb.mxu0 %v9590_v11  ;;  %4295 = vmatpush.bf16.msra.mxu1 %v7858_v6 }
 0x647   : > { %4308 = vmatpush.bf16.msra.mxu2 %v9592_v41  ;;  %4321 = vmatpush.bf16.msrb.mxu3 %v7861_v9 }
 0x648   : > { %6865 = vtanh.f32 %v8900_v1  ;;  %v4003_v19 = vsel %vm4002_vm5, %v6862_v47, %v3999_v29 }
 0x649   : > { %v4008_v11 = vsel %vm4005_vm12, %v4007_v13, %v4003_v19 }
 0x64a   : > { %4283 = vmatpush.bf16.msrb.mxu0 %v9594_v56  ;;  %4296 = vmatpush.bf16.msra.mxu1 %v7867_v33  ;;  %v9830_v56 = vld [vmem:[#allocation115_spill] sm:$0xff] }
 0x64b   : > { %4309 = vmatpush.bf16.msra.mxu2 %v9595_v53  ;;  %4322 = vmatpush.bf16.msrb.mxu3 %v7872_v57  ;;  %v9824_v57 = vld [vmem:[#allocation112_spill] sm:$0xff]  ;;  %v9831_v53 = vld [vmem:[#allocation99_spill] sm:$0xff] }
 0x64e   : > { %v6866_v6 = vpop.eup %6865  ;;  %4284 = vmatpush.bf16.msrb.mxu0 %v7804_v4  ;;  %4297 = vmatpush.bf16.msra.mxu1 %v7880_v44  ;;  %v9816_v4 = vld [vmem:[#allocation106_spill] sm:$0xff]  ;;  %v9825_v44 = vld [vmem:[#allocation96_spill] sm:$0xff] }
 0x64f   : > { %v8914_v41 = vmul.f32 %v6866_v6, %v4008_v11  ;;  %4310 = vmatpush.bf16.msra.mxu2 %v7807_v10  ;;  %4323 = vmatpush.bf16.msrb.mxu3 %v7883_v8  ;;  %v9817_v10 = vld [vmem:[#allocation92_spill] sm:$0xff]  ;;  %v9826_v8 = vld [vmem:[#allocation113_spill] sm:$0xff] }
 0x650   : > { %v9850_v6 = vld [vmem:[#allocation40_spill] sm:$0xff] }
 0x651   : > { %v6205_v33 = vpack.c.bf16 %v8914_v41, %v8914_v41 }
 0x652   : > { %4285 = vmatpush.bf16.msrb.mxu0 %v7813_v46  ;;  %4298 = vmatpush.bf16.msra.mxu1 %v7887_v58  ;;  %v9815_v58 = vld [vmem:[#allocation90_spill] sm:$0xff]  ;;  %v9818_v46 = vld [vmem:[#allocation108_spill] sm:$0xff] }
 0x653   : > { %6206 = vmatmul.msk.bf16.vlgmr.msra.gmra.mxu0 %vm8466_vm2, %v6205_v33  ;;  %6209 = vmatmul.msk.bf16.vlgmr.msrb.gmra.mxu1 %vm8466_vm2, %v6205_v33 }
 0x654   : > { %6212 = vmatmul.msk.bf16.vlgmr.msrb.gmra.mxu2 %vm8466_vm2, %v6205_v33  ;;  %6215 = vmatmul.msk.bf16.vlgmr.msra.gmra.mxu3 %vm8466_vm2, %v6205_v33 }
 0x655   : > { %4311 = vmatpush.bf16.msra.mxu2 %v7815_v40  ;;  %4324 = vmatpush.bf16.msrb.mxu3 %v7890_v43  ;;  %v9819_v40 = vld [vmem:[#allocation93_spill] sm:$0xff] }
 0x656   : > { %4286 = vmatpush.bf16.msrb.mxu0 %v7823_v22  ;;  %4299 = vmatpush.bf16.msra.mxu1 %v7893_v25  ;;  %v9820_v22 = vld [vmem:[#allocation109_spill] sm:$0xff]  ;;  %v9823_v25 = vld [vmem:[#allocation95_spill] sm:$0xff] }
 0x657   : > { %v9827_v43 = vld [vmem:[#allocation97_spill] sm:$0xff] }
 0x659   : > { %4312 = vmatpush.bf16.msra.mxu2 %v7825_v27  ;;  %4325 = vmatpush.bf16.msrb.mxu3 %v7896_v16  ;;  %v9821_v27 = vld [vmem:[#allocation94_spill] sm:$0xff] }
 0x65a   : > { %4287 = vmatpush.bf16.msrb.mxu0 %v7833_v38  ;;  %4300 = vmatpush.bf16.msra.mxu1 %v7901_v18  ;;  %v9822_v38 = vld [vmem:[#allocation111_spill] sm:$0xff]  ;;  %v9828_v16 = vld [vmem:[#allocation114_spill] sm:$0xff] }
 0x65b   : > { %v9829_v18 = vld [vmem:[#allocation98_spill] sm:$0xff] }
 0x65d   : > { %4313 = vmatpush.bf16.msra.mxu2 %v9730_v21  ;;  %4326 = vmatpush.bf16.msrb.mxu3 %v9815_v58  ;;  %v9832_v21 = vld [vmem:[#allocation116_spill] sm:$0xff] }
 0x65e   : > { %4400 = vmatpush.bf16.msra.mxu0 %v9773_v60  ;;  %4413 = vmatpush.bf16.msrb.mxu1 %v9816_v4  ;;  %v9834_v60 = vld [vmem:[#allocation117_spill] sm:$0xff] }
 0x661   : > { %4426 = vmatpush.bf16.msrb.mxu2 %v9817_v10  ;;  %4439 = vmatpush.bf16.msra.mxu3 %v9818_v46 }
 0x662   : > { %4401 = vmatpush.bf16.msra.mxu0 %v9819_v40  ;;  %4414 = vmatpush.bf16.msrb.mxu1 %v9820_v22 }
 0x665   : > { %4427 = vmatpush.bf16.msrb.mxu2 %v9821_v27  ;;  %4440 = vmatpush.bf16.msra.mxu3 %v9822_v38  ;;  %v9851_v27 = vld [vmem:[#allocation63_spill] sm:$0xff] }
 0x666   : > { %4402 = vmatpush.bf16.msra.mxu0 %v9823_v25  ;;  %4415 = vmatpush.bf16.msrb.mxu1 %v9824_v57  ;;  %v9852_v25 = vld [vmem:[#allocation48_spill] sm:$0xff] }
 0x669   : > { %4428 = vmatpush.bf16.msrb.mxu2 %v9825_v44  ;;  %4441 = vmatpush.bf16.msra.mxu3 %v9826_v8 }
 0x66a   : > { %4403 = vmatpush.bf16.msra.mxu0 %v9827_v43  ;;  %4416 = vmatpush.bf16.msrb.mxu1 %v9828_v16 }
 0x66d   : > { %4429 = vmatpush.bf16.msrb.mxu2 %v9829_v18  ;;  %4442 = vmatpush.bf16.msra.mxu3 %v9830_v56 }
 0x66e   : > { %4404 = vmatpush.bf16.msra.mxu0 %v9831_v53  ;;  %4417 = vmatpush.bf16.msrb.mxu1 %v9832_v21 }
 0x671   : > { %4430 = vmatpush.bf16.msrb.mxu2 %v9833_v35  ;;  %4443 = vmatpush.bf16.msra.mxu3 %v9834_v60 }
 0x672   : > { %4405 = vmatpush.bf16.msra.mxu0 %v9835_v20  ;;  %4418 = vmatpush.bf16.msrb.mxu1 %v9836_v24 }
 0x675   : > { %4431 = vmatpush.bf16.msrb.mxu2 %v9837_v15  ;;  %4444 = vmatpush.bf16.msra.mxu3 %v9838_v61 }
 0x676   : > { %4406 = vmatpush.bf16.msra.mxu0 %v9839_v51  ;;  %4419 = vmatpush.bf16.msrb.mxu1 %v9840_v42 }
 0x679   : > { %4432 = vmatpush.bf16.msrb.mxu2 %v9841_v50  ;;  %4445 = vmatpush.bf16.msra.mxu3 %v9842_v5 }
 0x67a   : > { %4407 = vmatpush.bf16.msra.mxu0 %v9843_v54  ;;  %4420 = vmatpush.bf16.msrb.mxu1 %v9844_v52 }
 0x67d   : > { %4433 = vmatpush.bf16.msrb.mxu2 %v9845_v62  ;;  %4446 = vmatpush.bf16.msra.mxu3 %v9846_v34 }
 0x6b9   : > { %v4037_v55 = vpop.f32.mrf.mxu0  ;;  %v4050_v47 = vpop.f32.mrf.mxu1 }
 0x6ba   : > { %v4080_v0 = vadd.f32 %v4037_v55, %v9847_v37  ;;  %v4081_v30 = vadd.f32 %v4050_v47, %v9848_v63  ;;  %v9853_v37 = vld [vmem:[#allocation83_spill] sm:$0xff] }
 0x6bb   : > { %vm9854_vm0 = vcmp.eq.s32.totalorder %v9853_v37, 1 }
 0x6bc   : > { %v6201_v59 = vmul.f32 -1.442695, %v4080_v0  ;;  %v6202_v31 = vmul.f32 -1.442695, %v4081_v30  ;;  %v4016_v0 = vsel %vm9854_vm0, %v8864_v23, 0.0 }
 0x6be   : > { %6867 = vpow2.f32 %v6201_v59  ;;  %v9855_v59 = vld [vmem:[#allocation71_spill] sm:$0xff] }
 0x6bf   : > { %6869 = vpow2.f32 %v6202_v31 }
 0x6c0   : > { %v4063_v26 = vpop.f32.mrf.mxu2  ;;  %v4076_v39 = vpop.f32.mrf.mxu3 }
 0x6c1   : > { %v4083_v12 = vadd.f32 %v4076_v39, %v9849_v49  ;;  %v4039_v48 = vpop.f32.mrf.mxu0  ;;  %v4052_v14 = vpop.f32.mrf.mxu1  ;;  %v4082_v11 = vadd.f32 %v4063_v26, %v9850_v6 }
 0x6c3   : > { %v6203_v28 = vmul.f32 -1.442695, %v4083_v12 }
 0x6c4   : > { %v6868_v3 = vpop.eup %6867 }
 0x6c5   : > { %v6870_v2 = vpop.eup %6869  ;;  %v4087_v29 = vadd.f32 1.0, %v6868_v3  ;;  %6871 = vpow2.f32 %v6203_v28 }
 0x6c6   : > { %v4106_v32 = vadd.f32 1.0, %v6870_v2 }
 0x6c7   : > { %6873 = vrcp.f32 %v4087_v29  ;;  %v4097_v43 = vand.u32 2147483647, %v4087_v29  ;;  %v4099_v16 = vand.u32 2147483648, %v4087_v29  ;;  %vm4093_vm13 = vweird.f32 %v4087_v29 }
 0x6c8   : > { %6875 = vrcp.f32 %v4106_v32  ;;  %v4065_v17 = vpop.f32.mrf.mxu2  ;;  %v4078_v19 = vpop.f32.mrf.mxu3  ;;  %v4118_v8 = vand.u32 2147483648, %v4106_v32  ;;  %v4116_v35 = vand.u32 2147483647, %v4106_v32  ;;  %vm4112_vm15 = vweird.f32 %v4106_v32 }
 0x6c9   : > { %v4100_v24 = vor.u32 1.1754944e-38, %v4099_v16  ;;  %vm4098_vm7 = vcmp.eq.f32.partialorder %v4097_v43, 8.507059e+37 }
 0x6ca   : > { %v4119_v42 = vor.u32 1.1754944e-38, %v4118_v8  ;;  %vm4117_vm1 = vcmp.eq.f32.partialorder %v4116_v35, 8.507059e+37 }
 0x6cb   : > { %v6872_v13 = vpop.eup %6871 }
 0x6cc   : > { %v8978_v33 = vadd.f32 1.0, %v6872_v13 }
 0x6cd   : > { %v6874_v9 = vpop.eup %6873 }
 0x6ce   : > { %v6876_v58 = vpop.eup %6875  ;;  %v4089_v4 = vmul.f32 %v6874_v9, %v4087_v29  ;;  %6877 = vrcp.f32 %v8978_v33  ;;  %vm4094_vm2 = vweird.f32 %v6874_v9  ;;  %v4138_v23 = vand.u32 2147483648, %v8978_v33 }
 0x6cf   : > { %v4108_v10 = vmul.f32 %v6876_v58, %v4106_v32  ;;  %6879 = vtanh.f32 %v4082_v11  ;;  %vm4113_vm10 = vweird.f32 %v6876_v58  ;;  %vm4095_vm8 = vmor %vm4093_vm13, %vm4094_vm2  ;;  %vm4132_vm5 = vweird.f32 %v8978_v33 }
 0x6d0   : > { %v4157_v46 = vpop.f32.mrf.mxu0  ;;  %v4170_v40 = vpop.f32.mrf.mxu1  ;;  %v4090_v22 = vsub.f32 1.0, %v4089_v4  ;;  %vm4114_vm14 = vmor %vm4112_vm15, %vm4113_vm10  ;;  %v4136_v29 = vand.u32 2147483647, %v8978_v33  ;;  %v4139_v13 = vor.u32 1.1754944e-38, %v4138_v23 }
 0x6d1   : > { %v4200_v38 = vadd.f32 %v4157_v46, %v9851_v27  ;;  %v4201_v57 = vadd.f32 %v4170_v40, %v9852_v25  ;;  %v4109_v44 = vsub.f32 1.0, %v4108_v10  ;;  %v9856_v46 = vld [vmem:[#allocation49_spill] sm:$0xff] }
 0x6d2   : > { %v4091_v18 = vmul.f32 %v6874_v9, %v4090_v22  ;;  %vm4137_vm2 = vcmp.eq.f32.partialorder %v4136_v29, 8.507059e+37  ;;  %v6533_v29 = vld [vmem:[#allocation11 + $0x10] sm:$0xff] }
 0x6d3   : > { %v6216_v56 = vmul.f32 -1.442695, %v4200_v38  ;;  %v6217_v53 = vmul.f32 -1.442695, %v4201_v57  ;;  %v4110_v21 = vmul.f32 %v6876_v58, %v4109_v44  ;;  %v6538_v57 = vld [vmem:[#allocation11 + $0x38] sm:$0xff] }
 0x6d4   : > { %v6878_v60 = vpop.eup %6877  ;;  %v4092_v20 = vadd.f32 %v6874_v9, %v4091_v18 }
 0x6d5   : > { %6881 = vpow2.f32 %v6216_v56  ;;  %v4111_v15 = vadd.f32 %v6876_v58, %v4110_v21  ;;  %v4128_v61 = vmul.f32 %v6878_v60, %v8978_v33  ;;  %v6880_v51 = vpop.eup %6879  ;;  %vm4133_vm9 = vweird.f32 %v6878_v60 }
 0x6d6   : > { %6883 = vpow2.f32 %v6217_v53  ;;  %v4096_v50 = vsel %vm4095_vm8, %v6874_v9, %v4092_v20  ;;  %vm4134_vm12 = vmor %vm4132_vm5, %vm4133_vm9  ;;  %v6537_v20 = vld [vmem:[#allocation11 + $0x30] sm:$0xff] }
 0x6d7   : > { %v4183_v5 = vpop.f32.mrf.mxu2  ;;  %v4196_v54 = vpop.f32.mrf.mxu3  ;;  %v4101_v52 = vsel %vm4098_vm7, %v4100_v24, %v4096_v50  ;;  %v4115_v62 = vsel %vm4114_vm14, %v6876_v58, %v4111_v15  ;;  %v4129_v34 = vsub.f32 1.0, %v4128_v61 }
 0x6d8   : > { %v4159_v55 = vpop.f32.mrf.mxu0  ;;  %v4172_v47 = vpop.f32.mrf.mxu1  ;;  %v4120_v63 = vsel %vm4117_vm1, %v4119_v42, %v4115_v62  ;;  %v4143_v30 = vmul.f32 %v6880_v51, %v4101_v52  ;;  %v4203_v31 = vadd.f32 %v4196_v54, %v9855_v59  ;;  %v4202_v40 = vadd.f32 %v4183_v5, %v9856_v46  ;;  %v9858_v62 = vld [vmem:[#allocation79_spill] sm:$0xff]  ;;  %v9869_v46 = vld [vmem:[#allocation80_spill] sm:$0xff] }
 0x6d9   : > { %v4142_v26 = vmul.f32 %v4120_v63, %v4016_v0  ;;  %v4130_v39 = vmul.f32 %v6878_v60, %v4129_v34  ;;  %vm9859_vm0 = vcmp.eq.s32.totalorder %v9858_v62, 1  ;;  %v6536_v0 = vld [vmem:[#allocation11 + $0x28] sm:$0xff] }
 0x6da   : > { %v6218_v12 = vmul.f32 -1.442695, %v4203_v31  ;;  %v4018_v34 = vsel %vm9859_vm0, %v8900_v1, 0.0 }
 0x6db   : > { %v6882_v49 = vpop.eup %6881  ;;  %v8988_v14 = vadd.f32 %v4143_v30, %v4142_v26  ;;  %v4131_v3 = vadd.f32 %v6878_v60, %v4130_v39  ;;  %v6535_v26 = vld [vmem:[#allocation11 + $0x20] sm:$0xff] }
 0x6dc   : > { %v6884_v48 = vpop.eup %6883  ;;  %v4207_v28 = vadd.f32 1.0, %v6882_v49  ;;  %6885 = vpow2.f32 %v6218_v12  ;;  %v6534_v12 = vld [vmem:[#allocation11 + $0x18] sm:$0xff] }
 0x6dd   : > { %v4226_v2 = vadd.f32 1.0, %v6884_v48  ;;  %6887 = vtanh.f32 %v8988_v14  ;;  %v4135_v19 = vsel %vm4134_vm12, %v6878_v60, %v4131_v3 }
 0x6de   : > { %6889 = vrcp.f32 %v4207_v28  ;;  %v4140_v9 = vsel %vm4137_vm2, %v4139_v13, %v4135_v19  ;;  %v4219_v8 = vand.u32 2147483648, %v4207_v28  ;;  %v4217_v18 = vand.u32 2147483647, %v4207_v28  ;;  %v6531_v19 = vld [vmem:[#allocation11] sm:$0xff]  ;;  %v9861_v13 = vld [vmem:[#allocation18_spill] sm:$0xff] }
 0x6df   : > { %v4185_v32 = vpop.f32.mrf.mxu2  ;;  %v4198_v17 = vpop.f32.mrf.mxu3  ;;  %6891 = vrcp.f32 %v4226_v2  ;;  %v4238_v43 = vand.u32 2147483648, %v4226_v2  ;;  %v4236_v21 = vand.u32 2147483647, %v4226_v2  ;;  %vm4213_vm13 = vweird.f32 %v4207_v28 }
 0x6e0   : > { %vm4232_vm8 = vweird.f32 %v4226_v2  ;;  %v4220_v24 = vor.u32 1.1754944e-38, %v4219_v8  ;;  %vm4218_vm1 = vcmp.eq.f32.partialorder %v4217_v18, 8.507059e+37  ;;  %v6532_v17 = vld [vmem:[#allocation11 + $0x8] sm:$0xff]  ;;  %v9878_v8 = vld [vmem:[#allocation51_spill] sm:$0xff] }
 0x6e1   : > { %v4239_v51 = vor.u32 1.1754944e-38, %v4238_v43 }
 0x6e2   : > { %v6886_v6 = vpop.eup %6885 }
 0x6e3   : > { %v6888_v11 = vpop.eup %6887  ;;  %v8994_v58 = vadd.f32 1.0, %v6886_v6  ;;  %v9862_v6 = vld [vmem:[#allocation89_spill] sm:$0xff] }
 0x6e4   : > { %v6890_v4 = vpop.eup %6889  ;;  %v8996_v10 = vmul.f32 %v6888_v11, %v4140_v9  ;;  %v6314_v11 = vpack.c.bf16 %v9862_v6, %v9861_v13  ;;  %v9863_v9 = vld [vmem:[#allocation64_spill] sm:$0xff] }
 0x6e5   : > { %v6892_v22 = vpop.eup %6891  ;;  %v4209_v33 = vmul.f32 %v6890_v4, %v4207_v28  ;;  %6893 = vrcp.f32 %v8994_v58  ;;  %vm4214_vm10 = vweird.f32 %v6890_v4  ;;  %v4258_v39 = vand.u32 2147483648, %v8994_v58 }
 0x6e6   : > { %v4228_v27 = vmul.f32 %v6892_v22, %v4226_v2  ;;  %v6220_v25 = vpack.c.bf16 %v8996_v10, %v8996_v10  ;;  %6895 = vtanh.f32 %v4202_v40  ;;  %vm4233_vm15 = vweird.f32 %v6892_v22  ;;  %vm4215_vm14 = vmor %vm4213_vm13, %vm4214_vm10  ;;  %v9870_v40 = vld [vmem:[#allocation22_spill] sm:$0xff] }
 0x6e7   : > { %v4210_v38 = vsub.f32 1.0, %v4209_v33  ;;  %vm4234_vm7 = vmor %vm4232_vm8, %vm4233_vm15  ;;  %vm4252_vm5 = vweird.f32 %v8994_v58  ;;  %v4256_v1 = vand.u32 2147483647, %v8994_v58  ;;  %v4259_v48 = vor.u32 1.1754944e-38, %v4258_v39  ;;  %v9897_v33 = vld [vmem:[#allocation75_spill] sm:$0xff] }
 0x6e8   : > { %v4229_v44 = vsub.f32 1.0, %v4228_v27  ;;  %6221 = vmatmul.msk.bf16.vlgmr.msrb.gmra.mxu0 %vm8371_vm6, %v6220_v25  ;;  %6224 = vmatmul.msk.bf16.vlgmr.msra.gmra.mxu1 %vm8371_vm6, %v6220_v25  ;;  %vm9864_vm10 = vcmp.eq.s32.totalorder %v9863_v9, 1  ;;  %v9874_v27 = vld [vmem:[#allocation61_spill] sm:$0xff] }
 0x6e9   : > { %v4211_v16 = vmul.f32 %v6890_v4, %v4210_v38  ;;  %6227 = vmatmul.msk.bf16.vlgmr.msra.gmra.mxu2 %vm8371_vm6, %v6220_v25  ;;  %6230 = vmatmul.msk.bf16.vlgmr.msrb.gmra.mxu3 %vm8371_vm6, %v6220_v25  ;;  %vm4237_vm6 = vcmp.eq.f32.partialorder %v4236_v21, 8.507059e+37  ;;  %vm4257_vm2 = vcmp.eq.f32.partialorder %v4256_v1, 8.507059e+37  ;;  %v6320_v38 = vpack.c.bf16 %v8872_v45, %v9874_v27  ;;  %v6546_v21 = vld [vmem:[#allocation11 + $0x78] sm:$0xff]  ;;  %v4737_v25 = vld [vmem:[%s9295_s12 + $0x50] sm:$0xff] }
 0x6ea   : > { %v4230_v53 = vmul.f32 %v6892_v22, %v4229_v44  ;;  %4661 = vmatpush.bf16.msrb.mxu0 %v6538_v57  ;;  %4690 = vmatpush.bf16.msra.mxu1 %v6546_v21 }
 0x6eb   : > { %v6894_v35 = vpop.eup %6893  ;;  %v4212_v60 = vadd.f32 %v6890_v4, %v4211_v16  ;;  %v9879_v16 = vld [vmem:[#allocation19_spill] sm:$0xff] }
 0x6ec   : > { %v4231_v15 = vadd.f32 %v6892_v22, %v4230_v53  ;;  %v4248_v61 = vmul.f32 %v6894_v35, %v8994_v58  ;;  %v6896_v50 = vpop.eup %6895  ;;  %vm4253_vm9 = vweird.f32 %v6894_v35  ;;  %v9865_v58 = vld [vmem:[#allocation55_spill] sm:$0xff] }
 0x6ed   : > { %v4216_v42 = vsel %vm4215_vm14, %v6890_v4, %v4212_v60  ;;  %vm4254_vm12 = vmor %vm4252_vm5, %vm4253_vm9  ;;  %vm9866_vm15 = vcmp.eq.s32.totalorder %v9865_v58, 1  ;;  %vm9875_vm14 = vcmp.eq.s32.totalorder %v9853_v37, 1  ;;  %v4740_v4 = vld [vmem:[%s9295_s12 + $0x68] sm:$0xff] }
 0x6ee   : > { %v4221_v5 = vsel %vm4218_vm1, %v4220_v24, %v4216_v42  ;;  %v4235_v54 = vsel %vm4234_vm7, %v6892_v22, %v4231_v15  ;;  %v4249_v52 = vsub.f32 1.0, %v4248_v61  ;;  %4662 = vmatpush.bf16.msrb.mxu0 %v6537_v20  ;;  %vm9039_vm13 = vmpackc.low %vm9866_vm15, %vm9864_vm10  ;;  %v6317_v22 = vpack.c.bf16 %v9870_v40, %v9869_v46  ;;  %v9880_v20 = vld [vmem:[#allocation50_spill] sm:$0xff]  ;;  %v6545_v42 = vld [vmem:[#allocation11 + $0x70] sm:$0xff] }
 0x6ef   : > { %v4240_v55 = vsel %vm4237_vm6, %v4239_v51, %v4235_v54  ;;  %v4263_v47 = vmul.f32 %v6896_v50, %v4221_v5  ;;  %vm9063_vm7 = vmpackc.low %vm9875_vm14, %vm3512_vm4  ;;  %4691 = vmatpush.bf16.msra.mxu1 %v6545_v42 }
 0x6f0   : > { %v4262_v63 = vmul.f32 %v4240_v55, %v4018_v34  ;;  %v4250_v30 = vmul.f32 %v6894_v35, %v4249_v52  ;;  %v6544_v34 = vld [vmem:[#allocation11 + $0x68] sm:$0xff] }
 0x6f2   : > { %v9015_v59 = vadd.f32 %v4263_v47, %v4262_v63  ;;  %v4251_v31 = vadd.f32 %v6894_v35, %v4250_v30  ;;  %4663 = vmatpush.bf16.msrb.mxu0 %v6536_v0  ;;  %v6543_v63 = vld [vmem:[#allocation11 + $0x60] sm:$0xff]  ;;  %v9881_v30 = vld [vmem:[#allocation24_spill] sm:$0xff] }
 0x6f3   : > { %4692 = vmatpush.bf16.msra.mxu1 %v6544_v34 }
 0x6f4   : > { %6897 = vtanh.f32 %v9015_v59  ;;  %v4255_v49 = vsel %vm4254_vm12, %v6894_v35, %v4251_v31 }
 0x6f5   : > { %v4260_v3 = vsel %vm4257_vm2, %v4259_v48, %v4255_v49 }
 0x6f6   : > { %4664 = vmatpush.bf16.msrb.mxu0 %v6535_v26 }
 0x6f7   : > { %4693 = vmatpush.bf16.msra.mxu1 %v6543_v63 }
 0x6fa   : > { %v6898_v28 = vpop.eup %6897  ;;  %4665 = vmatpush.bf16.msrb.mxu0 %v6534_v12 }
 0x6fb   : > { %v9021_v2 = vmul.f32 %v6898_v28, %v4260_v3  ;;  %v6542_v3 = vld [vmem:[#allocation11 + $0x58] sm:$0xff] }
 0x6fc   : > { %4694 = vmatpush.bf16.msra.mxu1 %v6542_v3 }
 0x6fd   : > { %v6235_v23 = vpack.c.bf16 %v9021_v2, %v9021_v2 }
 0x6fe   : > { %4666 = vmatpush.bf16.msrb.mxu0 %v6533_v29  ;;  %v9882_v29 = vld [vmem:[#allocation59_spill] sm:$0xff] }
 0x6ff   : > { %6236 = vmatmul.msk.bf16.vlgmr.msra.gmra.mxu0 %vm8321_vm3, %v6235_v23  ;;  %6239 = vmatmul.msk.bf16.vlgmr.msrb.gmra.mxu1 %vm8321_vm3, %v6235_v23 }
 0x700   : > { %6242 = vmatmul.msk.bf16.vlgmr.msrb.gmra.mxu2 %vm8321_vm3, %v6235_v23  ;;  %6245 = vmatmul.msk.bf16.vlgmr.msra.gmra.mxu3 %vm8321_vm3, %v6235_v23  ;;  %vm9871_vm3 = vmmov %vm9859_vm0 }
 0x701   : > { %vm9051_vm8 = vmpackc.low %vm3505_vm11, %vm9871_vm3 }
 0x702   : > { %4667 = vmatpush.bf16.msrb.mxu0 %v6532_v17  ;;  %v9883_v17 = vld [vmem:[#allocation43_spill] sm:$0xff] }
 0x706   : > { %4668 = vmatpush.bf16.msrb.mxu0 %v6531_v19 }
 0x70f   : > { %6315 = vmatmul.msk.bf16.vlgmr.msrb.gmra.mxu0 %vm9039_vm13, %v6314_v11 }
 0x71f   : > { %6318 = vmatmul.msk.bf16.gmra.mxu0 %vm9051_vm8, %v6317_v22 }
 0x72f   : > { %6321 = vmatmul.msk.bf16.gmra.mxu0 %vm9063_vm7, %v6320_v38 }
 0x765   : > { %v4289_v57 = vpop.f32.mrf.mxu0  ;;  %v4302_v44 = vpop.f32.mrf.mxu1 }
 0x766   : > { %v4332_v43 = vadd.f32 %v4289_v57, %v9878_v8  ;;  %v4333_v18 = vadd.f32 %v4302_v44, %v9879_v16 }
 0x768   : > { %v6231_v56 = vmul.f32 -1.442695, %v4332_v43  ;;  %v6232_v53 = vmul.f32 -1.442695, %v4333_v18 }
 0x76a   : > { %6899 = vpow2.f32 %v6231_v56  ;;  %v6541_v56 = vld [vmem:[#allocation11 + $0x50] sm:$0xff] }
 0x76b   : > { %6901 = vpow2.f32 %v6232_v53  ;;  %4695 = vmatpush.bf16.msra.mxu1 %v6541_v56  ;;  %v9887_v56 = vld [vmem:[#allocation45_spill] sm:$0xff] }
 0x76c   : > { %v4315_v35 = vpop.f32.mrf.mxu2  ;;  %v4328_v60 = vpop.f32.mrf.mxu3 }
 0x76d   : > { %v4335_v24 = vadd.f32 %v4328_v60, %v9880_v20  ;;  %v4291_v15 = vpop.f32.mrf.mxu0  ;;  %v4304_v61 = vpop.f32.mrf.mxu1  ;;  %v4334_v31 = vadd.f32 %v4315_v35, %v9881_v30 }
 0x76f   : > { %v6233_v51 = vmul.f32 -1.442695, %v4335_v24  ;;  %v6540_v24 = vld [vmem:[#allocation11 + $0x48] sm:$0xff] }
 0x770   : > { %v6900_v50 = vpop.eup %6899  ;;  %4696 = vmatpush.bf16.msra.mxu1 %v6540_v24 }
 0x771   : > { %v6902_v5 = vpop.eup %6901  ;;  %v4339_v54 = vadd.f32 1.0, %v6900_v50  ;;  %6903 = vpow2.f32 %v6233_v51 }
 0x772   : > { %v4358_v52 = vadd.f32 1.0, %v6902_v5 }
 0x773   : > { %6905 = vrcp.f32 %v4339_v54  ;;  %v4349_v38 = vand.u32 2147483647, %v4339_v54  ;;  %v4351_v57 = vand.u32 2147483648, %v4339_v54  ;;  %vm4345_vm9 = vweird.f32 %v4339_v54 }
 0x774   : > { %6907 = vrcp.f32 %v4358_v52  ;;  %v4317_v55 = vpop.f32.mrf.mxu2  ;;  %v4330_v47 = vpop.f32.mrf.mxu3  ;;  %v4370_v22 = vand.u32 2147483648, %v4358_v52  ;;  %v4368_v18 = vand.u32 2147483647, %v4358_v52  ;;  %vm4364_vm0 = vweird.f32 %v4358_v52 }
 0x775   : > { %v4352_v35 = vor.u32 1.1754944e-38, %v4351_v57  ;;  %vm4350_vm2 = vcmp.eq.f32.partialorder %v4349_v38, 8.507059e+37  ;;  %v9884_v47 = vld [vmem:[#allocation73_spill] sm:$0xff] }
 0x776   : > { %v4371_v61 = vor.u32 1.1754944e-38, %v4370_v22  ;;  %vm4369_vm10 = vcmp.eq.f32.partialorder %v4368_v18, 8.507059e+37  ;;  %vm9885_vm15 = vcmp.eq.s32.totalorder %v9884_v47, 1 }
 0x777   : > { %v6904_v0 = vpop.eup %6903 }
 0x778   : > { %v9073_v26 = vadd.f32 1.0, %v6904_v0  ;;  %v4268_v0 = vsel %vm9885_vm15, %v8988_v14, 0.0 }
 0x779   : > { %v6906_v39 = vpop.eup %6905 }
 0x77a   : > { %v6908_v1 = vpop.eup %6907  ;;  %v4341_v49 = vmul.f32 %v6906_v39, %v4339_v54  ;;  %6909 = vrcp.f32 %v9073_v26  ;;  %vm4346_vm1 = vweird.f32 %v6906_v39  ;;  %v4390_v14 = vand.u32 2147483648, %v9073_v26 }
 0x77b   : > { %v4360_v12 = vmul.f32 %v6908_v1, %v4358_v52  ;;  %6911 = vtanh.f32 %v4334_v31  ;;  %vm4365_vm6 = vweird.f32 %v6908_v1  ;;  %vm4347_vm5 = vmor %vm4345_vm9, %vm4346_vm1  ;;  %v9886_v31 = vld [vmem:[#allocation67_spill] sm:$0xff]  ;;  %vm4384_vm14 = vweird.f32 %v9073_v26 }
 0x77c   : > { %v4409_v48 = vpop.f32.mrf.mxu0  ;;  %v4422_v28 = vpop.f32.mrf.mxu1  ;;  %v4342_v23 = vsub.f32 1.0, %v4341_v49  ;;  %vm4366_vm12 = vmor %vm4364_vm0, %vm4365_vm6  ;;  %v4388_v22 = vand.u32 2147483647, %v9073_v26  ;;  %v4391_v57 = vor.u32 1.1754944e-38, %v4390_v14 }
 0x77d   : > { %v4452_v32 = vadd.f32 %v4409_v48, %v9882_v29  ;;  %v4453_v19 = vadd.f32 %v4422_v28, %v9883_v17  ;;  %v4361_v11 = vsub.f32 1.0, %v4360_v12  ;;  %vm9888_vm0 = vmmov %vm9885_vm15 }
 0x77e   : > { %v4343_v44 = vmul.f32 %v6906_v39, %v4342_v23  ;;  %vm4389_vm6 = vcmp.eq.f32.partialorder %v4388_v22, 8.507059e+37 }
 0x77f   : > { %v6246_v8 = vmul.f32 -1.442695, %v4452_v32  ;;  %v6247_v43 = vmul.f32 -1.442695, %v4453_v19  ;;  %v4362_v16 = vmul.f32 %v6908_v1, %v4361_v11 }
 0x780   : > { %v6910_v53 = vpop.eup %6909  ;;  %v4344_v21 = vadd.f32 %v6906_v39, %v4343_v44 }
 0x781   : > { %6913 = vpow2.f32 %v6246_v8  ;;  %v4363_v60 = vadd.f32 %v6908_v1, %v4362_v16  ;;  %v4380_v20 = vmul.f32 %v6910_v53, %v9073_v26  ;;  %v6912_v15 = vpop.eup %6911  ;;  %vm4385_vm3 = vweird.f32 %v6910_v53 }
 0x782   : > { %6915 = vpow2.f32 %v6247_v43  ;;  %v4348_v51 = vsel %vm4347_vm5, %v6906_v39, %v4344_v21  ;;  %v6539_v39 = vld [vmem:[#allocation11 + $0x40] sm:$0xff]  ;;  %vm4386_vm1 = vmor %vm4384_vm14, %vm4385_vm3 }
 0x783   : > { %v4435_v42 = vpop.f32.mrf.mxu2  ;;  %v4448_v50 = vpop.f32.mrf.mxu3  ;;  %v4353_v5 = vsel %vm4350_vm2, %v4352_v35, %v4348_v51  ;;  %v4367_v52 = vsel %vm4366_vm12, %v6908_v1, %v4363_v60  ;;  %v4381_v54 = vsub.f32 1.0, %v4380_v20  ;;  %4697 = vmatpush.bf16.msra.mxu1 %v6539_v39  ;;  %v9889_v51 = vld [vmem:[#allocation27_spill] sm:$0xff] }
 0x784   : > { %v4411_v34 = vpop.f32.mrf.mxu0  ;;  %v4424_v55 = vpop.f32.mrf.mxu1  ;;  %v4372_v63 = vsel %vm4369_vm10, %v4371_v61, %v4367_v52  ;;  %v4395_v30 = vmul.f32 %v6912_v15, %v4353_v5  ;;  %v4455_v49 = vadd.f32 %v4448_v50, %v9886_v31  ;;  %v4454_v21 = vadd.f32 %v4435_v42, %v9887_v56  ;;  %v4735_v50 = vld [vmem:[%s9295_s12 + $0x40] sm:$0xff] }
 0x785   : > { %v4394_v12 = vmul.f32 %v4372_v63, %v4268_v0  ;;  %v4382_v48 = vmul.f32 %v6910_v53, %v4381_v54  ;;  %vm9890_vm9 = vcmp.eq.s32.totalorder %v9889_v51, 1 }
 0x786   : > { %v6248_v3 = vmul.f32 -1.442695, %v4455_v49  ;;  %vm9096_vm5 = vmpackc.low %vm9890_vm9, %vm9888_vm0  ;;  %vm9893_vm0 = vcmp.eq.s32.totalorder %v9865_v58, 1 }
 0x787   : > { %v6914_v28 = vpop.eup %6913  ;;  %v4396_v1 = vadd.f32 %v4395_v30, %v4394_v12  ;;  %v4383_v17 = vadd.f32 %v6910_v53, %v4382_v48 }
 0x788   : > { %v6916_v23 = vpop.eup %6915  ;;  %v4459_v29 = vadd.f32 1.0, %v6914_v28  ;;  %6917 = vpow2.f32 %v6248_v3 }
 0x789   : > { %v4478_v32 = vadd.f32 1.0, %v6916_v23  ;;  %6919 = vtanh.f32 %v4396_v1  ;;  %v4387_v38 = vsel %vm4386_vm1, %v6910_v53, %v4383_v17  ;;  %v4270_v23 = vsel %vm9893_vm0, %v9015_v59, 0.0 }
 0x78a   : > { %6921 = vrcp.f32 %v4459_v29  ;;  %v4392_v16 = vsel %vm4389_vm6, %v4391_v57, %v4387_v38  ;;  %v4471_v61 = vand.u32 2147483648, %v4459_v29  ;;  %v4469_v52 = vand.u32 2147483647, %v4459_v29 }
 0x78b   : > { %v4437_v19 = vpop.f32.mrf.mxu2  ;;  %v4450_v11 = vpop.f32.mrf.mxu3  ;;  %6923 = vrcp.f32 %v4478_v32  ;;  %v4490_v42 = vand.u32 2147483648, %v4478_v32  ;;  %v4488_v34 = vand.u32 2147483647, %v4478_v32  ;;  %vm4465_vm10 = vweird.f32 %v4459_v29 }
 0x78c   : > { %vm4484_vm15 = vweird.f32 %v4478_v32  ;;  %v4472_v63 = vor.u32 1.1754944e-38, %v4471_v61  ;;  %vm4470_vm1 = vcmp.eq.f32.partialorder %v4469_v52, 8.507059e+37  ;;  %v4738_v61 = vld [vmem:[%s9295_s12 + $0x58] sm:$0xff]  ;;  %v4733_v52 = vld [vmem:[%s9295_s12 + $0x30] sm:$0xff] }
 0x78d   : > { %v4491_v49 = vor.u32 1.1754944e-38, %v4490_v42  ;;  %vm4489_vm6 = vcmp.eq.f32.partialorder %v4488_v34, 8.507059e+37  ;;  %v4736_v42 = vld [vmem:[%s9295_s12 + $0x48] sm:$0xff]  ;;  %v4731_v34 = vld [vmem:[%s9295_s12 + $0x20] sm:$0xff] }
 0x78e   : > { %v6918_v44 = vpop.eup %6917 }
 0x78f   : > { %v6920_v8 = vpop.eup %6919  ;;  %v4498_v43 = vadd.f32 1.0, %v6918_v44 }
 0x790   : > { %v6922_v18 = vpop.eup %6921  ;;  %v9088_v35 = vmul.f32 %v6920_v8, %v4392_v16 }
 0x791   : > { %v6924_v60 = vpop.eup %6923  ;;  %v4461_v20 = vmul.f32 %v6922_v18, %v4459_v29  ;;  %6925 = vrcp.f32 %v4498_v43  ;;  %vm4466_vm12 = vweird.f32 %v6922_v18  ;;  %v4510_v11 = vand.u32 2147483648, %v4498_v43 }
 0x792   : > { %v4480_v24 = vmul.f32 %v6924_v60, %v4478_v32  ;;  %v6323_v26 = vpack.c.bf16 %v9088_v35, %v8996_v10  ;;  %6927 = vtanh.f32 %v4454_v21  ;;  %vm4485_vm2 = vweird.f32 %v6924_v60  ;;  %vm4467_vm3 = vmor %vm4465_vm10, %vm4466_vm12  ;;  %v4741_v21 = vld [vmem:[%s9295_s12 + $0x70] sm:$0xff] }
 0x793   : > { %v4462_v15 = vsub.f32 1.0, %v4461_v20  ;;  %vm4486_vm14 = vmor %vm4484_vm15, %vm4485_vm2  ;;  %vm4504_vm12 = vweird.f32 %v4498_v43  ;;  %v4508_v22 = vand.u32 2147483647, %v4498_v43  ;;  %v4511_v57 = vor.u32 1.1754944e-38, %v4510_v11  ;;  %v9896_v20 = vld [vmem:[#allocation84_spill] sm:$0xff] }
 0x794   : > { %v4481_v53 = vsub.f32 1.0, %v4480_v24  ;;  %6324 = vmatmul.msk.bf16.gmra.mxu0 %vm9096_vm5, %v6323_v26 }
 0x795   : > { %v4463_v5 = vmul.f32 %v6922_v18, %v4462_v15  ;;  %vm4509_vm10 = vcmp.eq.f32.partialorder %v4508_v22, 8.507059e+37  ;;  %v9898_v15 = vld [vmem:[#allocation74_spill] sm:$0xff] }
 0x796   : > { %v4482_v54 = vmul.f32 %v6924_v60, %v4481_v53  ;;  %v6335_v26 = vpack.c.bf16 %v9898_v15, %v9897_v33  ;;  %v4739_v53 = vld [vmem:[%s9295_s12 + $0x60] sm:$0xff] }
 0x797   : > { %v6926_v55 = vpop.eup %6925  ;;  %v4464_v0 = vadd.f32 %v6922_v18, %v4463_v5  ;;  %v4734_v5 = vld [vmem:[%s9295_s12 + $0x38] sm:$0xff] }
 0x798   : > { %v4483_v30 = vadd.f32 %v6924_v60, %v4482_v54  ;;  %v4500_v31 = vmul.f32 %v6926_v55, %v4498_v43  ;;  %v6928_v48 = vpop.eup %6927  ;;  %vm4505_vm9 = vweird.f32 %v6926_v55  ;;  %v4742_v43 = vld [vmem:[%s9295_s12 + $0x78] sm:$0xff]  ;;  %v4732_v54 = vld [vmem:[%s9295_s12 + $0x28] sm:$0xff] }
 0x799   : > { %v4468_v12 = vsel %vm4467_vm3, %v6922_v18, %v4464_v0  ;;  %vm4506_vm2 = vmor %vm4504_vm12, %vm4505_vm9  ;;  %v9894_v18 = vld [vmem:[#allocation69_spill] sm:$0xff]  ;;  %4743 = vmatpush.msra.mxu2 %v4742_v43  ;;  %v4729_v0 = vld [vmem:[%s9295_s12 + $0x10] sm:$0xff] }
 0x79a   : > { %v4473_v39 = vsel %vm4470_vm1, %v4472_v63, %v4468_v12  ;;  %v4487_v28 = vsel %vm4486_vm14, %v6924_v60, %v4483_v30  ;;  %v4501_v3 = vsub.f32 1.0, %v4500_v31  ;;  %v6329_v56 = vpack.c.bf16 %v9894_v18, %v8914_v41  ;;  %v9895_v60 = vld [vmem:[#allocation30_spill] sm:$0xff]  ;;  %v4727_v30 = vld [vmem:[%s9295_s12] sm:$0xff]  ;;  %v4670_v31 = vpop.f32.mrf.mxu0 }
 0x79b   : > { %v4492_v1 = vsel %vm4489_vm6, %v4491_v49, %v4487_v28  ;;  %v4515_v29 = vmul.f32 %v6928_v48, %v4473_v39  ;;  %4744 = vmatpush.msra.mxu2 %v4741_v21  ;;  %v6332_v24 = vpack.c.bf16 %v9896_v20, %v9895_v60  ;;  %v4728_v63 = vld [vmem:[%s9295_s12 + $0x8] sm:$0xff]  ;;  %v6674_v12 = vld [vmem:[%s9899_s20] ss:$0 sm:$0xff] }
 0x79c   : > { %v4514_v32 = vmul.f32 %v4492_v1, %v4270_v23  ;;  %v4502_v17 = vmul.f32 %v6926_v55, %v4501_v3  ;;  %v4671_v48 = vadd.f32 %v6674_v12, %v4670_v31 }
 0x79d   : > { %4745 = vmatpush.msra.mxu2 %v4740_v4 }
 0x79e   : > { %v4516_v14 = vadd.f32 %v4515_v29, %v4514_v32  ;;  %v4503_v19 = vadd.f32 %v6926_v55, %v4502_v17 }
 0x79f   : > { %4746 = vmatpush.msra.mxu2 %v4739_v53 }
 0x7a0   : > { %6929 = vtanh.f32 %v4516_v14  ;;  %v4507_v38 = vsel %vm4506_vm2, %v6926_v55, %v4503_v19  ;;  %v4730_v55 = vld [vmem:[%s9295_s12 + $0x18] sm:$0xff] }
 0x7a1   : > { %v4512_v8 = vsel %vm4509_vm10, %v4511_v57, %v4507_v38  ;;  %4747 = vmatpush.msra.mxu2 %v4738_v61 }
 0x7a2   : > { %v4672_v49 = vpop.f32.mrf.mxu0 }
 0x7a3   : > { %4748 = vmatpush.msra.mxu2 %v4737_v25  ;;  %v4673_v23 = vadd.f32 %v6674_v12, %v4672_v49 }
 0x7a5   : > { %4749 = vmatpush.msra.mxu2 %v4736_v42 }
 0x7a6   : > { %v6930_v44 = vpop.eup %6929 }
 0x7a7   : > { %v9105_v16 = vmul.f32 %v6930_v44, %v4512_v8  ;;  %4750 = vmatpush.msra.mxu2 %v4735_v50 }
 0x7a9   : > { %v6326_v59 = vpack.c.bf16 %v9021_v2, %v9105_v16  ;;  %4751 = vmatpush.msra.mxu2 %v4734_v5 }
 0x7aa   : > { %v4675_v3 = vpop.f32.mrf.mxu0 }
 0x7ab   : > { %6327 = vmatmul.msk.bf16.vlgmr.msra.gmra.mxu1 %vm9039_vm13, %v6326_v59  ;;  %4752 = vmatpush.msra.mxu2 %v4733_v52  ;;  %v4676_v14 = vadd.f32 %v6674_v12, %v4675_v3 }
 0x7ad   : > { %4753 = vmatpush.msra.mxu2 %v4732_v54 }
 0x7af   : > { %4754 = vmatpush.msra.mxu2 %v4731_v34 }
 0x7b1   : > { %4755 = vmatpush.msra.mxu2 %v4730_v55 }
 0x7b2   : > { %v4677_v17 = vpop.f32.mrf.mxu0 }
 0x7b3   : > { %4756 = vmatpush.msra.mxu2 %v4729_v0  ;;  %v4678_v38 = vadd.f32 %v6674_v12, %v4677_v17 }
 0x7b5   : > { %4757 = vmatpush.msra.mxu2 %v4728_v63 }
 0x7b7   : > { %4758 = vmatpush.msra.mxu2 %v4727_v30 }
 0x7ba   : > { %v4680_v57 = vpop.f32.mrf.mxu0 }
 0x7bb   : > { %6330 = vmatmul.msk.bf16.gmra.mxu1 %vm9051_vm8, %v6329_v56  ;;  %v4681_v56 = vadd.f32 %v6674_v12, %v4680_v57 }
 0x7cb   : > { %6333 = vmatmul.msk.bf16.gmra.mxu1 %vm9063_vm7, %v6332_v24  ;;  %v4682_v24 = vpop.f32.mrf.mxu0 }
 0x7db   : > { %6336 = vmatmul.msk.bf16.gmra.mxu1 %vm9096_vm5, %v6335_v26  ;;  %v4683_v26 = vadd.f32 %v6674_v12, %v4682_v24 }
 0x811   : > { %v4685_v42 = vpop.f32.mrf.mxu0 }
 0x812   : > { %v4686_v50 = vadd.f32 %v6674_v12, %v4685_v42 }
 0x819   : > { %v4687_v34 = vpop.f32.mrf.mxu0 }
 0x81a   : > { %v4688_v55 = vadd.f32 %v6674_v12, %v4687_v34 }
 0x828   : > { %v4699_v39 = vpop.f32.mrf.mxu1 }
 0x829   : > { %v4700_v28 = vadd.f32 %v4699_v39, %v4671_v48 }
 0x82b   : > { %6931 = vtanh.f32 %v4700_v28 }
 0x830   : > { %v4701_v1 = vpop.f32.mrf.mxu1 }
 0x831   : > { %v6932_v29 = vpop.eup %6931  ;;  %v4702_v32 = vadd.f32 %v4701_v1, %v4673_v23  ;;  %v9900_v1 = vld [vmem:[#allocation110_spill] sm:$0xff] }
 0x832   : > { %4759 = vmatmul.f32.vlgmr.msra.gmra.mxu2 %v6932_v29  ;;  %vm9901_vm13 = vcmp.gt.s32.totalorder %v9900_v1, 0  ;;  %vm9902_vm8 = vcmp.gt.s32.totalorder %v9900_v1, 1  ;;  %vm9903_vm7 = vcmp.gt.s32.totalorder %v9900_v1, 2  ;;  %vm9904_vm5 = vcmp.gt.s32.totalorder %v9900_v1, 3 }
 0x833   : > { %6933 = vtanh.f32 %v4702_v32  ;;  %vm9905_vm15 = vcmp.gt.s32.totalorder %v9900_v1, 4  ;;  %vm9906_vm3 = vcmp.gt.s32.totalorder %v9900_v1, 5  ;;  %vm9907_vm14 = vcmp.gt.s32.totalorder %v9900_v1, 6  ;;  %vm9909_vm6 = vmmov %vm9901_vm13 }
 0x834   : > { %vm9908_vm1 = vcmp.gt.s32.totalorder %v9900_v1, 7  ;;  %vm9910_vm0 = vmmov %vm9902_vm8 }
 0x835   : > { %vm9911_vm9 = vmmov %vm9903_vm7 }
 0x836   : > { %vm9912_vm12 = vmmov %vm9904_vm5 }
 0x837   : > { %vm9913_vm2 = vmmov %vm9905_vm15 }
 0x838   : > { %v4704_v19 = vpop.f32.mrf.mxu1  ;;  %vm9914_vm10 = vmmov %vm9906_vm3 }
 0x839   : > { %v6934_v11 = vpop.eup %6933  ;;  %v4705_v22 = vadd.f32 %v4704_v19, %v4676_v14 }
 0x83a   : > { %4762 = vmatmul.f32.gmra.mxu2 %v6934_v11 }
 0x83b   : > { %6935 = vtanh.f32 %v4705_v22 }
 0x840   : > { %v4706_v44 = vpop.f32.mrf.mxu1 }
 0x841   : > { %v6936_v8 = vpop.eup %6935  ;;  %v4707_v59 = vadd.f32 %v4706_v44, %v4678_v38 }
 0x842   : > { %4765 = vmatmul.f32.gmra.mxu2 %v6936_v8 }
 0x843   : > { %6937 = vtanh.f32 %v4707_v59 }
 0x848   : > { %v4709_v43 = vpop.f32.mrf.mxu1 }
 0x849   : > { %v6938_v21 = vpop.eup %6937  ;;  %v4710_v4 = vadd.f32 %v4709_v43, %v4681_v56 }
 0x84a   : > { %4768 = vmatmul.f32.gmra.mxu2 %v6938_v21 }
 0x84b   : > { %6939 = vtanh.f32 %v4710_v4 }
 0x850   : > { %v4711_v53 = vpop.f32.mrf.mxu1 }
 0x851   : > { %v6940_v61 = vpop.eup %6939  ;;  %v4712_v25 = vadd.f32 %v4711_v53, %v4683_v26 }
 0x852   : > { %4771 = vmatmul.f32.gmra.mxu2 %v6940_v61 }
 0x853   : > { %6941 = vtanh.f32 %v4712_v25 }
 0x858   : > { %v4714_v5 = vpop.f32.mrf.mxu1 }
 0x859   : > { %v6942_v52 = vpop.eup %6941  ;;  %v4715_v54 = vadd.f32 %v4714_v5, %v4686_v50 }
 0x85a   : > { %4774 = vmatmul.f32.gmra.mxu2 %v6942_v52 }
 0x85b   : > { %6943 = vtanh.f32 %v4715_v54 }
 0x860   : > { %v4716_v0 = vpop.f32.mrf.mxu1 }
 0x861   : > { %v6944_v63 = vpop.eup %6943  ;;  %v4717_v30 = vadd.f32 %v4716_v0, %v4688_v55 }
 0x862   : > { %4777 = vmatmul.f32.gmra.mxu2 %v6944_v63 }
 0x863   : > { %6945 = vtanh.f32 %v4717_v30 }
 0x869   : > { %v6946_v31 = vpop.eup %6945 }
 0x86a   : > { %4780 = vmatmul.f32.gmra.mxu2 %v6946_v31 }
 0x8b5   : > { %v4760_v49 = vpop.f32.mrf.mxu2 }
 0x8b6   : > { %v4784_v29 = vsel %vm9901_vm13, %v4760_v49, -1e+30  ;;  %vm9915_vm13 = vmmov %vm9907_vm14 }
 0x8b7   : > { %v4785_v12 = vmax.f32 %v4784_v29, -1e+30 }
 0x8bd   : > { %v4763_v48 = vpop.f32.mrf.mxu2 }
 0x8be   : > { %v4786_v32 = vsel %vm9902_vm8, %v4763_v48, -1e+30  ;;  %vm9916_vm8 = vmmov %vm9908_vm1 }
 0x8bf   : > { %v4787_v14 = vmax.f32 %v4785_v12, %v4786_v32 }
 0x8c5   : > { %v4766_v39 = vpop.f32.mrf.mxu2 }
 0x8c6   : > { %v4788_v17 = vsel %vm9903_vm7, %v4766_v39, -1e+30 }
 0x8c7   : > { %v4789_v11 = vmax.f32 %v4787_v14, %v4788_v17 }
 0x8cd   : > { %v4769_v28 = vpop.f32.mrf.mxu2 }
 0x8ce   : > { %v4790_v19 = vsel %vm9904_vm5, %v4769_v28, -1e+30 }
 0x8cf   : > { %v4791_v57 = vmax.f32 %v4789_v11, %v4790_v19 }
 0x8d5   : > { %v4772_v3 = vpop.f32.mrf.mxu2 }
 0x8d6   : > { %v4792_v38 = vsel %vm9905_vm15, %v4772_v3, -1e+30 }
 0x8d7   : > { %v4793_v8 = vmax.f32 %v4791_v57, %v4792_v38 }
 0x8dd   : > { %v4775_v23 = vpop.f32.mrf.mxu2 }
 0x8de   : > { %v4794_v44 = vsel %vm9906_vm3, %v4775_v23, -1e+30 }
 0x8df   : > { %v4795_v56 = vmax.f32 %v4793_v8, %v4794_v44 }
 0x8e5   : > { %v4778_v22 = vpop.f32.mrf.mxu2 }
 0x8e6   : > { %v4796_v59 = vsel %vm9907_vm14, %v4778_v22, -1e+30  ;;  %vm9919_vm14 = vcmp.eq.s32.totalorder %v9865_v58, 1 }
 0x8e7   : > { %v4797_v43 = vmax.f32 %v4795_v56, %v4796_v59 }
 0x8ed   : > { %v4781_v21 = vpop.f32.mrf.mxu2 }
 0x8ee   : > { %v4798_v4 = vsel %vm9908_vm1, %v4781_v21, -1e+30  ;;  %vm9920_vm1 = vmmov %vm9919_vm14 }
 0x8ef   : > { %v4799_v24 = vmax.f32 %v4797_v43, %v4798_v4 }
 0x8f1   : > { %v4800_v26 = vsub.f32 %v4760_v49, %v4799_v24  ;;  %v4805_v53 = vsub.f32 %v4763_v48, %v4799_v24  ;;  %v4810_v61 = vsub.f32 %v4766_v39, %v4799_v24  ;;  %v4815_v25 = vsub.f32 %v4769_v28, %v4799_v24 }
 0x8f2   : > { %v4820_v5 = vsub.f32 %v4772_v3, %v4799_v24  ;;  %v4825_v34 = vsub.f32 %v4775_v23, %v4799_v24  ;;  %v4830_v0 = vsub.f32 %v4778_v22, %v4799_v24  ;;  %v4835_v63 = vsub.f32 %v4781_v21, %v4799_v24 }
 0x8f3   : > { %v4801_v42 = vmul.f32 1.442695, %v4800_v26  ;;  %v4806_v50 = vmul.f32 1.442695, %v4805_v53  ;;  %v4811_v52 = vmul.f32 1.442695, %v4810_v61 }
 0x8f4   : > { %v4816_v54 = vmul.f32 1.442695, %v4815_v25  ;;  %v4821_v55 = vmul.f32 1.442695, %v4820_v5  ;;  %v4826_v30 = vmul.f32 1.442695, %v4825_v34 }
 0x8f5   : > { %6947 = vpow2.f32 %v4801_v42  ;;  %v4831_v31 = vmul.f32 1.442695, %v4830_v0  ;;  %v4836_v39 = vmul.f32 1.442695, %v4835_v63 }
 0x8f6   : > { %6949 = vpow2.f32 %v4806_v50 }
 0x8f7   : > { %6951 = vpow2.f32 %v4811_v52 }
 0x8f8   : > { %6953 = vpow2.f32 %v4816_v54 }
 0x8f9   : > { %6955 = vpow2.f32 %v4821_v55 }
 0x8fa   : > { %6957 = vpow2.f32 %v4826_v30 }
 0x8fb   : > { %v6948_v49 = vpop.eup %6947  ;;  %6959 = vpow2.f32 %v4831_v31 }
 0x8fc   : > { %v6950_v48 = vpop.eup %6949  ;;  %v4803_v28 = vsel %vm9909_vm6, %v6948_v49, 0.0  ;;  %6961 = vpow2.f32 %v4836_v39  ;;  %vm9921_vm6 = vcmp.eq.s32.totalorder %v9863_v9, 1  ;;  %v3506_v9 = vsel %vm3505_vm11, %v9870_v40, 0.0 }
 0x8fd   : > { %v6952_v3 = vpop.eup %6951  ;;  %v4808_v23 = vsel %vm9910_vm0, %v6950_v48, 0.0  ;;  %vm9922_vm0 = vmmov %vm9921_vm6 }
 0x8fe   : > { %v6954_v29 = vpop.eup %6953  ;;  %v4809_v32 = vadd.f32 %v4808_v23, %v4803_v28  ;;  %v4813_v12 = vsel %vm9911_vm9, %v6952_v3, 0.0  ;;  %v9917_v3 = vld [vmem:[#allocation124_spill] sm:$0xff]  ;;  %vm9923_vm9 = vcmp.eq.s32.totalorder %v9858_v62, 1  ;;  %v3763_v62 = vsel %vm3512_vm4, %v9874_v27, 0.0 }
 0x8ff   : > { %v6956_v17 = vpop.eup %6955  ;;  %v4818_v19 = vsel %vm9912_vm12, %v6954_v29, 0.0  ;;  %v4971_v29 = vmul.f32 %v9917_v3, %v9917_v3  ;;  %vm9924_vm12 = vmmov %vm9923_vm9 }
 0x900   : > { %v4814_v14 = vadd.f32 %v4813_v12, %v4809_v32  ;;  %v6958_v11 = vpop.eup %6957  ;;  %v4823_v38 = vsel %vm9913_vm2, %v6956_v17, 0.0  ;;  %v9918_v32 = vld [vmem:[#allocation21_spill] sm:$0xff] }
 0x901   : > { %v6960_v57 = vpop.eup %6959  ;;  %v4828_v8 = vsel %vm9914_vm10, %v6958_v11, 0.0 }
 0x902   : > { %v4819_v22 = vadd.f32 %v4818_v19, %v4814_v14  ;;  %v6962_v59 = vpop.eup %6961  ;;  %v4833_v43 = vsel %vm9915_vm13, %v6960_v57, 0.0  ;;  %vm9929_vm13 = vcmp.eq.s32.totalorder %v9889_v51, 1 }
 0x903   : > { %v4838_v4 = vsel %vm9916_vm8, %v6962_v59, 0.0  ;;  %vm9930_vm8 = vmmov %vm9929_vm13 }
 0x904   : > { %v4824_v44 = vadd.f32 %v4823_v38, %v4819_v22  ;;  %v2714_v22 = vsel %vm9921_vm6, %v9861_v13, 0.0  ;;  %v3242_v13 = vsel %vm9924_vm12, %v9869_v46, 0.0  ;;  %v3513_v46 = vsel %vm3512_vm4, %v9895_v60, 0.0 }
 0x905   : > { %vm9927_vm4 = vcmp.eq.s32.totalorder %v9884_v47, 1 }
 0x906   : > { %v4829_v56 = vadd.f32 %v4828_v8, %v4824_v44  ;;  %v2985_v7 = vsel %vm9927_vm4, %v9897_v33, 0.0  ;;  %vm9928_vm10 = vmmov %vm9927_vm4 }
 0x907   : > { %v4267_v60 = vsel %vm9928_vm10, %v8996_v10, 0.0 }
 0x908   : > { %v4834_v21 = vadd.f32 %v4833_v43, %v4829_v56 }
 0x90a   : > { %v4839_v24 = vadd.f32 %v4838_v4, %v4834_v21 }
 0x90c   : > { %v4840_v26 = vadd.f32 1e-30, %v4839_v24 }
 0x90e   : > { %6963 = vrcp.f32 %v4840_v26  ;;  %v4852_v42 = vand.u32 2147483648, %v4840_v26  ;;  %v4850_v5 = vand.u32 2147483647, %v4840_v26  ;;  %vm4846_vm5 = vweird.f32 %v4840_v26 }
 0x910   : > { %v4853_v54 = vor.u32 1.1754944e-38, %v4852_v42  ;;  %vm4851_vm3 = vcmp.eq.f32.partialorder %v4850_v5, 8.507059e+37 }
 0x914   : > { %v6964_v53 = vpop.eup %6963 }
 0x915   : > { %v4842_v61 = vmul.f32 %v6964_v53, %v4840_v26  ;;  %vm4847_vm7 = vweird.f32 %v6964_v53 }
 0x916   : > { %vm4848_vm15 = vmor %vm4846_vm5, %vm4847_vm7 }
 0x917   : > { %v4843_v25 = vsub.f32 1.0, %v4842_v61 }
 0x919   : > { %v4844_v50 = vmul.f32 %v6964_v53, %v4843_v25 }
 0x91b   : > { %v4845_v52 = vadd.f32 %v6964_v53, %v4844_v50 }
 0x91d   : > { %v4849_v34 = vsel %vm4848_vm15, %v6964_v53, %v4845_v52 }
 0x91e   : > { %v4854_v55 = vsel %vm4851_vm3, %v4853_v54, %v4849_v34 }
 0x91f   : > { %v4876_v0 = vmul.f32 %v4854_v55, %v4813_v12  ;;  %v4866_v1 = vmul.f32 %v4854_v55, %v4808_v23  ;;  %v4856_v63 = vmul.f32 %v4854_v55, %v4803_v28  ;;  %v4906_v30 = vmul.f32 %v4854_v55, %v4828_v8 }
 0x920   : > { %v4896_v31 = vmul.f32 %v4854_v55, %v4823_v38  ;;  %v4886_v49 = vmul.f32 %v4854_v55, %v4818_v19  ;;  %v4926_v48 = vmul.f32 %v4854_v55, %v4838_v4  ;;  %v4916_v39 = vmul.f32 %v4854_v55, %v4833_v43 }
 0x921   : > { %4879 = vperm.xlu2 %6673, %v4876_v0   ;;  %4869 = vperm.xlu1 %6672, %v4866_v1   ;;  %v4970_v23 = vmul.f32 %v9918_v32, %v9918_v32  ;;  %v4269_v12 = vsel %vm9919_vm14, %v9021_v2, 0.0  ;;  %v2978_v19 = vsel %vm9920_vm1, %v9862_v6, 0.0  ;;  %v4520_v38 = vsel %vm9922_vm0, %v9105_v16, 0.0 }
 0x922   : > { %4859 = vperm.xlu0 %6671, %v4856_v63   ;;  %v4017_v2 = vsel %vm9923_vm9, %v8914_v41, 0.0  ;;  %v3765_v16 = vsel %vm3505_vm11, %v9894_v18, 0.0  ;;  %vm9925_vm11 = vcmp.eq.s32.totalorder %v9853_v37, 1  ;;  %v2721_v37 = vsel %vm9929_vm13, %v9898_v15, 0.0 }
 0x923   : > { %v4972_v28 = vadd.f32 %v4971_v29, %v4970_v23  ;;  %v4015_v36 = vsel %vm9925_vm11, %v8872_v45, 0.0  ;;  %vm9926_vm2 = vmmov %vm9925_vm11  ;;  %vm5021_vm11 = vcmask 7168  }
 0x924   : > { %v3249_v54 = vsel %vm9926_vm2, %v9896_v20, 0.0  ;;  %v4519_v20 = vsel %vm9930_vm8, %v9088_v35, 0.0  ;;  %vm5023_vm2 = vcmask 15360  }
 0x929   : > { %4909 = vperm.xlu2 %6673, %v4906_v30   ;;  %4899 = vperm.xlu1 %6672, %v4896_v31  }
 0x92a   : > { %4889 = vperm.xlu0 %6671, %v4886_v49  }
 0x931   : > { %4929 = vperm.xlu1 %6672, %v4926_v48  }
 0x932   : > { %4919 = vperm.xlu0 %6671, %v4916_v39  }
 0x952   : > { %4973 = vadd.xlane.f32.xlu2 %v4972_v28 }
 0x97b   : > { %v4880_v14 = vpop.permute.xlu2 %4879 }
 0x97c   : > { %v4883_v56 = vmul.f32 %v4880_v14, %v4017_v2  ;;  %v4882_v21 = vmul.f32 %v4880_v14, %v3242_v13 }
 0x983   : > { %v4910_v61 = vpop.permute.xlu2 %4909 }
 0x984   : > { %v4912_v18 = vmul.f32 %v4910_v61, %v4015_v36  ;;  %v4913_v27 = vmul.f32 %v4910_v61, %v3249_v54  ;;  %v4936_v54 = vld [vmem:[%s588_s24] sm:$0xff] }
 0x993   : > { %v4870_v17 = vpop.permute.xlu1 %4869 }
 0x994   : > { %v4873_v11 = vmul.f32 %v4870_v17, %v4269_v12  ;;  %v4860_v57 = vpop.permute.xlu0 %4859  ;;  %v4872_v44 = vmul.f32 %v4870_v17, %v2978_v19 }
 0x995   : > { %v4862_v8 = vmul.f32 %v4860_v57, %v2714_v22  ;;  %v4863_v59 = vmul.f32 %v4860_v57, %v4520_v38 }
 0x997   : > { %v4875_v58 = vadd.f32 %v4873_v11, %v4863_v59  ;;  %v4874_v6 = vadd.f32 %v4872_v44, %v4862_v8 }
 0x999   : > { %v4885_v43 = vadd.f32 %v4883_v56, %v4875_v58  ;;  %v4884_v41 = vadd.f32 %v4882_v21, %v4874_v6 }
 0x99b   : > { %v4900_v4 = vpop.permute.xlu1 %4899 }
 0x99c   : > { %v4890_v24 = vpop.permute.xlu0 %4889  ;;  %v4902_v25 = vmul.f32 %v4900_v4, %v3763_v62  ;;  %v4903_v42 = vmul.f32 %v4900_v4, %v3513_v46 }
 0x99d   : > { %v4892_v26 = vmul.f32 %v4890_v24, %v3506_v9  ;;  %v4893_v53 = vmul.f32 %v4890_v24, %v3765_v16 }
 0x99f   : > { %v4894_v40 = vadd.f32 %v4892_v26, %v4884_v41  ;;  %v4895_v50 = vadd.f32 %v4893_v53, %v4885_v43 }
 0x9a1   : > { %v4904_v5 = vadd.f32 %v4902_v25, %v4894_v40  ;;  %v4905_v52 = vadd.f32 %v4903_v42, %v4895_v50 }
 0x9a3   : > { %v4914_v34 = vadd.f32 %v4912_v18, %v4904_v5  ;;  %v4930_v55 = vpop.permute.xlu1 %4929  ;;  %v4915_v45 = vadd.f32 %v4913_v27, %v4905_v52 }
 0x9a4   : > { %v4920_v0 = vpop.permute.xlu0 %4919  ;;  %v4932_v30 = vmul.f32 %v4930_v55, %v4519_v20  ;;  %v4933_v31 = vmul.f32 %v4930_v55, %v2721_v37 }
 0x9a5   : > { %v4922_v1 = vmul.f32 %v4920_v0, %v4267_v60  ;;  %v4923_v63 = vmul.f32 %v4920_v0, %v2985_v7 }
 0x9a7   : > { %v4924_v49 = vadd.f32 %v4922_v1, %v4914_v34  ;;  %v4925_v33 = vadd.f32 %v4923_v63, %v4915_v45  ;;  %v4960_v34 = vsub.f32 1.0, %v4936_v54 }
 0x9a9   : > { %v4934_v48 = vadd.f32 %v4932_v30, %v4924_v49  ;;  %v4935_v39 = vadd.f32 %v4933_v31, %v4925_v33 }
 0x9ab   : > { %v4987_v47 = vmul.f32 %v4934_v48, %v4934_v48  ;;  %v4988_v10 = vmul.f32 %v4935_v39, %v4935_v39  ;;  %v4965_v29 = vmul.f32 %v4934_v48, %v9918_v32  ;;  %v4966_v23 = vmul.f32 %v4935_v39, %v9917_v3 }
 0x9ac   : > { %v4937_v28 = vsub.f32 %v9918_v32, %v4934_v48  ;;  %v4938_v15 = vsub.f32 %v9917_v3, %v4935_v39 }
 0x9ad   : > { %v4989_v12 = vadd.f32 %v4988_v10, %v4987_v47  ;;  %v4967_v17 = vadd.f32 %v4966_v23, %v4965_v29 }
 0x9ae   : > { %v4939_v51 = vmul.f32 %v4937_v28, %v4937_v28  ;;  %v4940_v35 = vmul.f32 %v4938_v15, %v4938_v15 }
 0x9af   : > { %4990 = vadd.xlane.f32.xlu0 %v4989_v12  ;;  %4968 = vadd.xlane.f32.xlu2 %v4967_v17 }
 0x9b0   : > { %v4941_v14 = vadd.f32 %v4940_v35, %v4939_v51 }
 0x9b2   : > { %4942 = vadd.xlane.f32.xlu1 %v4941_v14 }
 0x9c5   : > { %v4974_v19 = vpop.xlane.xlu2 %4973 }
 0x9c6   : > { %6965 = vrsqrt.f32 %v4974_v19  ;;  %vm4982_vm7 = vcmp.eq.f32.partialorder %v4974_v19, inf  ;;  %v4985_v53 = vand.u32 2147483648, %v4974_v19  ;;  %vm4984_vm15 = vcmp.eq.f32.partialorder %v4974_v19, 0.0 }
 0x9cc   : > { %v6966_v11 = vpop.eup %6965 }
 0x9cd   : > { %v4976_v22 = vmul.f32 %v6966_v11, %v4974_v19 }
 0x9cf   : > { %v4977_v38 = vmul.f32 %v6966_v11, %v4976_v22 }
 0x9d1   : > { %v4978_v44 = vmul.f32 0.5, %v4977_v38 }
 0x9d3   : > { %v4979_v59 = vsub.f32 1.5, %v4978_v44 }
 0x9d5   : > { %v4980_v56 = vmul.f32 %v6966_v11, %v4979_v59 }
 0x9d7   : > { %v4981_v21 = vmul.f32 %v4980_v56, %v4974_v19 }
 0x9d9   : > { %v4983_v41 = vsel %vm4982_vm7, %v4974_v19, %v4981_v21 }
 0x9da   : > { %v4986_v25 = vsel %vm4984_vm15, %v4985_v53, %v4983_v41 }
 0xa22   : > { %v4991_v57 = vpop.xlane.xlu0 %4990  ;;  %v4969_v10 = vpop.xlane.xlu2 %4968 }
 0xa23   : > { %6967 = vrsqrt.f32 %v4991_v57  ;;  %vm4999_vm5 = vcmp.eq.f32.partialorder %v4991_v57, inf  ;;  %v5002_v61 = vand.u32 2147483648, %v4991_v57  ;;  %vm5001_vm3 = vcmp.eq.f32.partialorder %v4991_v57, 0.0 }
 0xa25   : > { %v4943_v8 = vpop.xlane.xlu1 %4942 }
 0xa26   : > { %v4944_v32 = vadd.f32 1e-12, %v4943_v8  ;;  %v4959_v31 = vmul.f32 %v4943_v8, %v4936_v54 }
 0xa28   : > { %6969 = vrsqrt.f32 %v4944_v32  ;;  %vm4952_vm14 = vcmp.eq.f32.partialorder %v4944_v32, inf  ;;  %v4955_v52 = vand.u32 2147483648, %v4944_v32  ;;  %vm4954_vm1 = vcmp.eq.f32.partialorder %v4944_v32, 0.0 }
 0xa29   : > { %v6968_v3 = vpop.eup %6967 }
 0xa2a   : > { %v4993_v2 = vmul.f32 %v6968_v3, %v4991_v57 }
 0xa2c   : > { %v4994_v58 = vmul.f32 %v6968_v3, %v4993_v2 }
 0xa2e   : > { %v6970_v6 = vpop.eup %6969  ;;  %v4995_v43 = vmul.f32 0.5, %v4994_v58 }
 0xa2f   : > { %v4946_v13 = vmul.f32 %v6970_v6, %v4944_v32 }
 0xa30   : > { %v4996_v4 = vsub.f32 1.5, %v4995_v43 }
 0xa31   : > { %v4947_v9 = vmul.f32 %v6970_v6, %v4946_v13 }
 0xa32   : > { %v4997_v16 = vmul.f32 %v6968_v3, %v4996_v4 }
 0xa33   : > { %v4948_v24 = vmul.f32 0.5, %v4947_v9 }
 0xa34   : > { %v4998_v26 = vmul.f32 %v4997_v16, %v4991_v57 }
 0xa35   : > { %v4949_v62 = vsub.f32 1.5, %v4948_v24 }
 0xa36   : > { %v5000_v46 = vsel %vm4999_vm5, %v4991_v57, %v4998_v26 }
 0xa37   : > { %v5003_v42 = vsel %vm5001_vm3, %v5002_v61, %v5000_v46  ;;  %v4950_v40 = vmul.f32 %v6970_v6, %v4949_v62 }
 0xa38   : > { %v5004_v50 = vmul.f32 %v5003_v42, %v4986_v25 }
 0xa39   : > { %v4951_v36 = vmul.f32 %v4950_v40, %v4944_v32 }
 0xa3a   : > { %v5005_v18 = vadd.f32 1e-12, %v5004_v50 }
 0xa3b   : > { %v4953_v5 = vsel %vm4952_vm14, %v4944_v32, %v4951_v36 }
 0xa3c   : > { %6971 = vrcp.f32 %v5005_v18  ;;  %v4956_v27 = vsel %vm4954_vm1, %v4955_v52, %v4953_v5  ;;  %v5017_v37 = vand.u32 2147483648, %v5005_v18  ;;  %v5015_v30 = vand.u32 2147483647, %v5005_v18 }
 0xa3d   : > { %v4957_v55 = vsub.f32 1.0, %v4956_v27  ;;  %vm5011_vm0 = vweird.f32 %v5005_v18 }
 0xa3e   : > { %v5018_v48 = vor.u32 1.1754944e-38, %v5017_v37  ;;  %vm5016_vm12 = vcmp.eq.f32.partialorder %v5015_v30, 8.507059e+37 }
 0xa3f   : > { %v4958_v7 = vmax.f32 %v4957_v55, 0.0 }
 0xa41   : > { %v4961_v0 = vmul.f32 %v4960_v34, %v4958_v7 }
 0xa42   : > { %v6972_v60 = vpop.eup %6971 }
 0xa43   : > { %v5007_v45 = vmul.f32 %v6972_v60, %v5005_v18  ;;  %v4962_v63 = vmul.f32 %v4961_v0, %v4958_v7  ;;  %vm5012_vm6 = vweird.f32 %v6972_v60 }
 0xa44   : > { %vm5013_vm9 = vmor %vm5011_vm0, %vm5012_vm6 }
 0xa45   : > { %v5008_v1 = vsub.f32 1.0, %v5007_v45  ;;  %v4963_v33 = vadd.f32 %v4962_v63, %v4959_v31 }
 0xa47   : > { %v5009_v20 = vmul.f32 %v6972_v60, %v5008_v1  ;;  %v4964_v23 = vmul.f32 0.5, %v4963_v33 }
 0xa49   : > { %v5010_v49 = vadd.f32 %v6972_v60, %v5009_v20 }
 0xa4b   : > { %v5014_v39 = vsel %vm5013_vm9, %v6972_v60, %v5010_v49 }
 0xa4c   : > { %v5019_v47 = vsel %vm5016_vm12, %v5018_v48, %v5014_v39 }
 0xa4d   : > { %v5020_v29 = vmul.f32 %v5019_v47, %v4969_v10 }
 0xa4f   : > { %v5022_v28 = vsel %vm5021_vm11, %v4964_v23, %v5020_v29 }
 0xa50   : > { %5024 = vst.msk [vmem:[%s592_s25] sm:$0xff] %vm5023_vm2, %v5022_v28 }
 0xa51 PF: > { %p26_p1 = scmp.ge.s32.totalorder %s7355_s30, 4   ;;  %s9933_s25 = smov %s7191_s26 }
 0xa52   : > { %s9934_s26 = smov %s7195_s27  ;;  %s9935_s27 = smov %s7366_s17 }
 0xa53   : > { %s9936_s28 = smov %s7355_s30  ;;  %28 = sbr.rel (!%p26_p1) target bundleno = 12 (0xc), region = 141 }
 0xa58   :  { %5044 = vsyncpa [#allocation4], 1 }
 0xa59   :  { %5046 = vsyncpa [#allocation4 + $0x1], 1 }
 0xa5a   :  { %5047 = vsyncpa [#allocation6], 1 }
 0xa5b   :  { %5048 = vsyncpa [#allocation9], 1 }
 0xa5c   :  { %5049 = vsyncpa [#allocation12], 1 }

</bundles_post_ra>
